<compile_context>
chip_gen: v7x
topology: tpu7x:2x2x1
jax: 0.10.0
libtpu: 0.0.40
codegen_flags: <defaults>
</compile_context>

<pallas_src>
import functools

import jax
import jax.numpy as jnp
from jax import lax
from jax.experimental import pallas as pl
from jax.experimental.pallas import tpu as pltpu

MULTIPLIER = 1000.0   # DIB-R linear_rasterizer default
DELTA = 7000.0        # DIB-R linear_rasterizer default
SCALE = (MULTIPLIER * MULTIPLIER) / DELTA
EXPAND = 0.02         # DIB-R linear_rasterizer default soft-silhouette window (NDC)
LANE = 128

N_COL = 8             # packed accumulator / colour-matrix width
Z_COL = 4             # column of the packed accumulator holding best-z
CNT_COL = 3           # column holding the winner count


# ----------------------------------------------------------------------------
# Device-dependent defaults
# ----------------------------------------------------------------------------
def _device_defaults():
    """Return (tile_faces, vmem_limit_bytes) sized per TPU generation."""
    try:
        vmem_cap = int(pltpu.get_tpu_info().vmem_capacity_bytes)
    except Exception:
        vmem_cap = 64 * 1024 * 1024
    if vmem_cap >= 100 * 1024 * 1024:      # v5e / v6e: 128 MiB VMEM per core
        return 512, 100 * 1024 * 1024
    return 256, 56 * 1024 * 1024           # v7x-class: 64 MiB VMEM per core


def _vpu_supports_bf16():
    """bf16 VALU/EUP exists on v6e/v7x; not on v2-v5."""
    try:
        kind = jax.devices()[0].device_kind.lower()
    except Exception:
        return False
    return not any(tag in kind for tag in ("v2", "v3", "v4", "v5"))


# ----------------------------------------------------------------------------
# Pallas rasterizer kernel.
# grid = (B, H/TH, W/TW, F/TF); face-chunk axis innermost ("arbitrary") with
# VMEM-resident accumulators and init/finalize under pl.when.
# ----------------------------------------------------------------------------
def _rasterize_kernel(bbox_ref, attrs_ref, colmat_ref, imfeat_ref, improb_ref,
                      acc_ref, kprod_ref, *, H, W, TH, TW, TF, sil_dtype):
    b = pl.program_id(0)
    tr = pl.program_id(1)
    tc = pl.program_id(2)
    f = pl.program_id(3)
    nf = pl.num_programs(3)

    col_iota = lax.broadcasted_iota(jnp.int32, (1, 1, N_COL), 2)
    is_z = (col_iota == Z_COL).astype(jnp.float32)

    # ---- init accumulators at the first face chunk of this pixel tile ----
    @pl.when(f == 0)
    def _init():
        acc_ref[...] = jnp.broadcast_to(is_z * jnp.float32(-1e30), (TH, TW, N_COL))
        kprod_ref[...] = jnp.ones((TH, TW, LANE), dtype=jnp.float32)

    # ---- scalar-prefetched chunk bbox: skip chunks that miss this tile ----
    base = (b * nf + f) * 4
    hit = ((tr >= bbox_ref[base + 0]) & (tr <= bbox_ref[base + 1]) &
           (tc >= bbox_ref[base + 2]) & (tc <= bbox_ref[base + 3]))

    @pl.when(hit)
    def _body():
        def a(k):  # one face-attribute row of chunk f, shaped (1, 1, TF)
            return attrs_ref[0, pl.ds(f, 1), k:k + 1, :]

        x0, y0, x1, y1, x2, y2 = a(0), a(1), a(2), a(3), a(4), a(5)
        z0, z1, z2 = a(6), a(7), a(8)
        nz = a(9)

        # pixel centres in NDC; row 0 maps to y=+1 (top), col 0 to x=-1.
        row = (lax.broadcasted_iota(jnp.int32, (TH, TW, 1), 0)
               + tr * TH).astype(jnp.float32)
        col = (lax.broadcasted_iota(jnp.int32, (TH, TW, 1), 1)
               + tc * TW).astype(jnp.float32)
        px = -1.0 + (2.0 * col + 1.0) / W            # (TH, TW, 1)
        py = 1.0 - (2.0 * row + 1.0) / H

        eps = jnp.float32(1e-10)

        # Barycentric weights; face-only reciprocal hoisted and guarded by the
        # validity mask (no lossy eps in the reciprocal itself).
        e12y = y1 - y2
        e21x = x2 - x1
        e20y = y2 - y0
        e02x = x0 - x2
        e02y = y0 - y2
        denom = e12y * e02x + e21x * e02y            # (1, 1, TF)
        denom_ok = jnp.abs(denom) > eps
        inv_denom = 1.0 / jnp.where(denom_ok, denom, 1.0)

        dpx = px - x2                                # (TH, TW, TF)
        dpy = py - y2
        w0 = (e12y * dpx + e21x * dpy) * inv_denom
        w1 = (e20y * dpx + e02x * dpy) * inv_denom
        w2 = 1.0 - w0 - w1

        front = nz > 0.0
        inside = (w0 >= 0.0) & (w1 >= 0.0) & (w2 >= 0.0) & denom_ok
        valid = inside & front

        # ---- z-buffer over this chunk (delta form; z-max reduced once) ----
        z_interp = z2 + w0 * (z0 - z2) + w1 * (z1 - z2)
        z_sel = jnp.where(valid, z_interp, jnp.float32(-1e30))
        bmax_k = jnp.max(z_sel, axis=-1, keepdims=True)      # (TH, TW, 1)

        winner = valid & (z_sel >= bmax_k)
        winf = winner.astype(jnp.float32)
        w0m, w1m, w2m = winf * w0, winf * w1, winf * w2

        # ---- MXU offload: [R,G,B,count,0,...] = sum_f w_vm * [c_v.rgb,1,0..] ----
        bf16 = jnp.bfloat16
        P = TH * TW

        def rhs(v):  # per-vertex colour matrix rows of chunk f: (TF, N_COL)
            return colmat_ref[0, pl.ds(f * 3 + v, 1), :, :][0].astype(bf16)

        chunk = jnp.dot(w0m.reshape(P, TF).astype(bf16), rhs(0),
                        preferred_element_type=jnp.float32)
        chunk = chunk + jnp.dot(w1m.reshape(P, TF).astype(bf16), rhs(1),
                                preferred_element_type=jnp.float32)
        chunk = chunk + jnp.dot(w2m.reshape(P, TF).astype(bf16), rhs(2),
                                preferred_element_type=jnp.float32)
        chunk = chunk.reshape(TH, TW, N_COL)

        # ---- cross-chunk z-buffer merge: new max -> replace, tie -> add ----
        acc = acc_ref[...]
        prev_best = jnp.sum(acc * is_z, axis=-1, keepdims=True)   # (TH, TW, 1)
        keep_old = 1.0 - (bmax_k > prev_best).astype(jnp.float32)
        add_chunk = (bmax_k >= prev_best).astype(jnp.float32)
        new_best = jnp.maximum(prev_best, bmax_k)
        acc_ref[...] = jnp.where(col_iota == Z_COL, new_best,
                                 keep_old * acc + add_chunk * chunk)

        # ---- soft coverage probability (DIB-R silhouette, expand window) ----
        # Chunks outside the expand window were culled by the bbox test above,
        # matching the reference expand=0.02 behaviour.
        # TODO(synk): exact DIB-R CUDA keeps only the knum nearest faces inside
        #   the window; here all windowed front faces are aggregated.
        sdt = sil_dtype

        def edge_d2(ax, ay, bx, by):
            abx_f = bx - ax                                    # face-only, f32
            aby_f = by - ay
            il2 = (1.0 / (abx_f * abx_f + aby_f * aby_f + eps)).astype(sdt)
            abx = abx_f.astype(sdt)
            aby = aby_f.astype(sdt)
            apx = (px - ax).astype(sdt)                        # f32 sub, then narrow
            apy = (py - ay).astype(sdt)
            tt = jnp.clip((apx * abx + apy * aby) * il2, 0.0, 1.0)
            dx = apx - tt * abx
            dy = apy - tt * aby
            return dx * dx + dy * dy

        d2 = jnp.minimum(edge_d2(x0, y0, x1, y1),
                         jnp.minimum(edge_d2(x1, y1, x2, y2),
                                     edge_d2(x2, y2, x0, y0)))
        d2 = jnp.where(inside, jnp.asarray(0.0, sdt), d2)
        contrib = jnp.where(front, jnp.exp(jnp.asarray(-SCALE, sdt) * d2),
                            jnp.asarray(0.0, sdt))
        keep = jnp.asarray(1.0, sdt) - contrib                 # (TH, TW, TF)
        kp = keep[:, :, 0:LANE]
        for j in range(1, TF // LANE):                         # lane-aligned folds
            kp = kp * keep[:, :, j * LANE:(j + 1) * LANE]
        kprod_ref[...] = kprod_ref[...] * kp.astype(jnp.float32)

    # ---- finalize at the last face chunk: write the output tile ----
    @pl.when(f == nf - 1)
    def _finalize():
        acc = acc_ref[...]

        def col2d(j):  # extract accumulator column j as (TH, TW)
            sel = (col_iota == j).astype(jnp.float32)
            return jnp.sum(acc * sel, axis=-1)

        cnt = col2d(CNT_COL)
        inv = 1.0 / jnp.maximum(cnt, 1.0)                      # average tied winners
        imfeat_ref[0, 0, :, :] = col2d(0) * inv
        imfeat_ref[0, 1, :, :] = col2d(1) * inv
        imfeat_ref[0, 2, :, :] = col2d(2) * inv
        # constant-1 mask attribute interpolates to exactly the coverage bit
        imfeat_ref[0, 3, :, :] = (cnt > 0.0).astype(jnp.float32)
        logk = jnp.log(jnp.clip(kprod_ref[...], 1e-20, 1.0))
        improb_ref[0, 0, :, :] = 1.0 - jnp.exp(jnp.sum(logk, axis=-1))


def rasterize_batch(attrs_bncf, colmat_b, bbox_flat, height, width, *,
                    tile_rows, tile_cols, tile_faces, vmem_limit_bytes,
                    use_bf16_silhouette):
    """attrs (B,NC,10,TF) f32, colmat (B,NC*3,TF,8) f32, bbox (B*NC*4,) i32
    -> (imfeat (B,4,H,W), improb (B,1,H,W))."""
    B, NC, C, TF = attrs_bncf.shape
    assert C == 10 and TF == tile_faces
    assert colmat_b.shape == (B, NC * 3, TF, N_COL)
    TH, TW = tile_rows, tile_cols

    kernel = functools.partial(
        _rasterize_kernel, H=height, W=width, TH=TH, TW=TW, TF=TF,
        sil_dtype=jnp.bfloat16 if use_bf16_silhouette else jnp.float32)
    grid = (B, height // TH, width // TW, NC)

    # TODO(synk): for extremely large meshes (resident attrs+colmat > VMEM
    #   budget, especially on v7x) a chunked-DMA fallback spec would be needed.
    return pl.pallas_call(
        kernel,
        out_shape=(jax.ShapeDtypeStruct((B, 4, height, width), jnp.float32),
                   jax.ShapeDtypeStruct((B, 1, height, width), jnp.float32)),
        grid_spec=pltpu.PrefetchScalarGridSpec(
            num_scalar_prefetch=1,
            grid=grid,
            in_specs=[
                # whole face-attribute slab resident per batch item
                pl.BlockSpec((1, NC, C, TF), lambda b, r, c, f, bb: (b, 0, 0, 0)),
                # per-vertex colour matrices (MXU RHS), resident per batch item
                pl.BlockSpec((1, NC * 3, TF, N_COL),
                             lambda b, r, c, f, bb: (b, 0, 0, 0)),
            ],
            out_specs=[
                pl.BlockSpec((1, 4, TH, TW), lambda b, r, c, f, bb: (b, 0, r, c)),
                pl.BlockSpec((1, 1, TH, TW), lambda b, r, c, f, bb: (b, 0, r, c)),
            ],
            scratch_shapes=[
                pltpu.VMEM((TH, TW, N_COL), jnp.float32),   # [R,G,B,cnt,best_z,..]
                pltpu.VMEM((TH, TW, LANE), jnp.float32),    # lane-parallel keep prod
            ]),
        compiler_params=pltpu.CompilerParams(
            dimension_semantics=("parallel", "parallel", "parallel", "arbitrary"),
            vmem_limit_bytes=vmem_limit_bytes),
    )(bbox_flat, attrs_bncf, colmat_b)


# ----------------------------------------------------------------------------
# Plain-JAX glue (camera transform, per-face gather, chunk bboxes, outputs)
# ----------------------------------------------------------------------------
def datanormalize(x, axis):
    return x / (jnp.sqrt(jnp.sum(x * x, axis=axis, keepdims=True)) + 1e-10)


def perspective_projection(points_1xpx3, faces_fx3, cam_rot_1x3x3,
                           cam_pos_1x3, cam_proj_3x1):
    p = points_1xpx3 - cam_pos_1x3[:, None, :]
    p = jnp.einsum('bpk,bjk->bpj', p, cam_rot_1x3x3)
    proj = cam_proj_3x1.reshape(1, 1, 3)
    xyz = p * proj
    xy = xyz[:, :, :2] / xyz[:, :, 2:3]

    pf0 = p[:, faces_fx3[:, 0], :]
    pf1 = p[:, faces_fx3[:, 1], :]
    pf2 = p[:, faces_fx3[:, 2], :]
    points3d_1xfx9 = jnp.concatenate([pf0, pf1, pf2], axis=2)

    xf0 = xy[:, faces_fx3[:, 0], :]
    xf1 = xy[:, faces_fx3[:, 1], :]
    xf2 = xy[:, faces_fx3[:, 2], :]
    points2d_1xfx6 = jnp.concatenate([xf0, xf1, xf2], axis=2)

    normal_1xfx3 = jnp.cross(pf1 - pf0, pf2 - pf0)
    return points3d_1xfx9, points2d_1xfx6, normal_1xfx3


def _chunk_bboxes(p2d_1xfx6, normalz_1xfx1, f_pad, tile_faces,
                  height, width, tile_rows, tile_cols, expand):
    """Per-chunk conservative tile bbox (NC,4) i32 = [r_lo, r_hi, c_lo, c_hi]."""
    n_f = p2d_1xfx6.shape[1]
    xs = p2d_1xfx6[0, :, 0::2]                     # (F, 3)
    ys = p2d_1xfx6[0, :, 1::2]
    valid = normalz_1xfx1[0, :, 0] > 0.0           # front faces only (matches kernel)
    finite = jnp.all(jnp.isfinite(xs), axis=1) & jnp.all(jnp.isfinite(ys), axis=1)

    big = jnp.float32(4.0)                         # beyond NDC -> acts as "everywhere"
    xs_c = jnp.clip(jnp.where(jnp.isfinite(xs), xs, 0.0), -big, big)
    ys_c = jnp.clip(jnp.where(jnp.isfinite(ys), ys, 0.0), -big, big)
    fx_lo = jnp.where(finite, jnp.min(xs_c, axis=1), -big)
    fx_hi = jnp.where(finite, jnp.max(xs_c, axis=1), big)
    fy_lo = jnp.where(finite, jnp.min(ys_c, axis=1), -big)
    fy_hi = jnp.where(finite, jnp.max(ys_c, axis=1), big)

    pad = f_pad - n_f
    valid = jnp.pad(valid, (0, pad))
    fx_lo = jnp.pad(fx_lo, (0, pad))
    fx_hi = jnp.pad(fx_hi, (0, pad))
    fy_lo = jnp.pad(fy_lo, (0, pad))
    fy_hi = jnp.pad(fy_hi, (0, pad))

    nc = f_pad // tile_faces
    v2 = valid.reshape(nc, tile_faces)
    cx_lo = jnp.min(jnp.where(v2, fx_lo.reshape(nc, tile_faces), big), axis=1)
    cx_hi = jnp.max(jnp.where(v2, fx_hi.reshape(nc, tile_faces), -big), axis=1)
    cy_lo = jnp.min(jnp.where(v2, fy_lo.reshape(nc, tile_faces), big), axis=1)
    cy_hi = jnp.max(jnp.where(v2, fy_hi.reshape(nc, tile_faces), -big), axis=1)
    has = jnp.any(v2, axis=1)

    # conservative NDC -> pixel-centre -> tile conversion
    c_lo = jnp.floor(((cx_lo - expand + 1.0) * width - 1.0) * 0.5)
    c_hi = jnp.ceil(((cx_hi + expand + 1.0) * width - 1.0) * 0.5)
    r_lo = jnp.floor(((1.0 - cy_hi - expand) * height - 1.0) * 0.5)
    r_hi = jnp.ceil(((1.0 - cy_lo + expand) * height - 1.0) * 0.5)

    c_lo = jnp.clip(c_lo, 0, width - 1).astype(jnp.int32) // tile_cols
    c_hi = jnp.clip(c_hi, 0, width - 1).astype(jnp.int32) // tile_cols
    r_lo = jnp.clip(r_lo, 0, height - 1).astype(jnp.int32) // tile_rows
    r_hi = jnp.clip(r_hi, 0, height - 1).astype(jnp.int32) // tile_rows

    n_rt = height // tile_rows
    n_ct = width // tile_cols
    r_lo = jnp.where(has, r_lo, n_rt)
    r_hi = jnp.where(has, r_hi, -1)
    c_lo = jnp.where(has, c_lo, n_ct)
    c_hi = jnp.where(has, c_hi, -1)
    return jnp.stack([r_lo, r_hi, c_lo, c_hi], axis=1).astype(jnp.int32)


def vc_render_batch(points, cameras, colors, height, width,
                    tile_rows=8, tile_cols=128, tile_faces=None, expand=EXPAND):
    """Mirrors VCRenderBatch.forward.

    points : list of [points_1xpx3, faces_fx3]
    cameras: [camera_rot_bx3x3, camera_pos_bx3, camera_proj_{b}x3x1]
    colors : list of colors_1xpx3
    returns (imrender, improb_bxhxwx1, normal1_1xfx3_list, hardmask_good)
    """
    camera_rot, camera_pos, camera_proj = cameras
    b = len(points)
    single_intrinsic = camera_proj.ndim != 3
    if not single_intrinsic:
        assert camera_proj.shape[0] == b

    default_tf, vmem_limit = _device_defaults()
    if tile_faces is None:
        tile_faces = default_tf
    use_bf16 = _vpu_supports_bf16()

    tile_rows = min(tile_rows, height)
    tile_cols = min(tile_cols, width)
    assert height % tile_rows == 0 and width % tile_cols == 0
    assert tile_faces % LANE == 0

    f_max = max(int(points[i][1].shape[0]) for i in range(b))
    f_pad = ((f_max + tile_faces - 1) // tile_faces) * tile_faces
    nc = f_pad // tile_faces

    attrs_list, colmat_list, bbox_list, normal1_list = [], [], [], []
    for i in range(b):
        points_1xpx3, faces_fx3 = points[i]
        proj_i = camera_proj if single_intrinsic else camera_proj[i]
        p3d, p2d, normal = perspective_projection(
            points_1xpx3, faces_fx3,
            camera_rot[i:i + 1], camera_pos[i:i + 1], proj_i)
        normalz = normal[:, :, 2:3]
        normal1_list.append(datanormalize(normal, axis=2))

        colors_1xpx3 = colors[i]
        n_f = int(faces_fx3.shape[0])
        pad = f_pad - n_f

        # 10 attribute channels (padded faces are all-zero -> culled in kernel)
        z3 = p3d[:, :, jnp.array([2, 5, 8])]
        attrs = jnp.concatenate([p2d, z3, normalz], axis=2)          # (1, F, 10)
        attrs = jnp.pad(attrs, ((0, 0), (0, pad), (0, 0)))
        attrs = attrs.reshape(1, nc, tile_faces, 10).transpose(0, 1, 3, 2)
        attrs_list.append(attrs)                                     # (1, NC, 10, TF)

        # per-vertex colour matrices (MXU RHS): rows [r, g, b, 1, 0, 0, 0, 0]
        cms = []
        for v in range(3):
            cv = colors_1xpx3[:, faces_fx3[:, v], :]                 # (1, F, 3)
            one = jnp.ones_like(cv[:, :, :1])
            zero = jnp.zeros((1, n_f, N_COL - 4), dtype=cv.dtype)
            cms.append(jnp.concatenate([cv, one, zero], axis=2))     # (1, F, 8)
        cm = jnp.stack(cms, axis=1)                                  # (1, 3, F, 8)
        cm = jnp.pad(cm, ((0, 0), (0, 0), (0, pad), (0, 0)))
        cm = cm.reshape(1, 3, nc, tile_faces, N_COL).transpose(0, 2, 1, 3, 4)
        colmat_list.append(cm.reshape(1, nc * 3, tile_faces, N_COL))

        bbox_list.append(_chunk_bboxes(p2d, normalz, f_pad, tile_faces,
                                       height, width, tile_rows, tile_cols,
                                       expand))

    attrs_b = jnp.concatenate(attrs_list, axis=0).astype(jnp.float32)
    colmat_b = jnp.concatenate(colmat_list, axis=0).astype(jnp.float32)
    bbox_b = jnp.stack(bbox_list, axis=0).reshape(-1).astype(jnp.int32)

    imfeat_p, improb_p = rasterize_batch(
        attrs_b, colmat_b, bbox_b, height, width,
        tile_rows=tile_rows, tile_cols=tile_cols, tile_faces=tile_faces,
        vmem_limit_bytes=vmem_limit, use_bf16_silhouette=use_bf16)

    imfeat = jnp.transpose(imfeat_p, (0, 2, 3, 1))       # (B, H, W, 4)
    improb_bxhxwx1 = jnp.transpose(improb_p, (0, 2, 3, 1))
    imrender = imfeat[:, :, :, :3]
    _sum_imrender = imrender.sum(axis=3)
    hardmask_good = (_sum_imrender != 0).astype(jnp.float32)
    # TODO(synk): requires_grad bookkeeping of the PyTorch module is a
    #   training-time flag with no forward-value effect; dropped here.
    return imrender, improb_bxhxwx1, normal1_list, hardmask_good


# ----------------------------------------------------------------------------
if __name__ == "__main__":
    key = jax.random.PRNGKey(0)
    B, P, F = 2, 32, 64
    H = W = 16

    item_keys = jax.random.split(key, B)
    points_list, colors_list = [], []
    for i in range(B):
        kp, kf, kc = jax.random.split(item_keys[i], 3)
        verts = jax.random.uniform(kp, (1, P, 3), minval=-0.8, maxval=0.8,
                                   dtype=jnp.float32)
        faces = jax.random.randint(kf, (F, 3), 0, P, dtype=jnp.int32)
        cols = jax.random.uniform(kc, (1, P, 3), dtype=jnp.float32)
        points_list.append([verts, faces])
        colors_list.append(cols)

    # deterministic camera: identity rotation, positioned at z=+2.5 looking -z,
    # single shared pinhole intrinsic (3x1), 45 deg fov.
    camera_rot = jnp.tile(jnp.eye(3, dtype=jnp.float32)[None], (B, 1, 1))
    camera_pos = jnp.tile(jnp.array([[0.0, 0.0, 2.5]], jnp.float32), (B, 1))
    fl = 1.0 / jnp.tan(jnp.deg2rad(45.0) / 2.0)
    camera_proj = jnp.array([[fl], [fl], [-1.0]], dtype=jnp.float32)
    cameras = [camera_rot, camera_pos, camera_proj]

    imrender, improb, normal1_list, hardmask_good = vc_render_batch(
        points_list, cameras, colors_list, H, W)

    jax.block_until_ready(imrender)
    jax.block_until_ready(improb)
    jax.block_until_ready(hardmask_good)
    for n in normal1_list:
        jax.block_until_ready(n)

    assert imrender.shape == (B, H, W, 3)
    assert improb.shape == (B, H, W, 1)
    assert hardmask_good.shape == (B, H, W)
    assert len(normal1_list) == B and normal1_list[0].shape == (1, F, 3)
    assert bool(jnp.all(jnp.isfinite(imrender)))
    assert bool(jnp.all(jnp.isfinite(improb)))
    print("KERNEL_OK")
</pallas_src>

<mosaic_0001>
module attributes {stable_mosaic.version = 11 : i64} {
  func.func @_rasterize_kernel(%arg0: i32, %arg1: i32, %arg2: i32, %arg3: i32, %arg4: memref<8xi32, #tpu.memory_space<smem>>, %arg5: memref<1x1x10x256xf32, #tpu.memory_space<vmem>>, %arg6: memref<1x3x256x8xf32, #tpu.memory_space<vmem>>, %arg7: memref<1x4x8x16xf32, #tpu.memory_space<vmem>>, %arg8: memref<1x1x8x16xf32, #tpu.memory_space<vmem>>, %arg9: memref<8x16x8xf32, #tpu.memory_space<vmem>>, %arg10: memref<8x16x128xf32, #tpu.memory_space<vmem>>) attributes {dimension_semantics = [#tpu.dimension_semantics<parallel>, #tpu.dimension_semantics<parallel>, #tpu.dimension_semantics<parallel>, #tpu.dimension_semantics<arbitrary>], iteration_bounds = array<i64: 2, 2, 1, 1>, scalar_prefetch = 1 : i64, scratch_operands = 2 : i64, tpu.core_type = #tpu.core_type<tc>, window_params = [{transform_indices = @transform_0, window_bounds = array<i64: 1, 1, 10, 256>}, {transform_indices = @transform_1, window_bounds = array<i64: 1, 3, 256, 8>}, {transform_indices = @transform_2, window_bounds = array<i64: 1, 4, 8, 16>}, {transform_indices = @transform_3, window_bounds = array<i64: 1, 1, 8, 16>}]} {
    %0 = tpu.iota {dimensions = array<i32: 2>} : vector<1x1x8xi32>
    %c4_i32 = arith.constant 4 : i32
    %1 = vector.broadcast %c4_i32 : i32 to vector<1x1x8xi32>
    %2 = arith.cmpi eq, %0, %1 : vector<1x1x8xi32>
    %3 = arith.extui %2 : vector<1x1x8xi1> to vector<1x1x8xi32>
    %4 = arith.sitofp %3 : vector<1x1x8xi32> to vector<1x1x8xf32>
    %c0_i32 = arith.constant 0 : i32
    %5 = arith.cmpi eq, %arg3, %c0_i32 : i32
    %6 = arith.extui %5 : i1 to i32
    %c0_i32_0 = arith.constant 0 : i32
    %7 = arith.cmpi ne, %6, %c0_i32_0 : i32
    scf.if %7 {
      %cst = arith.constant -1.000000e+30 : f32
      %35 = vector.broadcast %cst : f32 to vector<1x1x8xf32>
      %36 = arith.mulf %4, %35 : vector<1x1x8xf32>
      %37 = vector.shape_cast %36 : vector<1x1x8xf32> to vector<1x1x8xf32>
      %38 = vector.broadcast %37 : vector<1x1x8xf32> to vector<8x16x8xf32>
      %c0 = arith.constant 0 : index
      %c0_7 = arith.constant 0 : index
      %c0_8 = arith.constant 0 : index
      %39 = vector.load %arg9[%c0, %c0_7, %c0_8] : memref<8x16x8xf32, #tpu.memory_space<vmem>>, vector<8x16x8xf32>
      tpu.vector_store %arg9[%c0, %c0_7, %c0_8], %38 {strides = array<i32>} : memref<8x16x8xf32, #tpu.memory_space<vmem>>, vector<8x16x8xf32>,
      %cst_9 = arith.constant 1.000000e+00 : f32
      %40 = vector.broadcast %cst_9 : f32 to vector<8x16x128xf32>
      %c0_10 = arith.constant 0 : index
      %c0_11 = arith.constant 0 : index
      %c0_12 = arith.constant 0 : index
      %41 = vector.load %arg10[%c0_10, %c0_11, %c0_12] : memref<8x16x128xf32, #tpu.memory_space<vmem>>, vector<8x16x128xf32>
      tpu.vector_store %arg10[%c0_10, %c0_11, %c0_12], %40 {strides = array<i32>} : memref<8x16x128xf32, #tpu.memory_space<vmem>>, vector<8x16x128xf32>,
    } else {
    }
    %c1_i32 = arith.constant 1 : i32
    %8 = arith.muli %arg0, %c1_i32 : i32
    %9 = arith.addi %8, %arg3 : i32
    %c4_i32_1 = arith.constant 4 : i32
    %10 = arith.muli %9, %c4_i32_1 : i32
    %c0_i32_2 = arith.constant 0 : i32
    %11 = arith.addi %10, %c0_i32_2 : i32
    %12 = arith.index_cast %11 : i32 to index
    %13 = memref.load %arg4[%12] : memref<8xi32, #tpu.memory_space<smem>>
    %14 = arith.cmpi sge, %arg1, %13 : i32
    %c1_i32_3 = arith.constant 1 : i32
    %15 = arith.addi %10, %c1_i32_3 : i32
    %16 = arith.index_cast %15 : i32 to index
    %17 = memref.load %arg4[%16] : memref<8xi32, #tpu.memory_space<smem>>
    %18 = arith.cmpi sle, %arg1, %17 : i32
    %19 = arith.andi %14, %18 : i1
    %c2_i32 = arith.constant 2 : i32
    %20 = arith.addi %10, %c2_i32 : i32
    %21 = arith.index_cast %20 : i32 to index
    %22 = memref.load %arg4[%21] : memref<8xi32, #tpu.memory_space<smem>>
    %23 = arith.cmpi sge, %arg2, %22 : i32
    %24 = arith.andi %19, %23 : i1
    %c3_i32 = arith.constant 3 : i32
    %25 = arith.addi %10, %c3_i32 : i32
    %26 = arith.index_cast %25 : i32 to index
    %27 = memref.load %arg4[%26] : memref<8xi32, #tpu.memory_space<smem>>
    %28 = arith.cmpi sle, %arg2, %27 : i32
    %29 = arith.andi %24, %28 : i1
    %30 = arith.extui %29 : i1 to i32
    %c0_i32_4 = arith.constant 0 : i32
    %31 = arith.cmpi ne, %30, %c0_i32_4 : i32
    scf.if %31 {
      %c0 = arith.constant 0 : index
      %35 = arith.index_cast %arg3 : i32 to index
      %c0_7 = arith.constant 0 : index
      %c0_8 = arith.constant 0 : index
      %36 = vector.load %arg5[%c0, %35, %c0_7, %c0_8] : memref<1x1x10x256xf32, #tpu.memory_space<vmem>>, vector<1x1x1x256xf32>
      %37 = vector.shape_cast %36 : vector<1x1x1x256xf32> to vector<1x1x256xf32>
      %c0_9 = arith.constant 0 : index
      %38 = arith.index_cast %arg3 : i32 to index
      %c1 = arith.constant 1 : index
      %c0_10 = arith.constant 0 : index
      %39 = vector.load %arg5[%c0_9, %38, %c1, %c0_10] : memref<1x1x10x256xf32, #tpu.memory_space<vmem>>, vector<1x1x1x256xf32>
      %40 = vector.shape_cast %39 : vector<1x1x1x256xf32> to vector<1x1x256xf32>
      %c0_11 = arith.constant 0 : index
      %41 = arith.index_cast %arg3 : i32 to index
      %c2 = arith.constant 2 : index
      %c0_12 = arith.constant 0 : index
      %42 = vector.load %arg5[%c0_11, %41, %c2, %c0_12] : memref<1x1x10x256xf32, #tpu.memory_space<vmem>>, vector<1x1x1x256xf32>
      %43 = vector.shape_cast %42 : vector<1x1x1x256xf32> to vector<1x1x256xf32>
      %c0_13 = arith.constant 0 : index
      %44 = arith.index_cast %arg3 : i32 to index
      %c3 = arith.constant 3 : index
      %c0_14 = arith.constant 0 : index
      %45 = vector.load %arg5[%c0_13, %44, %c3, %c0_14] : memref<1x1x10x256xf32, #tpu.memory_space<vmem>>, vector<1x1x1x256xf32>
      %46 = vector.shape_cast %45 : vector<1x1x1x256xf32> to vector<1x1x256xf32>
      %c0_15 = arith.constant 0 : index
      %47 = arith.index_cast %arg3 : i32 to index
      %c4 = arith.constant 4 : index
      %c0_16 = arith.constant 0 : index
      %48 = vector.load %arg5[%c0_15, %47, %c4, %c0_16] : memref<1x1x10x256xf32, #tpu.memory_space<vmem>>, vector<1x1x1x256xf32>
      %49 = vector.shape_cast %48 : vector<1x1x1x256xf32> to vector<1x1x256xf32>
      %c0_17 = arith.constant 0 : index
      %50 = arith.index_cast %arg3 : i32 to index
      %c5 = arith.constant 5 : index
      %c0_18 = arith.constant 0 : index
      %51 = vector.load %arg5[%c0_17, %50, %c5, %c0_18] : memref<1x1x10x256xf32, #tpu.memory_space<vmem>>, vector<1x1x1x256xf32>
      %52 = vector.shape_cast %51 : vector<1x1x1x256xf32> to vector<1x1x256xf32>
      %c0_19 = arith.constant 0 : index
      %53 = arith.index_cast %arg3 : i32 to index
      %c6 = arith.constant 6 : index
      %c0_20 = arith.constant 0 : index
      %54 = vector.load %arg5[%c0_19, %53, %c6, %c0_20] : memref<1x1x10x256xf32, #tpu.memory_space<vmem>>, vector<1x1x1x256xf32>
      %55 = vector.shape_cast %54 : vector<1x1x1x256xf32> to vector<1x1x256xf32>
      %c0_21 = arith.constant 0 : index
      %56 = arith.index_cast %arg3 : i32 to index
      %c7 = arith.constant 7 : index
      %c0_22 = arith.constant 0 : index
      %57 = vector.load %arg5[%c0_21, %56, %c7, %c0_22] : memref<1x1x10x256xf32, #tpu.memory_space<vmem>>, vector<1x1x1x256xf32>
      %58 = vector.shape_cast %57 : vector<1x1x1x256xf32> to vector<1x1x256xf32>
      %c0_23 = arith.constant 0 : index
      %59 = arith.index_cast %arg3 : i32 to index
      %c8 = arith.constant 8 : index
      %c0_24 = arith.constant 0 : index
      %60 = vector.load %arg5[%c0_23, %59, %c8, %c0_24] : memref<1x1x10x256xf32, #tpu.memory_space<vmem>>, vector<1x1x1x256xf32>
      %61 = vector.shape_cast %60 : vector<1x1x1x256xf32> to vector<1x1x256xf32>
      %c0_25 = arith.constant 0 : index
      %62 = arith.index_cast %arg3 : i32 to index
      %c9 = arith.constant 9 : index
      %c0_26 = arith.constant 0 : index
      %63 = vector.load %arg5[%c0_25, %62, %c9, %c0_26] : memref<1x1x10x256xf32, #tpu.memory_space<vmem>>, vector<1x1x1x256xf32>
      %64 = vector.shape_cast %63 : vector<1x1x1x256xf32> to vector<1x1x256xf32>
      %65 = tpu.iota {dimensions = array<i32: 0>} : vector<8x16x1xi32>
      %c8_i32 = arith.constant 8 : i32
      %66 = arith.muli %arg1, %c8_i32 : i32
      %67 = vector.broadcast %66 : i32 to vector<8x16x1xi32>
      %68 = arith.addi %65, %67 : vector<8x16x1xi32>
      %69 = arith.sitofp %68 : vector<8x16x1xi32> to vector<8x16x1xf32>
      %70 = tpu.iota {dimensions = array<i32: 1>} : vector<8x16x1xi32>
      %c16_i32 = arith.constant 16 : i32
      %71 = arith.muli %arg2, %c16_i32 : i32
      %72 = vector.broadcast %71 : i32 to vector<8x16x1xi32>
      %73 = arith.addi %70, %72 : vector<8x16x1xi32>
      %74 = arith.sitofp %73 : vector<8x16x1xi32> to vector<8x16x1xf32>
      %cst = arith.constant 2.000000e+00 : f32
      %75 = vector.broadcast %cst : f32 to vector<8x16x1xf32>
      %76 = arith.mulf %75, %74 : vector<8x16x1xf32>
      %cst_27 = arith.constant 1.000000e+00 : f32
      %77 = vector.broadcast %cst_27 : f32 to vector<8x16x1xf32>
      %78 = arith.addf %76, %77 : vector<8x16x1xf32>
      %cst_28 = arith.constant 1.600000e+01 : f32
      %79 = vector.broadcast %cst_28 : f32 to vector<8x16x1xf32>
      %80 = arith.divf %78, %79 : vector<8x16x1xf32>
      %cst_29 = arith.constant -1.000000e+00 : f32
      %81 = vector.broadcast %cst_29 : f32 to vector<8x16x1xf32>
      %82 = arith.addf %81, %80 : vector<8x16x1xf32>
      %cst_30 = arith.constant 2.000000e+00 : f32
      %83 = vector.broadcast %cst_30 : f32 to vector<8x16x1xf32>
      %84 = arith.mulf %83, %69 : vector<8x16x1xf32>
      %cst_31 = arith.constant 1.000000e+00 : f32
      %85 = vector.broadcast %cst_31 : f32 to vector<8x16x1xf32>
      %86 = arith.addf %84, %85 : vector<8x16x1xf32>
      %cst_32 = arith.constant 1.600000e+01 : f32
      %87 = vector.broadcast %cst_32 : f32 to vector<8x16x1xf32>
      %88 = arith.divf %86, %87 : vector<8x16x1xf32>
      %cst_33 = arith.constant 1.000000e+00 : f32
      %89 = vector.broadcast %cst_33 : f32 to vector<8x16x1xf32>
      %90 = arith.subf %89, %88 : vector<8x16x1xf32>
      %91 = arith.subf %46, %52 : vector<1x1x256xf32>
      %92 = arith.subf %49, %43 : vector<1x1x256xf32>
      %93 = arith.subf %52, %40 : vector<1x1x256xf32>
      %94 = arith.subf %37, %49 : vector<1x1x256xf32>
      %95 = arith.subf %40, %52 : vector<1x1x256xf32>
      %96 = arith.mulf %91, %94 : vector<1x1x256xf32>
      %97 = arith.mulf %92, %95 : vector<1x1x256xf32>
      %98 = arith.addf %96, %97 : vector<1x1x256xf32>
      %99 = math.absf %98 : vector<1x1x256xf32>
      %cst_34 = arith.constant 1.000000e-10 : f32
      %100 = vector.broadcast %cst_34 : f32 to vector<1x1x256xf32>
      %101 = arith.cmpf ogt, %99, %100 : vector<1x1x256xf32>
      %cst_35 = arith.constant 1.000000e+00 : f32
      %102 = vector.broadcast %cst_35 : f32 to vector<1x1x256xf32>
      %103 = arith.select %101, %98, %102 : vector<1x1x256xi1>, vector<1x1x256xf32>
      %cst_36 = arith.constant 1.000000e+00 : f32
      %104 = vector.broadcast %cst_36 : f32 to vector<1x1x256xf32>
      %105 = arith.divf %104, %103 : vector<1x1x256xf32>
      %106 = vector.broadcast %82 : vector<8x16x1xf32> to vector<8x16x256xf32>
      %107 = vector.broadcast %49 : vector<1x1x256xf32> to vector<8x16x256xf32>
      %108 = arith.subf %106, %107 : vector<8x16x256xf32>
      %109 = vector.broadcast %90 : vector<8x16x1xf32> to vector<8x16x256xf32>
      %110 = vector.broadcast %52 : vector<1x1x256xf32> to vector<8x16x256xf32>
      %111 = arith.subf %109, %110 : vector<8x16x256xf32>
      %112 = vector.broadcast %91 : vector<1x1x256xf32> to vector<8x16x256xf32>
      %113 = arith.mulf %112, %108 : vector<8x16x256xf32>
      %114 = vector.broadcast %92 : vector<1x1x256xf32> to vector<8x16x256xf32>
      %115 = arith.mulf %114, %111 : vector<8x16x256xf32>
      %116 = arith.addf %113, %115 : vector<8x16x256xf32>
      %117 = vector.broadcast %105 : vector<1x1x256xf32> to vector<8x16x256xf32>
      %118 = arith.mulf %116, %117 : vector<8x16x256xf32>
      %119 = vector.broadcast %93 : vector<1x1x256xf32> to vector<8x16x256xf32>
      %120 = arith.mulf %119, %108 : vector<8x16x256xf32>
      %121 = vector.broadcast %94 : vector<1x1x256xf32> to vector<8x16x256xf32>
      %122 = arith.mulf %121, %111 : vector<8x16x256xf32>
      %123 = arith.addf %120, %122 : vector<8x16x256xf32>
      %124 = vector.broadcast %105 : vector<1x1x256xf32> to vector<8x16x256xf32>
      %125 = arith.mulf %123, %124 : vector<8x16x256xf32>
      %cst_37 = arith.constant 1.000000e+00 : f32
      %126 = vector.broadcast %cst_37 : f32 to vector<8x16x256xf32>
      %127 = arith.subf %126, %118 : vector<8x16x256xf32>
      %128 = arith.subf %127, %125 : vector<8x16x256xf32>
      %cst_38 = arith.constant 0.000000e+00 : f32
      %129 = vector.broadcast %cst_38 : f32 to vector<1x1x256xf32>
      %130 = arith.cmpf ogt, %64, %129 : vector<1x1x256xf32>
      %cst_39 = arith.constant 0.000000e+00 : f32
      %131 = vector.broadcast %cst_39 : f32 to vector<8x16x256xf32>
      %132 = arith.cmpf oge, %118, %131 : vector<8x16x256xf32>
      %cst_40 = arith.constant 0.000000e+00 : f32
      %133 = vector.broadcast %cst_40 : f32 to vector<8x16x256xf32>
      %134 = arith.cmpf oge, %125, %133 : vector<8x16x256xf32>
      %135 = arith.andi %132, %134 : vector<8x16x256xi1>
      %cst_41 = arith.constant 0.000000e+00 : f32
      %136 = vector.broadcast %cst_41 : f32 to vector<8x16x256xf32>
      %137 = arith.cmpf oge, %128, %136 : vector<8x16x256xf32>
      %138 = arith.andi %135, %137 : vector<8x16x256xi1>
      %139 = vector.broadcast %101 : vector<1x1x256xi1> to vector<8x16x256xi1>
      %140 = arith.andi %138, %139 : vector<8x16x256xi1>
      %141 = vector.broadcast %130 : vector<1x1x256xi1> to vector<8x16x256xi1>
      %142 = arith.andi %140, %141 : vector<8x16x256xi1>
      %143 = arith.subf %55, %61 : vector<1x1x256xf32>
      %144 = vector.broadcast %143 : vector<1x1x256xf32> to vector<8x16x256xf32>
      %145 = arith.mulf %118, %144 : vector<8x16x256xf32>
      %146 = vector.broadcast %61 : vector<1x1x256xf32> to vector<8x16x256xf32>
      %147 = arith.addf %146, %145 : vector<8x16x256xf32>
      %148 = arith.subf %58, %61 : vector<1x1x256xf32>
      %149 = vector.broadcast %148 : vector<1x1x256xf32> to vector<8x16x256xf32>
      %150 = arith.mulf %125, %149 : vector<8x16x256xf32>
      %151 = arith.addf %147, %150 : vector<8x16x256xf32>
      %cst_42 = arith.constant -1.000000e+30 : f32
      %152 = vector.broadcast %cst_42 : f32 to vector<8x16x256xf32>
      %153 = arith.select %142, %151, %152 : vector<8x16x256xi1>, vector<8x16x256xf32>
      %cst_43 = arith.constant dense<0xFF800000> : vector<8x16xf32>
      %154 = vector.multi_reduction <maximumf>, %153, %cst_43 [2] : vector<8x16x256xf32> to vector<8x16xf32>
      %155 = vector.shape_cast %154 : vector<8x16xf32> to vector<8x16x1xf32>
      %156 = vector.broadcast %155 : vector<8x16x1xf32> to vector<8x16x256xf32>
      %157 = arith.cmpf oge, %153, %156 : vector<8x16x256xf32>
      %158 = arith.andi %142, %157 : vector<8x16x256xi1>
      %159 = arith.extui %158 : vector<8x16x256xi1> to vector<8x16x256xi32>
      %160 = arith.sitofp %159 : vector<8x16x256xi32> to vector<8x16x256xf32>
      %161 = arith.mulf %160, %118 : vector<8x16x256xf32>
      %162 = arith.mulf %160, %125 : vector<8x16x256xf32>
      %163 = arith.mulf %160, %128 : vector<8x16x256xf32>
      %164 = vector.shape_cast %161 : vector<8x16x256xf32> to vector<128x256xf32>
      %165 = arith.truncf %164 : vector<128x256xf32> to vector<128x256xbf16>
      %c3_i32_44 = arith.constant 3 : i32
      %166 = arith.muli %arg3, %c3_i32_44 : i32
      %c0_i32_45 = arith.constant 0 : i32
      %167 = arith.addi %166, %c0_i32_45 : i32
      %c0_46 = arith.constant 0 : index
      %168 = arith.index_cast %167 : i32 to index
      %c0_47 = arith.constant 0 : index
      %c0_48 = arith.constant 0 : index
      %169 = vector.load %arg6[%c0_46, %168, %c0_47, %c0_48] : memref<1x3x256x8xf32, #tpu.memory_space<vmem>>, vector<1x1x256x8xf32>
      %170 = vector.shape_cast %169 : vector<1x1x256x8xf32> to vector<1x256x8xf32>
      %171 = vector.shape_cast %170 : vector<1x256x8xf32> to vector<256x8xf32>
      %172 = arith.truncf %171 : vector<256x8xf32> to vector<256x8xbf16>
      %cst_49 = arith.constant dense<0.000000e+00> : vector<128x8xf32>
      %173 = tpu.matmul %165, %172, %cst_49 {dimension_numbers = #tpu.dot_dimension_numbers<[1], [0], [0], [1], [0, 0, 1, 1], [], []>} : vector<128x256xbf16>, vector<256x8xbf16>, vector<128x8xf32> -> vector<128x8xf32>
      %174 = vector.shape_cast %162 : vector<8x16x256xf32> to vector<128x256xf32>
      %175 = arith.truncf %174 : vector<128x256xf32> to vector<128x256xbf16>
      %c3_i32_50 = arith.constant 3 : i32
      %176 = arith.muli %arg3, %c3_i32_50 : i32
      %c1_i32_51 = arith.constant 1 : i32
      %177 = arith.addi %176, %c1_i32_51 : i32
      %c0_52 = arith.constant 0 : index
      %178 = arith.index_cast %177 : i32 to index
      %c0_53 = arith.constant 0 : index
      %c0_54 = arith.constant 0 : index
      %179 = vector.load %arg6[%c0_52, %178, %c0_53, %c0_54] : memref<1x3x256x8xf32, #tpu.memory_space<vmem>>, vector<1x1x256x8xf32>
      %180 = vector.shape_cast %179 : vector<1x1x256x8xf32> to vector<1x256x8xf32>
      %181 = vector.shape_cast %180 : vector<1x256x8xf32> to vector<256x8xf32>
      %182 = arith.truncf %181 : vector<256x8xf32> to vector<256x8xbf16>
      %cst_55 = arith.constant dense<0.000000e+00> : vector<128x8xf32>
      %183 = tpu.matmul %175, %182, %cst_55 {dimension_numbers = #tpu.dot_dimension_numbers<[1], [0], [0], [1], [0, 0, 1, 1], [], []>} : vector<128x256xbf16>, vector<256x8xbf16>, vector<128x8xf32> -> vector<128x8xf32>
      %184 = arith.addf %173, %183 : vector<128x8xf32>
      %185 = vector.shape_cast %163 : vector<8x16x256xf32> to vector<128x256xf32>
      %186 = arith.truncf %185 : vector<128x256xf32> to vector<128x256xbf16>
      %c3_i32_56 = arith.constant 3 : i32
      %187 = arith.muli %arg3, %c3_i32_56 : i32
      %c2_i32_57 = arith.constant 2 : i32
      %188 = arith.addi %187, %c2_i32_57 : i32
      %c0_58 = arith.constant 0 : index
      %189 = arith.index_cast %188 : i32 to index
      %c0_59 = arith.constant 0 : index
      %c0_60 = arith.constant 0 : index
      %190 = vector.load %arg6[%c0_58, %189, %c0_59, %c0_60] : memref<1x3x256x8xf32, #tpu.memory_space<vmem>>, vector<1x1x256x8xf32>
      %191 = vector.shape_cast %190 : vector<1x1x256x8xf32> to vector<1x256x8xf32>
      %192 = vector.shape_cast %191 : vector<1x256x8xf32> to vector<256x8xf32>
      %193 = arith.truncf %192 : vector<256x8xf32> to vector<256x8xbf16>
      %cst_61 = arith.constant dense<0.000000e+00> : vector<128x8xf32>
      %194 = tpu.matmul %186, %193, %cst_61 {dimension_numbers = #tpu.dot_dimension_numbers<[1], [0], [0], [1], [0, 0, 1, 1], [], []>} : vector<128x256xbf16>, vector<256x8xbf16>, vector<128x8xf32> -> vector<128x8xf32>
      %195 = arith.addf %184, %194 : vector<128x8xf32>
      %196 = vector.shape_cast %195 : vector<128x8xf32> to vector<8x16x8xf32>
      %c0_62 = arith.constant 0 : index
      %c0_63 = arith.constant 0 : index
      %c0_64 = arith.constant 0 : index
      %197 = vector.load %arg9[%c0_62, %c0_63, %c0_64] : memref<8x16x8xf32, #tpu.memory_space<vmem>>, vector<8x16x8xf32>
      %198 = vector.broadcast %4 : vector<1x1x8xf32> to vector<8x16x8xf32>
      %199 = arith.mulf %197, %198 : vector<8x16x8xf32>
      %cst_65 = arith.constant dense<0.000000e+00> : vector<8x16xf32>
      %200 = vector.multi_reduction <add>, %199, %cst_65 [2] : vector<8x16x8xf32> to vector<8x16xf32>
      %201 = vector.shape_cast %200 : vector<8x16xf32> to vector<8x16x1xf32>
      %202 = arith.cmpf ogt, %155, %201 : vector<8x16x1xf32>
      %203 = arith.extui %202 : vector<8x16x1xi1> to vector<8x16x1xi32>
      %204 = arith.sitofp %203 : vector<8x16x1xi32> to vector<8x16x1xf32>
      %cst_66 = arith.constant 1.000000e+00 : f32
      %205 = vector.broadcast %cst_66 : f32 to vector<8x16x1xf32>
      %206 = arith.subf %205, %204 : vector<8x16x1xf32>
      %207 = arith.cmpf oge, %155, %201 : vector<8x16x1xf32>
      %208 = arith.extui %207 : vector<8x16x1xi1> to vector<8x16x1xi32>
      %209 = arith.sitofp %208 : vector<8x16x1xi32> to vector<8x16x1xf32>
      %210 = arith.maximumf %201, %155 : vector<8x16x1xf32>
      %c4_i32_67 = arith.constant 4 : i32
      %211 = vector.broadcast %c4_i32_67 : i32 to vector<1x1x8xi32>
      %212 = arith.cmpi eq, %0, %211 : vector<1x1x8xi32>
      %213 = vector.broadcast %206 : vector<8x16x1xf32> to vector<8x16x8xf32>
      %214 = arith.mulf %213, %197 : vector<8x16x8xf32>
      %215 = vector.broadcast %209 : vector<8x16x1xf32> to vector<8x16x8xf32>
      %216 = arith.mulf %215, %196 : vector<8x16x8xf32>
      %217 = arith.addf %214, %216 : vector<8x16x8xf32>
      %218 = vector.shape_cast %212 : vector<1x1x8xi1> to vector<1x1x8xi1>
      %219 = vector.broadcast %218 : vector<1x1x8xi1> to vector<8x16x8xi1>
      %220 = vector.shape_cast %210 : vector<8x16x1xf32> to vector<8x16x1xf32>
      %221 = vector.broadcast %220 : vector<8x16x1xf32> to vector<8x16x8xf32>
      %222 = arith.select %219, %221, %217 : vector<8x16x8xi1>, vector<8x16x8xf32>
      %c0_68 = arith.constant 0 : index
      %c0_69 = arith.constant 0 : index
      %c0_70 = arith.constant 0 : index
      %223 = vector.load %arg9[%c0_68, %c0_69, %c0_70] : memref<8x16x8xf32, #tpu.memory_space<vmem>>, vector<8x16x8xf32>
      tpu.vector_store %arg9[%c0_68, %c0_69, %c0_70], %222 {strides = array<i32>} : memref<8x16x8xf32, #tpu.memory_space<vmem>>, vector<8x16x8xf32>,
      %224 = arith.subf %43, %37 : vector<1x1x256xf32>
      %225 = arith.subf %46, %40 : vector<1x1x256xf32>
      %226 = arith.mulf %224, %224 : vector<1x1x256xf32>
      %227 = arith.mulf %225, %225 : vector<1x1x256xf32>
      %228 = arith.addf %226, %227 : vector<1x1x256xf32>
      %cst_71 = arith.constant 1.000000e-10 : f32
      %229 = vector.broadcast %cst_71 : f32 to vector<1x1x256xf32>
      %230 = arith.addf %228, %229 : vector<1x1x256xf32>
      %cst_72 = arith.constant 1.000000e+00 : f32
      %231 = vector.broadcast %cst_72 : f32 to vector<1x1x256xf32>
      %232 = arith.divf %231, %230 : vector<1x1x256xf32>
      %233 = arith.truncf %232 : vector<1x1x256xf32> to vector<1x1x256xbf16>
      %234 = arith.truncf %224 : vector<1x1x256xf32> to vector<1x1x256xbf16>
      %235 = arith.truncf %225 : vector<1x1x256xf32> to vector<1x1x256xbf16>
      %236 = vector.broadcast %82 : vector<8x16x1xf32> to vector<8x16x256xf32>
      %237 = vector.broadcast %37 : vector<1x1x256xf32> to vector<8x16x256xf32>
      %238 = arith.subf %236, %237 : vector<8x16x256xf32>
      %239 = arith.truncf %238 : vector<8x16x256xf32> to vector<8x16x256xbf16>
      %240 = vector.broadcast %90 : vector<8x16x1xf32> to vector<8x16x256xf32>
      %241 = vector.broadcast %40 : vector<1x1x256xf32> to vector<8x16x256xf32>
      %242 = arith.subf %240, %241 : vector<8x16x256xf32>
      %243 = arith.truncf %242 : vector<8x16x256xf32> to vector<8x16x256xbf16>
      %244 = vector.broadcast %234 : vector<1x1x256xbf16> to vector<8x16x256xbf16>
      %245 = arith.mulf %239, %244 : vector<8x16x256xbf16>
      %246 = vector.broadcast %235 : vector<1x1x256xbf16> to vector<8x16x256xbf16>
      %247 = arith.mulf %243, %246 : vector<8x16x256xbf16>
      %248 = arith.addf %245, %247 : vector<8x16x256xbf16>
      %249 = vector.broadcast %233 : vector<1x1x256xbf16> to vector<8x16x256xbf16>
      %250 = arith.mulf %248, %249 : vector<8x16x256xbf16>
      %cst_73 = arith.constant 0.000000e+00 : f32
      %cst_74 = arith.constant 1.000000e+00 : f32
      %251 = arith.truncf %cst_73 : f32 to bf16
      %252 = vector.broadcast %251 : bf16 to vector<8x16x256xbf16>
      %253 = arith.maximumf %252, %250 : vector<8x16x256xbf16>
      %254 = arith.truncf %cst_74 : f32 to bf16
      %255 = vector.broadcast %254 : bf16 to vector<8x16x256xbf16>
      %256 = arith.minimumf %255, %253 : vector<8x16x256xbf16>
      %257 = vector.broadcast %234 : vector<1x1x256xbf16> to vector<8x16x256xbf16>
      %258 = arith.mulf %256, %257 : vector<8x16x256xbf16>
      %259 = arith.subf %239, %258 : vector<8x16x256xbf16>
      %260 = vector.broadcast %235 : vector<1x1x256xbf16> to vector<8x16x256xbf16>
      %261 = arith.mulf %256, %260 : vector<8x16x256xbf16>
      %262 = arith.subf %243, %261 : vector<8x16x256xbf16>
      %263 = arith.mulf %259, %259 : vector<8x16x256xbf16>
      %264 = arith.mulf %262, %262 : vector<8x16x256xbf16>
      %265 = arith.addf %263, %264 : vector<8x16x256xbf16>
      %266 = arith.subf %49, %43 : vector<1x1x256xf32>
      %267 = arith.subf %52, %46 : vector<1x1x256xf32>
      %268 = arith.mulf %266, %266 : vector<1x1x256xf32>
      %269 = arith.mulf %267, %267 : vector<1x1x256xf32>
      %270 = arith.addf %268, %269 : vector<1x1x256xf32>
      %cst_75 = arith.constant 1.000000e-10 : f32
      %271 = vector.broadcast %cst_75 : f32 to vector<1x1x256xf32>
      %272 = arith.addf %270, %271 : vector<1x1x256xf32>
      %cst_76 = arith.constant 1.000000e+00 : f32
      %273 = vector.broadcast %cst_76 : f32 to vector<1x1x256xf32>
      %274 = arith.divf %273, %272 : vector<1x1x256xf32>
      %275 = arith.truncf %274 : vector<1x1x256xf32> to vector<1x1x256xbf16>
      %276 = arith.truncf %266 : vector<1x1x256xf32> to vector<1x1x256xbf16>
      %277 = arith.truncf %267 : vector<1x1x256xf32> to vector<1x1x256xbf16>
      %278 = vector.broadcast %82 : vector<8x16x1xf32> to vector<8x16x256xf32>
      %279 = vector.broadcast %43 : vector<1x1x256xf32> to vector<8x16x256xf32>
      %280 = arith.subf %278, %279 : vector<8x16x256xf32>
      %281 = arith.truncf %280 : vector<8x16x256xf32> to vector<8x16x256xbf16>
      %282 = vector.broadcast %90 : vector<8x16x1xf32> to vector<8x16x256xf32>
      %283 = vector.broadcast %46 : vector<1x1x256xf32> to vector<8x16x256xf32>
      %284 = arith.subf %282, %283 : vector<8x16x256xf32>
      %285 = arith.truncf %284 : vector<8x16x256xf32> to vector<8x16x256xbf16>
      %286 = vector.broadcast %276 : vector<1x1x256xbf16> to vector<8x16x256xbf16>
      %287 = arith.mulf %281, %286 : vector<8x16x256xbf16>
      %288 = vector.broadcast %277 : vector<1x1x256xbf16> to vector<8x16x256xbf16>
      %289 = arith.mulf %285, %288 : vector<8x16x256xbf16>
      %290 = arith.addf %287, %289 : vector<8x16x256xbf16>
      %291 = vector.broadcast %275 : vector<1x1x256xbf16> to vector<8x16x256xbf16>
      %292 = arith.mulf %290, %291 : vector<8x16x256xbf16>
      %cst_77 = arith.constant 0.000000e+00 : f32
      %cst_78 = arith.constant 1.000000e+00 : f32
      %293 = arith.truncf %cst_77 : f32 to bf16
      %294 = vector.broadcast %293 : bf16 to vector<8x16x256xbf16>
      %295 = arith.maximumf %294, %292 : vector<8x16x256xbf16>
      %296 = arith.truncf %cst_78 : f32 to bf16
      %297 = vector.broadcast %296 : bf16 to vector<8x16x256xbf16>
      %298 = arith.minimumf %297, %295 : vector<8x16x256xbf16>
      %299 = vector.broadcast %276 : vector<1x1x256xbf16> to vector<8x16x256xbf16>
      %300 = arith.mulf %298, %299 : vector<8x16x256xbf16>
      %301 = arith.subf %281, %300 : vector<8x16x256xbf16>
      %302 = vector.broadcast %277 : vector<1x1x256xbf16> to vector<8x16x256xbf16>
      %303 = arith.mulf %298, %302 : vector<8x16x256xbf16>
      %304 = arith.subf %285, %303 : vector<8x16x256xbf16>
      %305 = arith.mulf %301, %301 : vector<8x16x256xbf16>
      %306 = arith.mulf %304, %304 : vector<8x16x256xbf16>
      %307 = arith.addf %305, %306 : vector<8x16x256xbf16>
      %308 = arith.subf %37, %49 : vector<1x1x256xf32>
      %309 = arith.subf %40, %52 : vector<1x1x256xf32>
      %310 = arith.mulf %308, %308 : vector<1x1x256xf32>
      %311 = arith.mulf %309, %309 : vector<1x1x256xf32>
      %312 = arith.addf %310, %311 : vector<1x1x256xf32>
      %cst_79 = arith.constant 1.000000e-10 : f32
      %313 = vector.broadcast %cst_79 : f32 to vector<1x1x256xf32>
      %314 = arith.addf %312, %313 : vector<1x1x256xf32>
      %cst_80 = arith.constant 1.000000e+00 : f32
      %315 = vector.broadcast %cst_80 : f32 to vector<1x1x256xf32>
      %316 = arith.divf %315, %314 : vector<1x1x256xf32>
      %317 = arith.truncf %316 : vector<1x1x256xf32> to vector<1x1x256xbf16>
      %318 = arith.truncf %308 : vector<1x1x256xf32> to vector<1x1x256xbf16>
      %319 = arith.truncf %309 : vector<1x1x256xf32> to vector<1x1x256xbf16>
      %320 = vector.broadcast %82 : vector<8x16x1xf32> to vector<8x16x256xf32>
      %321 = vector.broadcast %49 : vector<1x1x256xf32> to vector<8x16x256xf32>
      %322 = arith.subf %320, %321 : vector<8x16x256xf32>
      %323 = arith.truncf %322 : vector<8x16x256xf32> to vector<8x16x256xbf16>
      %324 = vector.broadcast %90 : vector<8x16x1xf32> to vector<8x16x256xf32>
      %325 = vector.broadcast %52 : vector<1x1x256xf32> to vector<8x16x256xf32>
      %326 = arith.subf %324, %325 : vector<8x16x256xf32>
      %327 = arith.truncf %326 : vector<8x16x256xf32> to vector<8x16x256xbf16>
      %328 = vector.broadcast %318 : vector<1x1x256xbf16> to vector<8x16x256xbf16>
      %329 = arith.mulf %323, %328 : vector<8x16x256xbf16>
      %330 = vector.broadcast %319 : vector<1x1x256xbf16> to vector<8x16x256xbf16>
      %331 = arith.mulf %327, %330 : vector<8x16x256xbf16>
      %332 = arith.addf %329, %331 : vector<8x16x256xbf16>
      %333 = vector.broadcast %317 : vector<1x1x256xbf16> to vector<8x16x256xbf16>
      %334 = arith.mulf %332, %333 : vector<8x16x256xbf16>
      %cst_81 = arith.constant 0.000000e+00 : f32
      %cst_82 = arith.constant 1.000000e+00 : f32
      %335 = arith.truncf %cst_81 : f32 to bf16
      %336 = vector.broadcast %335 : bf16 to vector<8x16x256xbf16>
      %337 = arith.maximumf %336, %334 : vector<8x16x256xbf16>
      %338 = arith.truncf %cst_82 : f32 to bf16
      %339 = vector.broadcast %338 : bf16 to vector<8x16x256xbf16>
      %340 = arith.minimumf %339, %337 : vector<8x16x256xbf16>
      %341 = vector.broadcast %318 : vector<1x1x256xbf16> to vector<8x16x256xbf16>
      %342 = arith.mulf %340, %341 : vector<8x16x256xbf16>
      %343 = arith.subf %323, %342 : vector<8x16x256xbf16>
      %344 = vector.broadcast %319 : vector<1x1x256xbf16> to vector<8x16x256xbf16>
      %345 = arith.mulf %340, %344 : vector<8x16x256xbf16>
      %346 = arith.subf %327, %345 : vector<8x16x256xbf16>
      %347 = arith.mulf %343, %343 : vector<8x16x256xbf16>
      %348 = arith.mulf %346, %346 : vector<8x16x256xbf16>
      %349 = arith.addf %347, %348 : vector<8x16x256xbf16>
      %350 = arith.minimumf %307, %349 : vector<8x16x256xbf16>
      %351 = arith.minimumf %265, %350 : vector<8x16x256xbf16>
      %cst_83 = arith.constant 0.000000e+00 : bf16
      %352 = vector.broadcast %cst_83 : bf16 to vector<8x16x256xbf16>
      %353 = arith.select %140, %352, %351 : vector<8x16x256xi1>, vector<8x16x256xbf16>
      %cst_84 = arith.constant -1.430000e+02 : bf16
      %354 = vector.broadcast %cst_84 : bf16 to vector<8x16x256xbf16>
      %355 = arith.mulf %354, %353 : vector<8x16x256xbf16>
      %356 = math.exp %355 : vector<8x16x256xbf16>
      %cst_85 = arith.constant 0.000000e+00 : bf16
      %357 = vector.shape_cast %130 : vector<1x1x256xi1> to vector<1x1x256xi1>
      %358 = vector.broadcast %357 : vector<1x1x256xi1> to vector<8x16x256xi1>
      %359 = vector.broadcast %cst_85 : bf16 to vector<8x16x256xbf16>
      %360 = arith.select %358, %356, %359 : vector<8x16x256xi1>, vector<8x16x256xbf16>
      %cst_86 = arith.constant 1.000000e+00 : bf16
      %361 = vector.broadcast %cst_86 : bf16 to vector<8x16x256xbf16>
      %362 = arith.subf %361, %360 : vector<8x16x256xbf16>
      %363 = vector.extract_strided_slice %362 {offsets = [0, 0, 0], sizes = [8, 16, 128], strides = [1, 1, 1]} : vector<8x16x256xbf16> to vector<8x16x128xbf16>
      %364 = vector.extract_strided_slice %362 {offsets = [0, 0, 128], sizes = [8, 16, 128], strides = [1, 1, 1]} : vector<8x16x256xbf16> to vector<8x16x128xbf16>
      %365 = arith.mulf %363, %364 : vector<8x16x128xbf16>
      %c0_87 = arith.constant 0 : index
      %c0_88 = arith.constant 0 : index
      %c0_89 = arith.constant 0 : index
      %366 = vector.load %arg10[%c0_87, %c0_88, %c0_89] : memref<8x16x128xf32, #tpu.memory_space<vmem>>, vector<8x16x128xf32>
      %367 = arith.extf %365 : vector<8x16x128xbf16> to vector<8x16x128xf32>
      %368 = arith.mulf %366, %367 : vector<8x16x128xf32>
      %c0_90 = arith.constant 0 : index
      %c0_91 = arith.constant 0 : index
      %c0_92 = arith.constant 0 : index
      %369 = vector.load %arg10[%c0_90, %c0_91, %c0_92] : memref<8x16x128xf32, #tpu.memory_space<vmem>>, vector<8x16x128xf32>
      tpu.vector_store %arg10[%c0_90, %c0_91, %c0_92], %368 {strides = array<i32>} : memref<8x16x128xf32, #tpu.memory_space<vmem>>, vector<8x16x128xf32>,
    } else {
    }
    %c0_i32_5 = arith.constant 0 : i32
    %32 = arith.cmpi eq, %arg3, %c0_i32_5 : i32
    %33 = arith.extui %32 : i1 to i32
    %c0_i32_6 = arith.constant 0 : i32
    %34 = arith.cmpi ne, %33, %c0_i32_6 : i32
    scf.if %34 {
      %c0 = arith.constant 0 : index
      %c0_7 = arith.constant 0 : index
      %c0_8 = arith.constant 0 : index
      %35 = vector.load %arg9[%c0, %c0_7, %c0_8] : memref<8x16x8xf32, #tpu.memory_space<vmem>>, vector<8x16x8xf32>
      %c3_i32_9 = arith.constant 3 : i32
      %36 = vector.broadcast %c3_i32_9 : i32 to vector<1x1x8xi32>
      %37 = arith.cmpi eq, %0, %36 : vector<1x1x8xi32>
      %38 = arith.extui %37 : vector<1x1x8xi1> to vector<1x1x8xi32>
      %39 = arith.sitofp %38 : vector<1x1x8xi32> to vector<1x1x8xf32>
      %40 = vector.broadcast %39 : vector<1x1x8xf32> to vector<8x16x8xf32>
      %41 = arith.mulf %35, %40 : vector<8x16x8xf32>
      %cst = arith.constant dense<0.000000e+00> : vector<8x16xf32>
      %42 = vector.multi_reduction <add>, %41, %cst [2] : vector<8x16x8xf32> to vector<8x16xf32>
      %cst_10 = arith.constant 1.000000e+00 : f32
      %43 = vector.broadcast %cst_10 : f32 to vector<8x16xf32>
      %44 = arith.maximumf %42, %43 : vector<8x16xf32>
      %cst_11 = arith.constant 1.000000e+00 : f32
      %45 = vector.broadcast %cst_11 : f32 to vector<8x16xf32>
      %46 = arith.divf %45, %44 : vector<8x16xf32>
      %c0_i32_12 = arith.constant 0 : i32
      %47 = vector.broadcast %c0_i32_12 : i32 to vector<1x1x8xi32>
      %48 = arith.cmpi eq, %0, %47 : vector<1x1x8xi32>
      %49 = arith.extui %48 : vector<1x1x8xi1> to vector<1x1x8xi32>
      %50 = arith.sitofp %49 : vector<1x1x8xi32> to vector<1x1x8xf32>
      %51 = vector.broadcast %50 : vector<1x1x8xf32> to vector<8x16x8xf32>
      %52 = arith.mulf %35, %51 : vector<8x16x8xf32>
      %cst_13 = arith.constant dense<0.000000e+00> : vector<8x16xf32>
      %53 = vector.multi_reduction <add>, %52, %cst_13 [2] : vector<8x16x8xf32> to vector<8x16xf32>
      %54 = arith.mulf %53, %46 : vector<8x16xf32>
      %c0_14 = arith.constant 0 : index
      %c0_15 = arith.constant 0 : index
      %c0_16 = arith.constant 0 : index
      %c0_17 = arith.constant 0 : index
      %55 = vector.load %arg7[%c0_14, %c0_15, %c0_16, %c0_17] : memref<1x4x8x16xf32, #tpu.memory_space<vmem>>, vector<1x1x8x16xf32>
      %56 = vector.shape_cast %55 : vector<1x1x8x16xf32> to vector<8x16xf32>
      %57 = vector.shape_cast %54 : vector<8x16xf32> to vector<1x1x8x16xf32>
      tpu.vector_store %arg7[%c0_14, %c0_15, %c0_16, %c0_17], %57 {strides = array<i32>} : memref<1x4x8x16xf32, #tpu.memory_space<vmem>>, vector<1x1x8x16xf32>,
      %c1_i32_18 = arith.constant 1 : i32
      %58 = vector.broadcast %c1_i32_18 : i32 to vector<1x1x8xi32>
      %59 = arith.cmpi eq, %0, %58 : vector<1x1x8xi32>
      %60 = arith.extui %59 : vector<1x1x8xi1> to vector<1x1x8xi32>
      %61 = arith.sitofp %60 : vector<1x1x8xi32> to vector<1x1x8xf32>
      %62 = vector.broadcast %61 : vector<1x1x8xf32> to vector<8x16x8xf32>
      %63 = arith.mulf %35, %62 : vector<8x16x8xf32>
      %cst_19 = arith.constant dense<0.000000e+00> : vector<8x16xf32>
      %64 = vector.multi_reduction <add>, %63, %cst_19 [2] : vector<8x16x8xf32> to vector<8x16xf32>
      %65 = arith.mulf %64, %46 : vector<8x16xf32>
      %c0_20 = arith.constant 0 : index
      %c1 = arith.constant 1 : index
      %c0_21 = arith.constant 0 : index
      %c0_22 = arith.constant 0 : index
      %66 = vector.load %arg7[%c0_20, %c1, %c0_21, %c0_22] : memref<1x4x8x16xf32, #tpu.memory_space<vmem>>, vector<1x1x8x16xf32>
      %67 = vector.shape_cast %66 : vector<1x1x8x16xf32> to vector<8x16xf32>
      %68 = vector.shape_cast %65 : vector<8x16xf32> to vector<1x1x8x16xf32>
      tpu.vector_store %arg7[%c0_20, %c1, %c0_21, %c0_22], %68 {strides = array<i32>} : memref<1x4x8x16xf32, #tpu.memory_space<vmem>>, vector<1x1x8x16xf32>,
      %c2_i32_23 = arith.constant 2 : i32
      %69 = vector.broadcast %c2_i32_23 : i32 to vector<1x1x8xi32>
      %70 = arith.cmpi eq, %0, %69 : vector<1x1x8xi32>
      %71 = arith.extui %70 : vector<1x1x8xi1> to vector<1x1x8xi32>
      %72 = arith.sitofp %71 : vector<1x1x8xi32> to vector<1x1x8xf32>
      %73 = vector.broadcast %72 : vector<1x1x8xf32> to vector<8x16x8xf32>
      %74 = arith.mulf %35, %73 : vector<8x16x8xf32>
      %cst_24 = arith.constant dense<0.000000e+00> : vector<8x16xf32>
      %75 = vector.multi_reduction <add>, %74, %cst_24 [2] : vector<8x16x8xf32> to vector<8x16xf32>
      %76 = arith.mulf %75, %46 : vector<8x16xf32>
      %c0_25 = arith.constant 0 : index
      %c2 = arith.constant 2 : index
      %c0_26 = arith.constant 0 : index
      %c0_27 = arith.constant 0 : index
      %77 = vector.load %arg7[%c0_25, %c2, %c0_26, %c0_27] : memref<1x4x8x16xf32, #tpu.memory_space<vmem>>, vector<1x1x8x16xf32>
      %78 = vector.shape_cast %77 : vector<1x1x8x16xf32> to vector<8x16xf32>
      %79 = vector.shape_cast %76 : vector<8x16xf32> to vector<1x1x8x16xf32>
      tpu.vector_store %arg7[%c0_25, %c2, %c0_26, %c0_27], %79 {strides = array<i32>} : memref<1x4x8x16xf32, #tpu.memory_space<vmem>>, vector<1x1x8x16xf32>,
      %cst_28 = arith.constant 0.000000e+00 : f32
      %80 = vector.broadcast %cst_28 : f32 to vector<8x16xf32>
      %81 = arith.cmpf ogt, %42, %80 : vector<8x16xf32>
      %82 = arith.extui %81 : vector<8x16xi1> to vector<8x16xi32>
      %83 = arith.sitofp %82 : vector<8x16xi32> to vector<8x16xf32>
      %c0_29 = arith.constant 0 : index
      %c3 = arith.constant 3 : index
      %c0_30 = arith.constant 0 : index
      %c0_31 = arith.constant 0 : index
      %84 = vector.load %arg7[%c0_29, %c3, %c0_30, %c0_31] : memref<1x4x8x16xf32, #tpu.memory_space<vmem>>, vector<1x1x8x16xf32>
      %85 = vector.shape_cast %84 : vector<1x1x8x16xf32> to vector<8x16xf32>
      %86 = vector.shape_cast %83 : vector<8x16xf32> to vector<1x1x8x16xf32>
      tpu.vector_store %arg7[%c0_29, %c3, %c0_30, %c0_31], %86 {strides = array<i32>} : memref<1x4x8x16xf32, #tpu.memory_space<vmem>>, vector<1x1x8x16xf32>,
      %c0_32 = arith.constant 0 : index
      %c0_33 = arith.constant 0 : index
      %c0_34 = arith.constant 0 : index
      %87 = vector.load %arg10[%c0_32, %c0_33, %c0_34] : memref<8x16x128xf32, #tpu.memory_space<vmem>>, vector<8x16x128xf32>
      %cst_35 = arith.constant 9.99999968E-21 : f32
      %cst_36 = arith.constant 1.000000e+00 : f32
      %88 = vector.broadcast %cst_35 : f32 to vector<8x16x128xf32>
      %89 = arith.maximumf %88, %87 : vector<8x16x128xf32>
      %90 = vector.broadcast %cst_36 : f32 to vector<8x16x128xf32>
      %91 = arith.minimumf %90, %89 : vector<8x16x128xf32>
      %92 = math.log %91 : vector<8x16x128xf32>
      %cst_37 = arith.constant dense<0.000000e+00> : vector<8x16xf32>
      %93 = vector.multi_reduction <add>, %92, %cst_37 [2] : vector<8x16x128xf32> to vector<8x16xf32>
      %94 = math.exp %93 : vector<8x16xf32>
      %cst_38 = arith.constant 1.000000e+00 : f32
      %95 = vector.broadcast %cst_38 : f32 to vector<8x16xf32>
      %96 = arith.subf %95, %94 : vector<8x16xf32>
      %c0_39 = arith.constant 0 : index
      %c0_40 = arith.constant 0 : index
      %c0_41 = arith.constant 0 : index
      %c0_42 = arith.constant 0 : index
      %97 = vector.load %arg8[%c0_39, %c0_40, %c0_41, %c0_42] : memref<1x1x8x16xf32, #tpu.memory_space<vmem>>, vector<1x1x8x16xf32>
      %98 = vector.shape_cast %97 : vector<1x1x8x16xf32> to vector<8x16xf32>
      %99 = vector.shape_cast %96 : vector<8x16xf32> to vector<1x1x8x16xf32>
      tpu.vector_store %arg8[%c0_39, %c0_40, %c0_41, %c0_42], %99 {strides = array<i32>} : memref<1x1x8x16xf32, #tpu.memory_space<vmem>>, vector<1x1x8x16xf32>,
    } else {
    }
    return
  }
  func.func @transform_0(%arg0: i32, %arg1: i32, %arg2: i32, %arg3: i32, %arg4: memref<8xi32, #tpu.memory_space<smem>>) -> (i32, i32, i32, i32) {
    %c0_i32 = arith.constant 0 : i32
    %c0_i32_0 = arith.constant 0 : i32
    %c0_i32_1 = arith.constant 0 : i32
    %c0_i32_2 = arith.constant 0 : i32
    return %arg0, %c0_i32, %c0_i32_0, %c0_i32_1 : i32, i32, i32, i32
  }
  func.func @transform_1(%arg0: i32, %arg1: i32, %arg2: i32, %arg3: i32, %arg4: memref<8xi32, #tpu.memory_space<smem>>) -> (i32, i32, i32, i32) {
    %c0_i32 = arith.constant 0 : i32
    %c0_i32_0 = arith.constant 0 : i32
    %c0_i32_1 = arith.constant 0 : i32
    %c0_i32_2 = arith.constant 0 : i32
    return %arg0, %c0_i32, %c0_i32_0, %c0_i32_1 : i32, i32, i32, i32
  }
  func.func @transform_2(%arg0: i32, %arg1: i32, %arg2: i32, %arg3: i32, %arg4: memref<8xi32, #tpu.memory_space<smem>>) -> (i32, i32, i32, i32) {
    %c0_i32 = arith.constant 0 : i32
    %c0_i32_0 = arith.constant 0 : i32
    return %arg0, %c0_i32, %arg1, %arg2 : i32, i32, i32, i32
  }
  func.func @transform_3(%arg0: i32, %arg1: i32, %arg2: i32, %arg3: i32, %arg4: memref<8xi32, #tpu.memory_space<smem>>) -> (i32, i32, i32, i32) {
    %c0_i32 = arith.constant 0 : i32
    %c0_i32_0 = arith.constant 0 : i32
    return %arg0, %c0_i32, %arg1, %arg2 : i32, i32, i32, i32
  }
}

</mosaic_0001>

<bundles_post_ra>
// kernel: tpu_custom_call.1
= control target key start
LH: loop header
LB: loop body
LE: loop exit
PB: predicated region body
PF: predicated region fallthrough
CT: control target
= control target key end

     0   :  { %s10986_s0 = inlined_call_operand.vmem [shape: s32[8], index: 0, kind: input, shape index: {}]   ;;  %s10987_s1 = inlined_call_operand.vmem [shape: f32[2,1,10,256], index: 1, kind: input, shape index: {}]   ;;  %s10988_s2 = inlined_call_operand.vmem [shape: f32[2,3,256,8], index: 2, kind: input, shape index: {}]   ;;  %s10989_s3 = inlined_call_operand.hbm [shape: f32[2,4,16,16], index: 3, kind: output, shape index: {0}]   ;;  %s10990_s4 = inlined_call_operand.hbm [shape: f32[2,1,16,16], index: 4, kind: output, shape index: {1}]  }
   0x1   :  { %11502 = sst [smem:[#allocation194_spill]] %s10987_s1  ;;  %s10_s17 = sshll.u32 %s10986_s0, 4  ;;  %s11_s17 = int_to_ptr.vmem [resolvable:$true] %s10_s17 }
   0x2   :  { %s5357_s18 = scalar_lea.vmem %s11_s17, 16  ;;  %p5362_p1 = scmp.lt.s32.totalorder %s11_s17, %s11_s17 }
   0x3   :  { %p5358_p0 = scmp.ne.s32.totalorder %s11_s17, %s5357_s18  ;;  %p5363_p2 = scmp.lt.s32.totalorder %s5357_s18, %s5357_s18 }
   0x5   :  { %p5364_p3 = por %p5363_p2, %p5362_p1 }
   0x7   :  { %p5365_p4 = pnand %p5364_p3, %p5358_p0 }
   0x9   :  { %5368 = shalt.err (!%p5365_p4)  }
   0xa   :  { %s5499_s19 = smov [#allocation5]  }
   0xb   :  { %13 = dma.vmem_to_smem %s11_s17, 16, %s5499_s19, [#allocation4] }
   0xc   :  { %5457 = dma.done.wait [#allocation4], 16 }
   0xd   :  { %5458 = vsyncadd [#allocation4], 4294967280 }
   0xe   :  { %15 = sfence }
   0xf   :  { %16 = vsyncpa [#allocation7], 0 }
  0x10   :  { %18 = vsyncpa [#allocation7 + $0x1], 0 }
  0x11   :  { %19 = vsyncpa [#allocation9], 0 }
  0x12   :  { %21 = vsyncpa [#allocation9 + $0x1], 0  ;;  %s5538_s20 = smov 0   ;;  %s5540_s0 = smov 0  }
  0x13   :  { %s5542_s21 = smov 0   ;;  %s5544_s22 = smov 0  }
  0x14   :  { %s5546_s23 = smov 0   ;;  %s5548_s24 = smov 0  }
  0x15   :  { %s5550_s25 = smov 0   ;;  %s5552_s26 = smov 0  }
  0x16 LB: > { %s4727_s27 = sadd.s32 4294967295, %s5497_s26   ;;  %s4728_s28 = sadd.s32 4294967294, %s5497_s26   ;;  %s5497_s26 = sphi %s5552_s26, %s27_s26   ;;  %s5493_s25 = sphi %s5550_s25, %s12678_s25   ;;  %s5489_s24 = sphi %s5548_s24, %s12677_s24   ;;  %s5485_s23 = sphi %s5546_s23, %s12676_s23   ;;  %s5481_s22 = sphi %s5544_s22, %s12675_s22   ;;  %s5477_s21 = sphi %s5542_s21, %s12674_s21   ;;  %s5473_s0 = sphi %s5540_s0, %s12673_s0   ;;  %s5469_s20 = sphi %s5538_s20, %s12672_s20  }
  0x17   : > { %s49_s29 = sadd.s32 1, %s5489_s24  ;;  %s53_s30 = sadd.s32 1, %s5493_s25 }
  0x18   : > { %p51_p5 = scmp.ge.s32.totalorder %s49_s29, 2  ;;  %p126_p6 = scmp.ne.s32.totalorder %s5477_s21, %s5473_s0 }
  0x19   : > { %p127_p7 = scmp.eq.s32.totalorder %s4727_s27, 3  ;;  %p132_p10 = scmp.ne.s32.totalorder %s5473_s0, %s5469_s20 }
  0x1a   : > { %s12680_s29 = smov (%p51_p5, %s49_s29), 0  ;;  %s12682_s30 = smov (!%p51_p5, %s53_s30), %s5493_s25 }
  0x1b   : > { %s110_s5 = ssub.s32 %s5489_s24, %s12680_s29  ;;  %p5589_p8 = por %p127_p7, %p126_p6 }
  0x1c   : > { %p55_p9 = scmp.ge.s32.totalorder %s12682_s30, 2  ;;  %p133_p11 = scmp.eq.s32.totalorder %s4728_s28, 3 }
  0x1d   : > { %p4731_p12 = scmp.ge.s32.totalorder %s5497_s26, 1  ;;  %p197_p0 = scmp.lt.s32.totalorder %s5497_s26, 5 }
  0x1e   : > { %s12684_s30 = smov (%p55_p9, %s12682_s30), 0  ;;  %p5598_p13 = por %p133_p11, %p132_p10 }
  0x1f   : > { %s109_s8 = ssub.s32 %s5493_s25, %s12684_s30  ;;  %s116_s9 = sadd.s32 1, %s5477_s21 }
  0x20   : > { %s111_s10 = sor.u32 %s110_s5, %s109_s8  ;;  %p198_p1 = pnand %p4731_p12, %p197_p0 }
  0x21   : > { %p114_p2 = scmp.eq.s32.totalorder %s111_s10, 0 }
  0x22   : > { %201 = sbr.rel (%p198_p1) target bundleno = 1259 (0x4eb), region = 28 }
  0x23   : > { %s5607_s11 = scalar_select %p114_p2, %s5477_s21, %s116_s9  }
  0x29   : > { %s5610_s12 = sand.u32 1, %s5473_s0   ;;  %p231_p3 = scmp.lt.s32.totalorder %s5485_s23, 1  ;;  %v10991_v0 = vlaneseq  ;;  %v5500_v1 = vmov 1.0   ;;  %v10992_v3 = vmov 0.0   ;;  %vm11071_vm1 = vcmask 64512  }
  0x2a   : > { %s4732_s13 = sshll.u32 %s5610_s12, 5  ;;  %s4733_s14 = sshll.u32 %s5610_s12, 3  ;;  %273 = vst [vmem:[#allocation3] sm:$0xff] %v5500_v1  ;;  %274 = vst [vmem:[#allocation3 + $0x8] sm:$0xff] %v5500_v1 }
  0x2b   : > { %275 = vst [vmem:[#allocation3 + $0x10] sm:$0xff] %v5500_v1  ;;  %276 = vst [vmem:[#allocation3 + $0x18] sm:$0xff] %v5500_v1  ;;  %v5616_v2 = vand.u32 127, %v10991_v0  ;;  %s232_s15 = scalar_select %p231_p3, %s5485_s23, 1 }
  0x2c   : > { %277 = vst [vmem:[#allocation3 + $0x20] sm:$0xff] %v5500_v1  ;;  %278 = vst [vmem:[#allocation3 + $0x28] sm:$0xff] %v5500_v1  ;;  %s5623_s16 = sshll.u32 %s5485_s23, 2  ;;  %s11507_s1 = sld [smem:[#allocation194_spill]] }
  0x2d   : > { %279 = vst [vmem:[#allocation3 + $0x30] sm:$0xff] %v5500_v1  ;;  %280 = vst [vmem:[#allocation3 + $0x38] sm:$0xff] %v5500_v1  ;;  %vm11070_vm0 = vcmp.eq.s32.totalorder %v5616_v2, 4  ;;  %s4910_s17 = sshll.u32 %s232_s15, 5  ;;  %s5119_s18 = smul.u32 768, %s232_s15 }
  0x2e   : > { %281 = vst [vmem:[#allocation3 + $0x40] sm:$0xff] %v5500_v1  ;;  %282 = vst [vmem:[#allocation3 + $0x48] sm:$0xff] %v5500_v1  ;;  %v5628_v4 = vsel %vm11070_vm0, 1.0, %v10992_v3  ;;  %s291_s5 = sld [smem:[#allocation5 + %s5623_s16]]  ;;  %s293_s15 = sadd.s32 1, %s5623_s16 }
  0x2f   : > { %283 = vst [vmem:[#allocation3 + $0x50] sm:$0xff] %v5500_v1  ;;  %284 = vst [vmem:[#allocation3 + $0x58] sm:$0xff] %v5500_v1  ;;  %v255_v5 = vmul.f32 -1e+30, %v5628_v4  ;;  %s5640_s10 = scalar_lea.vmem %s10988_s2, %s5119_s18  ;;  %s298_s18 = sadd.s32 2, %s5623_s16 }
  0x30   : > { %285 = vst [vmem:[#allocation3 + $0x60] sm:$0xff] %v5500_v1  ;;  %286 = vst [vmem:[#allocation3 + $0x68] sm:$0xff] %v5500_v1  ;;  %s299_s19 = sld [smem:[#allocation5 + %s298_s18]]  ;;  %s303_s27 = sadd.s32 3, %s5623_s16 }
  0x31   : > { %287 = vst [vmem:[#allocation3 + $0x70] sm:$0xff] %v5500_v1  ;;  %288 = vst [vmem:[#allocation3 + $0x78] sm:$0xff] %v5500_v1  ;;  %s304_s8 = sld [smem:[#allocation5 + %s303_s27]]  ;;  %s5665_s9 = scalar_lea.vmem [#allocation6], %s4732_s13 }
  0x32   : > { %11505 = vst [vmem:[#allocation13_spill] sm:$0xff] %v5616_v2  ;;  %11506 = vst [vmem:[#allocation14_spill] sm:$0xff] %v5628_v4  ;;  %s5633_s28 = scalar_lea.vmem %s11507_s1, %s4910_s17  ;;  %s294_s17 = sld [smem:[#allocation5 + %s293_s15]] }
  0x33   : > { %257 = vst.msk [vmem:[#allocation2] sm:$0xff] %vm11071_vm1, %v255_v5  ;;  %258 = vst.msk [vmem:[#allocation2 + $0x8] sm:$0xff] %vm11071_vm1, %v255_v5  ;;  %s5669_s1 = scalar_lea.vmem [#allocation8], %s4733_s14 }
  0x34   : > { %259 = vst.msk [vmem:[#allocation2 + $0x10] sm:$0xff] %vm11071_vm1, %v255_v5  ;;  %260 = vst.msk [vmem:[#allocation2 + $0x18] sm:$0xff] %vm11071_vm1, %v255_v5  ;;  %p292_p4 = scmp.ge.s32.totalorder %s5481_s22, %s291_s5 }
  0x35   : > { %261 = vst.msk [vmem:[#allocation2 + $0x20] sm:$0xff] %vm11071_vm1, %v255_v5  ;;  %262 = vst.msk [vmem:[#allocation2 + $0x28] sm:$0xff] %vm11071_vm1, %v255_v5 }
  0x36   : > { %263 = vst.msk [vmem:[#allocation2 + $0x30] sm:$0xff] %vm11071_vm1, %v255_v5  ;;  %264 = vst.msk [vmem:[#allocation2 + $0x38] sm:$0xff] %vm11071_vm1, %v255_v5  ;;  %p4739_p7 = scmp.le.s32.totalorder %s299_s19, 0 }
  0x37   : > { %265 = vst.msk [vmem:[#allocation2 + $0x40] sm:$0xff] %vm11071_vm1, %v255_v5  ;;  %266 = vst.msk [vmem:[#allocation2 + $0x48] sm:$0xff] %vm11071_vm1, %v255_v5  ;;  %p4740_p11 = scmp.ge.s32.totalorder %s304_s8, 0 }
  0x38   : > { %267 = vst.msk [vmem:[#allocation2 + $0x50] sm:$0xff] %vm11071_vm1, %v255_v5  ;;  %268 = vst.msk [vmem:[#allocation2 + $0x58] sm:$0xff] %vm11071_vm1, %v255_v5  ;;  %p295_p5 = scmp.le.s32.totalorder %s5481_s22, %s294_s17 }
  0x39   : > { %269 = vst.msk [vmem:[#allocation2 + $0x60] sm:$0xff] %vm11071_vm1, %v255_v5  ;;  %270 = vst.msk [vmem:[#allocation2 + $0x68] sm:$0xff] %vm11071_vm1, %v255_v5 }
  0x3a   : > { %271 = vst.msk [vmem:[#allocation2 + $0x70] sm:$0xff] %vm11071_vm1, %v255_v5  ;;  %272 = vst.msk [vmem:[#allocation2 + $0x78] sm:$0xff] %vm11071_vm1, %v255_v5  ;;  %p296_p6 = pnand %p295_p5, %p292_p4 }
  0x3c   : > { %p297_p9 = pneg %p296_p6 }
  0x3e   : > { %p301_p10 = pnand %p4739_p7, %p297_p9 }
  0x40   : > { %p302_p12 = pneg %p301_p10 }
  0x42   : > { %p306_p0 = pnand %p4740_p11, %p302_p12 }
  0x44   : > { %309 = sbr.rel (%p306_p0) target bundleno = 922 (0x39a), region = 36 }
  0x4b   : > { %v5672_v6 = vld [vmem:[%s5633_s28] ss:$8 sm:$0x3]  ;;  %v5675_v7 = vld [vmem:[%s5633_s28 + $0x1] ss:$8 sm:$0x3] }
  0x4c   : > { %v5678_v8 = vld [vmem:[%s5633_s28 + $0x2] ss:$8 sm:$0x3]  ;;  %v5681_v9 = vld [vmem:[%s5633_s28 + $0x3] ss:$8 sm:$0x3] }
  0x4d   : > { %v4744_v10 = vld [vmem:[%s5633_s28 + $0x4] ss:$8 sm:$0x3]  ;;  %v5685_v11 = vld [vmem:[%s5633_s28 + $0x5] ss:$8 sm:$0x3]  ;;  %v5719_v26 = vsub.f32 %v5678_v8, %v5672_v6  ;;  %v5723_v31 = vsub.f32 %v5681_v9, %v5675_v7 }
  0x4e   : > { %v399_v12 = vsub.f32 %v5681_v9, %v5685_v11  ;;  %v5690_v13 = vsub.f32 %v4744_v10, %v5678_v8  ;;  %v5693_v14 = vsub.f32 %v5672_v6, %v4744_v10  ;;  %v5697_v15 = vsub.f32 %v5675_v7, %v5685_v11  ;;  %s4750_s13 = sshll.u32 %s5481_s22, 3  ;;  %v4749_v47 = vld [vmem:[%s5633_s28 + $0x11] ss:$8 sm:$0x3] }
  0x4f   : > { %v5701_v16 = vshrl.u32 %v10991_v0, 7  ;;  %v5704_v18 = vstv %s4750_s13  ;;  %v401_v35 = vsub.f32 %v5685_v11, %v5675_v7  ;;  %v2255_v39 = vmul.f32 %v5719_v26, %v5719_v26 }
  0x50   : > { %v404_v17 = vmul.f32 %v5693_v14, %v399_v12  ;;  %11509 = vst [vmem:[#allocation16_spill] sm:$0xff] %v5704_v18  ;;  %v405_v19 = vmul.f32 %v5697_v15, %v5690_v13  ;;  %v337_v20 = vadd.s32 4, %v5704_v18  ;;  %vm741_vm3 = vcmp.gt.f32.partialorder %v4749_v47, 0.0 }
  0x51   : > { %11508 = vst [vmem:[#allocation15_spill] sm:$0xff] %v5701_v16  ;;  %v351_v21 = vadd.s32 8, %v5701_v16  ;;  %v356_v22 = vcvt.s32.f32 %v5701_v16  ;;  %v5712_v24 = vsub.s32 0, %v5701_v16  ;;  %v5715_v25 = vsub.s32 1, %v5701_v16 }
  0x52   : > { %v406_v23 = vadd.f32 %v405_v19, %v404_v17  ;;  %v345_v27 = vcvt.s32.f32 %v337_v20  ;;  %v4746_v20 = vld [vmem:[%s5633_s28 + $0x6] ss:$8 sm:$0x3] }
  0x53   : > { %v357_v28 = vcvt.s32.f32 %v351_v21  ;;  %v358_v29 = vmul.f32 2.0, %v356_v22  ;;  %v416_v37 = vrot.slane %v4744_v10, %v5712_v24  ;;  %v420_v38 = vrot.slane %v4744_v10, %v5715_v25  ;;  %v4747_v21 = vld [vmem:[%s5633_s28 + $0x7] ss:$8 sm:$0x3] }
  0x54   : > { %v407_v30 = vand.u32 2147483647, %v406_v23  ;;  %v371_v34 = vmul.f32 2.0, %v345_v27  ;;  %v5739_v44 = vrot.slane %v5685_v11, %v5712_v24  ;;  %v5743_v45 = vrot.slane %v5685_v11, %v5715_v25 }
  0x55   : > { %v359_v32 = vmul.f32 2.0, %v357_v28  ;;  %v360_v33 = vadd.f32 1.0, %v358_v29  ;;  %v458_v46 = vrot.slane %v399_v12, %v5712_v24  ;;  %v462_v51 = vrot.slane %v399_v12, %v5715_v25  ;;  %v4748_v29 = vld [vmem:[%s5633_s28 + $0x10] ss:$8 sm:$0x3] }
  0x56   : > { %vm5727_vm2 = vcmp.gt.f32.partialorder %v407_v30, 1e-10  ;;  %v379_v42 = vadd.f32 1.0, %v371_v34  ;;  %11512 = vst [vmem:[#allocation17_spill] sm:$0xff] %v5739_v44  ;;  %11513 = vst [vmem:[#allocation18_spill] sm:$0xff] %v5743_v45  ;;  %v5752_v52 = vrot.slane %v5690_v13, %v5712_v24  ;;  %v5756_v53 = vrot.slane %v5690_v13, %v5715_v25 }
  0x57   : > { %v361_v40 = vadd.f32 1.0, %v359_v32  ;;  %v363_v41 = vmul.f32 0.0625, %v360_v33  ;;  %v409_v43 = vsel %vm5727_vm2, %v406_v23, 1.0  ;;  %v575_v54 = vrot.slane %v401_v35, %v5712_v24 }
  0x58   : > { %5205 = vrcp.f32 %v409_v43  ;;  %v387_v50 = vmul.f32 0.0625, %v379_v42  ;;  %11514 = vst [vmem:[#allocation19_spill] sm:$0xff] %v5752_v52  ;;  %11515 = vst [vmem:[#allocation20_spill] sm:$0xff] %v5756_v53  ;;  %v579_v55 = vrot.slane %v401_v35, %v5715_v25  ;;  %v5772_v60 = vrot.slane %v5693_v14, %v5712_v24 }
  0x59   : > { %v364_v48 = vmul.f32 0.0625, %v361_v40  ;;  %v5747_v49 = vadd.f32 -1.0, %v363_v41  ;;  %v5776_v61 = vrot.slane %v5693_v14, %v5715_v25  ;;  %v2256_v27 = vmul.f32 %v5723_v31, %v5723_v31 }
  0x5a   : > { %v5762_v57 = vsub.f32 1.0, %v387_v50  ;;  %11516 = vst [vmem:[#allocation21_spill] sm:$0xff] %v5772_v60  ;;  %v5814_v28 = vsub.f32 %v5685_v11, %v5681_v9  ;;  %v10994_v33 = vmov 0   ;;  %v988_v50 = vsub.f32 %v4746_v20, %v4748_v29 }
  0x5b   : > { %v5760_v56 = vadd.f32 -1.0, %v364_v48  ;;  %v5765_v58 = vsub.f32 %v5747_v49, %v416_v37  ;;  %v5768_v59 = vsub.f32 %v5747_v49, %v420_v38  ;;  %11517 = vst [vmem:[#allocation22_spill] sm:$0xff] %v5776_v61  ;;  %v902_v34 = vsel %vm5727_vm2, 1, %v10994_v33 }
  0x5c   : > { %v5786_v1 = vsub.f32 %v5762_v57, %v5739_v44  ;;  %v5790_v5 = vsub.f32 %v5762_v57, %v5743_v45  ;;  %v945_v35 = vsel %vm741_vm3, 1, %v10994_v33  ;;  %v906_v0 = vrot.slane %v902_v34, %v5712_v24 }
  0x5d   : > { %v5779_v62 = vsub.f32 %v5760_v56, %v416_v37  ;;  %v5782_v63 = vsub.f32 %v5760_v56, %v420_v38  ;;  %v5793_v10 = vmul.f32 %v458_v46, %v5765_v58  ;;  %v5796_v12 = vmul.f32 %v462_v51, %v5768_v59 }
  0x5e   : > { %v5799_v17 = vmul.f32 %v575_v54, %v5765_v58  ;;  %v5802_v19 = vmul.f32 %v579_v55, %v5768_v59  ;;  %v488_v22 = vmul.f32 %v5752_v52, %v5786_v1  ;;  %v489_v23 = vmul.f32 %v5756_v53, %v5790_v5 }
  0x5f   : > { %11518 = vst [vmem:[#allocation23_spill] sm:$0xff] %v5793_v10  ;;  %11519 = vst [vmem:[#allocation24_spill] sm:$0xff] %v5796_v12  ;;  %v605_v30 = vmul.f32 %v5772_v60, %v5786_v1  ;;  %v606_v32 = vmul.f32 %v5776_v61, %v5790_v5  ;;  %v5827_v37 = vmul.f32 %v458_v46, %v5779_v62  ;;  %vm5897_vm4 = vcmp.eq.s32.totalorder %v906_v0, 1 }
  0x60   : > { %11520 = vst [vmem:[#allocation25_spill] sm:$0xff] %v5799_v17  ;;  %11521 = vst [vmem:[#allocation26_spill] sm:$0xff] %v5802_v19  ;;  %v5830_v11 = vmul.f32 %v462_v51, %v5782_v63  ;;  %v512_v38 = vadd.f32 %v488_v22, %v5793_v10  ;;  %v513_v40 = vadd.f32 %v489_v23, %v5796_v12  ;;  %v11549_v0 = vmov 0 }
  0x61   : > { %11522 = vst [vmem:[#allocation27_spill] sm:$0xff] %v5827_v37  ;;  %v5835_v42 = vmul.f32 %v575_v54, %v5779_v62  ;;  %v5838_v36 = vmul.f32 %v579_v55, %v5782_v63  ;;  %v629_v43 = vadd.f32 %v605_v30, %v5799_v17  ;;  %v630_v47 = vadd.f32 %v606_v32, %v5802_v19 }
  0x62   : > { %11523 = vst [vmem:[#allocation28_spill] sm:$0xff] %v5830_v11  ;;  %v5206_v41 = vpop.eup %5205  ;;  %v1075_v51 = vsub.f32 %v4747_v21, %v4748_v29  ;;  %v910_v54 = vrot.slane %v902_v34, %v5715_v25  ;;  %v949_v3 = vrot.slane %v945_v35, %v5712_v24  ;;  %v2257_v55 = vadd.f32 %v2256_v27, %v2255_v39 }
  0x63   : > { %11524 = vst [vmem:[#allocation29_spill] sm:$0xff] %v5835_v42  ;;  %11525 = vst [vmem:[#allocation30_spill] sm:$0xff] %v5838_v36  ;;  %v5843_v46 = vrot.slane %v5206_v41, %v5712_v24  ;;  %v5846_v48 = vrot.slane %v5206_v41, %v5715_v25  ;;  %v514_v33 = vadd.f32 %v488_v22, %v5827_v37  ;;  %v11556_v12 = vmov 0 }
  0x64   : > { %v515_v2 = vadd.f32 %v489_v23, %v5830_v11  ;;  %v631_v20 = vadd.f32 %v605_v30, %v5835_v42  ;;  %v632_v21 = vadd.f32 %v606_v32, %v5838_v36  ;;  %v953_v23 = vrot.slane %v945_v35, %v5715_v25 }
  0x65   : > { %11526 = vst [vmem:[#allocation31_spill] sm:$0xff] %v5843_v46  ;;  %11527 = vst [vmem:[#allocation32_spill] sm:$0xff] %v5846_v48  ;;  %v5854_v4 = vmul.f32 %v5843_v46, %v512_v38  ;;  %v5857_v19 = vmul.f32 %v5846_v48, %v513_v40  ;;  %v5862_v41 = vmul.f32 %v629_v43, %v5843_v46  ;;  %v11541_v36 = vmov 0 }
  0x66   : > { %v5865_v34 = vmul.f32 %v630_v47, %v5846_v48  ;;  %v5871_v27 = vrot.slane %v988_v50, %v5712_v24  ;;  %v5874_v38 = vrot.slane %v988_v50, %v5715_v25  ;;  %v5877_v30 = vrot.slane %v4748_v29, %v5712_v24 }
  0x67   : > { %11528 = vst [vmem:[#allocation33_spill] sm:$0xff] %v5854_v4  ;;  %11529 = vst [vmem:[#allocation34_spill] sm:$0xff] %v5857_v19  ;;  %v693_v39 = vsub.f32 1.0, %v5854_v4  ;;  %v694_v22 = vsub.f32 1.0, %v5857_v19  ;;  %v5880_v32 = vrot.slane %v4748_v29, %v5715_v25  ;;  %v5883_v40 = vrot.slane %v1075_v51, %v5712_v24 }
  0x68   : > { %11530 = vst [vmem:[#allocation35_spill] sm:$0xff] %v5862_v41  ;;  %11531 = vst [vmem:[#allocation36_spill] sm:$0xff] %v5865_v34  ;;  %v5886_v43 = vmul.f32 %v5843_v46, %v514_v33  ;;  %v5889_v35 = vmul.f32 %v5846_v48, %v515_v2  ;;  %v11542_v36 = vsel %vm5897_vm4, 4294967295, %v11541_v36  ;;  %v5902_v29 = vmul.f32 %v631_v20, %v5843_v46 }
  0x69   : > { %11532 = vst [vmem:[#allocation37_spill] sm:$0xff] %v5871_v27  ;;  %11533 = vst [vmem:[#allocation38_spill] sm:$0xff] %v5874_v38  ;;  %v5892_v47 = vsub.f32 %v693_v39, %v5862_v41  ;;  %v5895_v50 = vsub.f32 %v694_v22, %v5865_v34  ;;  %v5905_v42 = vmul.f32 %v632_v21, %v5846_v48  ;;  %vm758_vm5 = vcmp.ge.f32.partialorder %v5854_v4, 0.0 }
  0x6a   : > { %11534 = vst [vmem:[#allocation39_spill] sm:$0xff] %v5877_v30  ;;  %11535 = vst [vmem:[#allocation40_spill] sm:$0xff] %v5880_v32  ;;  %vm759_vm6 = vcmp.ge.f32.partialorder %v5857_v19, 0.0  ;;  %vm5909_vm7 = vcmp.eq.s32.totalorder %v910_v54, 1  ;;  %v11546_v2 = vmov 0  ;;  %vm790_vm8 = vcmp.ge.f32.partialorder %v5862_v41, 0.0 }
  0x6b   : > { %11536 = vst [vmem:[#allocation41_spill] sm:$0xff] %v5883_v40  ;;  %11537 = vst [vmem:[#allocation42_spill] sm:$0xff] %v5886_v43  ;;  %v11547_v2 = vsel %vm5909_vm7, 4294967295, %v11546_v2  ;;  %vm791_vm9 = vcmp.ge.f32.partialorder %v5865_v34, 0.0  ;;  %vm854_vm10 = vcmp.ge.f32.partialorder %v5892_v47, 0.0  ;;  %vm855_vm11 = vcmp.ge.f32.partialorder %v5895_v50, 0.0 }
  0x6c   : > { %11538 = vst [vmem:[#allocation43_spill] sm:$0xff] %v5889_v35  ;;  %11539 = vst [vmem:[#allocation44_spill] sm:$0xff] %v5892_v47  ;;  %vm5917_vm12 = vcmp.eq.s32.totalorder %v949_v3, 1  ;;  %v1016_v33 = vmul.f32 %v5871_v27, %v5854_v4  ;;  %v1017_v54 = vmul.f32 %v5874_v38, %v5857_v19  ;;  %v5926_v20 = vrot.slane %v1075_v51, %v5715_v25 }
  0x6d   : > { %11540 = vst [vmem:[#allocation45_spill] sm:$0xff] %v5895_v50  ;;  %11543 = vst [vmem:[#allocation46_spill] sm:$0xff] %v11542_v36  ;;  %v11550_v0 = vsel %vm5917_vm12, 4294967295, %v11549_v0  ;;  %v1103_v21 = vmul.f32 %v5883_v40, %v5862_v41  ;;  %vm5930_vm13 = vcmp.eq.s32.totalorder %v953_v23, 1  ;;  %v11553_v39 = vmov 0 }
  0x6e   : > { %11544 = vst [vmem:[#allocation47_spill] sm:$0xff] %v5902_v29  ;;  %11545 = vst [vmem:[#allocation48_spill] sm:$0xff] %v5905_v42  ;;  %v11554_v39 = vsel %vm5930_vm13, 4294967295, %v11553_v39  ;;  %v2258_v3 = vadd.f32 1e-10, %v2257_v55  ;;  %v2278_v22 = vrot.slane %v5719_v26, %v5712_v24  ;;  %v2282_v48 = vrot.slane %v5719_v26, %v5715_v25 }
  0x6f   : > { %11548 = vst [vmem:[#allocation49_spill] sm:$0xff] %v11547_v2  ;;  %11551 = vst [vmem:[#allocation50_spill] sm:$0xff] %v11550_v0  ;;  %v2291_v46 = vrot.slane %v5723_v31, %v5712_v24  ;;  %v1059_v51 = vadd.f32 %v5877_v30, %v1016_v33  ;;  %v1060_v23 = vadd.f32 %v5880_v32, %v1017_v54 }
  0x70   : > { %11552 = vst [vmem:[#allocation51_spill] sm:$0xff] %v5926_v20  ;;  %11555 = vst [vmem:[#allocation52_spill] sm:$0xff] %v11554_v39  ;;  %v1104_v41 = vmul.f32 %v5926_v20, %v5865_v34  ;;  %v2295_v55 = vrot.slane %v5723_v31, %v5715_v25  ;;  %5207 = vrcp.f32 %v2258_v3  ;;  %v2285_v26 = vpack.c.bf16 %v2278_v22, %v2278_v22 }
  0x71   : > { %vm822_vm14 = vmand %vm758_vm5, %vm790_vm8  ;;  %v2286_v17 = vpack.c.bf16 %v2282_v48, %v2282_v48  ;;  %v2298_v4 = vpack.c.bf16 %v2291_v46, %v2291_v46  ;;  %v1135_v11 = vadd.f32 %v1103_v21, %v1059_v51  ;;  %v2304_v54 = vrot.slane %v5672_v6, %v5712_v24 }
  0x72   : > { %vm823_vm15 = vmand %vm759_vm6, %vm791_vm9  ;;  %v1136_v37 = vadd.f32 %v1104_v41, %v1060_v23  ;;  %v2299_v33 = vpack.c.bf16 %v2295_v55, %v2295_v55  ;;  %v2308_v31 = vrot.slane %v5672_v6, %v5715_v25  ;;  %v5964_v3 = vrot.slane %v5675_v7, %v5712_v24 }
  0x73   : > { %vm5956_vm2 = vmand %vm822_vm14, %vm854_vm10  ;;  %v5968_v46 = vrot.slane %v5675_v7, %v5715_v25  ;;  %v2361_v48 = vpack.i.b16 %v2285_v26, %v2285_v26  ;;  %v11561_v41 = vmov 0  ;;  %v2311_v21 = vsub.f32 %v5747_v49, %v2304_v54 }
  0x74   : > { %v11557_v12 = vsel %vm5956_vm2, 4294967295, %v11556_v12  ;;  %11559 = vst [vmem:[#allocation54_spill] sm:$0xff] %v5964_v3  ;;  %vm5972_vm3 = vmand %vm823_vm15, %vm855_vm11  ;;  %v2313_v22 = vsub.f32 %v5760_v56, %v2304_v54  ;;  %v2368_v6 = vpack.i.b16 %v2286_v17, %v2286_v17  ;;  %v2377_v51 = vpack.i.b16 %v2298_v4, %v2298_v4 }
  0x75   : > { %11558 = vst [vmem:[#allocation53_spill] sm:$0xff] %v11557_v12  ;;  %11560 = vst [vmem:[#allocation55_spill] sm:$0xff] %v5968_v46  ;;  %v11562_v41 = vsel %vm5972_vm3, 4294967295, %v11561_v41  ;;  %v2312_v23 = vsub.f32 %v5747_v49, %v2308_v31  ;;  %v2314_v55 = vsub.f32 %v5760_v56, %v2308_v31  ;;  %v2336_v7 = vsub.f32 %v5762_v57, %v5964_v3 }
  0x76   : > { %11563 = vst [vmem:[#allocation56_spill] sm:$0xff] %v11562_v41  ;;  %v2337_v26 = vsub.f32 %v5762_v57, %v5968_v46  ;;  %vm11073_vm5 = vmand %vm5956_vm2, %vm5897_vm4  ;;  %v5988_v47 = vpack.c.bf16 %v2313_v22, %v2311_v21  ;;  %v5991_v17 = vrot.slane %v2361_v48, %v5712_v24  ;;  %v5994_v4 = vrot.slane %v2368_v6, %v5712_v24 }
  0x77   : > { %v5997_v54 = vrot.slane %v2377_v51, %v5712_v24  ;;  %vm11072_vm6 = vmand %vm5972_vm3, %vm5909_vm7  ;;  %v6003_v31 = vpack.c.bf16 %v2314_v55, %v2312_v23  ;;  %v6005_v50 = vpack.c.bf16 %v2336_v7, %v2336_v7  ;;  %v2384_v22 = vpack.i.b16 %v2299_v33, %v2299_v33 }
  0x78   : > { %11564 = vst [vmem:[#allocation57_spill] sm:$0xff] %v5988_v47  ;;  %11565 = vst [vmem:[#allocation58_spill] sm:$0xff] %v5991_v17  ;;  %v6007_v21 = vpack.c.bf16 %v2337_v26, %v2337_v26  ;;  %v695_v48 = vsub.f32 1.0, %v5886_v43  ;;  %v6012_v6 = vmul.bf16 %v5991_v17, %v5988_v47  ;;  %v2597_v51 = vmul.f32 %v5690_v13, %v5690_v13 }
  0x79   : > { %11566 = vst [vmem:[#allocation59_spill] sm:$0xff] %v5994_v4  ;;  %11567 = vst [vmem:[#allocation60_spill] sm:$0xff] %v6003_v31  ;;  %v2598_v19 = vmul.f32 %v5814_v28, %v5814_v28  ;;  %v11569_v33 = vmov 0  ;;  %v6031_v23 = vmul.bf16 %v5994_v4, %v6003_v31  ;;  %v6034_v13 = vrot.slane %v2384_v22, %v5712_v24 }
  0x7a   : > { %11568 = vst [vmem:[#allocation61_spill] sm:$0xff] %v6012_v6  ;;  %vm6025_vm8 = vmand %vm11073_vm5, %vm5917_vm12  ;;  %v2398_v55 = vmul.bf16 %v5997_v54, %v6005_v50  ;;  %v2616_v7 = vpack.c.bf16 %v5752_v52, %v5752_v52  ;;  %v11573_v26 = vmov 0  ;;  %v2617_v12 = vpack.c.bf16 %v5756_v53, %v5756_v53  ;;  %v5208_v46 = vpop.eup %5207 }
  0x7b   : > { %v11570_v33 = vsel %vm6025_vm8, 4294967295, %v11569_v33  ;;  %11572 = vst [vmem:[#allocation63_spill] sm:$0xff] %v6031_v23  ;;  %vm6047_vm9 = vmand %vm11072_vm6, %vm5930_vm13  ;;  %v6053_v22 = vsel %vm6025_vm8, %v1135_v11, -1e+30  ;;  %v2599_v34 = vadd.f32 %v2598_v19, %v2597_v51  ;;  %v2622_v10 = vrot.slane %v5814_v28, %v5712_v24 }
  0x7c   : > { %11571 = vst [vmem:[#allocation62_spill] sm:$0xff] %v11570_v33  ;;  %v11574_v26 = vsel %vm6047_vm9, 4294967295, %v11573_v26  ;;  %11576 = vst [vmem:[#allocation65_spill] sm:$0xff] %v6053_v22  ;;  %v6061_v41 = vsel %vm6047_vm9, %v1136_v37, -1e+30  ;;  %v2399_v3 = vmul.bf16 %v6034_v13, %v6007_v21  ;;  %v2414_v52 = vadd.bf16 %v2398_v55, %v6012_v6 }
  0x7d   : > { %11575 = vst [vmem:[#allocation64_spill] sm:$0xff] %v11574_v26  ;;  %11577 = vst [vmem:[#allocation66_spill] sm:$0xff] %v6061_v41  ;;  %v2626_v11 = vrot.slane %v5814_v28, %v5715_v25  ;;  %v1207_v19 = vmax.f32 %v6053_v22, %v6061_v41  ;;  %v2265_v51 = vrot.slane %v5208_v46, %v5712_v24  ;;  %v2600_v53 = vadd.f32 1e-10, %v2599_v34 }
  0x7e   : > { %v2269_v33 = vrot.slane %v5208_v46, %v5715_v25  ;;  %v2415_v26 = vadd.bf16 %v2399_v3, %v6031_v23  ;;  %v2629_v37 = vpack.c.bf16 %v2622_v10, %v2622_v10  ;;  %v2635_v44 = vrot.slane %v5678_v8, %v5712_v24  ;;  %vm3343_vm6 = vmpackc.low %vm5930_vm13, %vm5917_vm12 }
  0x7f   : > { %v2630_v45 = vpack.c.bf16 %v2626_v11, %v2626_v11  ;;  %v2272_v16 = vpack.c.bf16 %v2265_v51, %v2265_v51  ;;  %5209 = vrcp.f32 %v2600_v53  ;;  %v2639_v28 = vrot.slane %v5678_v8, %v5715_v25  ;;  %1208 = vmax.xlane.f32.xlu0 %v1207_v19 }
  0x80   : > { %v2273_v55 = vpack.c.bf16 %v2269_v33, %v2269_v33  ;;  %v2642_v41 = vsub.f32 %v5747_v49, %v2635_v44  ;;  %v2644_v22 = vsub.f32 %v5760_v56, %v2635_v44  ;;  %v6081_v34 = vrot.slane %v5681_v9, %v5712_v24 }
  0x81   : > { %v6085_v10 = vrot.slane %v5681_v9, %v5715_v25  ;;  %v2423_v3 = vpack.i.b16 %v2272_v16, %v2272_v16  ;;  %v2643_v53 = vsub.f32 %v5747_v49, %v2639_v28  ;;  %v2645_v33 = vsub.f32 %v5760_v56, %v2639_v28 }
  0x82   : > { %11578 = vst [vmem:[#allocation67_spill] sm:$0xff] %v6081_v34  ;;  %v2430_v46 = vpack.i.b16 %v2273_v55, %v2273_v55  ;;  %v696_v8 = vsub.f32 1.0, %v5889_v35  ;;  %v2667_v11 = vsub.f32 %v5762_v57, %v6081_v34  ;;  %v2692_v19 = vpack.i.b16 %v2616_v7, %v2616_v7 }
  0x83   : > { %11579 = vst [vmem:[#allocation68_spill] sm:$0xff] %v6085_v10  ;;  %v2668_v44 = vsub.f32 %v5762_v57, %v6085_v10  ;;  %v6095_v51 = vrot.slane %v2423_v3, %v5712_v24  ;;  %v6100_v16 = vpack.c.bf16 %v2644_v22, %v2642_v41  ;;  %v2699_v49 = vpack.i.b16 %v2617_v12, %v2617_v12 }
  0x84   : > { %v6098_v9 = vrot.slane %v2430_v46, %v5712_v24  ;;  %v6102_v55 = vpack.c.bf16 %v2645_v33, %v2643_v53  ;;  %v6104_v56 = vpack.c.bf16 %v2667_v11, %v2667_v11  ;;  %v6107_v28 = vrot.slane %v2692_v19, %v5712_v24 }
  0x85   : > { %11580 = vst [vmem:[#allocation69_spill] sm:$0xff] %v6095_v51  ;;  %11582 = vst [vmem:[#allocation71_spill] sm:$0xff] %v6100_v16  ;;  %v2708_v23 = vpack.i.b16 %v2629_v37, %v2629_v37  ;;  %v2444_v57 = vmul.bf16 %v6095_v51, %v2414_v52  ;;  %v6112_v3 = vrot.slane %v2699_v49, %v5712_v24  ;;  %v11587_v52 = vmov 0  }
  0x86   : > { %11581 = vst [vmem:[#allocation70_spill] sm:$0xff] %v6098_v9  ;;  %11583 = vst [vmem:[#allocation72_spill] sm:$0xff] %v6102_v55  ;;  %v2445_v7 = vmul.bf16 %v6098_v9, %v2415_v26  ;;  %v2715_v46 = vpack.i.b16 %v2630_v45, %v2630_v45  ;;  %v6114_v6 = vpack.c.bf16 %v2668_v44, %v2668_v44  ;;  %v11052_v44 = vmov 1065369472  }
  0x87   : > { %11584 = vst [vmem:[#allocation73_spill] sm:$0xff] %v6107_v28  ;;  %11585 = vst [vmem:[#allocation74_spill] sm:$0xff] %v6112_v3  ;;  %v6117_v12 = vrot.slane %v2708_v23, %v5712_v24  ;;  %v2927_v41 = vmul.f32 %v5693_v14, %v5693_v14  ;;  %v2928_v22 = vmul.f32 %v5697_v15, %v5697_v15  ;;  %vm760_vm10 = vcmp.ge.f32.partialorder %v5886_v43, 0.0 }
  0x88   : > { %v6124_v37 = vsub.f32 %v695_v48, %v5902_v29  ;;  %v2460_v26 = vmax.bf16 %v11587_v52, %v2444_v57  ;;  %v2461_v53 = vmax.bf16 %v11587_v52, %v2445_v7  ;;  %v6129_v45 = vrot.slane %v2715_v46, %v5712_v24 }
  0x89   : > { %v6132_v33 = vsub.f32 %v696_v8, %v5905_v42  ;;  %v6136_v23 = vmul.bf16 %v6107_v28, %v6100_v16  ;;  %v2929_v14 = vadd.f32 %v2928_v22, %v2927_v41  ;;  %v5210_v11 = vpop.eup %5209  ;;  %v6142_v49 = vmul.bf16 %v6112_v3, %v6102_v55 }
  0x8a   : > { %11586 = vst [vmem:[#allocation75_spill] sm:$0xff] %v6124_v37  ;;  %v2476_v48 = vmin.bf16 %v11052_v44, %v2460_v26  ;;  %v2477_v19 = vmin.bf16 %v11052_v44, %v2461_v53  ;;  %v2729_v57 = vmul.bf16 %v6117_v12, %v6104_v56  ;;  %v2607_v8 = vrot.slane %v5210_v11, %v5712_v24 }
  0x8b   : > { %11588 = vst [vmem:[#allocation76_spill] sm:$0xff] %v6132_v33  ;;  %11589 = vst [vmem:[#allocation77_spill] sm:$0xff] %v6136_v23  ;;  %v2611_v7 = vrot.slane %v5210_v11, %v5715_v25  ;;  %v2730_v46 = vmul.bf16 %v6129_v45, %v6114_v6  ;;  %v2930_v41 = vadd.f32 1e-10, %v2929_v14  ;;  %v2946_v53 = vpack.c.bf16 %v5772_v60, %v5772_v60 }
  0x8c   : > { %11590 = vst [vmem:[#allocation78_spill] sm:$0xff] %v6142_v49  ;;  %v2492_v22 = vmul.bf16 %v2476_v48, %v5991_v17  ;;  %v2493_v26 = vmul.bf16 %v2477_v19, %v5994_v4  ;;  %v2952_v44 = vrot.slane %v5697_v15, %v5712_v24  ;;  %vm792_vm11 = vcmp.ge.f32.partialorder %v5902_v29, 0.0 }
  0x8d   : > { %v2524_v11 = vmul.bf16 %v2476_v48, %v5997_v54  ;;  %v2614_v9 = vpack.c.bf16 %v2607_v8, %v2607_v8  ;;  %v2615_v51 = vpack.c.bf16 %v2611_v7, %v2611_v7  ;;  %5211 = vrcp.f32 %v2930_v41  ;;  %vm824_vm5 = vmand %vm760_vm10, %vm792_vm11 }
  0x8e   : > { %vm761_vm14 = vcmp.ge.f32.partialorder %v5889_v35, 0.0  ;;  %v6161_v14 = vsub.bf16 %v5988_v47, %v2492_v22  ;;  %v6164_v4 = vsub.bf16 %v6003_v31, %v2493_v26  ;;  %v2525_v17 = vmul.bf16 %v2477_v19, %v6034_v13 }
  0x8f   : > { %v2745_v10 = vadd.bf16 %v2729_v57, %v6136_v23  ;;  %v2746_v34 = vadd.bf16 %v2730_v46, %v6142_v49  ;;  %v2754_v60 = vpack.i.b16 %v2614_v9, %v2614_v9  ;;  %v2761_v20 = vpack.i.b16 %v2615_v51, %v2615_v51 }
  0x90   : > { %v2956_v48 = vrot.slane %v5697_v15, %v5715_v25  ;;  %vm793_vm15 = vcmp.ge.f32.partialorder %v5905_v42, 0.0  ;;  %vm856_vm0 = vcmp.ge.f32.partialorder %v6124_v37, 0.0  ;;  %v2947_v8 = vpack.c.bf16 %v5776_v61, %v5776_v61 }
  0x91   : > { %v2959_v7 = vpack.c.bf16 %v2952_v44, %v2952_v44  ;;  %v2540_v19 = vsub.bf16 %v6005_v50, %v2524_v11  ;;  %v6178_v57 = vrot.slane %v2754_v60, %v5712_v24  ;;  %v6181_v51 = vrot.slane %v2761_v20, %v5712_v24  ;;  %vm825_vm1 = vmand %vm761_vm14, %vm793_vm15 }
  0x92   : > { %v2960_v9 = vpack.c.bf16 %v2956_v48, %v2956_v48  ;;  %v2541_v15 = vsub.bf16 %v6007_v21, %v2525_v17  ;;  %v2556_v46 = vmul.bf16 %v6161_v14, %v6161_v14  ;;  %v2557_v41 = vmul.bf16 %v6164_v4, %v6164_v4  ;;  %vm6257_vm10 = vmand %vm824_vm5, %vm856_vm0 }
  0x93   : > { %11591 = vst [vmem:[#allocation79_spill] sm:$0xff] %v6178_v57  ;;  %11592 = vst [vmem:[#allocation80_spill] sm:$0xff] %v6181_v51  ;;  %v6190_v44 = vpack.c.bf16 %v5779_v62, %v5765_v58  ;;  %v2775_v50 = vmul.bf16 %v6178_v57, %v2745_v10  ;;  %v2776_v60 = vmul.bf16 %v6181_v51, %v2746_v34  ;;  %v11597_v48 = vmov 1065369472  }
  0x94   : > { %v6196_v20 = vpack.c.bf16 %v5782_v63, %v5768_v59  ;;  %v2980_v22 = vpack.i.b16 %v2946_v53, %v2946_v53  ;;  %v6200_v17 = vpack.c.bf16 %v5786_v1, %v5786_v1  ;;  %v2987_v21 = vpack.i.b16 %v2947_v8, %v2947_v8  ;;  %vm931_vm0 = vmand %vm6257_vm10, %vm5897_vm4 }
  0x95   : > { %11593 = vst [vmem:[#allocation81_spill] sm:$0xff] %v6190_v44  ;;  %v2996_v26 = vpack.i.b16 %v2959_v7, %v2959_v7  ;;  %v3003_v4 = vpack.i.b16 %v2960_v9, %v2960_v9  ;;  %v2572_v11 = vmul.bf16 %v2540_v19, %v2540_v19  ;;  %v2791_v58 = vmax.bf16 %v11587_v52, %v2775_v50  ;;  %vm6309_vm5 = vmand %vm931_vm0, %vm5917_vm12 }
  0x96   : > { %11594 = vst [vmem:[#allocation82_spill] sm:$0xff] %v6196_v20  ;;  %v2792_v62 = vmax.bf16 %v11587_v52, %v2776_v60  ;;  %v6205_v10 = vrot.slane %v2980_v22, %v5712_v24  ;;  %v6209_v59 = vpack.c.bf16 %v5790_v5, %v5790_v5  ;;  %v6212_v63 = vrot.slane %v2987_v21, %v5712_v24  ;;  %vm11629_vm15 = vmand %vm5956_vm2, %vm5897_vm4 }
  0x97   : > { %v6215_v1 = vrot.slane %v2996_v26, %v5712_v24  ;;  %v6218_v34 = vrot.slane %v3003_v4, %v5712_v24  ;;  %v5212_v53 = vpop.eup %5211  ;;  %v2573_v14 = vmul.bf16 %v2541_v15, %v2541_v15  ;;  %v2807_v8 = vmin.bf16 %v11597_v48, %v2791_v58 }
  0x98   : > { %11595 = vst [vmem:[#allocation83_spill] sm:$0xff] %v6205_v10  ;;  %11596 = vst [vmem:[#allocation84_spill] sm:$0xff] %v6212_v63  ;;  %v2808_v5 = vmin.bf16 %v11597_v48, %v2792_v62  ;;  %v6228_v7 = vmul.bf16 %v6205_v10, %v6190_v44  ;;  %v2937_v19 = vrot.slane %v5212_v53, %v5712_v24 }
  0x99   : > { %v2941_v9 = vrot.slane %v5212_v53, %v5715_v25  ;;  %v6238_v15 = vmul.bf16 %v6212_v63, %v6196_v20  ;;  %v3017_v50 = vmul.bf16 %v6215_v1, %v6200_v17  ;;  %v2823_v60 = vmul.bf16 %v2807_v8, %v6107_v28  ;;  %v11639_v53 = vld [vmem:[#allocation31_spill] sm:$0xff] }
  0x9a   : > { %11598 = vst [vmem:[#allocation85_spill] sm:$0xff] %v6228_v7  ;;  %v2824_v22 = vmul.bf16 %v2808_v5, %v6112_v3  ;;  %v2855_v21 = vmul.bf16 %v2807_v8, %v6117_v12  ;;  %v6250_v25 = vsel %vm3343_vm6, 65537, %v11587_v52  ;;  %v2856_v26 = vmul.bf16 %v2808_v5, %v6129_v45 }
  0x9b   : > { %11599 = vst [vmem:[#allocation86_spill] sm:$0xff] %v6238_v15  ;;  %v2944_v4 = vpack.c.bf16 %v2937_v19, %v2937_v19  ;;  %v2945_v58 = vpack.c.bf16 %v2941_v9, %v2941_v9  ;;  %v3018_v62 = vmul.bf16 %v6218_v34, %v6209_v59  ;;  %v2839_v3 = vsub.bf16 %v6100_v16, %v2823_v60 }
  0x9c   : > { %v2871_v8 = vsub.bf16 %v6104_v56, %v2855_v21  ;;  %vm11602_vm6 = vcmp.ge.f32.partialorder %v6132_v33, 0.0  ;;  %v3033_v5 = vadd.bf16 %v3017_v50, %v6228_v7  ;;  %v6271_v31 = vadd.bf16 %v2572_v11, %v2556_v46 }
  0x9d   : > { %vm6265_vm11 = vmand %vm825_vm1, %vm11602_vm6  ;;  %v3034_v19 = vadd.bf16 %v3018_v62, %v6238_v15  ;;  %v3042_v9 = vpack.i.b16 %v2944_v4, %v2944_v4  ;;  %v3049_v37 = vpack.i.b16 %v2945_v58, %v2945_v58  ;;  %v6273_v47 = vadd.bf16 %v2573_v14, %v2557_v41 }
  0x9e   : > { %v2840_v60 = vsub.bf16 %v6102_v55, %v2824_v22  ;;  %v2872_v50 = vsub.bf16 %v6114_v6, %v2856_v26  ;;  %v341_v41 = vcvt.s32.f32 %v5704_v18  ;;  %vm11113_vm1 = vmand %vm6265_vm11, %vm5909_vm7  ;;  %v2887_v11 = vmul.bf16 %v2839_v3, %v2839_v3 }
  0x9f   : > { %v6284_v21 = vrot.slane %v3042_v9, %v5712_v24  ;;  %v6287_v46 = vrot.slane %v3049_v37, %v5712_v24  ;;  %v2903_v14 = vmul.bf16 %v2871_v8, %v2871_v8  ;;  %v1018_v22 = vmul.f32 %v5871_v27, %v5886_v43  ;;  %v11611_v43 = vld [vmem:[#allocation15_spill] sm:$0xff]  ;;  %vm6328_vm14 = vmand %vm11113_vm1, %vm5930_vm13 }
  0xa0   : > { %v1019_v6 = vmul.f32 %v5874_v38, %v5889_v35  ;;  %v367_v4 = vmul.f32 2.0, %v341_v41  ;;  %v1105_v58 = vmul.f32 %v5883_v40, %v5902_v29  ;;  %v11607_v3 = vmov 0  ;;  %vm6395_vm6 = vmpackc.low %vm931_vm0, %vm11629_vm15 }
  0xa1   : > { %11605 = vst [vmem:[#allocation87_spill] sm:$0xff] %v6284_v21  ;;  %11606 = vst [vmem:[#allocation88_spill] sm:$0xff] %v6287_v46  ;;  %v3063_v26 = vmul.bf16 %v6284_v21, %v3033_v5  ;;  %v3064_v37 = vmul.bf16 %v6287_v46, %v3034_v19  ;;  %v11608_v3 = vsel %vm6309_vm5, 4294967295, %v11607_v3  ;;  %v1061_v62 = vadd.f32 %v5877_v30, %v1018_v22  ;;  %v11610_v5 = vld [vmem:[#allocation51_spill] sm:$0xff] }
  0xa2   : > { %11609 = vst [vmem:[#allocation89_spill] sm:$0xff] %v11608_v3  ;;  %v1062_v8 = vadd.f32 %v5880_v32, %v1019_v6  ;;  %v1106_v19 = vmul.f32 %v11610_v5, %v5905_v42  ;;  %v338_v9 = vadd.s32 5, %v5704_v18  ;;  %v375_v35 = vadd.f32 1.0, %v367_v4  ;;  %vm11635_vm1 = vmand %vm5972_vm3, %vm5909_vm7 }
  0xa3   : > { %v3079_v41 = vmax.bf16 %v11587_v52, %v3063_v26  ;;  %v3080_v56 = vmax.bf16 %v11587_v52, %v3064_v37  ;;  %v11612_v22 = vmov 0  ;;  %v2888_v6 = vmul.bf16 %v2840_v60, %v2840_v60  ;;  %vm11636_vm2 = vmand %vm6265_vm11, %vm5909_vm7 }
  0xa4   : > { %v11613_v22 = vsel %vm6328_vm14, 4294967295, %v11612_v22  ;;  %v2904_v29 = vmul.bf16 %v2872_v50, %v2872_v50  ;;  %v1137_v42 = vadd.f32 %v1105_v58, %v1061_v62  ;;  %v1138_v26 = vadd.f32 %v1106_v19, %v1062_v8 }
  0xa5   : > { %11614 = vst [vmem:[#allocation15_spill] sm:$0xff] %v11613_v22  ;;  %v2919_v55 = vadd.bf16 %v2903_v14, %v2887_v11  ;;  %v3095_v37 = vmin.bf16 %v11597_v48, %v3079_v41  ;;  %v3096_v4 = vmin.bf16 %v11597_v48, %v3080_v56  ;;  %v383_v33 = vmul.f32 0.0625, %v375_v35 }
  0xa6   : > { %v6336_v16 = vsel %vm6309_vm5, %v1137_v42, -1e+30  ;;  %v6340_v39 = vsel %vm6328_vm14, %v1138_v26, -1e+30  ;;  %v346_v0 = vcvt.s32.f32 %v338_v9  ;;  %v6343_v60 = vadd.s32 1, %v5704_v18  ;;  %v11617_v26 = vld [vmem:[#allocation17_spill] sm:$0xff]  ;;  %vm6411_vm5 = vmpackc.low %vm11636_vm2, %vm11635_vm1 }
  0xa7   : > { %11615 = vst [vmem:[#allocation90_spill] sm:$0xff] %v6336_v16  ;;  %11616 = vst [vmem:[#allocation91_spill] sm:$0xff] %v6340_v39  ;;  %v3111_v50 = vmul.bf16 %v3095_v37, %v6205_v10  ;;  %v3112_v11 = vmul.bf16 %v3096_v4, %v6212_v63  ;;  %v3143_v14 = vmul.bf16 %v3095_v37, %v6215_v1  ;;  %v6349_v58 = vsub.f32 1.0, %v383_v33 }
  0xa8   : > { %v3144_v35 = vmul.bf16 %v3096_v4, %v6218_v34  ;;  %v2920_v56 = vadd.bf16 %v2904_v29, %v2888_v6  ;;  %v1210_v42 = vmax.f32 %v6336_v16, %v6340_v39  ;;  %v6354_v62 = vadd.s32 6, %v5704_v18  ;;  %v11618_v29 = vld [vmem:[#allocation18_spill] sm:$0xff]  ;;  %v11621_v16 = vld [vmem:[#allocation21_spill] sm:$0xff] }
  0xa9   : > { %v3127_v8 = vsub.bf16 %v6190_v44, %v3111_v50  ;;  %v3128_v19 = vsub.bf16 %v6196_v20, %v3112_v11  ;;  %v3159_v9 = vsub.bf16 %v6200_v17, %v3143_v14  ;;  %v6362_v37 = vsub.f32 %v6349_v58, %v11617_v26  ;;  %v11619_v17 = vld [vmem:[#allocation19_spill] sm:$0xff]  ;;  %v11622_v26 = vld [vmem:[#allocation54_spill] sm:$0xff]  ;;  %v11627_v44 = vld [vmem:[#allocation28_spill] sm:$0xff] }
  0xaa   : > { %v3160_v41 = vsub.bf16 %v6209_v59, %v3144_v35  ;;  %v6366_v33 = vsub.f32 %v6349_v58, %v11618_v29  ;;  %1211 = vmax.xlane.f32.xlu0 %v1210_v42  ;;  %v372_v6 = vmul.f32 2.0, %v346_v0  ;;  %v342_v4 = vcvt.s32.f32 %v6343_v60  ;;  %v11620_v59 = vld [vmem:[#allocation20_spill] sm:$0xff]  ;;  %v11626_v20 = vld [vmem:[#allocation27_spill] sm:$0xff] }
  0xab   : > { %v3175_v3 = vmul.bf16 %v3127_v8, %v3127_v8  ;;  %v3176_v50 = vmul.bf16 %v3128_v19, %v3128_v19  ;;  %v3191_v22 = vmul.bf16 %v3159_v9, %v3159_v9  ;;  %v480_v14 = vmul.f32 %v11619_v17, %v6362_v37  ;;  %v11623_v8 = vld [vmem:[#allocation55_spill] sm:$0xff]  ;;  %v11625_v17 = vld [vmem:[#allocation24_spill] sm:$0xff] }
  0xac   : > { %v3192_v11 = vmul.bf16 %v3160_v41, %v3160_v41  ;;  %v481_v35 = vmul.f32 %v11620_v59, %v6366_v33  ;;  %v597_v39 = vmul.f32 %v11621_v16, %v6362_v37  ;;  %v598_v29 = vmul.f32 %v5776_v61, %v6366_v33  ;;  %v11624_v9 = vld [vmem:[#allocation23_spill] sm:$0xff] }
  0xad   : > { %v3207_v42 = vadd.bf16 %v3191_v22, %v3175_v3  ;;  %v2328_v60 = vsub.f32 %v6349_v58, %v11622_v26  ;;  %v2329_v19 = vsub.f32 %v6349_v58, %v11623_v8  ;;  %v496_v41 = vadd.f32 %v480_v14, %v11624_v9  ;;  %v11632_v22 = vld [vmem:[#allocation25_spill] sm:$0xff] }
  0xae   : > { %v3208_v0 = vadd.bf16 %v3192_v11, %v3176_v50  ;;  %v497_v18 = vadd.f32 %v481_v35, %v11625_v17  ;;  %v498_v59 = vadd.f32 %v480_v14, %v11626_v20  ;;  %v499_v63 = vadd.f32 %v481_v35, %v11627_v44  ;;  %v11633_v11 = vld [vmem:[#allocation26_spill] sm:$0xff]  ;;  %v11641_v35 = vld [vmem:[#allocation32_spill] sm:$0xff]  ;;  %v11645_v20 = vld [vmem:[#allocation29_spill] sm:$0xff] }
  0xaf   : > { %v3223_v16 = vmin.bf16 %v3207_v42, %v2919_v55  ;;  %v613_v50 = vadd.f32 %v597_v39, %v11632_v22  ;;  %v614_v14 = vadd.f32 %v598_v29, %v11633_v11  ;;  %v615_v11 = vadd.f32 %v597_v39, %v11645_v20  ;;  %v11646_v22 = vld [vmem:[#allocation30_spill] sm:$0xff]  ;;  %v11668_v20 = vld [vmem:[#allocation63_spill] sm:$0xff] }
  0xb0   : > { %v3224_v10 = vmin.bf16 %v3208_v0, %v2920_v56  ;;  %v6416_v56 = vmul.f32 %v11639_v53, %v496_v41  ;;  %v6419_v42 = vmul.f32 %v11641_v35, %v497_v18  ;;  %v6422_v0 = vmul.f32 %v11639_v53, %v498_v59 }
  0xb1   : > { %v6425_v55 = vmul.f32 %v11641_v35, %v499_v63  ;;  %v3239_v28 = vmin.bf16 %v3223_v16, %v6271_v31  ;;  %v616_v17 = vadd.f32 %v598_v29, %v11646_v22  ;;  %v6432_v41 = vmul.f32 %v613_v50, %v11639_v53 }
  0xb2   : > { %11640 = vst [vmem:[#allocation53_spill] sm:$0xff] %v6416_v56  ;;  %11642 = vst [vmem:[#allocation56_spill] sm:$0xff] %v6419_v42  ;;  %v3240_v44 = vmin.bf16 %v3224_v10, %v6273_v47  ;;  %v6435_v18 = vmul.f32 %v614_v14, %v11641_v35  ;;  %v677_v59 = vsub.f32 1.0, %v6416_v56  ;;  %v678_v9 = vsub.f32 1.0, %v6419_v42 }
  0xb3   : > { %11643 = vst [vmem:[#allocation92_spill] sm:$0xff] %v6422_v0  ;;  %11644 = vst [vmem:[#allocation93_spill] sm:$0xff] %v6425_v55  ;;  %v3271_v63 = vsel %vm6395_vm6, 0, %v3239_v28  ;;  %v6444_v39 = vmul.f32 %v615_v11, %v11639_v53  ;;  %v6447_v31 = vmul.f32 %v616_v17, %v11641_v35  ;;  %v679_v29 = vsub.f32 1.0, %v6422_v0 }
  0xb4   : > { %11647 = vst [vmem:[#allocation94_spill] sm:$0xff] %v6432_v41  ;;  %11648 = vst [vmem:[#allocation95_spill] sm:$0xff] %v6435_v18  ;;  %v3272_v47 = vsel %vm6411_vm5, 0, %v3240_v44  ;;  %v3287_v16 = vmul.bf16 3272590095, %v3271_v63  ;;  %v680_v50 = vsub.f32 1.0, %v6425_v55  ;;  %v6457_v51 = vsub.f32 %v677_v59, %v6432_v41 }
  0xb5   : > { %11649 = vst [vmem:[#allocation96_spill] sm:$0xff] %v6444_v39  ;;  %11650 = vst [vmem:[#allocation97_spill] sm:$0xff] %v6447_v31  ;;  %v3288_v10 = vmul.bf16 3272590095, %v3272_v47  ;;  %v11651_v14 = vsub.s32 4, %v11611_v43  ;;  %v6460_v44 = vsub.f32 %v678_v9, %v6435_v18  ;;  %v6463_v63 = vadd.f32 1.0, %v372_v6 }
  0xb6   : > { %11653 = vst [vmem:[#allocation99_spill] sm:$0xff] %v6457_v51  ;;  %v3320_v11 = vmul.bf16 1069105081, %v3287_v16  ;;  %v6465_v47 = vmul.f32 2.0, %v342_v4  ;;  %vm742_vm3 = vcmp.ge.f32.partialorder %v6416_v56, 0.0  ;;  %vm743_vm10 = vcmp.ge.f32.partialorder %v6419_v42, 0.0 }
  0xb7   : > { %v6454_v3 = vrot.slane %v6250_v25, %v11651_v14  ;;  %11654 = vst [vmem:[#allocation100_spill] sm:$0xff] %v6460_v44  ;;  %v3323_v28 = vmul.bf16 1069105081, %v3288_v10  ;;  %v6469_v43 = vpack.c.bf16 %v2328_v60, %v2328_v60  ;;  %v6471_v14 = vpack.c.bf16 %v2329_v19, %v2329_v19  ;;  %v11674_v16 = vld [vmem:[#allocation69_spill] sm:$0xff] }
  0xb8   : > { %5213 = vpow.bf16 %v3320_v11  ;;  %v6474_v9 = vsub.f32 %v679_v29, %v6444_v39  ;;  %v6477_v59 = vsub.f32 %v680_v50, %v6447_v31  ;;  %vm774_vm11 = vcmp.ge.f32.partialorder %v6432_v41, 0.0  ;;  %v11663_v50 = vld [vmem:[#allocation67_spill] sm:$0xff] }
  0xb9   : > { %11652 = vst [vmem:[#allocation98_spill] sm:$0xff] %v6454_v3  ;;  %5215 = vpow.bf16 %v3323_v28  ;;  %v11657_v6 = vrot.slane %v6250_v25, %v5712_v24  ;;  %v11658_v4 = vmov 0  ;;  %vm775_vm1 = vcmp.ge.f32.partialorder %v6435_v18, 0.0  ;;  %vm6501_vm2 = vmand %vm742_vm3, %vm774_vm11  ;;  %v11664_v28 = vld [vmem:[#allocation68_spill] sm:$0xff] }
  0xba   : > { %11655 = vst [vmem:[#allocation101_spill] sm:$0xff] %v6474_v9  ;;  %11656 = vst [vmem:[#allocation102_spill] sm:$0xff] %v6477_v59  ;;  %vm838_vm5 = vcmp.ge.f32.partialorder %v6457_v51, 0.0  ;;  %v1000_v60 = vmul.f32 %v5871_v27, %v6416_v56  ;;  %v1001_v19 = vmul.f32 %v5874_v38, %v6419_v42  ;;  %v1087_v24 = vmul.f32 %v5883_v40, %v6432_v41  ;;  %v11675_v51 = vld [vmem:[#allocation70_spill] sm:$0xff] }
  0xbb   : > { %vm6483_vm0 = vcmp.ne.s16.totalorder %v11657_v6, 0  ;;  %v1088_v25 = vmul.f32 %v11610_v5, %v6435_v18  ;;  %v2390_v10 = vmul.bf16 %v5997_v54, %v6469_v43  ;;  %v2391_v29 = vmul.bf16 %v6034_v13, %v6471_v14  ;;  %vm6515_vm6 = vmand %vm743_vm10, %vm775_vm1 }
  0xbc   : > { %v11659_v4 = vsel %vm6483_vm0, 4294967295, %v11658_v4  ;;  %v2659_v11 = vsub.f32 %v6349_v58, %v11663_v50  ;;  %v2660_v6 = vsub.f32 %v6349_v58, %v11664_v28  ;;  %v1043_v56 = vadd.f32 %v5877_v30, %v1000_v60  ;;  %v11667_v58 = vld [vmem:[#allocation61_spill] sm:$0xff]  ;;  %vm6543_vm15 = vmand %vm6501_vm2, %vm838_vm5 }
  0xbd   : > { %11660 = vst [vmem:[#allocation103_spill] sm:$0xff] %v11659_v4  ;;  %v1044_v41 = vadd.f32 %v5880_v32, %v1001_v19  ;;  %v6523_v18 = vpack.c.bf16 %v6362_v37, %v6362_v37  ;;  %v6527_v22 = vpack.c.bf16 %v6366_v33, %v6366_v33  ;;  %vm744_vm3 = vcmp.ge.f32.partialorder %v6422_v0, 0.0  ;;  %vm11131_vm2 = vmand %vm6543_vm15, %vm5897_vm4  ;;  %v11731_v37 = vld [vmem:[#allocation17_spill] sm:$0xff] }
  0xbe   : > { %vm776_vm11 = vcmp.ge.f32.partialorder %v6444_v39, 0.0  ;;  %v2406_v42 = vadd.bf16 %v2390_v10, %v11667_v58  ;;  %v2407_v35 = vadd.bf16 %v2391_v29, %v11668_v20  ;;  %v6533_v53 = vpack.c.bf16 %v2659_v11, %v2659_v11 }
  0xbf   : > { %v6535_v60 = vpack.c.bf16 %v2660_v6, %v2660_v6  ;;  %v1119_v33 = vadd.f32 %v1087_v24, %v1043_v56  ;;  %v1120_v19 = vadd.f32 %v1088_v25, %v1044_v41  ;;  %v3009_v10 = vmul.bf16 %v6215_v1, %v6523_v18 }
  0xc0   : > { %v3010_v29 = vmul.bf16 %v6218_v34, %v6527_v22  ;;  %vm11671_vm10 = vcmp.ge.f32.partialorder %v6460_v44, 0.0  ;;  %v2436_v6 = vmul.bf16 %v11674_v16, %v2406_v42  ;;  %v2437_v20 = vmul.bf16 %v11675_v51, %v2407_v35 }
  0xc1   : > { %vm6555_vm1 = vmand %vm6515_vm6, %vm11671_vm10  ;;  %v2721_v56 = vmul.bf16 %v6117_v12, %v6533_v53  ;;  %v2722_v41 = vmul.bf16 %v6129_v45, %v6535_v60  ;;  %v3025_v24 = vadd.bf16 %v3009_v10, %v6228_v7  ;;  %v1002_v25 = vmul.f32 %v5871_v27, %v6422_v0 }
  0xc2   : > { %v3026_v17 = vadd.bf16 %v3010_v29, %v6238_v15  ;;  %v1003_v42 = vmul.f32 %v5874_v38, %v6425_v55  ;;  %v2452_v35 = vmax.bf16 %v11587_v52, %v2436_v6  ;;  %v2453_v44 = vmax.bf16 %v11587_v52, %v2437_v20  ;;  %vm11154_vm10 = vmand %vm6555_vm1, %vm5909_vm7 }
  0xc3   : > { %v2737_v10 = vadd.bf16 %v2721_v56, %v6136_v23  ;;  %v2738_v29 = vadd.bf16 %v2722_v41, %v6142_v49  ;;  %v3055_v15 = vmul.bf16 %v6284_v21, %v3025_v24  ;;  %v6588_v51 = vadd.f32 %v5877_v30, %v1002_v25  ;;  %v5214_v20 = vpop.eup %5213  ;;  %v11676_v23 = vld [vmem:[#allocation80_spill] sm:$0xff]  ;;  %vm6606_vm6 = vmand %vm11131_vm2, %vm5917_vm12 }
  0xc4   : > { %v3056_v7 = vmul.bf16 %v6287_v46, %v3026_v17  ;;  %v6591_v6 = vadd.f32 %v5880_v32, %v1003_v42  ;;  %v2468_v56 = vmin.bf16 %v11597_v48, %v2452_v35  ;;  %v2469_v41 = vmin.bf16 %v11597_v48, %v2453_v44  ;;  %v5216_v58 = vpop.eup %5215  ;;  %vm6625_vm2 = vmand %vm11154_vm10, %vm5930_vm13  ;;  %v11690_v32 = vld [vmem:[#allocation57_spill] sm:$0xff] }
  0xc5   : > { %v2767_v49 = vmul.bf16 %v6178_v57, %v2737_v10  ;;  %v2768_v16 = vmul.bf16 %v11676_v23, %v2738_v29  ;;  %v3363_v24 = vsel %vm6483_vm0, %v5214_v20, 0  ;;  %v11678_v25 = vmov 0 }
  0xc6   : > { %v11679_v25 = vsel %vm6606_vm6, 4294967295, %v11678_v25  ;;  %v3071_v44 = vmax.bf16 %v11587_v52, %v3055_v15  ;;  %v3072_v42 = vmax.bf16 %v11587_v52, %v3056_v7  ;;  %v6614_v35 = vmul.f32 %v5883_v40, %v6444_v39  ;;  %v11687_v15 = vld [vmem:[#allocation58_spill] sm:$0xff] }
  0xc7   : > { %11680 = vst [vmem:[#allocation104_spill] sm:$0xff] %v11679_v25  ;;  %vm11681_vm5 = vcmp.ne.s16.totalorder %v6454_v3, 0  ;;  %v3379_v29 = vsub.bf16 1065369472, %v3363_v24  ;;  %v11683_v46 = vmov 0  ;;  %v2484_v21 = vmul.bf16 %v2468_v56, %v11687_v15  ;;  %v11689_v24 = vld [vmem:[#allocation59_spill] sm:$0xff] }
  0xc8   : > { %v3364_v10 = vsel %vm11681_vm5, %v5216_v58, 0  ;;  %v11684_v46 = vsel %vm6625_vm2, 4294967295, %v11683_v46  ;;  %v6631_v7 = vsel %vm6606_vm6, %v1119_v33, -1e+30  ;;  %v6636_v58 = vsel %vm6625_vm2, %v1120_v19, -1e+30  ;;  %vm6649_vm5 = vmand %vm744_vm3, %vm776_vm11 }
  0xc9   : > { %11685 = vst [vmem:[#allocation105_spill] sm:$0xff] %v11684_v46  ;;  %11686 = vst [vmem:[#allocation106_spill] sm:$0xff] %v6631_v7  ;;  %v3380_v23 = vsub.bf16 1065369472, %v3364_v10  ;;  %v2485_v57 = vmul.bf16 %v2469_v41, %v11689_v24  ;;  %v2516_v3 = vmul.bf16 %v2468_v56, %v5997_v54  ;;  %v1183_v4 = vmax.f32 %v6631_v7, %v6636_v58  ;;  %v11693_v10 = vld [vmem:[#allocation60_spill] sm:$0xff] }
  0xca   : > { %11688 = vst [vmem:[#allocation107_spill] sm:$0xff] %v6636_v58  ;;  %v2500_v30 = vsub.bf16 %v11690_v32, %v2484_v21  ;;  %v2517_v25 = vmul.bf16 %v2469_v41, %v6034_v13  ;;  %v2783_v33 = vmax.bf16 %v11587_v52, %v2767_v49  ;;  %v2784_v58 = vmax.bf16 %v11587_v52, %v2768_v16  ;;  %v3403_v21 = vld [vmem:[#allocation3 + $0x40] sm:$0xff]  ;;  %v3404_v7 = vld [vmem:[#allocation3 + $0x48] sm:$0xff] }
  0xcb   : > { %v3391_v40 = vmul.bf16 %v3380_v23, %v3379_v29  ;;  %v2501_v56 = vsub.bf16 %v11693_v10, %v2485_v57  ;;  %v2532_v46 = vsub.bf16 %v6469_v43, %v2516_v3  ;;  %vm11694_vm10 = vcmp.ge.f32.partialorder %v6447_v31, 0.0  ;;  %1184 = vmax.xlane.f32.xlu1 %v1183_v4  ;;  %v11708_v23 = vld [vmem:[#allocation84_spill] sm:$0xff] }
  0xcc   : > { %vm11695_vm2 = vcmp.ge.f32.partialorder %v6425_v55, 0.0  ;;  %v2533_v49 = vsub.bf16 %v6471_v14, %v2517_v25  ;;  %v2548_v41 = vmul.bf16 %v2500_v30, %v2500_v30  ;;  %v2799_v29 = vmin.bf16 %v11597_v48, %v2783_v33  ;;  %v11701_v14 = vld [vmem:[#allocation73_spill] sm:$0xff]  ;;  %v11741_v55 = vld [vmem:[#allocation28_spill] sm:$0xff] }
  0xcd   : > { %vm6660_vm14 = vmand %vm11695_vm2, %vm11694_vm10  ;;  %v3087_v57 = vmin.bf16 %v11597_v48, %v3071_v44  ;;  %v3419_v3 = vunpack.c.l.bf16 %v3391_v40  ;;  %v3420_v43 = vunpack.c.h.bf16 %v3391_v40  ;;  %v2549_v16 = vmul.bf16 %v2501_v56, %v2501_v56 }
  0xce   : > { %v2564_v0 = vmul.bf16 %v2532_v46, %v2532_v46  ;;  %vm11698_vm3 = vcmp.ge.f32.partialorder %v6474_v9, 0.0  ;;  %v2565_v39 = vmul.bf16 %v2533_v49, %v2533_v49  ;;  %v2800_v30 = vmin.bf16 %v11597_v48, %v2784_v58  ;;  %v11705_v49 = vld [vmem:[#allocation74_spill] sm:$0xff]  ;;  %v11706_v9 = vld [vmem:[#allocation71_spill] sm:$0xff] }
  0xcf   : > { %vm6671_vm11 = vmand %vm6649_vm5, %vm11698_vm3  ;;  %v2815_v25 = vmul.bf16 %v2799_v29, %v11701_v14  ;;  %v2847_v44 = vmul.bf16 %v2799_v29, %v6117_v12  ;;  %v3435_v4 = vmul.f32 %v3419_v3, %v3403_v21  ;;  %v3436_v33 = vmul.f32 %v3420_v43, %v3404_v7  ;;  %v11707_v21 = vld [vmem:[#allocation83_spill] sm:$0xff] }
  0xd0   : > { %vm11702_vm2 = vcmp.ge.f32.partialorder %v6477_v59, 0.0  ;;  %v2580_v46 = vadd.bf16 %v2564_v0, %v2548_v41  ;;  %v3088_v19 = vmin.bf16 %v11597_v48, %v3072_v42  ;;  %v2581_v56 = vadd.bf16 %v2565_v39, %v2549_v16  ;;  %v11709_v41 = vld [vmem:[#allocation72_spill] sm:$0xff] }
  0xd1   : > { %vm6682_vm10 = vmand %vm6660_vm14, %vm11702_vm2  ;;  %v2816_v58 = vmul.bf16 %v2800_v30, %v11705_v49  ;;  %v2831_v14 = vsub.bf16 %v11706_v9, %v2815_v25  ;;  %v2848_v29 = vmul.bf16 %v2800_v30, %v6129_v45  ;;  %3451 = vst [vmem:[#allocation3 + $0x40] sm:$0xff] %v3435_v4  ;;  %v2863_v7 = vsub.bf16 %v6533_v53, %v2847_v44  ;;  %v11710_v53 = vld [vmem:[#allocation81_spill] sm:$0xff]  ;;  %v11711_v4 = vld [vmem:[#allocation82_spill] sm:$0xff] }
  0xd2   : > { %3452 = vst [vmem:[#allocation3 + $0x48] sm:$0xff] %v3436_v33  ;;  %vm915_vm14 = vmand %vm6671_vm11, %vm5897_vm4  ;;  %v3103_v0 = vmul.bf16 %v3087_v57, %v11707_v21  ;;  %v3104_v42 = vmul.bf16 %v3088_v19, %v11708_v23  ;;  %v3135_v39 = vmul.bf16 %v3087_v57, %v6215_v1  ;;  %v3136_v30 = vmul.bf16 %v3088_v19, %v6218_v34 }
  0xd3   : > { %vm11162_vm5 = vmand %vm6682_vm10, %vm5909_vm7  ;;  %v2832_v3 = vsub.bf16 %v11709_v41, %v2816_v58  ;;  %v2864_v43 = vsub.bf16 %v6535_v60, %v2848_v29  ;;  %v2879_v16 = vmul.bf16 %v2831_v14, %v2831_v14  ;;  %v2895_v25 = vmul.bf16 %v2863_v7, %v2863_v7 }
  0xd4   : > { %v3119_v44 = vsub.bf16 %v11710_v53, %v3103_v0  ;;  %v3120_v33 = vsub.bf16 %v11711_v4, %v3104_v42  ;;  %v3151_v59 = vsub.bf16 %v6523_v18, %v3135_v39  ;;  %v3152_v21 = vsub.bf16 %v6527_v22, %v3136_v30  ;;  %vm6716_vm3 = vmand %vm915_vm14, %vm5917_vm12 }
  0xd5   : > { %v2880_v57 = vmul.bf16 %v2832_v3, %v2832_v3  ;;  %v2896_v23 = vmul.bf16 %v2864_v43, %v2864_v43  ;;  %v11712_v60 = vmov 0  ;;  %v1090_v14 = vmul.f32 %v11610_v5, %v6447_v31  ;;  %vm6729_vm2 = vmand %vm11162_vm5, %vm5930_vm13  ;;  %v11738_v31 = vld [vmem:[#allocation25_spill] sm:$0xff] }
  0xd6   : > { %v11713_v60 = vsel %vm6716_vm3, 4294967295, %v11712_v60  ;;  %v2911_v19 = vadd.bf16 %v2895_v25, %v2879_v16  ;;  %v3167_v18 = vmul.bf16 %v3119_v44, %v3119_v44  ;;  %v3168_v58 = vmul.bf16 %v3120_v33, %v3120_v33  ;;  %vm11723_vm5 = vmand %vm6543_vm15, %vm5897_vm4 }
  0xd7   : > { %11714 = vst [vmem:[#allocation60_spill] sm:$0xff] %v11713_v60  ;;  %v3183_v29 = vmul.bf16 %v3151_v59, %v3151_v59  ;;  %v11715_v22 = vmov 0  ;;  %v2912_v7 = vadd.bf16 %v2896_v23, %v2880_v57  ;;  %v3184_v0 = vmul.bf16 %v3152_v21, %v3152_v21  ;;  %vm11727_vm15 = vmand %vm6555_vm1, %vm5909_vm7  ;;  %v11739_v60 = vld [vmem:[#allocation26_spill] sm:$0xff] }
  0xd8   : > { %v11716_v22 = vsel %vm6729_vm2, 4294967295, %v11715_v22  ;;  %v1121_v42 = vadd.f32 %v6614_v35, %v6588_v51  ;;  %v1122_v39 = vadd.f32 %v1090_v14, %v6591_v6  ;;  %v388_v59 = vmul.f32 0.0625, %v6463_v63  ;;  %v11721_v51 = vld [vmem:[#allocation16_spill] sm:$0xff]  ;;  %vm11728_vm11 = vmand %vm6682_vm10, %vm5909_vm7 }
  0xd9   : > { %11717 = vst [vmem:[#allocation71_spill] sm:$0xff] %v11716_v22  ;;  %v3199_v3 = vadd.bf16 %v3183_v29, %v3167_v18  ;;  %v376_v43 = vadd.f32 1.0, %v6465_v47  ;;  %v11718_v16 = vcvt.s32.f32 %v6354_v62  ;;  %v3200_v25 = vadd.bf16 %v3184_v0, %v3168_v58  ;;  %v11732_v58 = vld [vmem:[#allocation18_spill] sm:$0xff] }
  0xda   : > { %v6742_v44 = vsel %vm6716_vm3, %v1121_v42, -1e+30  ;;  %v6746_v21 = vsel %vm6729_vm2, %v1122_v39, -1e+30  ;;  %v6749_v35 = vadd.s32 2, %v11721_v51  ;;  %v396_v47 = vsub.f32 1.0, %v388_v59  ;;  %vm6763_vm2 = vmpackc.low %vm915_vm14, %vm11723_vm5 }
  0xdb   : > { %v373_v30 = vmul.f32 2.0, %v11718_v16  ;;  %11719 = vst [vmem:[#allocation72_spill] sm:$0xff] %v6742_v44  ;;  %11720 = vst [vmem:[#allocation108_spill] sm:$0xff] %v6746_v21  ;;  %v3215_v6 = vmin.bf16 %v3199_v3, %v2911_v19  ;;  %v1186_v63 = vmax.f32 %v6742_v44, %v6746_v21  ;;  %v3216_v23 = vmin.bf16 %v3200_v25, %v2912_v7  ;;  %v11733_v39 = vld [vmem:[#allocation19_spill] sm:$0xff]  ;;  %v11734_v59 = vld [vmem:[#allocation20_spill] sm:$0xff] }
  0xdc   : > { %11722 = vst [vmem:[#allocation109_spill] sm:$0xff] %v6749_v35  ;;  %v6767_v33 = vmul.f32 0.0625, %v376_v43  ;;  %vm6782_vm14 = vmpackc.low %vm11728_vm11, %vm11727_vm15  ;;  %v6787_v18 = vsub.f32 %v396_v47, %v11731_v37  ;;  %v2338_v11 = vsub.f32 %v396_v47, %v11622_v26  ;;  %v6794_v7 = vsub.f32 %v396_v47, %v11623_v8  ;;  %v11740_v51 = vld [vmem:[#allocation27_spill] sm:$0xff] }
  0xdd   : > { %v6769_v57 = vadd.f32 1.0, %v373_v30  ;;  %v3231_v19 = vmin.bf16 %v3215_v6, %v2580_v46  ;;  %1187 = vmax.xlane.f32.xlu1 %v1186_v63  ;;  %v6790_v46 = vsub.f32 %v396_v47, %v11732_v58  ;;  %v3232_v29 = vmin.bf16 %v3216_v23, %v2581_v56  ;;  %v11735_v56 = vld [vmem:[#allocation21_spill] sm:$0xff]  ;;  %v11736_v23 = vld [vmem:[#allocation23_spill] sm:$0xff] }
  0xde   : > { %v6797_v40 = vsub.f32 %v396_v47, %v11663_v50  ;;  %v6800_v0 = vsub.f32 %v396_v47, %v11664_v28  ;;  %v490_v3 = vmul.f32 %v11733_v39, %v6787_v18  ;;  %v607_v16 = vmul.f32 %v11735_v56, %v6787_v18 }
  0xdf   : > { %11726 = vst [vmem:[#allocation110_spill] sm:$0xff] %v6769_v57  ;;  %v3263_v42 = vsel %vm6763_vm2, 0, %v3231_v19  ;;  %v491_v43 = vmul.f32 %v11734_v59, %v6790_v46  ;;  %v3264_v30 = vsel %vm6782_vm14, 0, %v3232_v29  ;;  %v608_v6 = vmul.f32 %v5776_v61, %v6790_v46  ;;  %v11737_v19 = vld [vmem:[#allocation24_spill] sm:$0xff]  ;;  %v11742_v57 = vld [vmem:[#allocation31_spill] sm:$0xff] }
  0xe0   : > { %v3279_v25 = vmul.bf16 3272590095, %v3263_v42  ;;  %v6814_v63 = vpack.c.bf16 %v2338_v11, %v2338_v11  ;;  %v3280_v47 = vmul.bf16 3272590095, %v3264_v30  ;;  %v516_v62 = vadd.f32 %v490_v3, %v11736_v23  ;;  %v11744_v11 = vld [vmem:[#allocation32_spill] sm:$0xff] }
  0xe1   : > { %v517_v14 = vadd.f32 %v491_v43, %v11737_v19  ;;  %v633_v22 = vadd.f32 %v607_v16, %v11738_v31  ;;  %v634_v44 = vadd.f32 %v608_v6, %v11739_v60  ;;  %v518_v35 = vadd.f32 %v490_v3, %v11740_v51 }
  0xe2   : > { %v3296_v21 = vmul.bf16 1069105081, %v3279_v25  ;;  %v519_v29 = vadd.f32 %v491_v43, %v11741_v55  ;;  %v3299_v42 = vmul.bf16 1069105081, %v3280_v47  ;;  %v6823_v28 = vmul.f32 %v11742_v57, %v516_v62 }
  0xe3   : > { %v6826_v50 = vmul.f32 %v11744_v11, %v517_v14  ;;  %v6829_v30 = vmul.f32 %v633_v22, %v11742_v57  ;;  %v6832_v8 = vmul.f32 %v634_v44, %v11744_v11  ;;  %v6835_v25 = vmul.f32 %v11742_v57, %v518_v35  ;;  %v11752_v14 = vld [vmem:[#allocation41_spill] sm:$0xff] }
  0xe4   : > { %11743 = vst [vmem:[#allocation18_spill] sm:$0xff] %v6823_v28  ;;  %5217 = vpow.bf16 %v3296_v21  ;;  %v6838_v3 = vmul.f32 %v11744_v11, %v519_v29  ;;  %v697_v43 = vsub.f32 1.0, %v6823_v28  ;;  %vm762_vm1 = vcmp.ge.f32.partialorder %v6823_v28, 0.0  ;;  %v11753_v29 = vld [vmem:[#allocation39_spill] sm:$0xff] }
  0xe5   : > { %11745 = vst [vmem:[#allocation111_spill] sm:$0xff] %v6826_v50  ;;  %11746 = vst [vmem:[#allocation112_spill] sm:$0xff] %v6829_v30  ;;  %5219 = vpow.bf16 %v3299_v42  ;;  %v698_v47 = vsub.f32 1.0, %v6826_v50  ;;  %vm763_vm10 = vcmp.ge.f32.partialorder %v6826_v50, 0.0  ;;  %vm794_vm5 = vcmp.ge.f32.partialorder %v6829_v30, 0.0 }
  0xe6   : > { %11747 = vst [vmem:[#allocation113_spill] sm:$0xff] %v6832_v8  ;;  %11748 = vst [vmem:[#allocation114_spill] sm:$0xff] %v6835_v25  ;;  %vm795_vm2 = vcmp.ge.f32.partialorder %v6832_v8, 0.0  ;;  %v1020_v22 = vmul.f32 %v5871_v27, %v6823_v28  ;;  %v6849_v44 = vsub.f32 %v697_v43, %v6829_v30  ;;  %v1021_v35 = vmul.f32 %v5874_v38, %v6826_v50  ;;  %v11754_v28 = vld [vmem:[#allocation29_spill] sm:$0xff]  ;;  %v11755_v43 = vld [vmem:[#allocation30_spill] sm:$0xff] }
  0xe7   : > { %11749 = vst [vmem:[#allocation115_spill] sm:$0xff] %v6838_v3  ;;  %v6852_v21 = vsub.f32 %v698_v47, %v6832_v8  ;;  %vm826_vm15 = vmand %vm762_vm1, %vm794_vm5  ;;  %v1107_v62 = vmul.f32 %v11752_v14, %v6829_v30  ;;  %v1108_v26 = vmul.f32 %v11610_v5, %v6832_v8  ;;  %v635_v55 = vadd.f32 %v607_v16, %v11754_v28  ;;  %v11756_v47 = vld [vmem:[#allocation40_spill] sm:$0xff] }
  0xe8   : > { %11750 = vst [vmem:[#allocation116_spill] sm:$0xff] %v6849_v44  ;;  %vm827_vm11 = vmand %vm763_vm10, %vm795_vm2  ;;  %v1063_v42 = vadd.f32 %v11753_v29, %v1020_v22  ;;  %v636_v60 = vadd.f32 %v608_v6, %v11755_v43  ;;  %vm858_vm14 = vcmp.ge.f32.partialorder %v6849_v44, 0.0  ;;  %v1064_v51 = vadd.f32 %v11756_v47, %v1021_v35 }
  0xe9   : > { %11751 = vst [vmem:[#allocation117_spill] sm:$0xff] %v6852_v21  ;;  %vm859_vm1 = vcmp.ge.f32.partialorder %v6852_v21, 0.0  ;;  %v699_v50 = vsub.f32 1.0, %v6835_v25  ;;  %vm6867_vm5 = vmand %vm826_vm15, %vm858_vm14  ;;  %v6872_v31 = vmul.f32 %v635_v55, %v11742_v57  ;;  %v700_v6 = vsub.f32 1.0, %v6838_v3 }
  0xea   : > { %v1139_v22 = vadd.f32 %v1107_v62, %v1063_v42  ;;  %v6875_v16 = vmul.f32 %v636_v60, %v11744_v11  ;;  %vm6878_vm10 = vmand %vm827_vm11, %vm859_vm1  ;;  %v11761_v44 = vmov 0  ;;  %v1140_v35 = vadd.f32 %v1108_v26, %v1064_v51 }
  0xeb   : > { %11759 = vst [vmem:[#allocation118_spill] sm:$0xff] %v6872_v31  ;;  %v11762_v44 = vsel %vm6878_vm10, 4294967295, %v11761_v44  ;;  %v1022_v62 = vmul.f32 %v5871_v27, %v6835_v25  ;;  %vm11182_vm14 = vmand %vm6867_vm5, %vm5897_vm4  ;;  %v6891_v60 = vsub.f32 %v699_v50, %v6872_v31  ;;  %v1023_v26 = vmul.f32 %v5874_v38, %v6838_v3 }
  0xec   : > { %11760 = vst [vmem:[#allocation119_spill] sm:$0xff] %v6875_v16  ;;  %11763 = vst [vmem:[#allocation120_spill] sm:$0xff] %v11762_v44  ;;  %v6894_v55 = vsub.f32 %v700_v6, %v6875_v16  ;;  %v1109_v50 = vmul.f32 %v11752_v14, %v6872_v31  ;;  %v1110_v42 = vmul.f32 %v11610_v5, %v6875_v16  ;;  %v11766_v6 = vmov 0 }
  0xed   : > { %11764 = vst [vmem:[#allocation121_spill] sm:$0xff] %v6891_v60  ;;  %vm11191_vm15 = vmand %vm6878_vm10, %vm5909_vm7  ;;  %v1065_v51 = vadd.f32 %v11753_v29, %v1022_v62  ;;  %v6924_v62 = vpack.c.bf16 %v6794_v7, %v6794_v7  ;;  %v2400_v21 = vmul.bf16 %v5997_v54, %v6814_v63  ;;  %v11769_v43 = vmov 0 }
  0xee   : > { %11765 = vst [vmem:[#allocation122_spill] sm:$0xff] %v6894_v55  ;;  %vm6916_vm1 = vmand %vm11182_vm14, %vm5917_vm12  ;;  %v1066_v7 = vadd.f32 %v11756_v47, %v1023_v26  ;;  %v6946_v14 = vpack.c.bf16 %v6797_v40, %v6797_v40  ;;  %vm11776_vm11 = vcmp.ge.f32.partialorder %v6835_v25, 0.0  ;;  %v11777_v26 = vld [vmem:[#allocation61_spill] sm:$0xff]  ;;  %v11778_v40 = vld [vmem:[#allocation98_spill] sm:$0xff]  ;;  %vm11781_vm9 = vcmp.ge.f32.partialorder %v6838_v3, 0.0 }
  0xef   : > { %v11767_v6 = vsel %vm6916_vm1, 4294967295, %v11766_v6  ;;  %v5218_v8 = vpop.eup %5217  ;;  %vm6935_vm14 = vmand %vm11191_vm15, %vm5930_vm13  ;;  %v6941_v28 = vsel %vm6916_vm1, %v1139_v22, -1e+30  ;;  %v1141_v5 = vadd.f32 %v1109_v50, %v1065_v51  ;;  %vm11775_vm15 = vcmp.ge.f32.partialorder %v6872_v31, 0.0  ;;  %v3395_v3 = vld [vmem:[#allocation3] sm:$0xff] }
  0xf0   : > { %11768 = vst [vmem:[#allocation123_spill] sm:$0xff] %v11767_v6  ;;  %v11770_v43 = vsel %vm6935_vm14, 4294967295, %v11769_v43  ;;  %11772 = vst [vmem:[#allocation125_spill] sm:$0xff] %v6941_v28  ;;  %v5220_v29 = vpop.eup %5219  ;;  %v3355_v27 = vsel %vm6483_vm0, %v5218_v8, 0  ;;  %v6952_v44 = vsel %vm6935_vm14, %v1140_v35, -1e+30  ;;  %v2401_v22 = vmul.bf16 %v6034_v13, %v6924_v62 }
  0xf1   : > { %11771 = vst [vmem:[#allocation124_spill] sm:$0xff] %v11770_v43  ;;  %11774 = vst [vmem:[#allocation126_spill] sm:$0xff] %v6952_v44  ;;  %v2416_v51 = vadd.bf16 %v2400_v21, %v11777_v26  ;;  %vm11779_vm1 = vcmp.ne.s16.totalorder %v11778_v40, 0  ;;  %v3371_v6 = vsub.bf16 1065369472, %v3355_v27  ;;  %v1213_v8 = vmax.f32 %v6941_v28, %v6952_v44  ;;  %v11785_v21 = vld [vmem:[#allocation63_spill] sm:$0xff] }
  0xf2   : > { %vm828_vm2 = vmand %vm11776_vm11, %vm11775_vm15  ;;  %v3356_v50 = vsel %vm11779_vm1, %v5220_v29, 0  ;;  %vm11780_vm14 = vcmp.ge.f32.partialorder %v6875_v16, 0.0  ;;  %v1142_v35 = vadd.f32 %v1110_v42, %v1066_v7  ;;  %vm11782_vm15 = vcmp.ge.f32.partialorder %v6891_v60, 0.0  ;;  %v11786_v29 = vld [vmem:[#allocation69_spill] sm:$0xff]  ;;  %v3396_v16 = vld [vmem:[#allocation3 + $0x8] sm:$0xff] }
  0xf3   : > { %vm829_vm3 = vmand %vm11781_vm9, %vm11780_vm14  ;;  %v3372_v25 = vsub.bf16 1065369472, %v3356_v50  ;;  %v2417_v43 = vadd.bf16 %v2401_v22, %v11785_v21  ;;  %v2446_v27 = vmul.bf16 %v11786_v29, %v2416_v51  ;;  %v6979_v28 = vpack.c.bf16 %v6800_v0, %v6800_v0  ;;  %1214 = vmax.xlane.f32.xlu0 %v1213_v8  ;;  %v11791_v8 = vld [vmem:[#allocation70_spill] sm:$0xff] }
  0xf4   : > { %vm6971_vm11 = vmand %vm828_vm2, %vm11782_vm15  ;;  %vm11787_vm1 = vcmp.ge.f32.partialorder %v6894_v55, 0.0  ;;  %v11788_v42 = vmov 0  ;;  %v2731_v7 = vmul.bf16 %v6117_v12, %v6946_v14  ;;  %v6991_v50 = vpack.c.bf16 %v6787_v18, %v6787_v18  ;;  %v11800_v40 = vld [vmem:[#allocation78_spill] sm:$0xff] }
  0xf5   : > { %vm6983_vm9 = vmand %vm829_vm3, %vm11787_vm1  ;;  %v6995_v22 = vpack.c.bf16 %v6790_v46, %v6790_v46  ;;  %v6998_v0 = vsub.f32 1.0, %v6767_v33  ;;  %v3387_v51 = vmul.bf16 %v3372_v25, %v3371_v6  ;;  %v2447_v60 = vmul.bf16 %v11791_v8, %v2417_v43  ;;  %v11792_v33 = vld [vmem:[#allocation77_spill] sm:$0xff] }
  0xf6   : > { %v11789_v42 = vsel %vm6983_vm9, 4294967295, %v11788_v42  ;;  %vm935_vm3 = vmand %vm6971_vm11, %vm5897_vm4  ;;  %v2462_v55 = vmax.bf16 %v11587_v52, %v2446_v27  ;;  %v2732_v18 = vmul.bf16 %v6129_v45, %v6979_v28  ;;  %v2747_v46 = vadd.bf16 %v2731_v7, %v11792_v33 }
  0xf7   : > { %11790 = vst [vmem:[#allocation127_spill] sm:$0xff] %v11789_v42  ;;  %vm11225_vm2 = vmand %vm6983_vm9, %vm5909_vm7  ;;  %v3019_v25 = vmul.bf16 %v6215_v1, %v6991_v50  ;;  %v3020_v43 = vmul.bf16 %v6218_v34, %v6995_v22  ;;  %v7019_v6 = vsub.f32 %v6998_v0, %v11731_v37  ;;  %v3411_v27 = vunpack.c.l.bf16 %v3387_v51 }
  0xf8   : > { %v3412_v44 = vunpack.c.h.bf16 %v3387_v51  ;;  %vm7028_vm14 = vmand %vm935_vm3, %vm5917_vm12  ;;  %v11793_v7 = vmov 0  ;;  %v2463_v8 = vmax.bf16 %v11587_v52, %v2447_v60  ;;  %v2478_v29 = vmin.bf16 %v11597_v48, %v2462_v55  ;;  %v11801_v60 = vld [vmem:[#allocation79_spill] sm:$0xff]  ;;  %v11802_v55 = vld [vmem:[#allocation85_spill] sm:$0xff] }
  0xf9   : > { %v11794_v7 = vsel %vm7028_vm14, 4294967295, %v11793_v7  ;;  %vm7041_vm15 = vmand %vm11225_vm2, %vm5930_vm13  ;;  %v11796_v51 = vmov 0  ;;  %v7047_v37 = vsel %vm7028_vm14, %v1141_v5, -1e+30  ;;  %v2748_v38 = vadd.bf16 %v2732_v18, %v11800_v40  ;;  %v11804_v18 = vld [vmem:[#allocation80_spill] sm:$0xff] }
  0xfa   : > { %11795 = vst [vmem:[#allocation128_spill] sm:$0xff] %v11794_v7  ;;  %v11797_v51 = vsel %vm7041_vm15, 4294967295, %v11796_v51  ;;  %11799 = vst [vmem:[#allocation130_spill] sm:$0xff] %v7047_v37  ;;  %v2777_v33 = vmul.bf16 %v11801_v60, %v2747_v46  ;;  %v3035_v21 = vadd.bf16 %v3019_v25, %v11802_v55  ;;  %v3427_v26 = vmul.f32 %v3411_v27, %v3395_v3 }
  0xfb   : > { %11798 = vst [vmem:[#allocation129_spill] sm:$0xff] %v11797_v51  ;;  %v3428_v20 = vmul.f32 %v3412_v44, %v3396_v16  ;;  %v7054_v17 = vsel %vm7041_vm15, %v1142_v35, -1e+30  ;;  %v2479_v47 = vmin.bf16 %v11597_v48, %v2463_v8  ;;  %v2494_v5 = vmul.bf16 %v2478_v29, %v11687_v15  ;;  %v11805_v35 = vld [vmem:[#allocation86_spill] sm:$0xff]  ;;  %vm11818_vm2 = vmand %vm6867_vm5, %vm5897_vm4 }
  0xfc   : > { %11803 = vst [vmem:[#allocation131_spill] sm:$0xff] %v7054_v17  ;;  %v1216_v42 = vmax.f32 %v7047_v37, %v7054_v17  ;;  %v2526_v7 = vmul.bf16 %v2478_v29, %v5997_v54  ;;  %v2778_v40 = vmul.bf16 %v11804_v18, %v2748_v38  ;;  %3443 = vst [vmem:[#allocation3] sm:$0xff] %v3427_v26  ;;  %v11806_v37 = vld [vmem:[#allocation87_spill] sm:$0xff] }
  0xfd   : > { %3444 = vst [vmem:[#allocation3 + $0x8] sm:$0xff] %v3428_v20  ;;  %v2495_v3 = vmul.bf16 %v2479_v47, %v11689_v24  ;;  %v2527_v44 = vmul.bf16 %v2479_v47, %v6034_v13  ;;  %v2793_v16 = vmax.bf16 %v11587_v52, %v2777_v33  ;;  %v3036_v46 = vadd.bf16 %v3020_v43, %v11805_v35  ;;  %v11807_v47 = vld [vmem:[#allocation88_spill] sm:$0xff]  ;;  %vm7134_vm14 = vmpackc.low %vm935_vm3, %vm11818_vm2 }
  0xfe   : > { %v2510_v8 = vsub.bf16 %v11690_v32, %v2494_v5  ;;  %v2542_v25 = vsub.bf16 %v6814_v63, %v2526_v7  ;;  %v2794_v27 = vmax.bf16 %v11587_v52, %v2778_v40  ;;  %v3065_v29 = vmul.bf16 %v11806_v37, %v3035_v21  ;;  %1217 = vmax.xlane.f32.xlu1 %v1216_v42  ;;  %v11808_v40 = vld [vmem:[#allocation73_spill] sm:$0xff]  ;;  %vm11823_vm5 = vmand %vm6878_vm10, %vm5909_vm7 }
  0xff   : > { %v2511_v38 = vsub.bf16 %v11693_v10, %v2495_v3  ;;  %v2543_v20 = vsub.bf16 %v6924_v62, %v2527_v44  ;;  %v2809_v26 = vmin.bf16 %v11597_v48, %v2793_v16  ;;  %v3066_v51 = vmul.bf16 %v11807_v47, %v3036_v46  ;;  %vm11825_vm11 = vmand %vm6983_vm9, %vm5909_vm7 }
 0x100   : > { %v2558_v33 = vmul.bf16 %v2510_v8, %v2510_v8  ;;  %v2574_v17 = vmul.bf16 %v2542_v25, %v2542_v25  ;;  %v2810_v43 = vmin.bf16 %v11597_v48, %v2794_v27  ;;  %v3081_v5 = vmax.bf16 %v11587_v52, %v3065_v29  ;;  %vm7153_vm3 = vmpackc.low %vm11825_vm11, %vm11823_vm5 }
 0x101   : > { %v2559_v63 = vmul.bf16 %v2511_v38, %v2511_v38  ;;  %v2575_v7 = vmul.bf16 %v2543_v20, %v2543_v20  ;;  %v2825_v32 = vmul.bf16 %v2809_v26, %v11808_v40  ;;  %v2857_v21 = vmul.bf16 %v2809_v26, %v6117_v12 }
 0x102   : > { %v2590_v42 = vadd.bf16 %v2574_v17, %v2558_v33  ;;  %v2826_v3 = vmul.bf16 %v2810_v43, %v11705_v49  ;;  %v2858_v62 = vmul.bf16 %v2810_v43, %v6129_v45  ;;  %v3082_v44 = vmax.bf16 %v11587_v52, %v3066_v51  ;;  %v11809_v51 = vld [vmem:[#allocation83_spill] sm:$0xff] }
 0x103   : > { %v2591_v16 = vadd.bf16 %v2575_v7, %v2559_v63  ;;  %v2841_v46 = vsub.bf16 %v11706_v9, %v2825_v32  ;;  %v2873_v8 = vsub.bf16 %v6946_v14, %v2857_v21  ;;  %v3097_v25 = vmin.bf16 %v11597_v48, %v3081_v5  ;;  %v11810_v63 = vld [vmem:[#allocation84_spill] sm:$0xff] }
 0x104   : > { %v2842_v27 = vsub.bf16 %v11709_v41, %v2826_v3  ;;  %v2874_v29 = vsub.bf16 %v6979_v28, %v2858_v62  ;;  %v3098_v38 = vmin.bf16 %v11597_v48, %v3082_v44  ;;  %v7089_v17 = vsub.f32 %v6998_v0, %v11732_v58 }
 0x105   : > { %v2889_v20 = vmul.bf16 %v2841_v46, %v2841_v46  ;;  %v2905_v26 = vmul.bf16 %v2873_v8, %v2873_v8  ;;  %v3113_v33 = vmul.bf16 %v3097_v25, %v11809_v51  ;;  %v3145_v32 = vmul.bf16 %v3097_v25, %v6215_v1 }
 0x106   : > { %v2890_v43 = vmul.bf16 %v2842_v27, %v2842_v27  ;;  %v2906_v14 = vmul.bf16 %v2874_v29, %v2874_v29  ;;  %v3114_v5 = vmul.bf16 %v3098_v38, %v11810_v63  ;;  %v3146_v7 = vmul.bf16 %v3098_v38, %v6218_v34 }
 0x107   : > { %v2921_v21 = vadd.bf16 %v2905_v26, %v2889_v20  ;;  %v3129_v28 = vsub.bf16 %v11710_v53, %v3113_v33  ;;  %v3161_v3 = vsub.bf16 %v6991_v50, %v3145_v32  ;;  %v482_v62 = vmul.f32 %v11733_v39, %v7019_v6 }
 0x108   : > { %v2922_v44 = vadd.bf16 %v2906_v14, %v2890_v43  ;;  %v3130_v46 = vsub.bf16 %v11711_v4, %v3114_v5  ;;  %v3162_v8 = vsub.bf16 %v6995_v22, %v3146_v7  ;;  %v483_v25 = vmul.f32 %v11734_v59, %v7089_v17  ;;  %v11812_v14 = vld [vmem:[#allocation25_spill] sm:$0xff]  ;;  %v11813_v7 = vld [vmem:[#allocation27_spill] sm:$0xff] }
 0x109   : > { %v3177_v27 = vmul.bf16 %v3129_v28, %v3129_v28  ;;  %v3193_v29 = vmul.bf16 %v3161_v3, %v3161_v3  ;;  %v500_v38 = vadd.f32 %v482_v62, %v11736_v23  ;;  %v599_v20 = vmul.f32 %v11735_v56, %v7019_v6  ;;  %v11815_v56 = vld [vmem:[#allocation26_spill] sm:$0xff] }
 0x10a   : > { %v3178_v26 = vmul.bf16 %v3130_v46, %v3130_v46  ;;  %v3194_v50 = vmul.bf16 %v3162_v8, %v3162_v8  ;;  %v501_v33 = vadd.f32 %v483_v25, %v11737_v19  ;;  %v600_v32 = vmul.f32 %v5776_v61, %v7089_v17  ;;  %v11816_v8 = vld [vmem:[#allocation28_spill] sm:$0xff] }
 0x10b   : > { %v3209_v43 = vadd.bf16 %v3193_v29, %v3177_v27  ;;  %v7110_v22 = vmul.f32 %v11742_v57, %v500_v38  ;;  %v617_v5 = vadd.f32 %v599_v20, %v11812_v14  ;;  %v502_v28 = vadd.f32 %v482_v62, %v11813_v7 }
 0x10c   : > { %v3210_v3 = vadd.bf16 %v3194_v50, %v3178_v26  ;;  %v7115_v23 = vmul.f32 %v11744_v11, %v501_v33  ;;  %v618_v46 = vadd.f32 %v600_v32, %v11815_v56  ;;  %v503_v4 = vadd.f32 %v483_v25, %v11816_v8 }
 0x10d   : > { %11811 = vst [vmem:[#allocation73_spill] sm:$0xff] %v7110_v22  ;;  %v3225_v19 = vmin.bf16 %v3209_v43, %v2921_v21  ;;  %v7120_v59 = vmul.f32 %v617_v5, %v11742_v57  ;;  %v681_v27 = vsub.f32 1.0, %v7110_v22  ;;  %vm746_vm1 = vcmp.ge.f32.partialorder %v7110_v22, 0.0  ;;  %v11831_v43 = vld [vmem:[#allocation38_spill] sm:$0xff]  ;;  %v11836_v21 = vld [vmem:[#allocation40_spill] sm:$0xff] }
 0x10e   : > { %11814 = vst [vmem:[#allocation83_spill] sm:$0xff] %v7115_v23  ;;  %v3226_v29 = vmin.bf16 %v3210_v3, %v2922_v44  ;;  %v7139_v62 = vmul.f32 %v618_v46, %v11744_v11  ;;  %v682_v25 = vsub.f32 1.0, %v7115_v23  ;;  %vm747_vm15 = vcmp.ge.f32.partialorder %v7115_v23, 0.0  ;;  %v11832_v46 = vld [vmem:[#allocation39_spill] sm:$0xff]  ;;  %v11833_v44 = vld [vmem:[#allocation41_spill] sm:$0xff] }
 0x10f   : > { %11817 = vst [vmem:[#allocation84_spill] sm:$0xff] %v7120_v59  ;;  %v3241_v30 = vmin.bf16 %v3225_v19, %v2590_v42  ;;  %v7158_v26 = vsub.f32 %v681_v27, %v7120_v59  ;;  %vm778_vm2 = vcmp.ge.f32.partialorder %v7120_v59, 0.0  ;;  %v11829_v19 = vld [vmem:[#allocation37_spill] sm:$0xff]  ;;  %v1005_v5 = vmul.f32 %v11831_v43, %v7115_v23 }
 0x110   : > { %11821 = vst [vmem:[#allocation132_spill] sm:$0xff] %v7139_v62  ;;  %v1004_v42 = vmul.f32 %v11829_v19, %v7110_v22  ;;  %v3242_v50 = vmin.bf16 %v3226_v29, %v2591_v16  ;;  %v7164_v33 = vsub.f32 %v682_v25, %v7139_v62  ;;  %vm779_vm10 = vcmp.ge.f32.partialorder %v7139_v62, 0.0  ;;  %vm810_vm6 = vmand %vm746_vm1, %vm778_vm2 }
 0x111   : > { %11828 = vst [vmem:[#allocation120_spill] sm:$0xff] %v7158_v26  ;;  %v3273_v3 = vsel %vm7134_vm14, 0, %v3241_v30  ;;  %vm811_vm9 = vmand %vm747_vm15, %vm779_vm10  ;;  %vm842_vm5 = vcmp.ge.f32.partialorder %v7158_v26, 0.0  ;;  %v1091_v16 = vmul.f32 %v11833_v44, %v7120_v59  ;;  %v1048_v30 = vadd.f32 %v11836_v21, %v1005_v5 }
 0x112   : > { %11830 = vst [vmem:[#allocation127_spill] sm:$0xff] %v7164_v33  ;;  %v1047_v27 = vadd.f32 %v11832_v46, %v1004_v42  ;;  %v3274_v29 = vsel %vm7153_vm3, 0, %v3242_v50  ;;  %v3289_v25 = vmul.bf16 3272590095, %v3273_v3  ;;  %vm843_vm1 = vcmp.ge.f32.partialorder %v7164_v33, 0.0  ;;  %vm7178_vm11 = vmand %vm810_vm6, %vm842_vm5  ;;  %v11840_v42 = vld [vmem:[#allocation51_spill] sm:$0xff] }
 0x113   : > { %v3290_v22 = vmul.bf16 3272590095, %v3274_v29  ;;  %vm7183_vm14 = vmand %vm811_vm9, %vm843_vm1  ;;  %v11837_v23 = vmov 0  ;;  %v1092_v26 = vmul.f32 %v11840_v42, %v7139_v62  ;;  %v7190_v38 = vmul.f32 %v11742_v57, %v502_v28  ;;  %v11843_v3 = vld [vmem:[#allocation29_spill] sm:$0xff]  ;;  %v11844_v33 = vld [vmem:[#allocation30_spill] sm:$0xff] }
 0x114   : > { %v11838_v23 = vsel %vm7183_vm14, 4294967295, %v11837_v23  ;;  %v1123_v59 = vadd.f32 %v1091_v16, %v1047_v27  ;;  %v3326_v50 = vmul.bf16 1069105081, %v3289_v25  ;;  %vm11236_vm6 = vmand %vm7178_vm11, %vm5897_vm4  ;;  %v7197_v5 = vmul.f32 %v11744_v11, %v503_v4 }
 0x115   : > { %11839 = vst [vmem:[#allocation133_spill] sm:$0xff] %v11838_v23  ;;  %11841 = vst [vmem:[#allocation134_spill] sm:$0xff] %v7190_v38  ;;  %v619_v29 = vadd.f32 %v599_v20, %v11843_v3  ;;  %v620_v8 = vadd.f32 %v600_v32, %v11844_v33  ;;  %v3329_v56 = vmul.bf16 1069105081, %v3290_v22  ;;  %v1124_v28 = vadd.f32 %v1092_v26, %v1048_v30  ;;  %v11883_v23 = vld [vmem:[#allocation77_spill] sm:$0xff] }
 0x116   : > { %11842 = vst [vmem:[#allocation135_spill] sm:$0xff] %v7197_v5  ;;  %vm11234_vm15 = vmand %vm7183_vm14, %vm5909_vm7  ;;  %v683_v27 = vsub.f32 1.0, %v7190_v38  ;;  %vm748_vm3 = vcmp.ge.f32.partialorder %v7190_v38, 0.0  ;;  %5221 = vpow.bf16 %v3326_v50  ;;  %v11846_v4 = vmov 0 }
 0x117   : > { %vm7214_vm2 = vmand %vm11236_vm6, %vm5917_vm12  ;;  %v7219_v20 = vmul.f32 %v619_v29, %v11742_v57  ;;  %v7222_v32 = vmul.f32 %v620_v8, %v11744_v11  ;;  %v684_v22 = vsub.f32 1.0, %v7197_v5  ;;  %5223 = vpow.bf16 %v3329_v56 }
 0x118   : > { %v11847_v4 = vsel %vm7214_vm2, 4294967295, %v11846_v4  ;;  %vm7232_vm10 = vmand %vm11234_vm15, %vm5930_vm13  ;;  %v11852_v25 = vmov 0  ;;  %v7238_v30 = vsel %vm7214_vm2, %v1123_v59, -1e+30  ;;  %vm749_vm9 = vcmp.ge.f32.partialorder %v7197_v5, 0.0 }
 0x119   : > { %11848 = vst [vmem:[#allocation136_spill] sm:$0xff] %v11847_v4  ;;  %11849 = vst [vmem:[#allocation137_spill] sm:$0xff] %v7219_v20  ;;  %v11853_v25 = vsel %vm7232_vm10, 4294967295, %v11852_v25  ;;  %v1006_v56 = vmul.f32 %v11829_v19, %v7190_v38  ;;  %v7245_v8 = vsel %vm7232_vm10, %v1124_v28, -1e+30  ;;  %v7248_v50 = vsub.f32 %v683_v27, %v7219_v20  ;;  %v11862_v4 = vld [vmem:[#allocation54_spill] sm:$0xff] }
 0x11a   : > { %11850 = vst [vmem:[#allocation138_spill] sm:$0xff] %v7222_v32  ;;  %11854 = vst [vmem:[#allocation139_spill] sm:$0xff] %v11853_v25  ;;  %v7251_v29 = vsub.f32 %v684_v22, %v7222_v32  ;;  %vm780_vm5 = vcmp.ge.f32.partialorder %v7219_v20, 0.0  ;;  %v1189_v59 = vmax.f32 %v7238_v30, %v7245_v8  ;;  %vm781_vm1 = vcmp.ge.f32.partialorder %v7222_v32, 0.0  ;;  %v11863_v25 = vld [vmem:[#allocation55_spill] sm:$0xff] }
 0x11b   : > { %11855 = vst [vmem:[#allocation140_spill] sm:$0xff] %v7238_v30  ;;  %11856 = vst [vmem:[#allocation141_spill] sm:$0xff] %v7245_v8  ;;  %v1007_v28 = vmul.f32 %v11831_v43, %v7197_v5  ;;  %v1049_v62 = vadd.f32 %v11832_v46, %v1006_v56  ;;  %vm844_vm2 = vcmp.ge.f32.partialorder %v7248_v50, 0.0  ;;  %v1093_v27 = vmul.f32 %v11833_v44, %v7219_v20  ;;  %v11881_v44 = vld [vmem:[#allocation61_spill] sm:$0xff] }
 0x11c   : > { %11857 = vst [vmem:[#allocation142_spill] sm:$0xff] %v7248_v50  ;;  %11858 = vst [vmem:[#allocation143_spill] sm:$0xff] %v7251_v29  ;;  %vm845_vm10 = vcmp.ge.f32.partialorder %v7251_v29, 0.0  ;;  %v1094_v22 = vmul.f32 %v11840_v42, %v7222_v32  ;;  %1190 = vmax.xlane.f32.xlu0 %v1189_v59  ;;  %v11859_v38 = vmov 0  ;;  %v2330_v56 = vsub.f32 %v6998_v0, %v11862_v4  ;;  %v11864_v29 = vld [vmem:[#allocation67_spill] sm:$0xff]  ;;  %v11868_v32 = vld [vmem:[#allocation68_spill] sm:$0xff] }
 0x11d   : > { %vm812_vm15 = vmand %vm748_vm3, %vm780_vm5  ;;  %v1050_v5 = vadd.f32 %v11836_v21, %v1007_v28  ;;  %v2331_v50 = vsub.f32 %v6998_v0, %v11863_v25  ;;  %v2661_v30 = vsub.f32 %v6998_v0, %v11864_v29  ;;  %v11865_v20 = vmov 0 }
 0x11e   : > { %vm813_vm6 = vmand %vm749_vm9, %vm781_vm1  ;;  %v1125_v59 = vadd.f32 %v1093_v27, %v1049_v62  ;;  %v2662_v8 = vsub.f32 %v6998_v0, %v11868_v32  ;;  %v7287_v28 = vpack.c.bf16 %v7019_v6, %v7019_v6  ;;  %v7291_v4 = vpack.c.bf16 %v7089_v17, %v7089_v17 }
 0x11f   : > { %vm7268_vm8 = vmand %vm812_vm15, %vm844_vm2  ;;  %v1126_v29 = vadd.f32 %v1094_v22, %v1050_v5  ;;  %v7297_v25 = vpack.c.bf16 %v2330_v56, %v2330_v56  ;;  %v7299_v62 = vpack.c.bf16 %v2331_v50, %v2331_v50  ;;  %v7301_v27 = vpack.c.bf16 %v2661_v30, %v2661_v30  ;;  %v11869_v5 = vld [vmem:[#allocation110_spill] sm:$0xff] }
 0x120   : > { %v11860_v38 = vsel %vm7268_vm8, 4294967295, %v11859_v38  ;;  %vm7279_vm3 = vmand %vm813_vm6, %vm845_vm10  ;;  %v7307_v0 = vpack.c.bf16 %v2662_v8, %v2662_v8  ;;  %v3011_v6 = vmul.bf16 %v6215_v1, %v7287_v28  ;;  %v3012_v17 = vmul.bf16 %v6218_v34, %v7291_v4 }
 0x121   : > { %11861 = vst [vmem:[#allocation144_spill] sm:$0xff] %v11860_v38  ;;  %v11866_v20 = vsel %vm7279_vm3, 4294967295, %v11865_v20  ;;  %vm919_vm6 = vmand %vm7268_vm8, %vm5897_vm4  ;;  %v389_v22 = vmul.f32 0.0625, %v11869_v5  ;;  %v11870_v30 = vmov 0  ;;  %v2392_v8 = vmul.bf16 %v5997_v54, %v7297_v25  ;;  %v11873_v5 = vld [vmem:[#allocation109_spill] sm:$0xff]  ;;  %v5222_v26 = vpop.eup %5221 }
 0x122   : > { %11867 = vst [vmem:[#allocation145_spill] sm:$0xff] %v11866_v20  ;;  %vm920_vm15 = vmand %vm7279_vm3, %vm5909_vm7  ;;  %v2393_v50 = vmul.bf16 %v6034_v13, %v7299_v62  ;;  %v2723_v56 = vmul.bf16 %v6117_v12, %v7301_v27  ;;  %v11874_v32 = vcvt.s32.f32 %v11873_v5  ;;  %v11876_v33 = vmov 0  ;;  %v11882_v20 = vld [vmem:[#allocation63_spill] sm:$0xff] }
 0x123   : > { %vm7321_vm2 = vmand %vm919_vm6, %vm5917_vm12  ;;  %v2724_v5 = vmul.bf16 %v6129_v45, %v7307_v0  ;;  %v2408_v21 = vadd.bf16 %v2392_v8, %v11881_v44  ;;  %v3365_v43 = vsel %vm6483_vm0, %v5222_v26, 0  ;;  %v11888_v8 = vld [vmem:[#allocation69_spill] sm:$0xff] }
 0x124   : > { %v11871_v30 = vsel %vm7321_vm2, 4294967295, %v11870_v30  ;;  %v7333_v16 = vmul.f32 2.0, %v11874_v32  ;;  %vm7342_vm10 = vmand %vm920_vm15, %vm5930_vm13  ;;  %v7348_v3 = vsel %vm7321_vm2, %v1125_v59, -1e+30  ;;  %v3027_v32 = vadd.bf16 %v3011_v6, %v11802_v55  ;;  %v5224_v59 = vpop.eup %5223  ;;  %v11885_v55 = vld [vmem:[#allocation78_spill] sm:$0xff] }
 0x125   : > { %11872 = vst [vmem:[#allocation110_spill] sm:$0xff] %v11871_v30  ;;  %v11877_v33 = vsel %vm7342_vm10, 4294967295, %v11876_v33  ;;  %11879 = vst [vmem:[#allocation147_spill] sm:$0xff] %v7348_v3  ;;  %v7356_v42 = vsel %vm7342_vm10, %v1126_v29, -1e+30  ;;  %v2409_v2 = vadd.bf16 %v2393_v50, %v11882_v20  ;;  %v2739_v30 = vadd.bf16 %v2723_v56, %v11883_v23  ;;  %v11889_v50 = vld [vmem:[#allocation70_spill] sm:$0xff] }
 0x126   : > { %11875 = vst [vmem:[#allocation109_spill] sm:$0xff] %v7333_v16  ;;  %11878 = vst [vmem:[#allocation146_spill] sm:$0xff] %v11877_v33  ;;  %v3028_v16 = vadd.bf16 %v3012_v17, %v11805_v35  ;;  %v1192_v6 = vmax.f32 %v7348_v3, %v7356_v42  ;;  %v2740_v17 = vadd.bf16 %v2724_v5, %v11885_v55  ;;  %v11886_v33 = vld [vmem:[#allocation98_spill] sm:$0xff]  ;;  %v3381_v38 = vsub.bf16 1065369472, %v3365_v43 }
 0x127   : > { %11880 = vst [vmem:[#allocation148_spill] sm:$0xff] %v7356_v42  ;;  %v3057_v35 = vmul.bf16 %v11806_v37, %v3027_v32  ;;  %vm11887_vm9 = vcmp.ne.s16.totalorder %v11886_v33, 0  ;;  %v2438_v44 = vmul.bf16 %v11888_v8, %v2408_v21  ;;  %v2439_v20 = vmul.bf16 %v11889_v50, %v2409_v2  ;;  %vm11902_vm1 = vmand %vm7178_vm11, %vm5897_vm4 }
 0x128   : > { %v3366_v29 = vsel %vm11887_vm9, %v5224_v59, 0  ;;  %v2769_v23 = vmul.bf16 %v11801_v60, %v2739_v30  ;;  %v2770_v26 = vmul.bf16 %v11804_v18, %v2740_v17  ;;  %v3058_v46 = vmul.bf16 %v11807_v47, %v3028_v16  ;;  %1193 = vmax.xlane.f32.xlu1 %v1192_v6  ;;  %v3406_v17 = vld [vmem:[#allocation3 + $0x58] sm:$0xff]  ;;  %v11891_v60 = vld [vmem:[#allocation57_spill] sm:$0xff]  ;;  %vm7460_vm9 = vmpackc.low %vm919_vm6, %vm11902_vm1 }
 0x129   : > { %v3382_v56 = vsub.bf16 1065369472, %v3366_v29  ;;  %v2454_v5 = vmax.bf16 %v11587_v52, %v2438_v44  ;;  %v2455_v32 = vmax.bf16 %v11587_v52, %v2439_v20  ;;  %v3073_v3 = vmax.bf16 %v11587_v52, %v3057_v35  ;;  %v3405_v29 = vld [vmem:[#allocation3 + $0x50] sm:$0xff]  ;;  %vm11910_vm11 = vmand %vm7183_vm14, %vm5909_vm7 }
 0x12a   : > { %v7377_v59 = vsub.f32 1.0, %v389_v22  ;;  %v2785_v21 = vmax.bf16 %v11587_v52, %v2769_v23  ;;  %v2786_v2 = vmax.bf16 %v11587_v52, %v2770_v26  ;;  %v3074_v30 = vmax.bf16 %v11587_v52, %v3058_v46  ;;  %v11890_v20 = vld [vmem:[#allocation17_spill] sm:$0xff]  ;;  %vm7478_vm8 = vmpackc.low %vm920_vm15, %vm11910_vm11 }
 0x12b   : > { %v3392_v43 = vmul.bf16 %v3382_v56, %v3381_v38  ;;  %v2470_v16 = vmin.bf16 %v11597_v48, %v2454_v5  ;;  %v2471_v6 = vmin.bf16 %v11597_v48, %v2455_v32  ;;  %v3089_v44 = vmin.bf16 %v11597_v48, %v3073_v3 }
 0x12c   : > { %v7387_v35 = vsub.f32 %v7377_v59, %v11890_v20  ;;  %v2801_v23 = vmin.bf16 %v11597_v48, %v2785_v21  ;;  %v2802_v56 = vmin.bf16 %v11597_v48, %v2786_v2 }
 0x12d   : > { %v3421_v22 = vunpack.c.l.bf16 %v3392_v43  ;;  %v3422_v38 = vunpack.c.h.bf16 %v3392_v43  ;;  %v2486_v46 = vmul.bf16 %v2470_v16, %v11687_v15  ;;  %v2487_v26 = vmul.bf16 %v2471_v6, %v11689_v24 }
 0x12e   : > { %v2518_v5 = vmul.bf16 %v2470_v16, %v5997_v54  ;;  %v2519_v32 = vmul.bf16 %v2471_v6, %v6034_v13  ;;  %v2817_v18 = vmul.bf16 %v2801_v23, %v11808_v40  ;;  %v2818_v20 = vmul.bf16 %v2802_v56, %v11705_v49 }
 0x12f   : > { %v3437_v42 = vmul.f32 %v3421_v22, %v3405_v29  ;;  %v3438_v3 = vmul.f32 %v3422_v38, %v3406_v17  ;;  %v2502_v43 = vsub.bf16 %v11891_v60, %v2486_v46  ;;  %v2503_v21 = vsub.bf16 %v11693_v10, %v2487_v26 }
 0x130   : > { %v2534_v2 = vsub.bf16 %v7297_v25, %v2518_v5  ;;  %v2535_v15 = vsub.bf16 %v7299_v62, %v2519_v32  ;;  %v2833_v16 = vsub.bf16 %v11706_v9, %v2817_v18  ;;  %v2834_v6 = vsub.bf16 %v11709_v41, %v2818_v20 }
 0x131   : > { %3453 = vst [vmem:[#allocation3 + $0x50] sm:$0xff] %v3437_v42  ;;  %3454 = vst [vmem:[#allocation3 + $0x58] sm:$0xff] %v3438_v3  ;;  %v2849_v29 = vmul.bf16 %v2801_v23, %v6117_v12  ;;  %v2850_v17 = vmul.bf16 %v2802_v56, %v6129_v45  ;;  %v2550_v22 = vmul.bf16 %v2502_v43, %v2502_v43 }
 0x132   : > { %v2551_v38 = vmul.bf16 %v2503_v21, %v2503_v21  ;;  %v2566_v49 = vmul.bf16 %v2534_v2, %v2534_v2  ;;  %v2567_v46 = vmul.bf16 %v2535_v15, %v2535_v15  ;;  %v2881_v5 = vmul.bf16 %v2833_v16, %v2833_v16  ;;  %v11892_v16 = vld [vmem:[#allocation20_spill] sm:$0xff] }
 0x133   : > { %v2865_v26 = vsub.bf16 %v7301_v27, %v2849_v29  ;;  %v2866_v25 = vsub.bf16 %v7307_v0, %v2850_v17  ;;  %v2882_v62 = vmul.bf16 %v2834_v6, %v2834_v6  ;;  %v3090_v18 = vmin.bf16 %v11597_v48, %v3074_v30  ;;  %v11893_v6 = vld [vmem:[#allocation82_spill] sm:$0xff] }
 0x134   : > { %v2582_v42 = vadd.bf16 %v2566_v49, %v2550_v22  ;;  %v2583_v32 = vadd.bf16 %v2567_v46, %v2551_v38  ;;  %v3105_v20 = vmul.bf16 %v3089_v44, %v11809_v51  ;;  %v3137_v56 = vmul.bf16 %v3089_v44, %v6215_v1  ;;  %v11894_v38 = vld [vmem:[#allocation23_spill] sm:$0xff] }
 0x135   : > { %v2897_v3 = vmul.bf16 %v2865_v26, %v2865_v26  ;;  %v2898_v23 = vmul.bf16 %v2866_v25, %v2866_v25  ;;  %v7412_v43 = vsub.f32 %v7377_v59, %v11732_v58  ;;  %v3106_v15 = vmul.bf16 %v3090_v18, %v11810_v63  ;;  %v11895_v25 = vld [vmem:[#allocation24_spill] sm:$0xff] }
 0x136   : > { %v3121_v27 = vsub.bf16 %v11710_v53, %v3105_v20  ;;  %v3138_v0 = vmul.bf16 %v3090_v18, %v6218_v34  ;;  %v492_v49 = vmul.f32 %v11733_v39, %v7387_v35  ;;  %v3153_v2 = vsub.bf16 %v7287_v28, %v3137_v56  ;;  %v11896_v20 = vld [vmem:[#allocation21_spill] sm:$0xff] }
 0x137   : > { %v2913_v30 = vadd.bf16 %v2897_v3, %v2881_v5  ;;  %v2914_v21 = vadd.bf16 %v2898_v23, %v2882_v62  ;;  %v493_v44 = vmul.f32 %v11892_v16, %v7412_v43  ;;  %v3122_v29 = vsub.bf16 %v11893_v6, %v3106_v15 }
 0x138   : > { %v3154_v17 = vsub.bf16 %v7291_v4, %v3138_v0  ;;  %v3169_v22 = vmul.bf16 %v3121_v27, %v3121_v27  ;;  %v520_v46 = vadd.f32 %v492_v49, %v11894_v38  ;;  %v3185_v26 = vmul.bf16 %v3153_v2, %v3153_v2  ;;  %v11899_v27 = vld [vmem:[#allocation26_spill] sm:$0xff] }
 0x139   : > { %v521_v18 = vadd.f32 %v493_v44, %v11895_v25  ;;  %v609_v39 = vmul.f32 %v11896_v20, %v7387_v35  ;;  %v610_v5 = vmul.f32 %v5776_v61, %v7412_v43  ;;  %v3170_v28 = vmul.bf16 %v3122_v29, %v3122_v29 }
 0x13a   : > { %v3186_v62 = vmul.bf16 %v3154_v17, %v3154_v17  ;;  %v7431_v3 = vmul.f32 %v11742_v57, %v520_v46  ;;  %v522_v23 = vadd.f32 %v492_v49, %v11813_v7  ;;  %v3201_v4 = vadd.bf16 %v3185_v26, %v3169_v22  ;;  %v11922_v7 = vld [vmem:[#allocation28_spill] sm:$0xff] }
 0x13b   : > { %v7435_v56 = vmul.f32 %v11744_v11, %v521_v18  ;;  %v637_v15 = vadd.f32 %v609_v39, %v11812_v14  ;;  %v638_v0 = vadd.f32 %v610_v5, %v11899_v27  ;;  %v11923_v14 = vmov 0 }
 0x13c   : > { %11897 = vst [vmem:[#allocation57_spill] sm:$0xff] %v7431_v3  ;;  %v3202_v2 = vadd.bf16 %v3186_v62, %v3170_v28  ;;  %v701_v25 = vsub.f32 1.0, %v7431_v3  ;;  %v1024_v29 = vmul.f32 %v11829_v19, %v7431_v3  ;;  %v3217_v17 = vmin.bf16 %v3201_v4, %v2913_v30  ;;  %v11906_v28 = vld [vmem:[#allocation38_spill] sm:$0xff] }
 0x13d   : > { %11898 = vst [vmem:[#allocation149_spill] sm:$0xff] %v7435_v56  ;;  %v7444_v46 = vmul.f32 %v637_v15, %v11742_v57  ;;  %v7447_v49 = vmul.f32 %v638_v0, %v11744_v11  ;;  %v702_v22 = vsub.f32 1.0, %v7435_v56  ;;  %vm767_vm5 = vcmp.ge.f32.partialorder %v7435_v56, 0.0  ;;  %v11967_v0 = vld [vmem:[#allocation77_spill] sm:$0xff] }
 0x13e   : > { %v3218_v26 = vmin.bf16 %v3202_v2, %v2914_v21  ;;  %v1025_v62 = vmul.f32 %v11906_v28, %v7435_v56  ;;  %v11907_v21 = vld [vmem:[#allocation39_spill] sm:$0xff]  ;;  %v3233_v31 = vmin.bf16 %v3217_v17, %v2582_v42  ;;  %vm11916_vm1 = vcmp.ge.f32.partialorder %v7431_v3, 0.0  ;;  %v11917_v17 = vld [vmem:[#allocation40_spill] sm:$0xff]  ;;  %v11918_v2 = vld [vmem:[#allocation41_spill] sm:$0xff] }
 0x13f   : > { %11900 = vst [vmem:[#allocation150_spill] sm:$0xff] %v7444_v46  ;;  %11901 = vst [vmem:[#allocation151_spill] sm:$0xff] %v7447_v49  ;;  %v1067_v4 = vadd.f32 %v11907_v21, %v1024_v29  ;;  %v7483_v27 = vsub.f32 %v701_v25, %v7444_v46  ;;  %v7486_v29 = vsub.f32 %v702_v22, %v7447_v49  ;;  %vm798_vm6 = vcmp.ge.f32.partialorder %v7444_v46, 0.0 }
 0x140   : > { %v3234_v42 = vmin.bf16 %v3218_v26, %v2583_v32  ;;  %vm799_vm14 = vcmp.ge.f32.partialorder %v7447_v49, 0.0  ;;  %vm830_vm2 = vmand %vm11916_vm1, %vm798_vm6  ;;  %v1068_v15 = vadd.f32 %v11917_v17, %v1025_v62  ;;  %v1111_v56 = vmul.f32 %v11918_v2, %v7444_v46  ;;  %v11919_v32 = vld [vmem:[#allocation51_spill] sm:$0xff] }
 0x141   : > { %11914 = vst [vmem:[#allocation144_spill] sm:$0xff] %v7483_v27  ;;  %11915 = vst [vmem:[#allocation133_spill] sm:$0xff] %v7486_v29  ;;  %v3265_v25 = vsel %vm7460_vm9, 0, %v3233_v31  ;;  %vm862_vm15 = vcmp.ge.f32.partialorder %v7483_v27, 0.0  ;;  %vm863_vm11 = vcmp.ge.f32.partialorder %v7486_v29, 0.0  ;;  %v1112_v22 = vmul.f32 %v11919_v32, %v7447_v49  ;;  %v11927_v49 = vld [vmem:[#allocation29_spill] sm:$0xff] }
 0x142   : > { %vm831_vm3 = vmand %vm767_vm5, %vm799_vm14  ;;  %v3266_v26 = vsel %vm7478_vm8, 0, %v3234_v42  ;;  %v3281_v3 = vmul.bf16 3272590095, %v3265_v25  ;;  %v1143_v46 = vadd.f32 %v1111_v56, %v1067_v4  ;;  %v523_v30 = vadd.f32 %v493_v44, %v11922_v7  ;;  %v11929_v44 = vld [vmem:[#allocation30_spill] sm:$0xff]  ;;  %v11965_v7 = vld [vmem:[#allocation85_spill] sm:$0xff] }
 0x143   : > { %vm7503_vm6 = vmand %vm830_vm2, %vm862_vm15  ;;  %v3282_v31 = vmul.bf16 3272590095, %v3266_v26  ;;  %v1144_v27 = vadd.f32 %v1112_v22, %v1068_v15  ;;  %v7513_v29 = vmul.f32 %v11742_v57, %v522_v23  ;;  %v639_v18 = vadd.f32 %v609_v39, %v11927_v49  ;;  %v11930_v25 = vld [vmem:[#allocation54_spill] sm:$0xff]  ;;  %v11962_v23 = vld [vmem:[#allocation61_spill] sm:$0xff] }
 0x144   : > { %vm7508_vm5 = vmand %vm831_vm3, %vm863_vm11  ;;  %v3302_v42 = vmul.bf16 1069105081, %v3281_v3  ;;  %v7521_v56 = vmul.f32 %v11744_v11, %v523_v30  ;;  %v640_v4 = vadd.f32 %v610_v5, %v11929_v44  ;;  %v2340_v26 = vsub.f32 %v7377_v59, %v11930_v25 }
 0x145   : > { %v11924_v14 = vsel %vm7508_vm5, 4294967295, %v11923_v14  ;;  %11926 = vst [vmem:[#allocation152_spill] sm:$0xff] %v7513_v29  ;;  %vm11288_vm2 = vmand %vm7503_vm6, %vm5897_vm4  ;;  %v3305_v15 = vmul.bf16 1069105081, %v3282_v31  ;;  %v7531_v39 = vmul.f32 %v639_v18, %v11742_v57  ;;  %v703_v3 = vsub.f32 1.0, %v7513_v29 }
 0x146   : > { %11925 = vst [vmem:[#allocation145_spill] sm:$0xff] %v11924_v14  ;;  %11928 = vst [vmem:[#allocation153_spill] sm:$0xff] %v7521_v56  ;;  %vm768_vm8 = vcmp.ge.f32.partialorder %v7513_v29, 0.0  ;;  %5225 = vpow.bf16 %v3302_v42  ;;  %v11933_v5 = vmov 0  ;;  %v7547_v22 = vmul.f32 %v640_v4, %v11744_v11 }
 0x147   : > { %vm11286_vm9 = vmand %vm7508_vm5, %vm5909_vm7  ;;  %11931 = vst [vmem:[#allocation54_spill] sm:$0xff] %v7531_v39  ;;  %v704_v30 = vsub.f32 1.0, %v7521_v56  ;;  %vm769_vm1 = vcmp.ge.f32.partialorder %v7521_v56, 0.0  ;;  %5227 = vpow.bf16 %v3305_v15  ;;  %v11938_v18 = vmov 0 }
 0x148   : > { %vm7542_vm14 = vmand %vm11288_vm2, %vm5917_vm12  ;;  %11936 = vst [vmem:[#allocation155_spill] sm:$0xff] %v7547_v22  ;;  %v7567_v4 = vsub.f32 %v703_v3, %v7531_v39  ;;  %vm800_vm15 = vcmp.ge.f32.partialorder %v7531_v39, 0.0  ;;  %vm801_vm11 = vcmp.ge.f32.partialorder %v7547_v22, 0.0  ;;  %v1027_v3 = vmul.f32 %v11906_v28, %v7521_v56  ;;  %v11953_v28 = vld [vmem:[#allocation68_spill] sm:$0xff] }
 0x149   : > { %v11934_v5 = vsel %vm7542_vm14, 4294967295, %v11933_v5  ;;  %vm7558_vm3 = vmand %vm11286_vm9, %vm5930_vm13  ;;  %v7564_v42 = vsel %vm7542_vm14, %v1143_v46, -1e+30  ;;  %v7575_v44 = vsub.f32 %v704_v30, %v7547_v22  ;;  %v11945_v30 = vmov 0 }
 0x14a   : > { %11935 = vst [vmem:[#allocation154_spill] sm:$0xff] %v11934_v5  ;;  %v11939_v18 = vsel %vm7558_vm3, 4294967295, %v11938_v18  ;;  %11941 = vst [vmem:[#allocation157_spill] sm:$0xff] %v7564_v42  ;;  %v7572_v15 = vsel %vm7558_vm3, %v1144_v27, -1e+30  ;;  %v1026_v5 = vmul.f32 %v11829_v19, %v7513_v29  ;;  %vm864_vm14 = vcmp.ge.f32.partialorder %v7567_v4, 0.0 }
 0x14b   : > { %11940 = vst [vmem:[#allocation156_spill] sm:$0xff] %v11939_v18  ;;  %11942 = vst [vmem:[#allocation158_spill] sm:$0xff] %v7567_v4  ;;  %v1219_v46 = vmax.f32 %v7564_v42, %v7572_v15  ;;  %v1113_v27 = vmul.f32 %v11918_v2, %v7531_v39  ;;  %vm865_vm3 = vcmp.ge.f32.partialorder %v7575_v44, 0.0  ;;  %v1114_v18 = vmul.f32 %v11919_v32, %v7547_v22  ;;  %v11952_v42 = vld [vmem:[#allocation67_spill] sm:$0xff] }
 0x14c   : > { %11943 = vst [vmem:[#allocation159_spill] sm:$0xff] %v7572_v15  ;;  %11944 = vst [vmem:[#allocation160_spill] sm:$0xff] %v7575_v44  ;;  %v1069_v29 = vadd.f32 %v11907_v21, %v1026_v5  ;;  %v11948_v15 = vld [vmem:[#allocation55_spill] sm:$0xff]  ;;  %v11949_v56 = vmov 0  ;;  %v1070_v39 = vadd.f32 %v11917_v17, %v1027_v3  ;;  %v7602_v44 = vpack.c.bf16 %v2340_v26, %v2340_v26 }
 0x14d   : > { %vm832_vm9 = vmand %vm768_vm8, %vm800_vm15  ;;  %v2341_v4 = vsub.f32 %v7377_v59, %v11948_v15  ;;  %1220 = vmax.xlane.f32.xlu0 %v1219_v46  ;;  %v2671_v2 = vsub.f32 %v7377_v59, %v11952_v42  ;;  %v2672_v5 = vsub.f32 %v7377_v59, %v11953_v28  ;;  %v7616_v32 = vpack.c.bf16 %v7387_v35, %v7387_v35  ;;  %v11964_v19 = vld [vmem:[#allocation63_spill] sm:$0xff] }
 0x14e   : > { %vm833_vm2 = vmand %vm769_vm1, %vm801_vm11  ;;  %v1145_v46 = vadd.f32 %v1113_v27, %v1069_v29  ;;  %v7620_v26 = vpack.c.bf16 %v7412_v43, %v7412_v43  ;;  %v1146_v59 = vadd.f32 %v1114_v18, %v1070_v39  ;;  %v2402_v3 = vmul.bf16 %v5997_v54, %v7602_v44  ;;  %v11957_v18 = vld [vmem:[#allocation109_spill] sm:$0xff] }
 0x14f   : > { %vm7588_vm10 = vmand %vm832_vm9, %vm864_vm14  ;;  %v7612_v22 = vpack.c.bf16 %v2341_v4, %v2341_v4  ;;  %v7628_v29 = vpack.c.bf16 %v2671_v2, %v2671_v2  ;;  %v7630_v4 = vpack.c.bf16 %v2672_v5, %v2672_v5  ;;  %v11954_v35 = vmov 0 }
 0x150   : > { %v11946_v30 = vsel %vm7588_vm10, 4294967295, %v11945_v30  ;;  %vm7597_vm8 = vmand %vm833_vm2, %vm865_vm3  ;;  %v3021_v2 = vmul.bf16 %v6215_v1, %v7616_v32  ;;  %v3022_v39 = vmul.bf16 %v6218_v34, %v7620_v26  ;;  %v377_v27 = vadd.f32 1.0, %v11957_v18 }
 0x151   : > { %11947 = vst [vmem:[#allocation161_spill] sm:$0xff] %v11946_v30  ;;  %v11950_v56 = vsel %vm7597_vm8, 4294967295, %v11949_v56  ;;  %vm939_vm9 = vmand %vm7588_vm10, %vm5897_vm4  ;;  %v2403_v43 = vmul.bf16 %v6034_v13, %v7612_v22  ;;  %v11958_v5 = vmov 0  ;;  %v2418_v17 = vadd.bf16 %v2402_v3, %v11962_v23 }
 0x152   : > { %11951 = vst [vmem:[#allocation162_spill] sm:$0xff] %v11950_v56  ;;  %vm940_vm2 = vmand %vm7597_vm8, %vm5909_vm7  ;;  %v2733_v18 = vmul.bf16 %v6117_v12, %v7628_v29  ;;  %v2734_v31 = vmul.bf16 %v6129_v45, %v7630_v4  ;;  %v3037_v57 = vadd.bf16 %v3021_v2, %v11965_v7  ;;  %v11966_v56 = vld [vmem:[#allocation86_spill] sm:$0xff]  ;;  %vm11969_vm3 = vcmp.ne.s16.totalorder %v11886_v33, 0 }
 0x153   : > { %vm7639_vm14 = vmand %vm939_vm9, %vm5917_vm12  ;;  %v2419_v11 = vadd.bf16 %v2403_v43, %v11964_v19  ;;  %v2448_v23 = vmul.bf16 %v11888_v8, %v2418_v17  ;;  %v11973_v33 = vld [vmem:[#allocation74_spill] sm:$0xff] }
 0x154   : > { %v11955_v35 = vsel %vm7639_vm14, 4294967295, %v11954_v35  ;;  %vm7657_vm1 = vmand %vm940_vm2, %vm5930_vm13  ;;  %v7663_v28 = vsel %vm7639_vm14, %v1145_v46, -1e+30  ;;  %v5226_v46 = vpop.eup %5225  ;;  %v2749_v14 = vadd.bf16 %v2733_v18, %v11967_v0  ;;  %v2750_v30 = vadd.bf16 %v2734_v31, %v11885_v55  ;;  %v11971_v55 = vld [vmem:[#allocation80_spill] sm:$0xff] }
 0x155   : > { %11956 = vst [vmem:[#allocation163_spill] sm:$0xff] %v11955_v35  ;;  %v11959_v5 = vsel %vm7657_vm1, 4294967295, %v11958_v5  ;;  %11961 = vst [vmem:[#allocation164_spill] sm:$0xff] %v7663_v28  ;;  %v7672_v21 = vsel %vm7657_vm1, %v1146_v59, -1e+30  ;;  %v3038_v35 = vadd.bf16 %v3022_v39, %v11966_v56  ;;  %v5228_v36 = vpop.eup %5227  ;;  %v3357_v59 = vsel %vm6483_vm0, %v5226_v46, 0 }
 0x156   : > { %11960 = vst [vmem:[#allocation109_spill] sm:$0xff] %v11959_v5  ;;  %11963 = vst [vmem:[#allocation165_spill] sm:$0xff] %v7672_v21  ;;  %v1222_v3 = vmax.f32 %v7663_v28, %v7672_v21  ;;  %v2449_v43 = vmul.bf16 %v11889_v50, %v2419_v11  ;;  %v3067_v2 = vmul.bf16 %v11806_v37, %v3037_v57  ;;  %v3358_v56 = vsel %vm11969_vm3, %v5228_v36, 0  ;;  %v11970_v21 = vld [vmem:[#allocation79_spill] sm:$0xff]  ;;  %v11972_v37 = vld [vmem:[#allocation58_spill] sm:$0xff] }
 0x157   : > { %v3068_v39 = vmul.bf16 %v11807_v47, %v3038_v35  ;;  %v3373_v28 = vsub.bf16 1065369472, %v3357_v59  ;;  %v2464_v17 = vmax.bf16 %v11587_v52, %v2448_v23  ;;  %v2779_v18 = vmul.bf16 %v11970_v21, %v2749_v14  ;;  %vm11980_vm15 = vmand %vm7503_vm6, %vm5897_vm4 }
 0x158   : > { %1223 = vmax.xlane.f32.xlu1 %v1222_v3  ;;  %v3374_v31 = vsub.bf16 1065369472, %v3358_v56  ;;  %v2465_v7 = vmax.bf16 %v11587_v52, %v2449_v43  ;;  %v2780_v46 = vmul.bf16 %v11971_v55, %v2750_v30  ;;  %v3083_v11 = vmax.bf16 %v11587_v52, %v3067_v2  ;;  %v3397_v3 = vld [vmem:[#allocation3 + $0x10] sm:$0xff]  ;;  %v3398_v43 = vld [vmem:[#allocation3 + $0x18] sm:$0xff]  ;;  %vm7774_vm11 = vmpackc.low %vm939_vm9, %vm11980_vm15 }
 0x159   : > { %v2480_v57 = vmin.bf16 %v11597_v48, %v2464_v17  ;;  %v2795_v35 = vmax.bf16 %v11587_v52, %v2779_v18  ;;  %v3084_v47 = vmax.bf16 %v11587_v52, %v3068_v39  ;;  %v385_v36 = vmul.f32 0.0625, %v377_v27  ;;  %vm11988_vm3 = vmand %vm7508_vm5, %vm5909_vm7 }
 0x15a   : > { %v3388_v59 = vmul.bf16 %v3374_v31, %v3373_v28  ;;  %v2481_v23 = vmin.bf16 %v11597_v48, %v2465_v7  ;;  %v2796_v14 = vmax.bf16 %v11587_v52, %v2780_v46  ;;  %v3099_v56 = vmin.bf16 %v11597_v48, %v3083_v11  ;;  %vm7790_vm6 = vmpackc.low %vm940_vm2, %vm11988_vm3 }
 0x15b   : > { %v2496_v30 = vmul.bf16 %v2480_v57, %v11972_v37  ;;  %v2528_v2 = vmul.bf16 %v2480_v57, %v5997_v54  ;;  %v2811_v17 = vmin.bf16 %v11597_v48, %v2795_v35  ;;  %v3100_v18 = vmin.bf16 %v11597_v48, %v3084_v47 }
 0x15c   : > { %v3413_v55 = vunpack.c.l.bf16 %v3388_v59  ;;  %v3414_v39 = vunpack.c.h.bf16 %v3388_v59  ;;  %v2497_v28 = vmul.bf16 %v2481_v23, %v11689_v24  ;;  %v2529_v7 = vmul.bf16 %v2481_v23, %v6034_v13 }
 0x15d   : > { %v2512_v27 = vsub.bf16 %v11891_v60, %v2496_v30  ;;  %v2544_v31 = vsub.bf16 %v7602_v44, %v2528_v2  ;;  %v2812_v46 = vmin.bf16 %v11597_v48, %v2796_v14  ;;  %v2827_v11 = vmul.bf16 %v2811_v17, %v11808_v40 }
 0x15e   : > { %v3429_v37 = vmul.f32 %v3413_v55, %v3397_v3  ;;  %v3430_v57 = vmul.f32 %v3414_v39, %v3398_v43  ;;  %v2513_v35 = vsub.bf16 %v11693_v10, %v2497_v28  ;;  %v2545_v47 = vsub.bf16 %v7612_v22, %v2529_v7 }
 0x15f   : > { %v2560_v21 = vmul.bf16 %v2512_v27, %v2512_v27  ;;  %v2576_v59 = vmul.bf16 %v2544_v31, %v2544_v31  ;;  %v2828_v24 = vmul.bf16 %v2812_v46, %v11973_v33  ;;  %v2843_v23 = vsub.bf16 %v11706_v9, %v2827_v11 }
 0x160   : > { %3445 = vst [vmem:[#allocation3 + $0x10] sm:$0xff] %v3429_v37  ;;  %3446 = vst [vmem:[#allocation3 + $0x18] sm:$0xff] %v3430_v57  ;;  %v2561_v30 = vmul.bf16 %v2513_v35, %v2513_v35  ;;  %v2577_v44 = vmul.bf16 %v2545_v47, %v2545_v47  ;;  %v2859_v14 = vmul.bf16 %v2811_v17, %v6117_v12  ;;  %v7725_v57 = vsub.f32 1.0, %v385_v36  ;;  %v11974_v47 = vld [vmem:[#allocation16_spill] sm:$0xff] }
 0x161   : > { %v2860_v2 = vmul.bf16 %v2812_v46, %v6129_v45  ;;  %v2592_v55 = vadd.bf16 %v2576_v59, %v2560_v21  ;;  %v2844_v3 = vsub.bf16 %v11709_v41, %v2828_v24  ;;  %v2891_v43 = vmul.bf16 %v2843_v23, %v2843_v23 }
 0x162   : > { %v3115_v22 = vmul.bf16 %v3099_v56, %v11809_v51  ;;  %v2593_v39 = vadd.bf16 %v2577_v44, %v2561_v30  ;;  %v2875_v28 = vsub.bf16 %v7628_v29, %v2859_v14  ;;  %v3116_v37 = vmul.bf16 %v3100_v18, %v11810_v63 }
 0x163   : > { %v2876_v7 = vsub.bf16 %v7630_v4, %v2860_v2  ;;  %v2892_v27 = vmul.bf16 %v2844_v3, %v2844_v3  ;;  %v3147_v17 = vmul.bf16 %v3099_v56, %v6215_v1  ;;  %v3148_v46 = vmul.bf16 %v3100_v18, %v6218_v34  ;;  %v11975_v56 = vld [vmem:[#allocation17_spill] sm:$0xff] }
 0x164   : > { %v3131_v31 = vsub.bf16 %v11710_v53, %v3115_v22  ;;  %v2907_v21 = vmul.bf16 %v2875_v28, %v2875_v28  ;;  %v3132_v24 = vsub.bf16 %v11893_v6, %v3116_v37  ;;  %v7730_v59 = vadd.s32 7, %v11974_v47 }
 0x165   : > { %v2908_v11 = vmul.bf16 %v2876_v7, %v2876_v7  ;;  %v3163_v35 = vsub.bf16 %v7616_v32, %v3147_v17  ;;  %v3164_v29 = vsub.bf16 %v7620_v26, %v3148_v46  ;;  %v7734_v18 = vsub.f32 %v7725_v57, %v11975_v56  ;;  %v11976_v26 = vld [vmem:[#allocation19_spill] sm:$0xff]  ;;  %v11977_v46 = vld [vmem:[#allocation25_spill] sm:$0xff] }
 0x166   : > { %v3179_v4 = vmul.bf16 %v3131_v31, %v3131_v31  ;;  %v2923_v23 = vadd.bf16 %v2907_v21, %v2891_v43  ;;  %v3180_v44 = vmul.bf16 %v3132_v24, %v3132_v24  ;;  %v7738_v36 = vsub.f32 %v7725_v57, %v11732_v58 }
 0x167   : > { %v2924_v30 = vadd.bf16 %v2908_v11, %v2892_v27  ;;  %v3195_v14 = vmul.bf16 %v3163_v35, %v3163_v35  ;;  %v3196_v2 = vmul.bf16 %v3164_v29, %v3164_v29  ;;  %v7742_v32 = vsub.f32 %v7725_v57, %v11930_v25  ;;  %v11978_v11 = vld [vmem:[#allocation27_spill] sm:$0xff] }
 0x168   : > { %v484_v3 = vmul.f32 %v11976_v26, %v7734_v18  ;;  %v601_v43 = vmul.f32 %v11896_v20, %v7734_v18  ;;  %v7750_v22 = vsub.f32 %v7725_v57, %v11948_v15  ;;  %v7754_v28 = vsub.f32 %v7725_v57, %v11952_v42  ;;  %v12009_v42 = vld [vmem:[#allocation40_spill] sm:$0xff] }
 0x169   : > { %v3211_v7 = vadd.bf16 %v3195_v14, %v3179_v4  ;;  %v3212_v37 = vadd.bf16 %v3196_v2, %v3180_v44  ;;  %v485_v27 = vmul.f32 %v11892_v16, %v7738_v36  ;;  %v602_v31 = vmul.f32 %v5776_v61, %v7738_v36  ;;  %v11984_v2 = vld [vmem:[#allocation24_spill] sm:$0xff]  ;;  %v12003_v14 = vld [vmem:[#allocation38_spill] sm:$0xff] }
 0x16a   : > { %v504_v17 = vadd.f32 %v484_v3, %v11894_v38  ;;  %v621_v21 = vadd.f32 %v601_v43, %v11977_v46  ;;  %v506_v24 = vadd.f32 %v484_v3, %v11978_v11  ;;  %v623_v35 = vadd.f32 %v601_v43, %v11927_v49  ;;  %v11985_v11 = vld [vmem:[#allocation26_spill] sm:$0xff]  ;;  %v11997_v38 = vld [vmem:[#allocation32_spill] sm:$0xff] }
 0x16b   : > { %v3227_v29 = vmin.bf16 %v3211_v7, %v2923_v23  ;;  %v3228_v20 = vmin.bf16 %v3212_v37, %v2924_v30  ;;  %v505_v3 = vadd.f32 %v485_v27, %v11984_v2  ;;  %v622_v43 = vadd.f32 %v602_v31, %v11985_v11  ;;  %v11992_v37 = vld [vmem:[#allocation31_spill] sm:$0xff]  ;;  %v11995_v11 = vld [vmem:[#allocation28_spill] sm:$0xff] }
 0x16c   : > { %v7795_v44 = vmul.f32 %v11992_v37, %v504_v17  ;;  %v7798_v49 = vmul.f32 %v621_v21, %v11992_v37  ;;  %v507_v23 = vadd.f32 %v485_v27, %v11995_v11  ;;  %v7802_v46 = vmul.f32 %v11992_v37, %v506_v24  ;;  %v12000_v17 = vld [vmem:[#allocation37_spill] sm:$0xff] }
 0x16d   : > { %v3243_v2 = vmin.bf16 %v3227_v29, %v2592_v55  ;;  %v3244_v62 = vmin.bf16 %v3228_v20, %v2593_v39  ;;  %v7805_v61 = vmul.f32 %v11997_v38, %v505_v3  ;;  %v7808_v16 = vmul.f32 %v622_v43, %v11997_v38  ;;  %v12004_v43 = vld [vmem:[#allocation39_spill] sm:$0xff] }
 0x16e   : > { %11993 = vst [vmem:[#allocation74_spill] sm:$0xff] %v7795_v44  ;;  %11994 = vst [vmem:[#allocation16_spill] sm:$0xff] %v7798_v49  ;;  %v685_v26 = vsub.f32 1.0, %v7795_v44  ;;  %vm750_vm10 = vcmp.ge.f32.partialorder %v7795_v44, 0.0  ;;  %vm782_vm5 = vcmp.ge.f32.partialorder %v7798_v49, 0.0  ;;  %v1008_v27 = vmul.f32 %v12000_v17, %v7795_v44 }
 0x16f   : > { %11996 = vst [vmem:[#allocation17_spill] sm:$0xff] %v7802_v46  ;;  %11998 = vst [vmem:[#allocation46_spill] sm:$0xff] %v7805_v61  ;;  %v3275_v21 = vsel %vm7774_vm11, 0, %v3243_v2  ;;  %v3276_v20 = vsel %vm7790_vm6, 0, %v3244_v62  ;;  %v686_v55 = vsub.f32 1.0, %v7805_v61  ;;  %vm751_vm8 = vcmp.ge.f32.partialorder %v7805_v61, 0.0 }
 0x170   : > { %11999 = vst [vmem:[#allocation161_spill] sm:$0xff] %v7808_v16  ;;  %v3291_v39 = vmul.bf16 3272590095, %v3275_v21  ;;  %v3292_v24 = vmul.bf16 3272590095, %v3276_v20  ;;  %v7822_v29 = vsub.f32 %v685_v26, %v7798_v49  ;;  %vm783_vm9 = vcmp.ge.f32.partialorder %v7808_v16, 0.0  ;;  %vm814_vm2 = vmand %vm750_vm10, %vm782_vm5 }
 0x171   : > { %v7826_v3 = vsub.f32 %v686_v55, %v7808_v16  ;;  %vm815_vm15 = vmand %vm751_vm8, %vm783_vm9  ;;  %v1009_v2 = vmul.f32 %v12003_v14, %v7805_v61  ;;  %v1051_v7 = vadd.f32 %v12004_v43, %v1008_v27  ;;  %v12005_v62 = vld [vmem:[#allocation41_spill] sm:$0xff]  ;;  %v12006_v26 = vld [vmem:[#allocation51_spill] sm:$0xff]  ;;  %v7843_v27 = vmul.f32 %v11997_v38, %v507_v23 }
 0x172   : > { %12001 = vst [vmem:[#allocation145_spill] sm:$0xff] %v7822_v29  ;;  %v1095_v44 = vmul.f32 %v12005_v62, %v7798_v49  ;;  %v3332_v21 = vmul.bf16 1069105081, %v3291_v39  ;;  %v3335_v20 = vmul.bf16 1069105081, %v3292_v24  ;;  %vm846_vm11 = vcmp.ge.f32.partialorder %v7822_v29, 0.0 }
 0x173   : > { %12002 = vst [vmem:[#allocation162_spill] sm:$0xff] %v7826_v3  ;;  %v1096_v11 = vmul.f32 %v12006_v26, %v7808_v16  ;;  %vm847_vm3 = vcmp.ge.f32.partialorder %v7826_v3, 0.0  ;;  %vm7837_vm6 = vmand %vm814_vm2, %vm846_vm11  ;;  %v1052_v61 = vadd.f32 %v12009_v42, %v1009_v2  ;;  %v12013_v24 = vld [vmem:[#allocation30_spill] sm:$0xff]  ;;  %v7851_v49 = vmul.f32 %v623_v35, %v11992_v37 }
 0x174   : > { %v1127_v15 = vadd.f32 %v1095_v44, %v1051_v7  ;;  %12010 = vst [vmem:[#allocation31_spill] sm:$0xff] %v7843_v27  ;;  %5229 = vpow.bf16 %v3332_v21  ;;  %vm7845_vm10 = vmand %vm815_vm15, %vm847_vm3  ;;  %v624_v29 = vadd.f32 %v602_v31, %v12013_v24  ;;  %v687_v3 = vsub.f32 1.0, %v7802_v46 }
 0x175   : > { %12014 = vst [vmem:[#allocation32_spill] sm:$0xff] %v7851_v49  ;;  %5231 = vpow.bf16 %v3335_v20  ;;  %vm11345_vm5 = vmand %vm7837_vm6, %vm5897_vm4  ;;  %v1128_v44 = vadd.f32 %v1096_v11, %v1052_v61  ;;  %v688_v23 = vsub.f32 1.0, %v7843_v27  ;;  %vm752_vm8 = vcmp.ge.f32.partialorder %v7802_v46, 0.0  ;;  %v12045_v61 = vld [vmem:[#allocation78_spill] sm:$0xff] }
 0x176   : > { %vm11346_vm9 = vmand %vm7845_vm10, %vm5909_vm7  ;;  %v7865_v31 = vmul.f32 %v624_v29, %v11997_v38  ;;  %v7868_v35 = vsub.f32 %v687_v3, %v7851_v49  ;;  %vm784_vm15 = vcmp.ge.f32.partialorder %v7851_v49, 0.0  ;;  %v12018_v11 = vmov 0 }
 0x177   : > { %vm7879_vm11 = vmand %vm11345_vm5, %vm5917_vm12  ;;  %v1010_v29 = vmul.f32 %v12000_v17, %v7802_v46  ;;  %v1011_v3 = vmul.f32 %v12003_v14, %v7843_v27  ;;  %v1097_v2 = vmul.f32 %v12005_v62, %v7851_v49  ;;  %v7891_v7 = vpack.c.bf16 %v7742_v32, %v7742_v32  ;;  %v12049_v62 = vld [vmem:[#allocation86_spill] sm:$0xff] }
 0x178   : > { %12015 = vst [vmem:[#allocation166_spill] sm:$0xff] %v7865_v31  ;;  %12016 = vst [vmem:[#allocation167_spill] sm:$0xff] %v7868_v35  ;;  %v12019_v11 = vsel %vm7879_vm11, 4294967295, %v12018_v11  ;;  %v12022_v20 = vmov 0  ;;  %v7906_v16 = vsel %vm7879_vm11, %v1127_v15, -1e+30  ;;  %v7909_v49 = vsub.f32 %v688_v23, %v7865_v31 }
 0x179   : > { %12020 = vst [vmem:[#allocation168_spill] sm:$0xff] %v12019_v11  ;;  %vm7900_vm3 = vmand %vm11346_vm9, %vm5930_vm13  ;;  %vm785_vm5 = vcmp.ge.f32.partialorder %v7865_v31, 0.0  ;;  %vm848_vm2 = vcmp.ge.f32.partialorder %v7868_v35, 0.0  ;;  %v1053_v24 = vadd.f32 %v12004_v43, %v1010_v29  ;;  %v1054_v11 = vadd.f32 %v12009_v42, %v1011_v3  ;;  %v12031_v35 = vld [vmem:[#allocation68_spill] sm:$0xff] }
 0x17a   : > { %v12023_v20 = vsel %vm7900_vm3, 4294967295, %v12022_v20  ;;  %12025 = vst [vmem:[#allocation170_spill] sm:$0xff] %v7906_v16  ;;  %12026 = vst [vmem:[#allocation171_spill] sm:$0xff] %v7909_v49  ;;  %v7915_v32 = vsel %vm7900_vm3, %v1128_v44, -1e+30  ;;  %v1098_v15 = vmul.f32 %v12006_v26, %v7865_v31  ;;  %vm12028_vm11 = vcmp.ge.f32.partialorder %v7843_v27, 0.0 }
 0x17b   : > { %12024 = vst [vmem:[#allocation169_spill] sm:$0xff] %v12023_v20  ;;  %12027 = vst [vmem:[#allocation172_spill] sm:$0xff] %v7915_v32  ;;  %v1195_v23 = vmax.f32 %v7906_v16, %v7915_v32  ;;  %vm849_vm1 = vcmp.ge.f32.partialorder %v7909_v49, 0.0  ;;  %v7930_v44 = vpack.c.bf16 %v7750_v22, %v7750_v22  ;;  %v2394_v29 = vmul.bf16 %v5997_v54, %v7891_v7  ;;  %v12034_v20 = vld [vmem:[#allocation61_spill] sm:$0xff]  ;;  %v12047_v26 = vld [vmem:[#allocation80_spill] sm:$0xff] }
 0x17c   : > { %vm816_vm9 = vmand %vm752_vm8, %vm784_vm15  ;;  %v1129_v46 = vadd.f32 %v1097_v2, %v1053_v24  ;;  %v2664_v31 = vsub.f32 %v7725_v57, %v12031_v35  ;;  %v7942_v27 = vpack.c.bf16 %v7754_v28, %v7754_v28  ;;  %v7953_v24 = vpack.c.bf16 %v7734_v18, %v7734_v18 }
 0x17d   : > { %vm817_vm14 = vmand %vm12028_vm11, %vm785_vm5  ;;  %1196 = vmax.xlane.f32.xlu0 %v1195_v23  ;;  %v2395_v22 = vmul.bf16 %v6034_v13, %v7930_v44  ;;  %v2410_v16 = vadd.bf16 %v2394_v29, %v12034_v20  ;;  %v7957_v57 = vpack.c.bf16 %v7738_v36, %v7738_v36  ;;  %v1130_v28 = vadd.f32 %v1098_v15, %v1054_v11 }
 0x17e   : > { %vm7934_vm8 = vmand %vm816_vm9, %vm848_vm2  ;;  %v7963_v2 = vpack.c.bf16 %v2664_v31, %v2664_v31  ;;  %v2725_v23 = vmul.bf16 %v6117_v12, %v7942_v27  ;;  %v348_v29 = vcvt.s32.f32 %v7730_v59  ;;  %v3013_v32 = vmul.bf16 %v6215_v1, %v7953_v24 }
 0x17f   : > { %vm7944_vm5 = vmand %vm817_vm14, %vm849_vm1  ;;  %v2411_v18 = vadd.bf16 %v2395_v22, %v11964_v19  ;;  %v2440_v36 = vmul.bf16 %v11888_v8, %v2410_v16  ;;  %v7977_v31 = vadd.s32 3, %v11974_v47  ;;  %v5230_v11 = vpop.eup %5229  ;;  %v12035_v59 = vmov 0 }
 0x180   : > { %vm923_vm14 = vmand %vm7934_vm8, %vm5897_vm4  ;;  %v2726_v16 = vmul.bf16 %v6129_v45, %v7963_v2  ;;  %v2741_v15 = vadd.bf16 %v2725_v23, %v11967_v0  ;;  %v3014_v47 = vmul.bf16 %v6218_v34, %v7957_v57  ;;  %v7995_v22 = vmul.f32 2.0, %v348_v29  ;;  %v5232_v8 = vpop.eup %5231 }
 0x181   : > { %vm924_vm1 = vmand %vm7944_vm5, %vm5909_vm7  ;;  %v3367_v19 = vsel %vm6483_vm0, %v5230_v11, 0  ;;  %v12038_v20 = vmov 0  ;;  %v2441_v29 = vmul.bf16 %v11889_v50, %v2411_v18  ;;  %v2456_v0 = vmax.bf16 %v11587_v52, %v2440_v36  ;;  %v12042_v11 = vld [vmem:[#allocation98_spill] sm:$0xff]  ;;  %v12046_v50 = vld [vmem:[#allocation79_spill] sm:$0xff] }
 0x182   : > { %vm7986_vm9 = vmand %vm923_vm14, %vm5917_vm12  ;;  %vm12043_vm15 = vcmp.ne.s16.totalorder %v12042_v11, 0  ;;  %v3383_v21 = vsub.bf16 1065369472, %v3367_v19  ;;  %v2742_v42 = vadd.bf16 %v2726_v16, %v12045_v61  ;;  %v2771_v36 = vmul.bf16 %v12046_v50, %v2741_v15  ;;  %v12050_v16 = vld [vmem:[#allocation58_spill] sm:$0xff] }
 0x183   : > { %v12036_v59 = vsel %vm7986_vm9, 4294967295, %v12035_v59  ;;  %vm8006_vm2 = vmand %vm924_vm1, %vm5930_vm13  ;;  %v8012_v23 = vsel %vm7986_vm9, %v1129_v46, -1e+30  ;;  %v3368_v5 = vsel %vm12043_vm15, %v5232_v8, 0  ;;  %v2457_v46 = vmax.bf16 %v11587_v52, %v2441_v29  ;;  %v12048_v8 = vld [vmem:[#allocation85_spill] sm:$0xff]  ;;  %v3408_v29 = vld [vmem:[#allocation3 + $0x68] sm:$0xff] }
 0x184   : > { %12037 = vst [vmem:[#allocation173_spill] sm:$0xff] %v12036_v59  ;;  %v12039_v20 = vsel %vm8006_vm2, 4294967295, %v12038_v20  ;;  %12041 = vst [vmem:[#allocation175_spill] sm:$0xff] %v8012_v23  ;;  %v8020_v35 = vsel %vm8006_vm2, %v1130_v28, -1e+30  ;;  %v2472_v18 = vmin.bf16 %v11597_v48, %v2456_v0  ;;  %v2772_v11 = vmul.bf16 %v12047_v26, %v2742_v42  ;;  %v12052_v26 = vld [vmem:[#allocation88_spill] sm:$0xff] }
 0x185   : > { %12040 = vst [vmem:[#allocation174_spill] sm:$0xff] %v12039_v20  ;;  %12044 = vst [vmem:[#allocation176_spill] sm:$0xff] %v8020_v35  ;;  %v3384_v43 = vsub.bf16 1065369472, %v3368_v5  ;;  %v1198_v59 = vmax.f32 %v8012_v23, %v8020_v35  ;;  %v3029_v19 = vadd.bf16 %v3013_v32, %v12048_v8  ;;  %v3030_v20 = vadd.bf16 %v3014_v47, %v12049_v62  ;;  %v3407_v35 = vld [vmem:[#allocation3 + $0x60] sm:$0xff] }
 0x186   : > { %v2473_v14 = vmin.bf16 %v11597_v48, %v2457_v46  ;;  %v2488_v5 = vmul.bf16 %v2472_v18, %v12050_v16  ;;  %v2520_v61 = vmul.bf16 %v2472_v18, %v5997_v54  ;;  %v2787_v0 = vmax.bf16 %v11587_v52, %v2771_v36  ;;  %v12051_v23 = vld [vmem:[#allocation87_spill] sm:$0xff]  ;;  %vm12065_vm15 = vmand %vm7837_vm6, %vm5897_vm4 }
 0x187   : > { %v3393_v28 = vmul.bf16 %v3384_v43, %v3383_v21  ;;  %1199 = vmax.xlane.f32.xlu1 %v1198_v59  ;;  %v2788_v15 = vmax.bf16 %v11587_v52, %v2772_v11  ;;  %v3059_v42 = vmul.bf16 %v12051_v23, %v3029_v19  ;;  %v3060_v32 = vmul.bf16 %v12052_v26, %v3030_v20  ;;  %v12053_v43 = vld [vmem:[#allocation59_spill] sm:$0xff]  ;;  %vm12074_vm6 = vmand %vm7845_vm10, %vm5909_vm7 }
 0x188   : > { %v2489_v21 = vmul.bf16 %v2473_v14, %v12053_v43  ;;  %v2504_v46 = vsub.bf16 %v11891_v60, %v2488_v5  ;;  %v2521_v62 = vmul.bf16 %v2473_v14, %v6034_v13  ;;  %v2536_v59 = vsub.bf16 %v7891_v7, %v2520_v61  ;;  %vm8140_vm8 = vmpackc.low %vm924_vm1, %vm12074_vm6 }
 0x189   : > { %v3423_v50 = vunpack.c.l.bf16 %v3393_v28  ;;  %v3424_v47 = vunpack.c.h.bf16 %v3393_v28  ;;  %v2803_v18 = vmin.bf16 %v11597_v48, %v2787_v0  ;;  %v2804_v36 = vmin.bf16 %v11597_v48, %v2788_v15 }
 0x18a   : > { %v2505_v19 = vsub.bf16 %v11693_v10, %v2489_v21  ;;  %v2552_v23 = vmul.bf16 %v2504_v46, %v2504_v46  ;;  %v2537_v20 = vsub.bf16 %v7930_v44, %v2521_v62  ;;  %v2568_v28 = vmul.bf16 %v2536_v59, %v2536_v59  ;;  %v1963_v21 = vld [vmem:[#allocation2] sm:$0xff] }
 0x18b   : > { %v3439_v16 = vmul.f32 %v3423_v50, %v3407_v35  ;;  %v3440_v11 = vmul.f32 %v3424_v47, %v3408_v29  ;;  %v2819_v26 = vmul.bf16 %v2803_v18, %v11808_v40  ;;  %v2820_v5 = vmul.bf16 %v2804_v36, %v11973_v33 }
 0x18c   : > { %v2851_v14 = vmul.bf16 %v2803_v18, %v6117_v12  ;;  %v2852_v61 = vmul.bf16 %v2804_v36, %v6129_v45  ;;  %v3075_v7 = vmax.bf16 %v11587_v52, %v3059_v42  ;;  %v344_v50 = vcvt.s32.f32 %v7977_v31 }
 0x18d   : > { %3455 = vst [vmem:[#allocation3 + $0x60] sm:$0xff] %v3439_v16  ;;  %3456 = vst [vmem:[#allocation3 + $0x68] sm:$0xff] %v3440_v11  ;;  %v2553_v35 = vmul.bf16 %v2505_v19, %v2505_v19  ;;  %v2569_v29 = vmul.bf16 %v2537_v20, %v2537_v20  ;;  %v2835_v0 = vsub.bf16 %v11706_v9, %v2819_v26  ;;  %v382_v31 = vadd.f32 1.0, %v7995_v22  ;;  %v12054_v20 = vld [vmem:[#allocation14_spill] sm:$0xff] }
 0x18e   : > { %v2836_v62 = vsub.bf16 %v11709_v41, %v2820_v5  ;;  %v2867_v44 = vsub.bf16 %v7942_v27, %v2851_v14  ;;  %v2868_v15 = vsub.bf16 %v7963_v2, %v2852_v61  ;;  %v3076_v16 = vmax.bf16 %v11587_v52, %v3060_v32 }
 0x18f   : > { %v3091_v47 = vmin.bf16 %v11597_v48, %v3075_v7  ;;  %v2584_v46 = vadd.bf16 %v2568_v28, %v2552_v23  ;;  %v2883_v59 = vmul.bf16 %v2835_v0, %v2835_v0  ;;  %v390_v19 = vmul.f32 0.0625, %v382_v31  ;;  %v12058_v31 = vld [vmem:[#allocation67_spill] sm:$0xff] }
 0x190   : > { %v2884_v42 = vmul.bf16 %v2836_v62, %v2836_v62  ;;  %v2899_v18 = vmul.bf16 %v2867_v44, %v2867_v44  ;;  %v2900_v36 = vmul.bf16 %v2868_v15, %v2868_v15  ;;  %v3092_v26 = vmin.bf16 %v11597_v48, %v3076_v16 }
 0x191   : > { %v3107_v11 = vmul.bf16 %v3091_v47, %v11809_v51  ;;  %v3139_v27 = vmul.bf16 %v3091_v47, %v6215_v1  ;;  %v370_v2 = vmul.f32 2.0, %v344_v50  ;;  %v1979_v32 = vmul.f32 %v12054_v20, %v1963_v21 }
 0x192   : > { %v2585_v5 = vadd.bf16 %v2569_v29, %v2553_v35  ;;  %v2915_v14 = vadd.bf16 %v2899_v18, %v2883_v59  ;;  %v3108_v23 = vmul.bf16 %v3092_v26, %v11810_v63  ;;  %v2916_v61 = vadd.bf16 %v2900_v36, %v2884_v42  ;;  %v12057_v59 = vld [vmem:[#allocation55_spill] sm:$0xff] }
 0x193   : > { %v3123_v28 = vsub.bf16 %v11710_v53, %v3107_v11  ;;  %v3140_v22 = vmul.bf16 %v3092_v26, %v6218_v34  ;;  %v3155_v7 = vsub.bf16 %v7953_v24, %v3139_v27  ;;  %v8067_v0 = vsub.f32 1.0, %v390_v19  ;;  %v12059_v26 = vld [vmem:[#allocation19_spill] sm:$0xff]  ;;  %v12060_v27 = vld [vmem:[#allocation20_spill] sm:$0xff] }
 0x194   : > { %v3124_v62 = vsub.bf16 %v11893_v6, %v3108_v23  ;;  %v8070_v15 = vadd.f32 1.0, %v370_v2  ;;  %vm12055_vm11 = vcmask 64512   ;;  %v12061_v2 = vld [vmem:[#allocation21_spill] sm:$0xff]  ;;  %v12062_v23 = vld [vmem:[#allocation22_spill] sm:$0xff]  ;;  %v12071_v53 = vld [vmem:[#allocation28_spill] sm:$0xff] }
 0x195   : > { %v3171_v44 = vmul.bf16 %v3123_v28, %v3123_v28  ;;  %v8073_v50 = vsel %vm12055_vm11, %v1979_v32, 0.0  ;;  %v3156_v35 = vsub.bf16 %v7957_v57, %v3140_v22  ;;  %v3187_v29 = vmul.bf16 %v3155_v7, %v3155_v7  ;;  %vm8116_vm11 = vmpackc.low %vm923_vm14, %vm12065_vm15 }
 0x196   : > { %12056 = vst [vmem:[#allocation177_spill] sm:$0xff] %v8073_v50  ;;  %v8078_v16 = vsub.f32 %v8067_v0, %v11975_v56  ;;  %v8082_v24 = vsub.f32 %v8067_v0, %v11732_v58  ;;  %v3172_v47 = vmul.bf16 %v3124_v62, %v3124_v62  ;;  %v2342_v21 = vsub.f32 %v8067_v0, %v11930_v25 }
 0x197   : > { %v2343_v42 = vsub.f32 %v8067_v0, %v12057_v59  ;;  %v8090_v18 = vsub.f32 %v8067_v0, %v12058_v31  ;;  %v3188_v57 = vmul.bf16 %v3156_v35, %v3156_v35  ;;  %v3203_v36 = vadd.bf16 %v3187_v29, %v3171_v44  ;;  %v12063_v35 = vld [vmem:[#allocation23_spill] sm:$0xff]  ;;  %v12064_v29 = vld [vmem:[#allocation24_spill] sm:$0xff] }
 0x198   : > { %v494_v11 = vmul.f32 %v12059_v26, %v8078_v16  ;;  %v495_v19 = vmul.f32 %v12060_v27, %v8082_v24  ;;  %v611_v32 = vmul.f32 %v12061_v2, %v8078_v16  ;;  %v612_v28 = vmul.f32 %v12062_v23, %v8082_v24 }
 0x199   : > { %v8100_v22 = vpack.c.bf16 %v2342_v21, %v2342_v21  ;;  %v8102_v7 = vpack.c.bf16 %v2343_v42, %v2343_v42  ;;  %v3204_v62 = vadd.bf16 %v3188_v57, %v3172_v47  ;;  %v3219_v50 = vmin.bf16 %v3203_v36, %v2915_v14  ;;  %v12068_v47 = vld [vmem:[#allocation25_spill] sm:$0xff]  ;;  %v12069_v42 = vld [vmem:[#allocation26_spill] sm:$0xff]  ;;  %v12070_v36 = vld [vmem:[#allocation27_spill] sm:$0xff] }
 0x19a   : > { %v524_v44 = vadd.f32 %v494_v11, %v12063_v35  ;;  %v525_v31 = vadd.f32 %v495_v19, %v12064_v29  ;;  %v641_v14 = vadd.f32 %v611_v32, %v12068_v47  ;;  %v642_v57 = vadd.f32 %v612_v28, %v12069_v42 }
 0x19b   : > { %v526_v6 = vadd.f32 %v494_v11, %v12070_v36  ;;  %v527_v55 = vadd.f32 %v495_v19, %v12071_v53  ;;  %v3220_v23 = vmin.bf16 %v3204_v62, %v2916_v61  ;;  %v3235_v2 = vmin.bf16 %v3219_v50, %v2584_v46  ;;  %v12084_v11 = vld [vmem:[#allocation41_spill] sm:$0xff]  ;;  %v12089_v53 = vld [vmem:[#allocation40_spill] sm:$0xff] }
 0x19c   : > { %v8125_v29 = vmul.f32 %v11992_v37, %v524_v44  ;;  %v8128_v3 = vmul.f32 %v11997_v38, %v525_v31  ;;  %v8145_v46 = vmul.f32 %v641_v14, %v11992_v37  ;;  %v8148_v61 = vmul.f32 %v642_v57, %v11997_v38  ;;  %v12083_v57 = vld [vmem:[#allocation38_spill] sm:$0xff] }
 0x19d   : > { %v8151_v39 = vmul.f32 %v11992_v37, %v526_v6  ;;  %v8154_v50 = vmul.f32 %v11997_v38, %v527_v55  ;;  %v3236_v49 = vmin.bf16 %v3220_v23, %v2585_v5  ;;  %v3267_v31 = vsel %vm8116_vm11, 0, %v3235_v2 }
 0x19e   : > { %12072 = vst [vmem:[#allocation55_spill] sm:$0xff] %v8125_v29  ;;  %12073 = vst [vmem:[#allocation19_spill] sm:$0xff] %v8128_v3  ;;  %v705_v19 = vsub.f32 1.0, %v8125_v29  ;;  %v706_v62 = vsub.f32 1.0, %v8128_v3  ;;  %v3283_v44 = vmul.bf16 3272590095, %v3267_v31  ;;  %v1028_v21 = vmul.f32 %v12000_v17, %v8125_v29 }
 0x19f   : > { %12077 = vst [vmem:[#allocation20_spill] sm:$0xff] %v8145_v46  ;;  %12078 = vst [vmem:[#allocation23_spill] sm:$0xff] %v8148_v61  ;;  %vm770_vm10 = vcmp.ge.f32.partialorder %v8125_v29, 0.0  ;;  %vm771_vm5 = vcmp.ge.f32.partialorder %v8128_v3, 0.0  ;;  %vm802_vm14 = vcmp.ge.f32.partialorder %v8145_v46, 0.0  ;;  %v3268_v6 = vsel %vm8140_vm8, 0, %v3236_v49 }
 0x1a0   : > { %12079 = vst [vmem:[#allocation25_spill] sm:$0xff] %v8151_v39  ;;  %12080 = vst [vmem:[#allocation178_spill] sm:$0xff] %v8154_v50  ;;  %v8166_v14 = vsub.f32 %v705_v19, %v8145_v46  ;;  %v8169_v5 = vsub.f32 %v706_v62, %v8148_v61  ;;  %vm803_vm1 = vcmp.ge.f32.partialorder %v8148_v61, 0.0  ;;  %v3284_v2 = vmul.bf16 3272590095, %v3268_v6  ;;  %v12085_v31 = vld [vmem:[#allocation51_spill] sm:$0xff] }
 0x1a1   : > { %vm834_vm15 = vmand %vm770_vm10, %vm802_vm14  ;;  %v3308_v23 = vmul.bf16 1069105081, %v3283_v44  ;;  %v1029_v55 = vmul.f32 %v12083_v57, %v8128_v3  ;;  %v1115_v49 = vmul.f32 %v12084_v11, %v8145_v46  ;;  %v1116_v19 = vmul.f32 %v12085_v31, %v8148_v61  ;;  %v12088_v6 = vld [vmem:[#allocation39_spill] sm:$0xff]  ;;  %v12093_v46 = vld [vmem:[#allocation30_spill] sm:$0xff] }
 0x1a2   : > { %12081 = vst [vmem:[#allocation179_spill] sm:$0xff] %v8166_v14  ;;  %12082 = vst [vmem:[#allocation180_spill] sm:$0xff] %v8169_v5  ;;  %vm866_vm6 = vcmp.ge.f32.partialorder %v8166_v14, 0.0  ;;  %vm867_vm8 = vcmp.ge.f32.partialorder %v8169_v5, 0.0  ;;  %v3311_v62 = vmul.bf16 1069105081, %v3284_v2  ;;  %v1071_v29 = vadd.f32 %v12088_v6, %v1028_v21 }
 0x1a3   : > { %vm835_vm11 = vmand %vm771_vm5, %vm803_vm1  ;;  %5233 = vpow.bf16 %v3308_v23  ;;  %v1072_v3 = vadd.f32 %v12089_v53, %v1029_v55  ;;  %v12092_v5 = vld [vmem:[#allocation29_spill] sm:$0xff]  ;;  %v644_v42 = vadd.f32 %v612_v28, %v12093_v46  ;;  %v707_v61 = vsub.f32 1.0, %v8151_v39  ;;  %v12169_v44 = vld [vmem:[#allocation27_spill] sm:$0xff] }
 0x1a4   : > { %vm8182_vm10 = vmand %vm834_vm15, %vm866_vm6  ;;  %v643_v36 = vadd.f32 %v611_v32, %v12092_v5  ;;  %v708_v2 = vsub.f32 1.0, %v8154_v50  ;;  %5235 = vpow.bf16 %v3311_v62  ;;  %v1147_v23 = vadd.f32 %v1115_v49, %v1071_v29 }
 0x1a5   : > { %vm8188_vm5 = vmand %vm835_vm11, %vm867_vm8  ;;  %v1148_v21 = vadd.f32 %v1116_v19, %v1072_v3  ;;  %vm772_vm1 = vcmp.ge.f32.partialorder %v8151_v39, 0.0  ;;  %v8209_v28 = vmul.f32 %v644_v42, %v11997_v38  ;;  %v1030_v55 = vmul.f32 %v12000_v17, %v8151_v39  ;;  %v12100_v19 = vld [vmem:[#allocation68_spill] sm:$0xff] }
 0x1a6   : > { %vm11388_vm14 = vmand %vm8182_vm10, %vm5897_vm4  ;;  %v8206_v32 = vmul.f32 %v643_v36, %v11992_v37  ;;  %v12097_v3 = vmov 0  ;;  %v1031_v42 = vmul.f32 %v12083_v57, %v8154_v50  ;;  %v2404_v36 = vmul.bf16 %v5997_v54, %v8100_v22 }
 0x1a7   : > { %vm11389_vm15 = vmand %vm8188_vm5, %vm5909_vm7  ;;  %12095 = vst [vmem:[#allocation182_spill] sm:$0xff] %v8209_v28  ;;  %v2405_v49 = vmul.bf16 %v6034_v13, %v8102_v7  ;;  %v2674_v62 = vsub.f32 %v8067_v0, %v12100_v19  ;;  %v12102_v5 = vmov 0  ;;  %v8252_v0 = vsub.f32 %v708_v2, %v8209_v28 }
 0x1a8   : > { %12094 = vst [vmem:[#allocation181_spill] sm:$0xff] %v8206_v32  ;;  %vm8221_vm6 = vmand %vm11388_vm14, %vm5917_vm12  ;;  %v8249_v17 = vsub.f32 %v707_v61, %v8206_v32  ;;  %vm804_vm14 = vcmp.ge.f32.partialorder %v8206_v32, 0.0  ;;  %v1117_v2 = vmul.f32 %v12084_v11, %v8206_v32 }
 0x1a9   : > { %v12098_v3 = vsel %vm8221_vm6, 4294967295, %v12097_v3  ;;  %vm8240_vm8 = vmand %vm11389_vm15, %vm5930_vm13  ;;  %v8246_v57 = vsel %vm8221_vm6, %v1147_v23, -1e+30  ;;  %12107 = vst [vmem:[#allocation187_spill] sm:$0xff] %v8252_v0  ;;  %vm805_vm15 = vcmp.ge.f32.partialorder %v8209_v28, 0.0  ;;  %v1073_v23 = vadd.f32 %v12088_v6, %v1030_v55 }
 0x1aa   : > { %12099 = vst [vmem:[#allocation183_spill] sm:$0xff] %v12098_v3  ;;  %v12103_v5 = vsel %vm8240_vm8, 4294967295, %v12102_v5  ;;  %12105 = vst [vmem:[#allocation185_spill] sm:$0xff] %v8246_v57  ;;  %v8257_v19 = vsel %vm8240_vm8, %v1148_v21, -1e+30  ;;  %v1074_v3 = vadd.f32 %v12089_v53, %v1031_v42  ;;  %vm12109_vm6 = vcmp.ge.f32.partialorder %v8154_v50, 0.0 }
 0x1ab   : > { %12104 = vst [vmem:[#allocation184_spill] sm:$0xff] %v12103_v5  ;;  %12106 = vst [vmem:[#allocation186_spill] sm:$0xff] %v8249_v17  ;;  %v1225_v61 = vmax.f32 %v8246_v57, %v8257_v19  ;;  %vm868_vm2 = vcmp.ge.f32.partialorder %v8249_v17, 0.0  ;;  %vm869_vm8 = vcmp.ge.f32.partialorder %v8252_v0, 0.0  ;;  %v1118_v55 = vmul.f32 %v12085_v31, %v8209_v28  ;;  %v12112_v42 = vld [vmem:[#allocation61_spill] sm:$0xff]  ;;  %v12113_v5 = vld [vmem:[#allocation63_spill] sm:$0xff] }
 0x1ac   : > { %12108 = vst [vmem:[#allocation188_spill] sm:$0xff] %v8257_v19  ;;  %vm836_vm11 = vmand %vm772_vm1, %vm804_vm14  ;;  %v2420_v39 = vadd.bf16 %v2404_v36, %v12112_v42  ;;  %v2421_v57 = vadd.bf16 %v2405_v49, %v12113_v5  ;;  %v8282_v50 = vpack.c.bf16 %v8090_v18, %v8090_v18  ;;  %v12114_v17 = vmov 0  ;;  %v12117_v49 = vld [vmem:[#allocation69_spill] sm:$0xff]  ;;  %v12118_v28 = vld [vmem:[#allocation70_spill] sm:$0xff] }
 0x1ad   : > { %vm837_vm9 = vmand %vm12109_vm6, %vm805_vm15  ;;  %1226 = vmax.xlane.f32.xlu0 %v1225_v61  ;;  %v1149_v32 = vadd.f32 %v1117_v2, %v1073_v23  ;;  %v8288_v0 = vpack.c.bf16 %v2674_v62, %v2674_v62  ;;  %v8292_v19 = vpack.c.bf16 %v8078_v16, %v8078_v16  ;;  %v8296_v36 = vpack.c.bf16 %v8082_v24, %v8082_v24  ;;  %v12123_v42 = vld [vmem:[#allocation77_spill] sm:$0xff] }
 0x1ae   : > { %vm8272_vm3 = vmand %vm836_vm11, %vm868_vm2  ;;  %v1150_v18 = vadd.f32 %v1118_v55, %v1074_v3  ;;  %v2450_v61 = vmul.bf16 %v12117_v49, %v2420_v39  ;;  %v2451_v23 = vmul.bf16 %v12118_v28, %v2421_v57  ;;  %v2735_v62 = vmul.bf16 %v6117_v12, %v8282_v50  ;;  %v5234_v2 = vpop.eup %5233 }
 0x1af   : > { %vm8284_vm14 = vmand %vm837_vm9, %vm869_vm8  ;;  %v2736_v16 = vmul.bf16 %v6129_v45, %v8288_v0  ;;  %v3023_v24 = vmul.bf16 %v6215_v1, %v8292_v19  ;;  %v3024_v39 = vmul.bf16 %v6218_v34, %v8296_v36  ;;  %v386_v57 = vmul.f32 0.0625, %v8070_v15  ;;  %v5236_v53 = vpop.eup %5235 }
 0x1b0   : > { %v12115_v17 = vsel %vm8284_vm14, 4294967295, %v12114_v17  ;;  %vm943_vm2 = vmand %vm8272_vm3, %vm5897_vm4  ;;  %v3359_v55 = vsel %vm6483_vm0, %v5234_v2, 0  ;;  %v12120_v28 = vmov 0  ;;  %v2466_v49 = vmax.bf16 %v11587_v52, %v2450_v61 }
 0x1b1   : > { %12116 = vst [vmem:[#allocation189_spill] sm:$0xff] %v12115_v17  ;;  %vm11419_vm9 = vmand %vm8284_vm14, %vm5909_vm7  ;;  %v2467_v5 = vmax.bf16 %v11587_v52, %v2451_v23  ;;  %v2751_v15 = vadd.bf16 %v2735_v62, %v12123_v42  ;;  %v3375_v3 = vsub.bf16 1065369472, %v3359_v55  ;;  %v12124_v2 = vmov 0  ;;  %v12128_v23 = vld [vmem:[#allocation78_spill] sm:$0xff] }
 0x1b2   : > { %vm8326_vm1 = vmand %vm943_vm2, %vm5917_vm12  ;;  %v2752_v29 = vadd.bf16 %v2736_v16, %v12128_v23  ;;  %v3039_v62 = vadd.bf16 %v3023_v24, %v12048_v8  ;;  %v12129_v55 = vld [vmem:[#allocation98_spill] sm:$0xff]  ;;  %v2482_v6 = vmin.bf16 %v11597_v48, %v2466_v49  ;;  %v12133_v16 = vld [vmem:[#allocation80_spill] sm:$0xff] }
 0x1b3   : > { %v12121_v28 = vsel %vm8326_vm1, 4294967295, %v12120_v28  ;;  %vm8340_vm15 = vmand %vm11419_vm9, %vm5930_vm13  ;;  %v8346_v61 = vsel %vm8326_vm1, %v1149_v32, -1e+30  ;;  %vm12130_vm11 = vcmp.ne.s16.totalorder %v12129_v55, 0  ;;  %v2483_v31 = vmin.bf16 %v11597_v48, %v2467_v5  ;;  %v12134_v24 = vld [vmem:[#allocation58_spill] sm:$0xff] }
 0x1b4   : > { %12122 = vst [vmem:[#allocation190_spill] sm:$0xff] %v12121_v28  ;;  %v12125_v2 = vsel %vm8340_vm15, 4294967295, %v12124_v2  ;;  %12127 = vst [vmem:[#allocation192_spill] sm:$0xff] %v8346_v61  ;;  %v3360_v42 = vsel %vm12130_vm11, %v5236_v53, 0  ;;  %v8354_v46 = vsel %vm8340_vm15, %v1150_v18, -1e+30  ;;  %v2782_v23 = vmul.bf16 %v12133_v16, %v2752_v29 }
 0x1b5   : > { %12126 = vst [vmem:[#allocation191_spill] sm:$0xff] %v12125_v2  ;;  %12131 = vst [vmem:[#allocation193_spill] sm:$0xff] %v8354_v46  ;;  %v3376_v11 = vsub.bf16 1065369472, %v3360_v42  ;;  %v1228_v32 = vmax.f32 %v8346_v61, %v8354_v46  ;;  %v12132_v28 = vld [vmem:[#allocation79_spill] sm:$0xff]  ;;  %v2498_v8 = vmul.bf16 %v2482_v6, %v12134_v24  ;;  %v2499_v53 = vmul.bf16 %v2483_v31, %v12053_v43  ;;  %v12135_v42 = vld [vmem:[#allocation86_spill] sm:$0xff] }
 0x1b6   : > { %v2781_v17 = vmul.bf16 %v12132_v28, %v2751_v15  ;;  %v2530_v2 = vmul.bf16 %v2482_v6, %v5997_v54  ;;  %v2531_v18 = vmul.bf16 %v2483_v31, %v6034_v13  ;;  %v2798_v5 = vmax.bf16 %v11587_v52, %v2782_v23  ;;  %v3399_v46 = vld [vmem:[#allocation3 + $0x20] sm:$0xff]  ;;  %v3400_v15 = vld [vmem:[#allocation3 + $0x28] sm:$0xff]  ;;  %vm12148_vm6 = vmand %vm8182_vm10, %vm5897_vm4 }
 0x1b7   : > { %v3389_v55 = vmul.bf16 %v3376_v11, %v3375_v3  ;;  %v3040_v30 = vadd.bf16 %v3024_v39, %v12135_v42  ;;  %1229 = vmax.xlane.f32.xlu1 %v1228_v32  ;;  %v2514_v29 = vsub.bf16 %v11891_v60, %v2498_v8  ;;  %v2515_v61 = vsub.bf16 %v11693_v10, %v2499_v53  ;;  %v1964_v3 = vld [vmem:[#allocation2 + $0x8] sm:$0xff]  ;;  %vm8458_vm8 = vmpackc.low %vm943_vm2, %vm12148_vm6 }
 0x1b8   : > { %v2797_v49 = vmax.bf16 %v11587_v52, %v2781_v17  ;;  %v2546_v43 = vsub.bf16 %v8100_v22, %v2530_v2  ;;  %v2547_v6 = vsub.bf16 %v8102_v7, %v2531_v18  ;;  %v2814_v17 = vmin.bf16 %v11597_v48, %v2798_v5  ;;  %v12137_v18 = vld [vmem:[#allocation88_spill] sm:$0xff]  ;;  %vm12152_vm1 = vmand %vm8188_vm5, %vm5909_vm7 }
 0x1b9   : > { %v3415_v24 = vunpack.c.l.bf16 %v3389_v55  ;;  %v3416_v31 = vunpack.c.h.bf16 %v3389_v55  ;;  %v2562_v23 = vmul.bf16 %v2514_v29, %v2514_v29  ;;  %v2563_v39 = vmul.bf16 %v2515_v61, %v2515_v61  ;;  %v12136_v61 = vld [vmem:[#allocation87_spill] sm:$0xff]  ;;  %vm12154_vm10 = vmand %vm8284_vm14, %vm5909_vm7 }
 0x1ba   : > { %v2813_v11 = vmin.bf16 %v11597_v48, %v2797_v49  ;;  %v2578_v32 = vmul.bf16 %v2546_v43, %v2546_v43  ;;  %v2579_v16 = vmul.bf16 %v2547_v6, %v2547_v6  ;;  %v2830_v53 = vmul.bf16 %v2814_v17, %v11973_v33  ;;  %vm8474_vm15 = vmpackc.low %vm12154_vm10, %vm12152_vm1 }
 0x1bb   : > { %v3431_v28 = vmul.f32 %v3415_v24, %v3399_v46  ;;  %v3432_v42 = vmul.f32 %v3416_v31, %v3400_v15  ;;  %v2862_v2 = vmul.bf16 %v2814_v17, %v6129_v45  ;;  %v8382_v55 = vmul.f32 %v12054_v20, %v1964_v3 }
 0x1bc   : > { %v2829_v8 = vmul.bf16 %v2813_v11, %v11808_v40  ;;  %v8377_v22 = vadd.bf16 %v2578_v32, %v2562_v23  ;;  %v2861_v7 = vmul.bf16 %v2813_v11, %v6117_v12  ;;  %v2846_v46 = vsub.bf16 %v11709_v41, %v2830_v53 }
 0x1bd   : > { %3447 = vst [vmem:[#allocation3 + $0x20] sm:$0xff] %v3431_v28  ;;  %3448 = vst [vmem:[#allocation3 + $0x28] sm:$0xff] %v3432_v42  ;;  %v3069_v24 = vmul.bf16 %v12136_v61, %v3039_v62  ;;  %v3070_v49 = vmul.bf16 %v12137_v18, %v3040_v30  ;;  %v8388_v5 = vadd.bf16 %v2579_v16, %v2563_v39  ;;  %v8392_v6 = vsub.f32 1.0, %v386_v57 }
 0x1be   : > { %v2845_v43 = vsub.bf16 %v11706_v9, %v2829_v8  ;;  %v2877_v15 = vsub.bf16 %v8282_v50, %v2861_v7  ;;  %v2878_v29 = vsub.bf16 %v8288_v0, %v2862_v2  ;;  %v2894_v11 = vmul.bf16 %v2846_v46, %v2846_v46 }
 0x1bf   : > { %v3085_v28 = vmax.bf16 %v11587_v52, %v3069_v24  ;;  %v3086_v42 = vmax.bf16 %v11587_v52, %v3070_v49  ;;  %v8398_v62 = vsub.f32 %v8392_v6, %v11975_v56  ;;  %v8402_v30 = vsub.f32 %v8392_v6, %v11732_v58  ;;  %v12141_v49 = vld [vmem:[#allocation81_spill] sm:$0xff] }
 0x1c0   : > { %v2893_v31 = vmul.bf16 %v2845_v43, %v2845_v43  ;;  %v2909_v17 = vmul.bf16 %v2877_v15, %v2877_v15  ;;  %v2910_v3 = vmul.bf16 %v2878_v29, %v2878_v29  ;;  %v8408_v57 = vsub.f32 %v8392_v6, %v11930_v25  ;;  %v12139_v43 = vld [vmem:[#allocation21_spill] sm:$0xff]  ;;  %v12142_v15 = vld [vmem:[#allocation82_spill] sm:$0xff] }
 0x1c1   : > { %v3101_v50 = vmin.bf16 %v11597_v48, %v3085_v28  ;;  %v3102_v0 = vmin.bf16 %v11597_v48, %v3086_v42  ;;  %v8412_v16 = vsub.f32 %v8392_v6, %v12057_v59  ;;  %v486_v56 = vmul.f32 %v12059_v26, %v8398_v62  ;;  %v12138_v59 = vld [vmem:[#allocation24_spill] sm:$0xff]  ;;  %v12140_v26 = vld [vmem:[#allocation22_spill] sm:$0xff] }
 0x1c2   : > { %v2925_v23 = vadd.bf16 %v2909_v17, %v2893_v31  ;;  %v2926_v39 = vadd.bf16 %v2910_v3, %v2894_v11  ;;  %v487_v58 = vmul.f32 %v12060_v27, %v8402_v30  ;;  %v603_v46 = vmul.f32 %v12139_v43, %v8398_v62  ;;  %v12145_v17 = vld [vmem:[#allocation26_spill] sm:$0xff] }
 0x1c3   : > { %v3117_v32 = vmul.bf16 %v3101_v50, %v11809_v51  ;;  %v3118_v8 = vmul.bf16 %v3102_v0, %v11810_v63  ;;  %v3149_v53 = vmul.bf16 %v3101_v50, %v6215_v1  ;;  %v3150_v25 = vmul.bf16 %v3102_v0, %v6218_v34 }
 0x1c4   : > { %v508_v7 = vadd.f32 %v486_v56, %v12063_v35  ;;  %v509_v2 = vadd.f32 %v487_v58, %v12138_v59  ;;  %v604_v24 = vmul.f32 %v12140_v26, %v8402_v30  ;;  %v625_v42 = vadd.f32 %v603_v46, %v12068_v47 }
 0x1c5   : > { %v3133_v27 = vsub.bf16 %v12141_v49, %v3117_v32  ;;  %v3134_v29 = vsub.bf16 %v12142_v15, %v3118_v8  ;;  %v3165_v31 = vsub.bf16 %v8292_v19, %v3149_v53  ;;  %v3166_v11 = vsub.bf16 %v8296_v36, %v3150_v25 }
 0x1c6   : > { %v8433_v28 = vmul.f32 %v11992_v37, %v508_v7  ;;  %v8436_v35 = vmul.f32 %v11997_v38, %v509_v2  ;;  %v626_v3 = vadd.f32 %v604_v24, %v12145_v17  ;;  %v8441_v8 = vmul.f32 %v625_v42, %v11992_v37  ;;  %v12161_v17 = vld [vmem:[#allocation41_spill] sm:$0xff] }
 0x1c7   : > { %v3181_v50 = vmul.bf16 %v3133_v27, %v3133_v27  ;;  %v3182_v0 = vmul.bf16 %v3134_v29, %v3134_v29  ;;  %v3197_v59 = vmul.bf16 %v3165_v31, %v3165_v31  ;;  %v3198_v32 = vmul.bf16 %v3166_v11, %v3166_v11  ;;  %v12159_v29 = vld [vmem:[#allocation37_spill] sm:$0xff]  ;;  %v12160_v11 = vld [vmem:[#allocation38_spill] sm:$0xff] }
 0x1c8   : > { %12143 = vst [vmem:[#allocation87_spill] sm:$0xff] %v8433_v28  ;;  %12144 = vst [vmem:[#allocation88_spill] sm:$0xff] %v8436_v35  ;;  %v8444_v19 = vmul.f32 %v626_v3, %v11997_v38  ;;  %v689_v36 = vsub.f32 1.0, %v8433_v28  ;;  %v690_v53 = vsub.f32 1.0, %v8436_v35  ;;  %vm754_vm11 = vcmp.ge.f32.partialorder %v8433_v28, 0.0 }
 0x1c9   : > { %12146 = vst [vmem:[#allocation24_spill] sm:$0xff] %v8441_v8  ;;  %v3213_v25 = vadd.bf16 %v3197_v59, %v3181_v50  ;;  %v3214_v7 = vadd.bf16 %v3198_v32, %v3182_v0  ;;  %vm755_vm9 = vcmp.ge.f32.partialorder %v8436_v35, 0.0  ;;  %vm786_vm3 = vcmp.ge.f32.partialorder %v8441_v8, 0.0  ;;  %v12162_v50 = vld [vmem:[#allocation51_spill] sm:$0xff] }
 0x1ca   : > { %12147 = vst [vmem:[#allocation21_spill] sm:$0xff] %v8444_v19  ;;  %v8479_v43 = vsub.f32 %v689_v36, %v8441_v8  ;;  %v8482_v26 = vsub.f32 %v690_v53, %v8444_v19  ;;  %vm787_vm2 = vcmp.ge.f32.partialorder %v8444_v19, 0.0  ;;  %vm818_vm5 = vmand %vm754_vm11, %vm786_vm3  ;;  %v1012_v31 = vmul.f32 %v12159_v29, %v8433_v28  ;;  %v12165_v32 = vld [vmem:[#allocation39_spill] sm:$0xff]  ;;  %v12166_v53 = vld [vmem:[#allocation40_spill] sm:$0xff] }
 0x1cb   : > { %v3229_v14 = vmin.bf16 %v3213_v25, %v2925_v23  ;;  %v3230_v27 = vmin.bf16 %v3214_v7, %v2926_v39  ;;  %v1013_v42 = vmul.f32 %v12160_v11, %v8436_v35  ;;  %vm819_vm14 = vmand %vm755_vm9, %vm787_vm2  ;;  %v1099_v3 = vmul.f32 %v12161_v17, %v8441_v8  ;;  %v12171_v8 = vld [vmem:[#allocation29_spill] sm:$0xff] }
 0x1cc   : > { %12157 = vst [vmem:[#allocation22_spill] sm:$0xff] %v8479_v43  ;;  %12158 = vst [vmem:[#allocation81_spill] sm:$0xff] %v8482_v26  ;;  %vm850_vm1 = vcmp.ge.f32.partialorder %v8479_v43, 0.0  ;;  %vm851_vm6 = vcmp.ge.f32.partialorder %v8482_v26, 0.0  ;;  %v1100_v0 = vmul.f32 %v12162_v50, %v8444_v19  ;;  %v1055_v36 = vadd.f32 %v12165_v32, %v1012_v31  ;;  %v12170_v26 = vld [vmem:[#allocation28_spill] sm:$0xff]  ;;  %v12221_v19 = vld [vmem:[#allocation58_spill] sm:$0xff] }
 0x1cd   : > { %v3245_v23 = vmin.bf16 %v3229_v14, %v8377_v22  ;;  %v3246_v39 = vmin.bf16 %v3230_v27, %v8388_v5  ;;  %vm8498_vm11 = vmand %vm818_vm5, %vm850_vm1  ;;  %v1056_v25 = vadd.f32 %v12166_v53, %v1013_v42  ;;  %v510_v43 = vadd.f32 %v486_v56, %v12169_v44  ;;  %v12172_v14 = vld [vmem:[#allocation30_spill] sm:$0xff] }
 0x1ce   : > { %vm8504_vm9 = vmand %vm819_vm14, %vm851_vm6  ;;  %v511_v28 = vadd.f32 %v487_v58, %v12170_v26  ;;  %v627_v22 = vadd.f32 %v603_v46, %v12171_v8  ;;  %v628_v5 = vadd.f32 %v604_v24, %v12172_v14  ;;  %v1131_v42 = vadd.f32 %v1099_v3, %v1055_v36 }
 0x1cf   : > { %v3277_v27 = vsel %vm8458_vm8, 0, %v3245_v23  ;;  %v3278_v31 = vsel %vm8474_vm15, 0, %v3246_v39  ;;  %vm11428_vm10 = vmand %vm8498_vm11, %vm5897_vm4  ;;  %v1132_v35 = vadd.f32 %v1100_v0, %v1056_v25  ;;  %v8525_v58 = vmul.f32 %v11992_v37, %v510_v43 }
 0x1d0   : > { %v3293_v56 = vmul.bf16 3272590095, %v3277_v27  ;;  %v3294_v44 = vmul.bf16 3272590095, %v3278_v31  ;;  %vm11427_vm3 = vmand %vm8504_vm9, %vm5909_vm7  ;;  %v8528_v46 = vmul.f32 %v11997_v38, %v511_v28  ;;  %v12176_v8 = vmov 0 }
 0x1d1   : > { %12173 = vst [vmem:[#allocation82_spill] sm:$0xff] %v8525_v58  ;;  %vm8537_vm15 = vmand %vm11428_vm10, %vm5917_vm12  ;;  %v8542_v47 = vmul.f32 %v627_v22, %v11992_v37  ;;  %v8545_v21 = vmul.f32 %v628_v5, %v11997_v38  ;;  %v8549_v28 = vpack.c.bf16 %v8408_v57, %v8408_v57  ;;  %v8553_v43 = vpack.c.bf16 %v8412_v16, %v8412_v16 }
 0x1d2   : > { %12174 = vst [vmem:[#allocation26_spill] sm:$0xff] %v8528_v46  ;;  %v12177_v8 = vsel %vm8537_vm15, 4294967295, %v12176_v8  ;;  %v3338_v26 = vmul.bf16 1069105081, %v3293_v56  ;;  %v3341_v3 = vmul.bf16 1069105081, %v3294_v44  ;;  %vm8562_vm8 = vmand %vm11427_vm3, %vm5930_vm13  ;;  %v1014_v57 = vmul.f32 %v12159_v29, %v8525_v58 }
 0x1d3   : > { %12178 = vst [vmem:[#allocation49_spill] sm:$0xff] %v12177_v8  ;;  %12179 = vst [vmem:[#allocation189_spill] sm:$0xff] %v8542_v47  ;;  %v12182_v38 = vmov 0  ;;  %v8568_v37 = vsel %vm8537_vm15, %v1131_v42, -1e+30  ;;  %v691_v23 = vsub.f32 1.0, %v8525_v58  ;;  %v1015_v22 = vmul.f32 %v12160_v11, %v8528_v46 }
 0x1d4   : > { %12180 = vst [vmem:[#allocation37_spill] sm:$0xff] %v8545_v21  ;;  %v12183_v38 = vsel %vm8562_vm8, 4294967295, %v12182_v38  ;;  %12185 = vst [vmem:[#allocation41_spill] sm:$0xff] %v8568_v37  ;;  %v8574_v16 = vsel %vm8562_vm8, %v1132_v35, -1e+30  ;;  %v692_v39 = vsub.f32 1.0, %v8528_v46  ;;  %5237 = vpow.bf16 %v3338_v26 }
 0x1d5   : > { %12184 = vst [vmem:[#allocation38_spill] sm:$0xff] %v12183_v38  ;;  %12186 = vst [vmem:[#allocation51_spill] sm:$0xff] %v8574_v16  ;;  %vm756_vm2 = vcmp.ge.f32.partialorder %v8525_v58, 0.0  ;;  %v1201_v36 = vmax.f32 %v8568_v37, %v8574_v16  ;;  %vm757_vm5 = vcmp.ge.f32.partialorder %v8528_v46, 0.0  ;;  %vm788_vm14 = vcmp.ge.f32.partialorder %v8542_v47, 0.0  ;;  %v1965_v56 = vld [vmem:[#allocation2 + $0x10] sm:$0xff] }
 0x1d6   : > { %5239 = vpow.bf16 %v3341_v3  ;;  %v8584_v29 = vsub.f32 %v691_v23, %v8542_v47  ;;  %v8587_v35 = vsub.f32 %v692_v39, %v8545_v21  ;;  %vm789_vm1 = vcmp.ge.f32.partialorder %v8545_v21, 0.0  ;;  %vm820_vm6 = vmand %vm756_vm2, %vm788_vm14  ;;  %v12193_v44 = vld [vmem:[#allocation67_spill] sm:$0xff]  ;;  %v12194_v26 = vld [vmem:[#allocation68_spill] sm:$0xff] }
 0x1d7   : > { %1202 = vmax.xlane.f32.xlu0 %v1201_v36  ;;  %vm8590_vm3 = vmand %vm757_vm5, %vm789_vm1  ;;  %v1057_v14 = vadd.f32 %v12165_v32, %v1014_v57  ;;  %v1101_v5 = vmul.f32 %v12161_v17, %v8542_v47  ;;  %v1102_v27 = vmul.f32 %v12162_v50, %v8545_v21  ;;  %v2396_v31 = vmul.bf16 %v5997_v54, %v8549_v28  ;;  %v12197_v23 = vld [vmem:[#allocation61_spill] sm:$0xff]  ;;  %v12198_v36 = vld [vmem:[#allocation63_spill] sm:$0xff] }
 0x1d8   : > { %12187 = vst [vmem:[#allocation39_spill] sm:$0xff] %v8584_v29  ;;  %12188 = vst [vmem:[#allocation40_spill] sm:$0xff] %v8587_v35  ;;  %vm852_vm10 = vcmp.ge.f32.partialorder %v8584_v29, 0.0  ;;  %vm853_vm2 = vcmp.ge.f32.partialorder %v8587_v35, 0.0  ;;  %v2397_v42 = vmul.bf16 %v6034_v13, %v8553_v43  ;;  %v1058_v17 = vadd.f32 %v12166_v53, %v1015_v22  ;;  %v12215_v58 = vld [vmem:[#allocation86_spill] sm:$0xff]  ;;  %v9243_v8 = vld [vmem:[%s5640_s10 + $0xa0] sm:$0xff] }
 0x1d9   : > { %vm8607_vm5 = vmand %vm820_vm6, %vm852_vm10  ;;  %v1133_v32 = vadd.f32 %v1101_v5, %v1057_v14  ;;  %v2665_v50 = vsub.f32 %v8392_v6, %v12193_v44  ;;  %v2666_v3 = vsub.f32 %v8392_v6, %v12194_v26  ;;  %v2412_v39 = vadd.bf16 %v2396_v31, %v12197_v23  ;;  %v12199_v5 = vld [vmem:[#allocation177_spill] sm:$0xff]  ;;  %v9246_v38 = vld [vmem:[%s5640_s10 + $0xa8] sm:$0xff] }
 0x1da   : > { %vm8618_vm14 = vmand %vm8590_vm3, %vm853_vm2  ;;  %v2413_v29 = vadd.bf16 %v2397_v42, %v12198_v36  ;;  %v8626_v53 = vpack.c.bf16 %v8398_v62, %v8398_v62  ;;  %v8630_v22 = vpack.c.bf16 %v8402_v30, %v8402_v30  ;;  %v1134_v6 = vadd.f32 %v1102_v27, %v1058_v17  ;;  %v12200_v62 = vld [vmem:[#allocation69_spill] sm:$0xff]  ;;  %v12201_v42 = vld [vmem:[#allocation70_spill] sm:$0xff] }
 0x1db   : > { %vm927_vm10 = vmand %vm8607_vm5, %vm5897_vm4  ;;  %v8636_v25 = vpack.c.bf16 %v2665_v50, %v2665_v50  ;;  %v8638_v14 = vpack.c.bf16 %v2666_v3, %v2666_v3  ;;  %1997 = vadd.xlane.f32.xlu0 %v12199_v5  ;;  %v1981_v31 = vmul.f32 %v12054_v20, %v1965_v56  ;;  %v2442_v30 = vmul.bf16 %v12200_v62, %v2412_v39  ;;  %v12211_v36 = vld [vmem:[#allocation85_spill] sm:$0xff] }
 0x1dc   : > { %vm928_vm3 = vmand %vm8618_vm14, %vm5909_vm7  ;;  %v2443_v44 = vmul.bf16 %v12201_v42, %v2413_v29  ;;  %v3015_v27 = vmul.bf16 %v6215_v1, %v8626_v53  ;;  %v3016_v17 = vmul.bf16 %v6218_v34, %v8630_v22  ;;  %v12202_v56 = vmov 0  ;;  %v12214_v42 = vld [vmem:[#allocation78_spill] sm:$0xff]  ;;  %v12359_v16 = vld [vmem:[#allocation109_spill] sm:$0xff] }
 0x1dd   : > { %vm8659_vm1 = vmand %vm927_vm10, %vm5917_vm12  ;;  %v2727_v29 = vmul.bf16 %v6117_v12, %v8636_v25  ;;  %v2728_v50 = vmul.bf16 %v6129_v45, %v8638_v14  ;;  %vm12205_vm6 = vcmask 64512   ;;  %v12207_v3 = vmov 0 }
 0x1de   : > { %v12203_v56 = vsel %vm8659_vm1, 4294967295, %v12202_v56  ;;  %v1999_v26 = vsel %vm12205_vm6, %v8382_v55, 0.0  ;;  %vm12206_vm2 = vmmov %vm12205_vm6  ;;  %v8683_v23 = vsel %vm8659_vm1, %v1133_v32, -1e+30  ;;  %v2458_v39 = vmax.bf16 %v11587_v52, %v2442_v30 }
 0x1df   : > { %12204 = vst [vmem:[#allocation27_spill] sm:$0xff] %v12203_v56  ;;  %v2002_v24 = vsel %vm12206_vm2, %v1981_v31, 0.0  ;;  %vm8677_vm12 = vmand %vm928_vm3, %vm5930_vm13  ;;  %v2459_v55 = vmax.bf16 %v11587_v52, %v2443_v44  ;;  %v3031_v5 = vadd.bf16 %v3015_v27, %v12211_v36  ;;  %v12213_v31 = vld [vmem:[#allocation77_spill] sm:$0xff]  ;;  %v2744_v35 = vadd.bf16 %v2728_v50, %v12214_v42  ;;  %v5238_v46 = vpop.eup %5237  ;;  %v12218_v50 = vld [vmem:[#allocation80_spill] sm:$0xff] }
 0x1e0   : > { %v12208_v3 = vsel %vm8677_vm12, 4294967295, %v12207_v3  ;;  %12210 = vst [vmem:[#allocation29_spill] sm:$0xff] %v8683_v23  ;;  %v8690_v0 = vsel %vm8677_vm12, %v1134_v6, -1e+30  ;;  %v2743_v62 = vadd.bf16 %v2727_v29, %v12213_v31  ;;  %v3032_v47 = vadd.bf16 %v3016_v17, %v12215_v58  ;;  %2003 = vadd.xlane.f32.xlu0 %v2002_v24  ;;  %v12217_v29 = vld [vmem:[#allocation79_spill] sm:$0xff]  ;;  %v12219_v17 = vld [vmem:[#allocation98_spill] sm:$0xff]  ;;  %vm12223_vm6 = vmmov %vm12206_vm2 }
 0x1e1   : > { %12209 = vst [vmem:[#allocation28_spill] sm:$0xff] %v12208_v3  ;;  %12212 = vst [vmem:[#allocation30_spill] sm:$0xff] %v8690_v0  ;;  %v1204_v32 = vmax.f32 %v8683_v23, %v8690_v0  ;;  %v2474_v30 = vmin.bf16 %v11597_v48, %v2458_v39  ;;  %v2475_v44 = vmin.bf16 %v11597_v48, %v2459_v55  ;;  %v5240_v36 = vpop.eup %5239  ;;  %v3369_v21 = vsel %vm6483_vm0, %v5238_v46, 0  ;;  %v12222_v3 = vld [vmem:[#allocation59_spill] sm:$0xff]  ;;  %v12317_v6 = vld [vmem:[#allocation136_spill] sm:$0xff] }
 0x1e2   : > { %v3061_v27 = vmul.bf16 %v12136_v61, %v3031_v5  ;;  %v2773_v31 = vmul.bf16 %v12217_v29, %v2743_v62  ;;  %v2774_v42 = vmul.bf16 %v12218_v50, %v2744_v35  ;;  %v3062_v58 = vmul.bf16 %v12137_v18, %v3032_v47  ;;  %v1966_v29 = vld [vmem:[#allocation2 + $0x18] sm:$0xff] }
 0x1e3   : > { %vm12220_vm13 = vcmp.ne.s16.totalorder %v12219_v17, 0  ;;  %v3385_v56 = vsub.bf16 1065369472, %v3369_v21  ;;  %v2490_v39 = vmul.bf16 %v2474_v30, %v12221_v19  ;;  %v2491_v55 = vmul.bf16 %v2475_v44, %v12222_v3  ;;  %1205 = vmax.xlane.f32.xlu1 %v1204_v32  ;;  %v3410_v32 = vld [vmem:[#allocation3 + $0x78] sm:$0xff] }
 0x1e4   : > { %v3370_v24 = vsel %vm12220_vm13, %v5240_v36, 0  ;;  %v2522_v5 = vmul.bf16 %v2474_v30, %v5997_v54  ;;  %v2523_v46 = vmul.bf16 %v2475_v44, %v6034_v13  ;;  %v2789_v62 = vmax.bf16 %v11587_v52, %v2773_v31  ;;  %v3409_v13 = vld [vmem:[#allocation3 + $0x70] sm:$0xff]  ;;  %vm12224_vm13 = vmmov %vm12206_vm2 }
 0x1e5   : > { %v3386_v61 = vsub.bf16 1065369472, %v3370_v24  ;;  %v8713_v35 = vsub.bf16 %v11891_v60, %v2490_v39  ;;  %v8716_v18 = vsub.bf16 %v11693_v10, %v2491_v55  ;;  %v2790_v47 = vmax.bf16 %v11587_v52, %v2774_v42  ;;  %v1967_v39 = vld [vmem:[#allocation2 + $0x20] sm:$0xff] }
 0x1e6   : > { %v8720_v21 = vsub.bf16 %v8549_v28, %v2522_v5  ;;  %v8723_v3 = vsub.bf16 %v8553_v43, %v2523_v46  ;;  %v2805_v54 = vmin.bf16 %v11597_v48, %v2789_v62  ;;  %v3077_v10 = vmax.bf16 %v11587_v52, %v3061_v27  ;;  %v1968_v62 = vld [vmem:[#allocation2 + $0x28] sm:$0xff] }
 0x1e7   : > { %v3394_v19 = vmul.bf16 %v3386_v61, %v3385_v56  ;;  %v2554_v60 = vmul.bf16 %v8713_v35, %v8713_v35  ;;  %v2806_v30 = vmin.bf16 %v11597_v48, %v2790_v47  ;;  %2000 = vadd.xlane.f32.xlu1 %v1999_v26  ;;  %v1982_v56 = vmul.f32 %v12054_v20, %v1966_v29  ;;  %v12247_v35 = vld [vmem:[#allocation62_spill] sm:$0xff] }
 0x1e8   : > { %v2555_v43 = vmul.bf16 %v8716_v18, %v8716_v18  ;;  %v3078_v36 = vmax.bf16 %v11587_v52, %v3062_v58  ;;  %v2821_v31 = vmul.bf16 %v2805_v54, %v11808_v40  ;;  %v2853_v42 = vmul.bf16 %v2805_v54, %v6117_v12 }
 0x1e9   : > { %v3425_v44 = vunpack.c.l.bf16 %v3394_v19  ;;  %v3426_v28 = vunpack.c.h.bf16 %v3394_v19  ;;  %v2822_v50 = vmul.bf16 %v2806_v30, %v11973_v33  ;;  %v2854_v24 = vmul.bf16 %v2806_v30, %v6129_v45 }
 0x1ea   : > { %v2570_v55 = vmul.bf16 %v8720_v21, %v8720_v21  ;;  %v2571_v61 = vmul.bf16 %v8723_v3, %v8723_v3  ;;  %v2837_v5 = vsub.bf16 %v11706_v9, %v2821_v31  ;;  %v2869_v40 = vsub.bf16 %v8636_v25, %v2853_v42  ;;  %v1969_v21 = vld [vmem:[#allocation2 + $0x30] sm:$0xff]  ;;  %v1971_v3 = vld [vmem:[#allocation2 + $0x40] sm:$0xff]  ;;  %v8764_v31 = vpop.xlane.xlu0 %1208 }
 0x1eb   : > { %v3441_v27 = vmul.f32 %v3425_v44, %v3409_v13  ;;  %v3442_v26 = vmul.f32 %v3426_v28, %v3410_v32  ;;  %v2838_v52 = vsub.bf16 %v11709_v41, %v2822_v50  ;;  %v2870_v33 = vsub.bf16 %v8638_v14, %v2854_v24  ;;  %12225 = vst [vmem:[#allocation50_spill] sm:$0xff] %v8764_v31 }
 0x1ec   : > { %v3093_v12 = vmin.bf16 %v11597_v48, %v3077_v10  ;;  %v3094_v45 = vmin.bf16 %v11597_v48, %v3078_v36  ;;  %v2005_v58 = vsel %vm12223_vm6, %v1982_v56, 0.0  ;;  %v1983_v46 = vmul.f32 %v12054_v20, %v1967_v39  ;;  %v1970_v48 = vld [vmem:[#allocation2 + $0x38] sm:$0xff]  ;;  %vm12227_vm6 = vmmov %vm12206_vm2 }
 0x1ed   : > { %3457 = vst [vmem:[#allocation3 + $0x70] sm:$0xff] %v3441_v27  ;;  %3458 = vst [vmem:[#allocation3 + $0x78] sm:$0xff] %v3442_v26  ;;  %v2885_v29 = vmul.bf16 %v2837_v5, %v2837_v5  ;;  %v2886_v18 = vmul.bf16 %v2838_v52, %v2838_v52  ;;  %v2901_v9 = vmul.bf16 %v2869_v40, %v2869_v40  ;;  %2006 = vadd.xlane.f32.xlu1 %v2005_v58 }
 0x1ee   : > { %v2902_v47 = vmul.bf16 %v2870_v33, %v2870_v33  ;;  %v3109_v41 = vmul.bf16 %v3093_v12, %v11809_v51  ;;  %v3110_v25 = vmul.bf16 %v3094_v45, %v11810_v63  ;;  %v3141_v14 = vmul.bf16 %v3093_v12, %v6215_v1  ;;  %v1972_v1 = vld [vmem:[#allocation2 + $0x48] sm:$0xff]  ;;  %v1974_v33 = vld [vmem:[#allocation2 + $0x58] sm:$0xff]  ;;  %v1975_v12 = vld [vmem:[#allocation2 + $0x60] sm:$0xff]  ;;  %v8813_v7 = vpop.xlane.xlu0 %1211 }
 0x1ef   : > { %v3142_v19 = vmul.bf16 %v3094_v45, %v6218_v34  ;;  %v2917_v54 = vadd.bf16 %v2901_v9, %v2885_v29  ;;  %v2008_v32 = vsel %vm12206_vm2, %v1983_v46, 0.0  ;;  %v1984_v30 = vmul.f32 %v12054_v20, %v1968_v62  ;;  %v4799_v45 = vld [vmem:[%s5640_s10 + $0x180] sm:$0xff]  ;;  %v4800_v62 = vld [vmem:[%s5640_s10 + $0x188] sm:$0xff]  ;;  %12236 = vst [vmem:[#allocation67_spill] sm:$0xff] %v8813_v7 }
 0x1f0   : > { %v2918_v13 = vadd.bf16 %v2902_v47, %v2886_v18  ;;  %v3125_v10 = vsub.bf16 %v12141_v49, %v3109_v41  ;;  %v3126_v56 = vsub.bf16 %v12142_v15, %v3110_v25  ;;  %v3157_v51 = vsub.bf16 %v8626_v53, %v3141_v14  ;;  %2009 = vadd.xlane.f32.xlu0 %v2008_v32  ;;  %v1973_v53 = vld [vmem:[#allocation2 + $0x50] sm:$0xff]  ;;  %v4783_v29 = vld [vmem:[%s5640_s10 + $0x100] sm:$0xff]  ;;  %v4784_v18 = vld [vmem:[%s5640_s10 + $0x108] sm:$0xff] }
 0x1f1   : > { %v3158_v63 = vsub.bf16 %v8630_v22, %v3142_v19  ;;  %v2011_v34 = vsel %vm12224_vm13, %v1984_v30, 0.0  ;;  %v1985_v44 = vmul.f32 %v12054_v20, %v1969_v21  ;;  %v1986_v28 = vmul.f32 %v12054_v20, %v1970_v48  ;;  %v8766_v22 = vpop.xlane.xlu1 %1184  ;;  %vm12228_vm13 = vmmov %vm12206_vm2  ;;  %v4785_v14 = vld [vmem:[%s5640_s10 + $0x110] sm:$0xff]  ;;  %v4786_v19 = vld [vmem:[%s5640_s10 + $0x118] sm:$0xff] }
 0x1f2   : > { %v1987_v36 = vmul.f32 %v12054_v20, %v1971_v3  ;;  %v3173_v50 = vmul.bf16 %v3125_v10, %v3125_v10  ;;  %v3174_v49 = vmul.bf16 %v3126_v56, %v3126_v56  ;;  %v3189_v15 = vmul.bf16 %v3157_v51, %v3157_v51  ;;  %2012 = vadd.xlane.f32.xlu1 %v2011_v34  ;;  %v1977_v3 = vld [vmem:[#allocation2 + $0x70] sm:$0xff]  ;;  %v4803_v56 = vld [vmem:[%s5640_s10 + $0x1a0] sm:$0xff]  ;;  %v4804_v51 = vld [vmem:[%s5640_s10 + $0x1a8] sm:$0xff] }
 0x1f3   : > { %v3190_v42 = vmul.bf16 %v3158_v63, %v3158_v63  ;;  %12226 = vst [vmem:[#allocation52_spill] sm:$0xff] %v8766_v22  ;;  %v2014_v24 = vsel %vm12227_vm6, %v1985_v44, 0.0  ;;  %v2017_v39 = vsel %vm12206_vm2, %v1986_v28, 0.0  ;;  %v1988_v27 = vmul.f32 %v12054_v20, %v1972_v1  ;;  %vm12229_vm6 = vmand %vm8498_vm11, %vm5897_vm4  ;;  %v4787_v63 = vld [vmem:[%s5640_s10 + $0x120] sm:$0xff] }
 0x1f4   : > { %v2586_v26 = vadd.bf16 %v2570_v55, %v2554_v60  ;;  %v2587_v5 = vadd.bf16 %v2571_v61, %v2555_v43  ;;  %v3205_v52 = vadd.bf16 %v3189_v15, %v3173_v50  ;;  %2015 = vadd.xlane.f32.xlu0 %v2014_v24  ;;  %v2020_v58 = vsel %vm12228_vm13, %v1987_v36, 0.0  ;;  %vm8790_vm2 = vmpackc.low %vm927_vm10, %vm12229_vm6  ;;  %v4801_v60 = vld [vmem:[%s5640_s10 + $0x190] sm:$0xff]  ;;  %v4802_v43 = vld [vmem:[%s5640_s10 + $0x198] sm:$0xff] }
 0x1f5   : > { %v3206_v40 = vadd.bf16 %v3190_v42, %v3174_v49  ;;  %v1989_v46 = vmul.f32 %v12054_v20, %v1973_v53  ;;  %vm12232_vm13 = vmand %vm8504_vm9, %vm5909_vm7  ;;  %vm12235_vm11 = vcmask 64512   ;;  %v1990_v11 = vmul.f32 %v12054_v20, %v1974_v33  ;;  %v1976_v61 = vld [vmem:[#allocation2 + $0x68] sm:$0xff]  ;;  %v8817_v21 = vpop.xlane.xlu1 %1187  ;;  %v4805_v42 = vld [vmem:[%s5640_s10 + $0x1b0] sm:$0xff]  ;;  %v8842_v33 = vpop.xlane.xlu0 %1214 }
 0x1f6   : > { %v3221_v9 = vmin.bf16 %v3205_v52, %v2917_v54  ;;  %2018 = vadd.xlane.f32.xlu1 %v2017_v39  ;;  %vm8806_vm4 = vmpackc.low %vm928_vm3, %vm12232_vm13  ;;  %v2023_v59 = vsel %vm12235_vm11, %v1988_v27, 0.0  ;;  %v1991_v55 = vmul.f32 %v12054_v20, %v1975_v12  ;;  %v1581_v2 = vpack.c.bf16 %v4800_v62, %v4799_v45  ;;  %12237 = vst [vmem:[#allocation68_spill] sm:$0xff] %v8817_v21  ;;  %v1978_v54 = vld [vmem:[#allocation2 + $0x78] sm:$0xff]  ;;  %v4788_v36 = vld [vmem:[%s5640_s10 + $0x128] sm:$0xff] }
 0x1f7   : > { %v3222_v47 = vmin.bf16 %v3206_v40, %v2918_v13  ;;  %v1573_v57 = vpack.c.bf16 %v4784_v18, %v4783_v29  ;;  %vm12238_vm7 = vmmov %vm12235_vm11  ;;  %v1582_v13 = vpack.c.bf16 %v4802_v43, %v4801_v60  ;;  %v1992_v10 = vmul.f32 %v12054_v20, %v1976_v61  ;;  %v4806_v53 = vld [vmem:[%s5640_s10 + $0x1b8] sm:$0xff]  ;;  %v4789_v24 = vld [vmem:[%s5640_s10 + $0x130] sm:$0xff]  ;;  %12243 = vst [vmem:[#allocation61_spill] sm:$0xff] %v8842_v33 }
 0x1f8   : > { %v3237_v41 = vmin.bf16 %v3221_v9, %v2586_v26  ;;  %2021 = vadd.xlane.f32.xlu0 %v2020_v58  ;;  %v2026_v48 = vsel %vm12238_vm7, %v1989_v46, 0.0  ;;  %5103 = vmatprep.subr.bf16.mxu1 %v1581_v2  ;;  %vm12239_vm9 = vmmov %vm12238_vm7  ;;  %v1574_v28 = vpack.c.bf16 %v4786_v19, %v4785_v14  ;;  %v1993_v49 = vmul.f32 %v12054_v20, %v1977_v3  ;;  %v12241_v39 = vld [vmem:[#allocation65_spill] sm:$0xff]  ;;  %v4790_v52 = vld [vmem:[%s5640_s10 + $0x138] sm:$0xff] }
 0x1f9   : > { %v3238_v25 = vmin.bf16 %v3222_v47, %v2587_v5  ;;  %v2029_v44 = vsel %vm12239_vm9, %v1990_v11, 0.0  ;;  %4911 = vmatprep.subr.bf16.mxu0 %v1581_v2  ;;  %5111 = vmatpush3.bf16.msra.mxu1 %v1573_v57  ;;  %vm12240_vm5 = vmmov %vm12238_vm7  ;;  %v1994_v15 = vmul.f32 %v12054_v20, %v1978_v54  ;;  %vm1247_vm14 = vcmp.ge.f32.partialorder %v12241_v39, %v8764_v31  ;;  %v4807_v40 = vld [vmem:[%s5640_s10 + $0x1c0] sm:$0xff]  ;;  %v12242_v20 = vld [vmem:[#allocation106_spill] sm:$0xff]  ;;  %v8849_v62 = vpop.xlane.xlu1 %1217 }
 0x1fa   : > { %v3269_v32 = vsel %vm8790_vm2, 0, %v3237_v41  ;;  %2024 = vadd.xlane.f32.xlu1 %v2023_v59  ;;  %v2032_v50 = vsel %vm12240_vm5, %v1991_v55, 0.0  ;;  %4912 = vmatpush3.bf16.msra.mxu0 %v1573_v57  ;;  %v1583_v5 = vpack.c.bf16 %v4804_v51, %v4803_v56  ;;  %vm1231_vm10 = vcmp.ge.f32.partialorder %v12242_v20, %v8766_v22  ;;  %v4808_v12 = vld [vmem:[%s5640_s10 + $0x1c8] sm:$0xff]  ;;  %v4791_v45 = vld [vmem:[%s5640_s10 + $0x140] sm:$0xff]  ;;  %12245 = vst [vmem:[#allocation63_spill] sm:$0xff] %v8849_v62  ;;  %vm12246_vm6 = vmmov %vm12240_vm5 }
 0x1fb   : > { %v3270_v30 = vsel %vm8806_vm4, 0, %v3238_v25  ;;  %v3285_v1 = vmul.bf16 3272590095, %v3269_v32  ;;  %5104 = vmatprep.subr.bf16.mxu1 %v1582_v13  ;;  %4913 = vmatprep.subr.bf16.mxu0 %v1582_v13  ;;  %v4792_v58 = vld [vmem:[%s5640_s10 + $0x148] sm:$0xff]  ;;  %v2035_v29 = vsel %vm12246_vm6, %v1992_v10, 0.0  ;;  %v1575_v18 = vpack.c.bf16 %v4788_v36, %v4787_v63  ;;  %v4809_v9 = vld [vmem:[%s5640_s10 + $0x1d0] sm:$0xff]  ;;  %vm12251_vm4 = vmmov %vm12240_vm5 }
 0x1fc   : > { %v3286_v34 = vmul.bf16 3272590095, %v3270_v30  ;;  %2027 = vadd.xlane.f32.xlu0 %v2026_v48  ;;  %v12244_v46 = vld [vmem:[#allocation72_spill] sm:$0xff]  ;;  %v4810_v47 = vld [vmem:[%s5640_s10 + $0x1d8] sm:$0xff]  ;;  %vm12248_vm2 = vnez %v12247_v35  ;;  %v2038_v43 = vsel %vm12251_vm4, %v1993_v49, 0.0  ;;  %v1584_v4 = vpack.c.bf16 %v4806_v53, %v4805_v42  ;;  %v4793_v59 = vld [vmem:[%s5640_s10 + $0x150] sm:$0xff] }
 0x1fd   : > { %v3314_v27 = vmul.bf16 1069105081, %v3285_v1  ;;  %vm1233_vm3 = vcmp.ge.f32.partialorder %v12244_v46, %v8817_v21  ;;  %5112 = vmatpush3.bf16.msra.mxu1 %v1574_v28  ;;  %vm8859_vm13 = vmand %vm12248_vm2, %vm1247_vm14  ;;  %v4794_v11 = vld [vmem:[%s5640_s10 + $0x158] sm:$0xff]  ;;  %v12252_v55 = vld [vmem:[#allocation104_spill] sm:$0xff]  ;;  %v1576_v25 = vpack.c.bf16 %v4790_v52, %v4789_v24  ;;  %v1585_v54 = vpack.c.bf16 %v4808_v12, %v4807_v40  ;;  %v8928_v39 = vpop.xlane.xlu1 %1193 }
 0x1fe   : > { %v3317_v26 = vmul.bf16 1069105081, %v3286_v34  ;;  %2030 = vadd.xlane.f32.xlu1 %v2029_v44  ;;  %4914 = vmatpush3.bf16.msra.mxu0 %v1574_v28  ;;  %vm12253_vm11 = vnez %v12252_v55  ;;  %vm12256_vm9 = vmmov %vm12251_vm4  ;;  %v4811_v2 = vld [vmem:[%s5640_s10 + $0x1e0] sm:$0xff]  ;;  %v4812_v57 = vld [vmem:[%s5640_s10 + $0x1e8] sm:$0xff]  ;;  %v8891_v13 = vpack.c.bf16 %v4792_v58, %v4791_v45  ;;  %v8899_v56 = vpack.c.bf16 %v4810_v47, %v4809_v9  ;;  %12275 = vst [vmem:[#allocation69_spill] sm:$0xff] %v8928_v39 }
 0x1ff   : > { %5241 = vpow.bf16 %v3314_v27  ;;  %vm8871_vm7 = vmand %vm12253_vm11, %vm1231_vm10  ;;  %v2041_v41 = vsel %vm12256_vm9, %v1994_v15, 0.0  ;;  %5105 = vmatprep.subr.bf16.mxu1 %v1583_v5  ;;  %4915 = vmatprep.subr.bf16.mxu0 %v1583_v5  ;;  %v12257_v14 = vld [vmem:[#allocation66_spill] sm:$0xff]  ;;  %v12258_v19 = vld [vmem:[#allocation91_spill] sm:$0xff]  ;;  %v8901_v51 = vpack.c.bf16 %v4794_v11, %v4793_v59  ;;  %v11454_v28 = vmov 0.0  }
 0x200   : > { %5243 = vpow.bf16 %v3317_v26  ;;  %2033 = vadd.xlane.f32.xlu0 %v2032_v50  ;;  %vm1248_vm5 = vcmp.ge.f32.partialorder %v12257_v14, %v8764_v31  ;;  %vm1250_vm14 = vcmp.ge.f32.partialorder %v12258_v19, %v8813_v7  ;;  %v12259_v48 = vld [vmem:[#allocation60_spill] sm:$0xff]  ;;  %v12265_v30 = vld [vmem:[#allocation107_spill] sm:$0xff]  ;;  %v12267_v63 = vld [vmem:[#allocation90_spill] sm:$0xff]  ;;  %v8912_v50 = vpop.xlane.xlu0 %1190  ;;  %v8914_v49 = vpack.c.bf16 %v4812_v57, %v4811_v2 }
 0x201   : > { %vm12260_vm10 = vnez %v12259_v48  ;;  %v12263_v32 = vld [vmem:[#allocation64_spill] sm:$0xff]  ;;  %vm1232_vm11 = vcmp.ge.f32.partialorder %v12265_v30, %v8766_v22  ;;  %5113 = vmatpush3.bf16.msra.mxu1 %v1575_v18  ;;  %v4795_v1 = vld [vmem:[%s5640_s10 + $0x160] sm:$0xff]  ;;  %12270 = vst [vmem:[#allocation177_spill] sm:$0xff] %v8912_v50  ;;  %v12271_v15 = vld [vmem:[#allocation126_spill] sm:$0xff]  ;;  %v8959_v9 = vsel %vm8871_vm7, 1.0, %v11454_v28  ;;  %v9150_v14 = vpop.xlane.xlu1 %1223 }
 0x202   : > { %vm8887_vm6 = vmand %vm12260_vm10, %vm1233_vm3  ;;  %2036 = vadd.xlane.f32.xlu1 %v2035_v29  ;;  %vm12264_vm2 = vnez %v12263_v32  ;;  %v12266_v10 = vld [vmem:[#allocation108_spill] sm:$0xff]  ;;  %v12268_v44 = vld [vmem:[#allocation15_spill] sm:$0xff]  ;;  %4916 = vmatpush3.bf16.msra.mxu0 %v1575_v18  ;;  %12282 = vst [vmem:[#allocation85_spill] sm:$0xff] %v8959_v9 }
 0x203   : > { %vm1280_vm4 = vmand %vm12264_vm2, %vm1248_vm5  ;;  %vm1234_vm9 = vcmp.ge.f32.partialorder %v12266_v10, %v8817_v21  ;;  %v4796_v34 = vld [vmem:[%s5640_s10 + $0x168] sm:$0xff]  ;;  %vm12269_vm10 = vnez %v12268_v44  ;;  %vm1252_vm2 = vcmp.ge.f32.partialorder %v12271_v15, %v8842_v33  ;;  %v12272_v42 = vld [vmem:[#allocation131_spill] sm:$0xff]  ;;  %5106 = vmatprep.subr.bf16.mxu1 %v1584_v4  ;;  %4917 = vmatprep.subr.bf16.mxu0 %v1584_v4  ;;  %v8947_v58 = vsel %vm8887_vm6, 1.0, %v11454_v28  ;;  %12343 = vst [vmem:[#allocation98_spill] sm:$0xff] %v9150_v14 }
 0x204   : > { %vm1282_vm5 = vmand %vm12269_vm10, %vm1250_vm14  ;;  %v8910_v36 = vsel %vm1280_vm4, 1.0, %v11454_v28  ;;  %2039 = vadd.xlane.f32.xlu0 %v2038_v43  ;;  %vm1254_vm3 = vcmp.ge.f32.partialorder %v12272_v42, %v8849_v62  ;;  %v12273_v24 = vld [vmem:[#allocation105_spill] sm:$0xff]  ;;  %v4814_v26 = vld [vmem:[%s5640_s10 + $0x1f8] sm:$0xff]  ;;  %12280 = vst [vmem:[#allocation70_spill] sm:$0xff] %v8947_v58  ;;  %v8949_v46 = vpack.c.bf16 %v4796_v34, %v4795_v1  ;;  %vm12283_vm6 = vcmp.ge.f32.partialorder %v12267_v63, %v8813_v7 }
 0x205   : > { %v8921_v53 = vsel %vm1282_vm5, 1.0, %v11454_v28  ;;  %vm12274_vm14 = vnez %v12273_v24  ;;  %v4813_v27 = vld [vmem:[%s5640_s10 + $0x1f0] sm:$0xff]  ;;  %v12276_v5 = vld [vmem:[#allocation36_spill] sm:$0xff]  ;;  %v12278_v12 = vld [vmem:[#allocation71_spill] sm:$0xff]  ;;  %5114 = vmatpush3.bf16.msra.mxu1 %v1576_v25 }
 0x206   : > { %vm1264_vm4 = vmand %vm12274_vm14, %vm1232_vm11  ;;  %v1408_v52 = vmul.f32 %v8910_v36, %v12276_v5  ;;  %v12277_v40 = vld [vmem:[#allocation48_spill] sm:$0xff]  ;;  %vm12279_vm10 = vnez %v12278_v12  ;;  %2042 = vadd.xlane.f32.xlu1 %v2041_v41  ;;  %v12281_v29 = vld [vmem:[#allocation141_spill] sm:$0xff]  ;;  %4918 = vmatpush3.bf16.msra.mxu0 %v1576_v25  ;;  %v8987_v19 = vpack.c.bf16 %v4814_v26, %v4813_v27 }
 0x207   : > { %v1410_v20 = vmul.f32 %v8921_v53, %v12277_v40  ;;  %vm1266_vm11 = vmand %vm12279_vm10, %vm1234_vm9  ;;  %v8942_v45 = vsel %vm1264_vm4, 1.0, %v11454_v28  ;;  %vm1236_vm5 = vcmp.ge.f32.partialorder %v12281_v29, %v8912_v50  ;;  %v12284_v47 = vld [vmem:[#allocation89_spill] sm:$0xff]  ;;  %v4798_v4 = vld [vmem:[%s5640_s10 + $0x178] sm:$0xff]  ;;  %5107 = vmatprep.subr.bf16.mxu1 %v1585_v54  ;;  %4919 = vmatprep.subr.bf16.mxu0 %v1585_v54 }
 0x208   : > { %v8954_v18 = vsel %vm1266_vm11, 1.0, %v11454_v28  ;;  %vm12285_vm9 = vnez %v12284_v47  ;;  %v4797_v43 = vld [vmem:[%s5640_s10 + $0x170] sm:$0xff]  ;;  %v12288_v11 = vld [vmem:[#allocation95_spill] sm:$0xff]  ;;  %v12290_v2 = vld [vmem:[#allocation148_spill] sm:$0xff] }
 0x209   : > { %vm8966_vm14 = vmand %vm12285_vm9, %vm12283_vm6  ;;  %v1531_v59 = vpack.c.bf16 %v1410_v20, %v1408_v52  ;;  %v1392_v55 = vmul.f32 %v8942_v45, %v12288_v11  ;;  %v12289_v41 = vld [vmem:[#allocation97_spill] sm:$0xff]  ;;  %vm1238_vm7 = vcmp.ge.f32.partialorder %v12290_v2, %v8928_v39  ;;  %v12291_v57 = vld [vmem:[#allocation124_spill] sm:$0xff]  ;;  %v9031_v5 = vpack.c.bf16 %v4798_v4, %v4797_v43  ;;  %5115 = vmatpush3.bf16.msra.mxu1 %v8891_v13 }
 0x20a   : > { %v1394_v61 = vmul.f32 %v8954_v18, %v12289_v41  ;;  %vm12292_vm4 = vnez %v12291_v57  ;;  %v8990_v48 = vld [vmem:[%s5640_s10 + $0x80] sm:$0xff]  ;;  %v8993_v3 = vld [vmem:[%s5640_s10 + $0x88] sm:$0xff]  ;;  %v12297_v63 = vld [vmem:[#allocation129_spill] sm:$0xff]  ;;  %v5242_v54 = vpop.eup %5241  ;;  %v9040_v20 = vsel %vm8859_vm13, 1.0, %v11454_v28  ;;  %v9069_v41 = vsel %vm8966_vm14, 1.0, %v11454_v28  ;;  %4920 = vmatpush3.bf16.msra.mxu0 %v8891_v13  ;;  %5108 = vmatprep.subr.bf16.mxu1 %v8899_v56 }
 0x20b   : > { %vm8983_vm10 = vmand %vm12292_vm4, %vm1252_vm2  ;;  %v12295_v32 = vld [vmem:[#allocation140_spill] sm:$0xff]  ;;  %vm12298_vm2 = vnez %v12297_v63  ;;  %v12301_v1 = vld [vmem:[#allocation125_spill] sm:$0xff]  ;;  %1653 = vmatprep.mubr.bf16.mxu1 %v1531_v59  ;;  %12309 = vst [vmem:[#allocation77_spill] sm:$0xff] %v9040_v20  ;;  %v5244_v4 = vpop.eup %5243  ;;  %v3361_v59 = vsel %vm6483_vm0, %v5242_v54, 0  ;;  %vm12318_vm0 = vnez %v12317_v6  ;;  %4921 = vmatprep.subr.bf16.mxu0 %v8899_v56 }
 0x20c   : > { %vm1235_vm11 = vcmp.ge.f32.partialorder %v12295_v32, %v8912_v50  ;;  %v12296_v30 = vld [vmem:[#allocation96_spill] sm:$0xff]  ;;  %vm9006_vm6 = vmand %vm12298_vm2, %vm1254_vm3  ;;  %v1523_v34 = vpack.c.bf16 %v1394_v61, %v1392_v55  ;;  %v12302_v44 = vld [vmem:[#allocation147_spill] sm:$0xff]  ;;  %12316 = vst [vmem:[#allocation86_spill] sm:$0xff] %v9069_v41  ;;  %v3377_v63 = vsub.bf16 1065369472, %v3361_v59 }
 0x20d   : > { %v8999_v10 = vmul.f32 %v8947_v58, %v12296_v30  ;;  %vm1237_vm4 = vcmp.ge.f32.partialorder %v12302_v44, %v8928_v39  ;;  %v9015_v15 = vld [vmem:[%s5640_s10] sm:$0xff]  ;;  %v9018_v24 = vld [vmem:[%s5640_s10 + $0x8] sm:$0xff]  ;;  %v12307_v26 = vld [vmem:[#allocation130_spill] sm:$0xff]  ;;  %5116 = vmatpush3.bf16.msra.mxu1 %v8901_v51 }
 0x20e   : > { %v12303_v42 = vld [vmem:[#allocation139_spill] sm:$0xff]  ;;  %vm1253_vm9 = vcmp.ge.f32.partialorder %v12307_v26, %v8849_v62  ;;  %v12308_v52 = vld [vmem:[#allocation94_spill] sm:$0xff]  ;;  %v9046_v29 = vld [vmem:[%s5640_s10 + $0x288] sm:$0xff]  ;;  %1621 = vmatprep.mubr.bf16.mxu0 %v1523_v34  ;;  %v9155_v26 = vsel %vm9006_vm6, 1.0, %v11454_v28  ;;  %4922 = vmatpush3.bf16.msra.mxu0 %v8901_v51 }
 0x20f   : > { %vm12304_vm3 = vnez %v12303_v42  ;;  %v9035_v40 = vmul.f32 %v8959_v9, %v12308_v52  ;;  %v9043_v12 = vld [vmem:[%s5640_s10 + $0x280] sm:$0xff]  ;;  %v12310_v47 = vld [vmem:[#allocation146_spill] sm:$0xff]  ;;  %v9075_v2 = vld [vmem:[%s5640_s10 + $0x208] sm:$0xff]  ;;  %v9096_v42 = vpop.xlane.xlu0 %1220  ;;  %12344 = vst [vmem:[#allocation58_spill] sm:$0xff] %v9155_v26  ;;  %5109 = vmatprep.subr.bf16.mxu1 %v8914_v49  ;;  %4923 = vmatprep.subr.bf16.mxu0 %v8914_v49 }
 0x210   : > { %vm9025_vm2 = vmand %vm12304_vm3, %vm1236_vm5  ;;  %vm12311_vm5 = vnez %v12310_v47  ;;  %v12314_v11 = vld [vmem:[#allocation99_spill] sm:$0xff]  ;;  %v12322_v35 = vld [vmem:[#allocation101_spill] sm:$0xff]  ;;  %12324 = vst [vmem:[#allocation79_spill] sm:$0xff] %v9096_v42 }
 0x211   : > { %vm9053_vm3 = vmand %vm12311_vm5, %vm1238_vm7  ;;  %v9064_v55 = vmul.f32 %v8959_v9, %v12314_v11  ;;  %v9072_v61 = vld [vmem:[%s5640_s10 + $0x200] sm:$0xff]  ;;  %vm12321_vm7 = vcmp.ne.s16.totalorder %v12219_v17, 0  ;;  %v9092_v34 = vmul.f32 %v8947_v58, %v12322_v35  ;;  %v12325_v54 = vld [vmem:[#allocation110_spill] sm:$0xff]  ;;  %vm12330_vm5 = vcmp.ge.f32.partialorder %v12301_v1, %v8842_v33  ;;  %5117 = vmatpush3.bf16.msra.mxu1 %v8949_v46 }
 0x212   : > { %vm9082_vm13 = vmand %vm12318_vm0, %vm1235_vm11  ;;  %v3362_v30 = vsel %vm12321_vm7, %v5244_v4, 0  ;;  %vm12326_vm14 = vnez %v12325_v54  ;;  %v12329_v52 = vld [vmem:[#allocation35_spill] sm:$0xff]  ;;  %v12336_v35 = vld [vmem:[#allocation157_spill] sm:$0xff]  ;;  %v9136_v1 = vsel %vm8983_vm10, 1.0, %v11454_v28  ;;  %v9178_v27 = vsel %vm9053_vm3, 1.0, %v11454_v28  ;;  %4924 = vmatpush3.bf16.msra.mxu0 %v8949_v46  ;;  %5110 = vmatprep.subr.bf16.mxu1 %v8987_v19 }
 0x213   : > { %12315 = vst [vmem:[#allocation78_spill] sm:$0xff] %v9064_v55  ;;  %12323 = vst [vmem:[#allocation103_spill] sm:$0xff] %v9092_v34  ;;  %v3378_v13 = vsub.bf16 1065369472, %v3362_v30  ;;  %v9110_v47 = vmul.f32 %v9040_v20, %v12329_v52  ;;  %v12331_v44 = vld [vmem:[#allocation123_spill] sm:$0xff]  ;;  %vm1255_vm7 = vcmp.ge.f32.partialorder %v12336_v35, %v9096_v42  ;;  %v12338_v54 = vld [vmem:[#allocation128_spill] sm:$0xff]  ;;  %v9226_v22 = vpop.xlane.xlu0 %1196  ;;  %vm12360_vm3 = vnez %v12359_v16  ;;  %4925 = vmatprep.subr.bf16.mxu0 %v8987_v19 }
 0x214   : > { %vm9103_vm11 = vmand %vm12326_vm14, %vm1237_vm4  ;;  %vm12332_vm4 = vnez %v12331_v44  ;;  %v12335_v56 = vld [vmem:[#allocation47_spill] sm:$0xff]  ;;  %12337 = vst [vmem:[#allocation80_spill] sm:$0xff] %v9136_v1  ;;  %vm12339_vm14 = vnez %v12338_v54  ;;  %v3402_v30 = vld [vmem:[#allocation3 + $0x38] sm:$0xff]  ;;  %v9183_v51 = vsel %vm9082_vm13, 1.0, %v11454_v28 }
 0x215   : > { %vm9121_vm0 = vmand %vm12332_vm4, %vm12330_vm5  ;;  %v9127_v6 = vmul.f32 %v9069_v41, %v12335_v56  ;;  %v3390_v44 = vmul.bf16 %v3378_v13, %v3377_v63  ;;  %v3401_v56 = vld [vmem:[#allocation3 + $0x30] sm:$0xff]  ;;  %v12342_v4 = vld [vmem:[#allocation159_spill] sm:$0xff]  ;;  %v9160_v63 = vsel %vm9025_vm2, 1.0, %v11454_v28  ;;  %v9188_v59 = vsel %vm9103_vm11, 1.0, %v11454_v28  ;;  %12351 = vst [vmem:[#allocation106_spill] sm:$0xff] %v9226_v22  ;;  %5118 = vmatpush3.bf16.msra.mxu1 %v9031_v5 }
 0x216   : > { %vm9143_vm5 = vmand %vm12339_vm14, %vm1253_vm9  ;;  %vm1256_vm4 = vcmp.ge.f32.partialorder %v12342_v4, %v9096_v42  ;;  %v9165_v13 = vld [vmem:[%s5640_s10 + $0x90] sm:$0xff]  ;;  %v9168_v54 = vld [vmem:[%s5640_s10 + $0x98] sm:$0xff]  ;;  %v9203_v57 = vsel %vm9121_vm0, 1.0, %v11454_v28  ;;  %4926 = vmatpush3.bf16.msra.mxu0 %v9031_v5 }
 0x217   : > { %v12345_v32 = vld [vmem:[#allocation165_spill] sm:$0xff]  ;;  %v3417_v60 = vunpack.c.l.bf16 %v3390_v44  ;;  %v3418_v62 = vunpack.c.h.bf16 %v3390_v44  ;;  %v9192_v33 = vld [vmem:[%s5640_s10 + $0x18] sm:$0xff]  ;;  %12346 = vst [vmem:[#allocation59_spill] sm:$0xff] %v9203_v57  ;;  %v9208_v17 = vsel %vm9143_vm5, 1.0, %v11454_v28  ;;  %v12348_v49 = vld [vmem:[#allocation164_spill] sm:$0xff] }
 0x218   : > { %vm1258_vm10 = vcmp.ge.f32.partialorder %v12345_v32, %v9150_v14  ;;  %v9173_v25 = vld [vmem:[%s5640_s10 + $0x10] sm:$0xff]  ;;  %v9198_v7 = vld [vmem:[%s5640_s10 + $0x298] sm:$0xff]  ;;  %12347 = vst [vmem:[#allocation65_spill] sm:$0xff] %v9208_v17  ;;  %vm1257_vm6 = vcmp.ge.f32.partialorder %v12348_v49, %v9150_v14  ;;  %v12350_v39 = vld [vmem:[#allocation119_spill] sm:$0xff] }
 0x219   : > { %v9195_v43 = vld [vmem:[%s5640_s10 + $0x290] sm:$0xff]  ;;  %v9218_v50 = vmul.f32 %v9155_v26, %v12350_v39  ;;  %v9224_v11 = vld [vmem:[%s5640_s10 + $0x218] sm:$0xff]  ;;  %v12352_v52 = vld [vmem:[#allocation132_spill] sm:$0xff]  ;;  %v3433_v0 = vmul.f32 %v3417_v60, %v3401_v56  ;;  %v3434_v23 = vmul.f32 %v3418_v62, %v3402_v30 }
 0x21a   : > { %v12349_v44 = vld [vmem:[#allocation113_spill] sm:$0xff]  ;;  %v9230_v28 = vmul.f32 %v9160_v63, %v12352_v52  ;;  %v12357_v52 = vld [vmem:[#allocation138_spill] sm:$0xff]  ;;  %v12358_v4 = vld [vmem:[#allocation84_spill] sm:$0xff] }
 0x21b   : > { %v9214_v31 = vmul.f32 %v9136_v1, %v12349_v44  ;;  %v9221_v21 = vld [vmem:[%s5640_s10 + $0x210] sm:$0xff]  ;;  %v12353_v44 = vld [vmem:[#allocation156_spill] sm:$0xff]  ;;  %v9250_v37 = vmul.f32 %v9178_v27, %v12357_v52  ;;  %vm9261_vm13 = vmand %vm12360_vm3, %vm1258_vm10  ;;  %3449 = vst [vmem:[#allocation3 + $0x30] sm:$0xff] %v3433_v0  ;;  %v1843_v0 = vpack.c.bf16 %v9198_v7, %v9195_v43 }
 0x21c   : > { %vm12354_vm9 = vnez %v12353_v44  ;;  %v9254_v44 = vmul.f32 %v9183_v51, %v12358_v4  ;;  %v12363_v60 = vld [vmem:[#allocation137_spill] sm:$0xff]  ;;  %v12364_v56 = vld [vmem:[#allocation112_spill] sm:$0xff]  ;;  %v12365_v16 = vld [vmem:[#allocation118_spill] sm:$0xff]  ;;  %3450 = vst [vmem:[#allocation3 + $0x38] sm:$0xff] %v3434_v23 }
 0x21d   : > { %vm9237_vm2 = vmand %vm12354_vm9, %vm1256_vm4  ;;  %v9269_v30 = vmul.f32 %v9188_v59, %v12363_v60  ;;  %v9273_v32 = vmul.f32 %v9203_v57, %v12364_v56  ;;  %v9277_v52 = vmul.f32 %v9208_v17, %v12365_v16  ;;  %v9280_v4 = vld [vmem:[%s5640_s10 + $0x20] sm:$0xff]  ;;  %v9283_v46 = vld [vmem:[%s5640_s10 + $0x28] sm:$0xff]  ;;  %v1530_v60 = vpack.c.bf16 %v9127_v6, %v9110_v47 }
 0x21e   : > { %v9286_v9 = vld [vmem:[%s5640_s10 + $0x2a0] sm:$0xff]  ;;  %v1515_v56 = vpack.c.bf16 %v9168_v54, %v9165_v13  ;;  %v12366_v58 = vld [vmem:[#allocation172_spill] sm:$0xff]  ;;  %v12367_v19 = vld [vmem:[#allocation170_spill] sm:$0xff]  ;;  %v12368_v16 = vmov 0.0   ;;  %v1533_v39 = vpack.c.bf16 %v9218_v50, %v9214_v31  ;;  %v1525_v35 = vpack.c.bf16 %v9250_v37, %v9230_v28 }
 0x21f   : > { %vm1240_vm11 = vcmp.ge.f32.partialorder %v12366_v58, %v9226_v22  ;;  %v9298_v17 = vld [vmem:[%s5640_s10 + $0x2a8] sm:$0xff]  ;;  %v9301_v57 = vld [vmem:[%s5640_s10 + $0x220] sm:$0xff]  ;;  %vm1239_vm0 = vcmp.ge.f32.partialorder %v12367_v19, %v9226_v22  ;;  %v9311_v47 = vld [vmem:[%s5640_s10 + $0xb0] sm:$0xff]  ;;  %v9325_v26 = vsel %vm9237_vm2, 1.0, %v12368_v16  ;;  %v9330_v7 = vsel %vm9261_vm13, 1.0, %v12368_v16  ;;  %1654 = vmatmul.mubr.bf16.vlgmr.msra.gmra.mrb[0].mxu1 %v1530_v60 }
 0x220   : > { %v9304_v23 = vld [vmem:[%s5640_s10 + $0x228] sm:$0xff]  ;;  %v9314_v6 = vld [vmem:[%s5640_s10 + $0xb8] sm:$0xff]  ;;  %v9317_v13 = vld [vmem:[%s5640_s10 + $0x30] sm:$0xff]  ;;  %12369 = vst [vmem:[#allocation72_spill] sm:$0xff] %v9325_v26  ;;  %v12379_v37 = vpack.c.bf16 %v8993_v3, %v8990_v48  ;;  %v12384_v3 = vpack.c.bf16 %v9046_v29, %v9043_v12  ;;  %v12396_v60 = vpack.c.bf16 %v8999_v10, %v9035_v40  ;;  %1661 = vmatprep.mubr.bf16.mxu1 %v1533_v39 }
 0x221   : > { %v9320_v54 = vld [vmem:[%s5640_s10 + $0x38] sm:$0xff]  ;;  %12370 = vst [vmem:[#allocation62_spill] sm:$0xff] %v9330_v7  ;;  %v12375_v20 = vld [vmem:[#allocation163_spill] sm:$0xff]  ;;  %v9376_v49 = vld [vmem:[%s5640_s10 + $0x230] sm:$0xff] }
 0x222   : > { %v12371_v43 = vld [vmem:[#allocation154_spill] sm:$0xff]  ;;  %4975 = vmatprep.subr.bf16.mxu1 %v12379_v37  ;;  %v12380_v5 = vld [vmem:[#allocation169_spill] sm:$0xff]  ;;  %5039 = vmatprep.subr.bf16.mxu0 %v12384_v3  ;;  %v9393_v37 = vpop.xlane.xlu1 %1199  ;;  %v12386_v50 = vld [vmem:[#allocation151_spill] sm:$0xff] }
 0x223   : > { %vm12372_vm14 = vnez %v12371_v43  ;;  %v9351_v43 = vld [vmem:[%s5640_s10 + $0x2b0] sm:$0xff]  ;;  %v9354_v42 = vld [vmem:[%s5640_s10 + $0x2b8] sm:$0xff]  ;;  %vm12381_vm10 = vnez %v12380_v5  ;;  %12385 = vst [vmem:[#allocation104_spill] sm:$0xff] %v9393_v37  ;;  %v9401_v58 = vmul.f32 %v9325_v26, %v12386_v50  ;;  %v12387_v5 = vld [vmem:[#allocation155_spill] sm:$0xff]  ;;  %1622 = vmatmul.mubr.bf16.vlgmr.msra.gmra.mrb[0].mxu0 %v12396_v60 }
 0x224   : > { %vm9337_vm5 = vmand %vm12372_vm14, %vm1255_vm7  ;;  %vm12376_vm7 = vnez %v12375_v20  ;;  %v9379_v41 = vld [vmem:[%s5640_s10 + $0x238] sm:$0xff]  ;;  %v1844_v20 = vpack.c.bf16 %v9298_v17, %v9286_v9  ;;  %v9405_v62 = vmul.f32 %v9330_v7, %v12387_v5  ;;  %v9408_v14 = vld [vmem:[%s5640_s10 + $0xc0] sm:$0xff]  ;;  %v12397_v5 = vpack.c.bf16 %v9018_v24, %v9015_v15  ;;  %1629 = vmatprep.mubr.bf16.mxu0 %v1525_v35 }
 0x225   : > { %vm9361_vm4 = vmand %vm12376_vm7, %vm1257_vm6  ;;  %v9411_v12 = vld [vmem:[%s5640_s10 + $0xc8] sm:$0xff]  ;;  %v12392_v17 = vld [vmem:[#allocation175_spill] sm:$0xff]  ;;  %v9429_v3 = vsel %vm9337_vm5, 1.0, %v12368_v16  ;;  %v12400_v24 = vpack.c.bf16 %v9075_v2, %v9072_v61  ;;  %v12411_v35 = vpack.c.bf16 %v9192_v33, %v9173_v25 }
 0x226   : > { %vm9386_vm6 = vmand %vm12381_vm10, %vm1240_vm11  ;;  %v12388_v9 = vld [vmem:[#allocation168_spill] sm:$0xff]  ;;  %vm1241_vm3 = vcmp.ge.f32.partialorder %v12392_v17, %v9393_v37  ;;  %12394 = vst [vmem:[#allocation66_spill] sm:$0xff] %v9429_v3  ;;  %v9434_v19 = vsel %vm9361_vm4, 1.0, %v12368_v16  ;;  %4976 = vmatpush3.bf16.msra.mxu1 %v12397_v5  ;;  %v9456_v15 = vld [vmem:[%s5640_s10 + $0x40] sm:$0xff] }
 0x227   : > { %vm12389_vm9 = vnez %v12388_v9  ;;  %v12393_v50 = vld [vmem:[#allocation176_spill] sm:$0xff]  ;;  %12395 = vst [vmem:[#allocation91_spill] sm:$0xff] %v9434_v19  ;;  %v9453_v10 = vsel %vm9386_vm6, 1.0, %v12368_v16  ;;  %5040 = vmatpush3.bf16.msra.mxu0 %v12400_v24  ;;  %4977 = vmatprep.subr.bf16.mxu1 %v1515_v56  ;;  %v9477_v2 = vld [vmem:[%s5640_s10 + $0x2c0] sm:$0xff]  ;;  %v12401_v24 = vld [vmem:[#allocation173_spill] sm:$0xff] }
 0x228   : > { %vm9418_vm2 = vmand %vm12389_vm9, %vm1239_vm0  ;;  %vm1242_vm13 = vcmp.ge.f32.partialorder %v12393_v50, %v9393_v37  ;;  %v12398_v50 = vld [vmem:[#allocation174_spill] sm:$0xff]  ;;  %v9474_v61 = vld [vmem:[%s5640_s10 + $0x48] sm:$0xff]  ;;  %5041 = vmatprep.subr.bf16.mxu0 %v1843_v0  ;;  %vm12402_vm14 = vnez %v12401_v24 }
 0x229   : > { %vm12399_vm11 = vnez %v12398_v50  ;;  %v9471_v48 = vsel %vm9418_vm2, 1.0, %v12368_v16  ;;  %v9480_v56 = vld [vmem:[%s5640_s10 + $0x2c8] sm:$0xff]  ;;  %v1535_v50 = vpack.c.bf16 %v9405_v62, %v9401_v58  ;;  %vm9489_vm5 = vmand %vm12402_vm14, %vm1241_vm3  ;;  %v12405_v60 = vld [vmem:[#allocation150_spill] sm:$0xff] }
 0x22a   : > { %vm1274_vm0 = vmand %vm12399_vm11, %vm1242_vm13  ;;  %v9495_v40 = vmul.f32 %v9429_v3, %v12405_v60  ;;  %v12406_v0 = vld [vmem:[#allocation54_spill] sm:$0xff]  ;;  %v9502_v62 = vld [vmem:[%s5640_s10 + $0x240] sm:$0xff]  ;;  %4978 = vmatpush3.bf16.msra.mxu1 %v12411_v35  ;;  %v9560_v26 = vsel %vm9489_vm5, 1.0, %v12368_v16 }
 0x22b   : > { %v9466_v5 = vsel %vm1274_vm0, 1.0, %v12368_v16  ;;  %v9499_v39 = vmul.f32 %v9434_v19, %v12406_v0  ;;  %v9505_v58 = vld [vmem:[%s5640_s10 + $0x248] sm:$0xff]  ;;  %v12407_v17 = vld [vmem:[#allocation161_spill] sm:$0xff]  ;;  %v12408_v9 = vld [vmem:[#allocation166_spill] sm:$0xff]  ;;  %v12417_v19 = vpack.c.bf16 %v9246_v38, %v9243_v8 }
 0x22c   : > { %v1400_v24 = vmul.f32 %v9453_v10, %v12407_v17  ;;  %v1402_v31 = vmul.f32 %v9466_v5, %v12408_v9  ;;  %v9512_v1 = vld [vmem:[%s5640_s10 + $0xd0] sm:$0xff]  ;;  %v9515_v60 = vld [vmem:[%s5640_s10 + $0xd8] sm:$0xff]  ;;  %v12409_v28 = vld [vmem:[#allocation56_spill] sm:$0xff] }
 0x22d   : > { %v9519_v0 = vmul.f32 %v8942_v45, %v12409_v28  ;;  %v12410_v37 = vld [vmem:[#allocation93_spill] sm:$0xff]  ;;  %v12412_v9 = vld [vmem:[#allocation16_spill] sm:$0xff]  ;;  %v9538_v28 = vld [vmem:[%s5640_s10 + $0x58] sm:$0xff]  ;;  %4979 = vmatprep.subr.bf16.mxu1 %v12417_v19 }
 0x22e   : > { %v9523_v22 = vmul.f32 %v8954_v18, %v12410_v37  ;;  %v9530_v17 = vmul.f32 %v9471_v48, %v12412_v9  ;;  %v9535_v3 = vld [vmem:[%s5640_s10 + $0x50] sm:$0xff]  ;;  %v12413_v37 = vld [vmem:[#allocation100_spill] sm:$0xff]  ;;  %v12415_v25 = vld [vmem:[#allocation102_spill] sm:$0xff]  ;;  %v12416_v9 = vpack.c.bf16 %v9224_v11, %v9221_v21  ;;  %v1534_v11 = vpack.c.bf16 %v9499_v39, %v9495_v40 }
 0x22f   : > { %v9541_v7 = vld [vmem:[%s5640_s10 + $0x2d0] sm:$0xff]  ;;  %v9545_v33 = vmul.f32 %v8942_v45, %v12413_v37  ;;  %v9549_v35 = vmul.f32 %v8954_v18, %v12415_v25  ;;  %v1846_v45 = vpack.c.bf16 %v9480_v56, %v9477_v2  ;;  %v9567_v37 = vld [vmem:[%s5640_s10 + $0x2d8] sm:$0xff]  ;;  %v9582_v2 = vld [vmem:[%s5640_s10 + $0xe0] sm:$0xff]  ;;  %v12418_v40 = vpack.c.bf16 %v9277_v52, %v9273_v32 }
 0x230   : > { %5042 = vmatpush3.bf16.msra.mxu0 %v12416_v9  ;;  %v9570_v21 = vld [vmem:[%s5640_s10 + $0x250] sm:$0xff]  ;;  %v9573_v8 = vld [vmem:[%s5640_s10 + $0x258] sm:$0xff]  ;;  %v9585_v56 = vld [vmem:[%s5640_s10 + $0xe8] sm:$0xff]  ;;  %v1527_v39 = vpack.c.bf16 %v1402_v31, %v1400_v24  ;;  %v12421_v52 = vpack.c.bf16 %v9269_v30, %v9254_v44  ;;  %v12422_v31 = vpack.c.bf16 %v9283_v46, %v9280_v4  ;;  %v1847_v9 = vpack.c.bf16 %v9567_v37, %v9541_v7 }
 0x231   : > { %12414 = vst [vmem:[#allocation60_spill] sm:$0xff] %v9545_v33  ;;  %5043 = vmatprep.subr.bf16.mxu0 %v1844_v20  ;;  %v9588_v29 = vld [vmem:[%s5640_s10 + $0x2e0] sm:$0xff]  ;;  %1662 = vmatmul.mubr.bf16.gmra.mrb[4].mxu1 %v12418_v40  ;;  %v9603_v19 = vld [vmem:[%s5640_s10 + $0x68] sm:$0xff]  ;;  %v12425_v44 = vpack.c.bf16 %v9304_v23, %v9301_v57  ;;  %v12426_v30 = vpack.c.bf16 %v9314_v6, %v9311_v47  ;;  %v9645_v46 = vld [vmem:[%s5640_s10 + $0xf0] sm:$0xff] }
 0x232   : > { %v9600_v38 = vld [vmem:[%s5640_s10 + $0x60] sm:$0xff]  ;;  %v9606_v18 = vld [vmem:[%s5640_s10 + $0x2e8] sm:$0xff]  ;;  %1630 = vmatmul.mubr.bf16.gmra.mrb[4].mxu0 %v12421_v52  ;;  %4980 = vmatpush3.bf16.msra.mxu1 %v12422_v31  ;;  %v1839_v4 = vpack.c.bf16 %v9573_v8, %v9570_v21  ;;  %v9648_v7 = vld [vmem:[%s5640_s10 + $0xf8] sm:$0xff]  ;;  %v12428_v57 = vpack.c.bf16 %v9354_v42, %v9351_v43  ;;  %v1520_v23 = vpack.c.bf16 %v9585_v56, %v9582_v2 }
 0x233   : > { %v12419_v25 = vld [vmem:[#allocation127_spill] sm:$0xff]  ;;  %v12423_v24 = vld [vmem:[#allocation32_spill] sm:$0xff]  ;;  %4981 = vmatprep.subr.bf16.mxu1 %v12426_v30  ;;  %v12427_v52 = vld [vmem:[#allocation142_spill] sm:$0xff]  ;;  %1669 = vmatprep.mubr.bf16.mxu1 %v1535_v50  ;;  %v1512_v47 = vpack.c.bf16 %v9603_v19, %v9600_v38  ;;  %v1848_v6 = vpack.c.bf16 %v9606_v18, %v9588_v29  ;;  %v12431_v18 = vpack.c.bf16 %v9320_v54, %v9317_v13 }
 0x234   : > { %v9610_v33 = vmul.f32 %v9160_v63, %v12419_v25  ;;  %v12420_v20 = vld [vmem:[#allocation143_spill] sm:$0xff]  ;;  %v1401_v40 = vmul.f32 %v9560_v26, %v12423_v24  ;;  %v9630_v55 = vld [vmem:[%s5640_s10 + $0x268] sm:$0xff]  ;;  %5044 = vmatpush3.bf16.msra.mxu0 %v12425_v44  ;;  %v9654_v31 = vmul.f32 %v9188_v59, %v12427_v52  ;;  %1637 = vmatprep.mubr.bf16.mxu0 %v1527_v39  ;;  %v9668_v8 = vld [vmem:[%s5640_s10 + $0x2f0] sm:$0xff] }
 0x235   : > { %v9614_v32 = vmul.f32 %v9178_v27, %v12420_v20  ;;  %v9627_v25 = vld [vmem:[%s5640_s10 + $0x260] sm:$0xff]  ;;  %v12424_v20 = vld [vmem:[#allocation120_spill] sm:$0xff]  ;;  %5045 = vmatprep.subr.bf16.mxu0 %v12428_v57  ;;  %v9671_v24 = vld [vmem:[%s5640_s10 + $0x2f8] sm:$0xff]  ;;  %v1521_v39 = vpack.c.bf16 %v9648_v7, %v9645_v46  ;;  %v12434_v57 = vpack.c.bf16 %v9379_v41, %v9376_v49  ;;  %v12435_v13 = vpack.c.bf16 %v9411_v12, %v9408_v14 }
 0x236   : > { %v9634_v34 = vmul.f32 %v9183_v51, %v12424_v20  ;;  %v1840_v21 = vpack.c.bf16 %v9630_v55, %v9627_v25  ;;  %v12429_v43 = vld [vmem:[#allocation162_spill] sm:$0xff]  ;;  %v12430_v2 = vld [vmem:[#allocation171_spill] sm:$0xff]  ;;  %4982 = vmatpush3.bf16.msra.mxu1 %v12431_v18  ;;  %v1526_v29 = vpack.c.bf16 %v1401_v40, %v9530_v17  ;;  %v12432_v20 = vld [vmem:[#allocation145_spill] sm:$0xff]  ;;  %v1849_v41 = vpack.c.bf16 %v9671_v24, %v9668_v8 }
 0x237   : > { %v9677_v50 = vmul.f32 %v9453_v10, %v12429_v43  ;;  %v9681_v56 = vmul.f32 %v9466_v5, %v12430_v2  ;;  %v9691_v44 = vmul.f32 %v9471_v48, %v12432_v20  ;;  %v12433_v30 = vld [vmem:[#allocation167_spill] sm:$0xff]  ;;  %4983 = vmatprep.subr.bf16.mxu1 %v12435_v13  ;;  %v12436_v17 = vld [vmem:[#allocation34_spill] sm:$0xff]  ;;  %v12438_v14 = vld [vmem:[#allocation45_spill] sm:$0xff] }
 0x238   : > { %v9695_v52 = vmul.f32 %v9560_v26, %v12433_v30  ;;  %5046 = vmatpush3.bf16.msra.mxu0 %v12434_v57  ;;  %v9707_v40 = vmul.f32 %v8910_v36, %v12436_v17  ;;  %v12437_v46 = vld [vmem:[#allocation43_spill] sm:$0xff]  ;;  %v9719_v12 = vmul.f32 %v8910_v36, %v12438_v14  ;;  %v12439_v43 = vld [vmem:[#allocation76_spill] sm:$0xff]  ;;  %v12440_v20 = vld [vmem:[#allocation33_spill] sm:$0xff] }
 0x239   : > { %v9711_v7 = vmul.f32 %v8921_v53, %v12437_v46  ;;  %5047 = vmatprep.subr.bf16.mxu0 %v1846_v45  ;;  %v9723_v2 = vmul.f32 %v8921_v53, %v12439_v43  ;;  %1670 = vmatmul.mubr.bf16.gmra.mrb[8].mxu1 %v1534_v11  ;;  %v12441_v45 = vld [vmem:[#allocation77_spill] sm:$0xff]  ;;  %v12442_v8 = vld [vmem:[#allocation42_spill] sm:$0xff]  ;;  %v12444_v13 = vld [vmem:[#allocation44_spill] sm:$0xff]  ;;  %v12445_v53 = vpack.c.bf16 %v9474_v61, %v9456_v15 }
 0x23a   : > { %v9729_v30 = vmul.f32 %v12441_v45, %v12440_v20  ;;  %v12443_v24 = vld [vmem:[#allocation86_spill] sm:$0xff]  ;;  %v9737_v36 = vmul.f32 %v12441_v45, %v12444_v13  ;;  %1638 = vmatmul.mubr.bf16.gmra.mrb[8].mxu0 %v1526_v29  ;;  %v12446_v17 = vld [vmem:[#allocation75_spill] sm:$0xff]  ;;  %v12448_v43 = vld [vmem:[#allocation80_spill] sm:$0xff]  ;;  %v12449_v45 = vpack.c.bf16 %v9505_v58, %v9502_v62  ;;  %v12450_v29 = vpack.c.bf16 %v9515_v60, %v9512_v1 }
 0x23b   : > { %v9733_v57 = vmul.f32 %v12443_v24, %v12442_v8  ;;  %4984 = vmatpush3.bf16.msra.mxu1 %v12445_v53  ;;  %v9746_v46 = vmul.f32 %v12443_v24, %v12446_v17  ;;  %v12447_v14 = vld [vmem:[#allocation111_spill] sm:$0xff]  ;;  %v12452_v8 = vld [vmem:[#allocation58_spill] sm:$0xff]  ;;  %v12453_v24 = vld [vmem:[#allocation117_spill] sm:$0xff] }
 0x23c   : > { %v9750_v20 = vmul.f32 %v12448_v43, %v12447_v14  ;;  %5048 = vmatpush3.bf16.msra.mxu0 %v12449_v45  ;;  %4985 = vmatprep.subr.bf16.mxu1 %v12450_v29  ;;  %v12451_v61 = vld [vmem:[#allocation115_spill] sm:$0xff]  ;;  %v9766_v53 = vmul.f32 %v12448_v43, %v12453_v24  ;;  %v12454_v58 = vld [vmem:[#allocation122_spill] sm:$0xff]  ;;  %v12458_v29 = vld [vmem:[#allocation65_spill] sm:$0xff] }
 0x23d   : > { %v9762_v13 = vmul.f32 %v12452_v8, %v12451_v61  ;;  %5049 = vmatprep.subr.bf16.mxu0 %v1847_v9  ;;  %v9772_v1 = vmul.f32 %v12452_v8, %v12454_v58  ;;  %v12455_v60 = vld [vmem:[#allocation18_spill] sm:$0xff]  ;;  %v12456_v17 = vld [vmem:[#allocation59_spill] sm:$0xff]  ;;  %v12459_v43 = vld [vmem:[#allocation116_spill] sm:$0xff] }
 0x23e   : > { %v9776_v14 = vmul.f32 %v12456_v17, %v12455_v60  ;;  %v12457_v45 = vld [vmem:[#allocation114_spill] sm:$0xff]  ;;  %v9786_v24 = vmul.f32 %v12456_v17, %v12459_v43  ;;  %v12460_v62 = vld [vmem:[#allocation121_spill] sm:$0xff]  ;;  %v12462_v11 = vld [vmem:[#allocation72_spill] sm:$0xff] }
 0x23f   : > { %v9780_v61 = vmul.f32 %v12458_v29, %v12457_v45  ;;  %v9790_v8 = vmul.f32 %v12458_v29, %v12460_v62  ;;  %v12461_v58 = vld [vmem:[#allocation149_spill] sm:$0xff]  ;;  %v12463_v45 = vpack.c.bf16 %v9538_v28, %v9535_v3  ;;  %v12465_v54 = vld [vmem:[#allocation62_spill] sm:$0xff]  ;;  %v12467_v28 = vld [vmem:[#allocation160_spill] sm:$0xff] }
 0x240   : > { %v9794_v60 = vmul.f32 %v12462_v11, %v12461_v58  ;;  %v12464_v43 = vld [vmem:[#allocation153_spill] sm:$0xff]  ;;  %5050 = vmatpush3.bf16.msra.mxu0 %v1839_v4  ;;  %v1489_v9 = vld [vmem:[%s5640_s10 + $0x78] sm:$0xff]  ;;  %v12472_v18 = vld [vmem:[#allocation144_spill] sm:$0xff] }
 0x241   : > { %4986 = vmatpush3.bf16.msra.mxu1 %v12463_v45  ;;  %v9805_v42 = vmul.f32 %v12465_v54, %v12464_v43  ;;  %v12466_v62 = vld [vmem:[#allocation133_spill] sm:$0xff]  ;;  %v9817_v45 = vmul.f32 %v12465_v54, %v12467_v28  ;;  %v12469_v17 = vld [vmem:[#allocation66_spill] sm:$0xff]  ;;  %5051 = vmatprep.subr.bf16.mxu0 %v1848_v6  ;;  %v12477_v38 = vld [vmem:[#allocation188_spill] sm:$0xff] }
 0x242   : > { %v9809_v29 = vmul.f32 %v12462_v11, %v12466_v62  ;;  %4987 = vmatprep.subr.bf16.mxu1 %v1520_v23  ;;  %v1488_v58 = vld [vmem:[%s5640_s10 + $0x70] sm:$0xff]  ;;  %v4830_v37 = vld [vmem:[%s5640_s10 + $0x278] sm:$0xff]  ;;  %v12470_v23 = vld [vmem:[#allocation152_spill] sm:$0xff]  ;;  %v9833_v3 = vmul.f32 %v12469_v17, %v12472_v18 }
 0x243   : > { %v12468_v49 = vld [vmem:[#allocation57_spill] sm:$0xff]  ;;  %v12471_v11 = vld [vmem:[#allocation91_spill] sm:$0xff]  ;;  %v12474_v54 = vld [vmem:[#allocation158_spill] sm:$0xff] }
 0x244   : > { %v9821_v15 = vmul.f32 %v12469_v17, %v12468_v49  ;;  %v4829_v43 = vld [vmem:[%s5640_s10 + $0x270] sm:$0xff]  ;;  %v9829_v62 = vmul.f32 %v12471_v11, %v12470_v23  ;;  %12473 = vst [vmem:[#allocation64_spill] sm:$0xff] %v9833_v3  ;;  %v9837_v28 = vmul.f32 %v12471_v11, %v12474_v54  ;;  %v1513_v49 = vpack.c.bf16 %v1489_v9, %v1488_v58  ;;  %v9851_v17 = vpop.xlane.xlu0 %1226  ;;  %v12481_v9 = vld [vmem:[#allocation183_spill] sm:$0xff]  ;;  %v9862_v25 = vpop.xlane.xlu1 %1229  ;;  %v12498_v23 = vld [vmem:[#allocation178_spill] sm:$0xff] }
 0x245   : > { %4988 = vmatpush3.bf16.msra.mxu1 %v1512_v47  ;;  %5052 = vmatpush3.bf16.msra.mxu0 %v1840_v21  ;;  %v1841_v18 = vpack.c.bf16 %v4830_v37, %v4829_v43  ;;  %12476 = vst [vmem:[#allocation108_spill] sm:$0xff] %v9851_v17  ;;  %vm1260_vm7 = vcmp.ge.f32.partialorder %v12477_v38, %v9851_v17  ;;  %v12478_v19 = vld [vmem:[#allocation185_spill] sm:$0xff]  ;;  %v12479_v47 = vld [vmem:[#allocation184_spill] sm:$0xff]  ;;  %vm12482_vm9 = vnez %v12481_v9  ;;  %12483 = vst [vmem:[#allocation90_spill] sm:$0xff] %v9862_v25 }
 0x246   : > { %12475 = vst [vmem:[#allocation107_spill] sm:$0xff] %v9837_v28  ;;  %4989 = vmatprep.subr.bf16.mxu1 %v1521_v39  ;;  %5053 = vmatprep.subr.bf16.mxu0 %v1849_v41  ;;  %vm1259_vm4 = vcmp.ge.f32.partialorder %v12478_v19, %v9851_v17  ;;  %vm12480_vm10 = vnez %v12479_v47  ;;  %v12484_v21 = vld [vmem:[#allocation192_spill] sm:$0xff]  ;;  %v12485_v39 = vld [vmem:[#allocation193_spill] sm:$0xff]  ;;  %v12486_v41 = vld [vmem:[#allocation191_spill] sm:$0xff] }
 0x247   : > { %vm1292_vm6 = vmand %vm12480_vm10, %vm1260_vm7  ;;  %vm1261_vm3 = vcmp.ge.f32.partialorder %v12484_v21, %v9862_v25  ;;  %vm1262_vm13 = vcmp.ge.f32.partialorder %v12485_v39, %v9862_v25  ;;  %vm12487_vm11 = vnez %v12486_v41  ;;  %v12488_v58 = vld [vmem:[#allocation23_spill] sm:$0xff]  ;;  %v12492_v19 = vld [vmem:[#allocation190_spill] sm:$0xff] }
 0x248   : > { %vm1291_vm2 = vmand %vm12482_vm9, %vm1259_vm4  ;;  %v4780_v55 = vsel %vm1292_vm6, 1.0, %v12368_v16  ;;  %v12489_v11 = vld [vmem:[#allocation19_spill] sm:$0xff]  ;;  %vm12493_vm14 = vnez %v12492_v19  ;;  %v12494_v47 = vld [vmem:[#allocation20_spill] sm:$0xff] }
 0x249   : > { %4990 = vmatpush3.bf16.msra.mxu1 %v1513_v49  ;;  %5054 = vmatpush3.bf16.msra.mxu0 %v1841_v18  ;;  %v4779_v37 = vsel %vm1291_vm2, 1.0, %v12368_v16  ;;  %vm1294_vm0 = vmand %vm12487_vm11, %vm1262_vm13  ;;  %v1420_v43 = vmul.f32 %v4780_v55, %v12488_v58  ;;  %v9873_v54 = vmul.f32 %v4780_v55, %v12489_v11  ;;  %v12490_v49 = vld [vmem:[#allocation180_spill] sm:$0xff]  ;;  %v12495_v21 = vld [vmem:[#allocation55_spill] sm:$0xff] }
 0x24a   : > { %v9876_v18 = vmul.f32 %v4780_v55, %v12490_v49  ;;  %v4782_v38 = vsel %vm1294_vm0, 1.0, %v12368_v16  ;;  %vm1293_vm5 = vmand %vm12493_vm14, %vm1261_vm3  ;;  %v1419_v9 = vmul.f32 %v4779_v37, %v12494_v47  ;;  %v9883_v39 = vmul.f32 %v4779_v37, %v12495_v21  ;;  %v12496_v41 = vld [vmem:[#allocation179_spill] sm:$0xff]  ;;  %v12497_v58 = vld [vmem:[#allocation182_spill] sm:$0xff] }
 0x24b   : > { %v9886_v4 = vmul.f32 %v4779_v37, %v12496_v41  ;;  %v1422_v6 = vmul.f32 %v4782_v38, %v12497_v58  ;;  %v4781_v11 = vsel %vm1293_vm5, 1.0, %v12368_v16  ;;  %v9891_v55 = vmul.f32 %v4782_v38, %v12498_v23  ;;  %v12499_v49 = vld [vmem:[#allocation187_spill] sm:$0xff]  ;;  %v12500_v19 = vld [vmem:[#allocation181_spill] sm:$0xff]  ;;  %v12502_v21 = vld [vmem:[#allocation186_spill] sm:$0xff] }
 0x24c   : > { %12491 = vst [vmem:[#allocation15_spill] sm:$0xff] %v9876_v18  ;;  %v9894_v25 = vmul.f32 %v4782_v38, %v12499_v49  ;;  %v1421_v17 = vmul.f32 %v4781_v11, %v12500_v19  ;;  %v12501_v3 = vld [vmem:[#allocation25_spill] sm:$0xff]  ;;  %v9901_v28 = vmul.f32 %v4781_v11, %v12502_v21  ;;  %v12506_v19 = vld [vmem:[#allocation83_spill] sm:$0xff] }
 0x24d   : > { %v9898_v47 = vmul.f32 %v4781_v11, %v12501_v3  ;;  %v1537_v37 = vpack.c.bf16 %v1422_v6, %v1420_v43  ;;  %v12503_v3 = vpack.c.bf16 %v9523_v22, %v9519_v0  ;;  %v12504_v6 = vld [vmem:[#allocation92_spill] sm:$0xff]  ;;  %v12505_v43 = vld [vmem:[#allocation70_spill] sm:$0xff]  ;;  %v1364_v21 = vmul.f32 %v9160_v63, %v12506_v19  ;;  %v12507_v58 = vld [vmem:[#allocation135_spill] sm:$0xff] }
 0x24e   : > { %v1536_v23 = vpack.c.bf16 %v1421_v17, %v1419_v9  ;;  %v1361_v11 = vmul.f32 %v12505_v43, %v12504_v6  ;;  %v1366_v17 = vmul.f32 %v9178_v27, %v12507_v58  ;;  %v12508_v9 = vld [vmem:[#allocation53_spill] sm:$0xff]  ;;  %v12511_v0 = vld [vmem:[#allocation134_spill] sm:$0xff]  ;;  %v12513_v63 = vld [vmem:[#allocation31_spill] sm:$0xff] }
 0x24f   : > { %1677 = vmatprep.mubr.bf16.mxu1 %v1537_v37  ;;  %v12509_v38 = vld [vmem:[#allocation85_spill] sm:$0xff]  ;;  %v1370_v43 = vmul.f32 %v9466_v5, %v12513_v63  ;;  %v12532_v63 = vld [vmem:[#allocation60_spill] sm:$0xff] }
 0x250   : > { %1678 = vmatmul.mubr.bf16.gmra.mrb[12].mxu1 %v1536_v23  ;;  %v1359_v41 = vmul.f32 %v12509_v38, %v12508_v9  ;;  %v1458_v49 = vpack.c.bf16 %v1366_v17, %v1364_v21  ;;  %v12510_v37 = vld [vmem:[#allocation73_spill] sm:$0xff]  ;;  %v1365_v23 = vmul.f32 %v9188_v59, %v12511_v0  ;;  %v12516_v59 = vld [vmem:[#allocation51_spill] sm:$0xff]  ;;  %v12521_v9 = vld [vmem:[#allocation30_spill] sm:$0xff] }
 0x251   : > { %1718 = vmatprep.mubr.bf16.mxu1 %v12503_v3  ;;  %v1363_v22 = vmul.f32 %v9183_v51, %v12510_v37  ;;  %v12512_v3 = vld [vmem:[#allocation46_spill] sm:$0xff]  ;;  %v12515_v38 = vld [vmem:[#allocation17_spill] sm:$0xff] }
 0x252   : > { %v1455_v18 = vpack.c.bf16 %v1361_v11, %v1359_v41  ;;  %v1368_v6 = vmul.f32 %v9453_v10, %v12512_v3  ;;  %v12514_v41 = vld [vmem:[#allocation74_spill] sm:$0xff]  ;;  %v12517_v10 = vld [vmem:[#allocation41_spill] sm:$0xff] }
 0x253   : > { %v1457_v27 = vpack.c.bf16 %v1365_v23, %v1363_v22  ;;  %v12520_v17 = vld [vmem:[#allocation29_spill] sm:$0xff]  ;;  %v12524_v23 = vld [vmem:[#allocation88_spill] sm:$0xff]  ;;  %v12531_v37 = vld [vmem:[#allocation82_spill] sm:$0xff] }
 0x254   : > { %v1460_v58 = vpack.c.bf16 %v1370_v43, %v1368_v6  ;;  %v12523_v22 = vld [vmem:[#allocation21_spill] sm:$0xff]  ;;  %v12526_v43 = vld [vmem:[#allocation24_spill] sm:$0xff] }
 0x258   : > { %1719 = vmatmul.mubr.bf16.vlgmr.msra.gmra.mrb[16].mxu1 %v1455_v18  ;;  %v1367_v18 = vmul.f32 %v9471_v48, %v12514_v41 }
 0x259   : > { %1726 = vmatprep.mubr.bf16.mxu1 %v1458_v49  ;;  %v1369_v49 = vmul.f32 %v9560_v26, %v12515_v38  ;;  %v12528_v38 = vld [vmem:[#allocation26_spill] sm:$0xff] }
 0x25b   : > { %v1459_v51 = vpack.c.bf16 %v1369_v49, %v1367_v18 }
 0x260   : > { %1727 = vmatmul.mubr.bf16.gmra.mrb[20].mxu1 %v1457_v27 }
 0x261   : > { %1734 = vmatprep.mubr.bf16.mxu1 %v1460_v58  ;;  %v12527_v58 = vld [vmem:[#allocation37_spill] sm:$0xff] }
 0x264   : > { %v9934_v11 = vpop.xlane.xlu0 %1202 }
 0x265   : > { %vm1244_vm7 = vcmp.ge.f32.partialorder %v12516_v59, %v9934_v11  ;;  %vm1243_vm4 = vcmp.ge.f32.partialorder %v12517_v10, %v9934_v11  ;;  %v12530_v10 = vld [vmem:[#allocation87_spill] sm:$0xff] }
 0x266   : > { %vm1276_vm10 = vmand %vm8562_vm8, %vm1244_vm7 }
 0x267   : > { %vm1275_vm6 = vmand %vm8537_vm15, %vm1243_vm4  ;;  %v4764_v48 = vsel %vm1276_vm10, 1.0, %v12368_v16  ;;  %vm12571_vm10 = vcmask 64512  }
 0x268   : > { %1735 = vmatmul.mubr.bf16.gmra.mrb[24].mxu1 %v1459_v51  ;;  %v4763_v26 = vsel %vm1275_vm6, 1.0, %v12368_v16  ;;  %v1404_v0 = vmul.f32 %v4764_v48, %v12523_v22  ;;  %v1372_v3 = vmul.f32 %v4764_v48, %v12524_v23  ;;  %v12529_v51 = vld [vmem:[#allocation189_spill] sm:$0xff] }
 0x269   : > { %v1403_v27 = vmul.f32 %v4763_v26, %v12526_v43  ;;  %v1371_v5 = vmul.f32 %v4763_v26, %v12530_v10  ;;  %v12533_v43 = vpack.c.bf16 %v9549_v35, %v12532_v63  ;;  %v12540_v35 = vpack.c.bf16 %v9762_v13, %v9750_v20 }
 0x26a   : > { %v12546_v20 = vpack.c.bf16 %v9805_v42, %v9794_v60  ;;  %v12552_v60 = vpack.c.bf16 %v9723_v2, %v9719_v12  ;;  %v12557_v12 = vpack.c.bf16 %v9817_v45, %v9809_v29  ;;  %v12558_v2 = vld [vmem:[#allocation107_spill] sm:$0xff] }
 0x270   : > { %v9945_v21 = vpop.xlane.xlu1 %1205 }
 0x271   : > { %vm1245_vm9 = vcmp.ge.f32.partialorder %v12520_v17, %v9945_v21  ;;  %vm1246_vm2 = vcmp.ge.f32.partialorder %v12521_v9, %v9945_v21 }
 0x272   : > { %vm1278_vm3 = vmand %vm8677_vm12, %vm1246_vm2 }
 0x273   : > { %v4766_v6 = vsel %vm1278_vm3, 1.0, %v12368_v16  ;;  %vm1277_vm15 = vmand %vm8659_vm1, %vm1245_vm9 }
 0x274   : > { %v1406_v41 = vmul.f32 %v4766_v6, %v12527_v58  ;;  %v4765_v18 = vsel %vm1277_vm15, 1.0, %v12368_v16  ;;  %v1374_v49 = vmul.f32 %v4766_v6, %v12528_v38  ;;  %v12534_v58 = vpack.c.bf16 %v9711_v7, %v9707_v40  ;;  %v12535_v38 = vld [vmem:[#allocation103_spill] sm:$0xff]  ;;  %vm12574_vm2 = vmmov %vm12571_vm10 }
 0x275   : > { %v1405_v59 = vmul.f32 %v4765_v18, %v12529_v51  ;;  %v1373_v22 = vmul.f32 %v4765_v18, %v12531_v37  ;;  %v12536_v51 = vld [vmem:[#allocation78_spill] sm:$0xff]  ;;  %v12541_v40 = vpack.c.bf16 %v9654_v31, %v9634_v34  ;;  %v12542_v7 = vpack.c.bf16 %v9681_v56, %v9677_v50  ;;  %v12549_v56 = vld [vmem:[#allocation39_spill] sm:$0xff] }
 0x276   : > { %v1529_v19 = vpack.c.bf16 %v1406_v41, %v1404_v0  ;;  %v1462_v17 = vpack.c.bf16 %v1374_v49, %v1372_v3  ;;  %v12537_v0 = vpack.c.bf16 %v12535_v38, %v12536_v51  ;;  %v12538_v3 = vpack.c.bf16 %v9614_v32, %v9610_v33  ;;  %v12544_v32 = vld [vmem:[#allocation81_spill] sm:$0xff]  ;;  %v12548_v31 = vld [vmem:[#allocation22_spill] sm:$0xff] }
 0x277   : > { %v1528_v9 = vpack.c.bf16 %v1405_v59, %v1403_v27  ;;  %v1461_v23 = vpack.c.bf16 %v1373_v22, %v1371_v5  ;;  %v12539_v27 = vpack.c.bf16 %v9733_v57, %v9729_v30  ;;  %v12543_v33 = vpack.c.bf16 %v9780_v61, %v9776_v14  ;;  %v12545_v30 = vld [vmem:[#allocation40_spill] sm:$0xff] }
 0x278   : > { %1645 = vmatprep.mubr.bf16.mxu0 %v1529_v19  ;;  %1742 = vmatprep.mubr.bf16.mxu1 %v1462_v17  ;;  %v1436_v41 = vmul.f32 %v4764_v48, %v12544_v32  ;;  %v1438_v57 = vmul.f32 %v4766_v6, %v12545_v30  ;;  %v12547_v34 = vpack.c.bf16 %v9695_v52, %v9691_v44 }
 0x279   : > { %1646 = vmatmul.mubr.bf16.gmra.mrb[12].mxu0 %v1528_v9  ;;  %1743 = vmatmul.mubr.bf16.gmra.mrb[28].mxu1 %v1461_v23  ;;  %v1435_v50 = vmul.f32 %v4763_v26, %v12548_v31  ;;  %v1437_v49 = vmul.f32 %v4765_v18, %v12549_v56  ;;  %v12550_v14 = vpack.c.bf16 %v9829_v62, %v9821_v15 }
 0x27a   : > { %1882 = vmatprep.mubr.bf16.mxu0 %v12533_v43  ;;  %1750 = vmatprep.mubr.bf16.mxu1 %v12534_v58  ;;  %v1790_v13 = vpack.c.bf16 %v1438_v57, %v1436_v41  ;;  %v12551_v61 = vpack.c.bf16 %v9891_v55, %v9873_v54  ;;  %v12553_v44 = vpack.c.bf16 %v9898_v47, %v9883_v39  ;;  %v12559_v54 = vld [vmem:[#allocation64_spill] sm:$0xff]  ;;  %v12561_v55 = vld [vmem:[#allocation15_spill] sm:$0xff] }
 0x27b   : > { %v1789_v42 = vpack.c.bf16 %v1437_v49, %v1435_v50  ;;  %v12554_v52 = vpack.c.bf16 %v9746_v46, %v9737_v36  ;;  %v12555_v15 = vpack.c.bf16 %v9772_v1, %v9766_v53  ;;  %v12556_v62 = vpack.c.bf16 %v9790_v8, %v9786_v24 }
 0x27c   : > { %v12560_v39 = vpack.c.bf16 %v12558_v2, %v12559_v54  ;;  %v12562_v36 = vpack.c.bf16 %v9894_v25, %v12561_v55  ;;  %v12563_v46 = vpack.c.bf16 %v9901_v28, %v9886_v4 }
 0x281   : > { %1883 = vmatmul.mubr.bf16.vlgmr.msra.gmra.mrb[16].mxu0 %v12537_v0  ;;  %1751 = vmatmul.mubr.bf16.gmra.mrb[32].mxu1 %v12539_v27 }
 0x282   : > { %1890 = vmatprep.mubr.bf16.mxu0 %v12538_v3  ;;  %1758 = vmatprep.mubr.bf16.mxu1 %v12540_v35 }
 0x289   : > { %1891 = vmatmul.mubr.bf16.gmra.mrb[20].mxu0 %v12541_v40  ;;  %1759 = vmatmul.mubr.bf16.gmra.mrb[36].mxu1 %v12543_v33 }
 0x28a   : > { %1898 = vmatprep.mubr.bf16.mxu0 %v12542_v7  ;;  %1766 = vmatprep.mubr.bf16.mxu1 %v12546_v20 }
 0x291   : > { %1899 = vmatmul.mubr.bf16.gmra.mrb[24].mxu0 %v12547_v34  ;;  %1767 = vmatmul.mubr.bf16.gmra.mrb[40].mxu1 %v12550_v14 }
 0x292   : > { %1906 = vmatprep.mubr.bf16.mxu0 %v1790_v13  ;;  %1774 = vmatprep.mubr.bf16.mxu1 %v12551_v61 }
 0x299   : > { %1907 = vmatmul.mubr.bf16.gmra.mrb[28].mxu0 %v1789_v42  ;;  %1775 = vmatmul.mubr.bf16.gmra.mrb[44].mxu1 %v12553_v44 }
 0x29a   : > { %1914 = vmatprep.mubr.bf16.mxu0 %v12552_v60 }
 0x2a1   : > { %1915 = vmatmul.mubr.bf16.gmra.mrb[32].mxu0 %v12554_v52 }
 0x2a2   : > { %1922 = vmatprep.mubr.bf16.mxu0 %v12555_v15 }
 0x2a9   : > { %1923 = vmatmul.mubr.bf16.gmra.mrb[36].mxu0 %v12556_v62 }
 0x2aa   : > { %1930 = vmatprep.mubr.bf16.mxu0 %v12557_v12 }
 0x2b1   : > { %1931 = vmatmul.mubr.bf16.gmra.mrb[40].mxu0 %v12560_v39 }
 0x2b2   : > { %1938 = vmatprep.mubr.bf16.mxu0 %v12562_v36 }
 0x2b9   : > { %1939 = vmatmul.mubr.bf16.gmra.mrb[44].mxu0 %v12563_v46 }
 0x2f2   : > { %v4951_v53 = vpop.f32.mrb[0].mxu1 }
 0x2f3   : > { %v4952_v24 = vpop.f32.mrb[1].mxu1 }
 0x2f4   : > { %v10036_v47 = vadd.f32 %v4952_v24, %v4951_v53  ;;  %v4954_v29 = vpop.f32.mrb[2].mxu1 }
 0x2f5   : > { %v4955_v26 = vpop.f32.mrb[3].mxu1 }
 0x2f6   : > { %v4927_v1 = vpop.f32.mrb[0].mxu0  ;;  %v10038_v18 = vadd.f32 %v4955_v26, %v4954_v29  ;;  %v10062_v26 = vpop.xlane.xlu1 %2000 }
 0x2f7   : > { %v4928_v8 = vpop.f32.mrb[1].mxu0 }
 0x2f8   : > { %v4929_v45 = vadd.f32 %v4928_v8, %v4927_v1  ;;  %v4930_v48 = vpop.f32.mrb[2].mxu0 }
 0x2f9   : > { %v4931_v6 = vpop.f32.mrb[3].mxu0 }
 0x2fa   : > { %v4932_v59 = vadd.f32 %v4931_v6, %v4930_v48 }
 0x304   : > { %v4957_v25 = vpop.f32.mrb[4].mxu1 }
 0x305   : > { %v4933_v10 = vpop.f32.mrb[4].mxu0  ;;  %v4958_v5 = vpop.f32.mrb[5].mxu1 }
 0x306   : > { %v4934_v19 = vpop.f32.mrb[5].mxu0  ;;  %v10040_v4 = vadd.f32 %v4958_v5, %v4957_v25  ;;  %v4960_v28 = vpop.f32.mrb[6].mxu1  ;;  %v12564_v5 = vld [vmem:[#allocation52_spill] sm:$0xff] }
 0x307   : > { %v4935_v17 = vadd.f32 %v4934_v19, %v4933_v10  ;;  %v4936_v9 = vpop.f32.mrb[6].mxu0  ;;  %v4961_v37 = vpop.f32.mrb[7].mxu1 }
 0x308   : > { %v4937_v22 = vpop.f32.mrb[7].mxu0  ;;  %v10042_v23 = vadd.f32 %v4961_v37, %v4960_v28 }
 0x309   : > { %v4938_v63 = vadd.f32 %v4937_v22, %v4936_v9  ;;  %v12565_v22 = vld [vmem:[#allocation68_spill] sm:$0xff] }
 0x30a   : > { %vm2045_vm1 = vcmp.gt.f32.partialorder %v12565_v22, %v10062_v26  ;;  %vm2109_vm11 = vcmp.ge.f32.partialorder %v12565_v22, %v10062_v26 }
 0x30c   : > { %v4963_v43 = vpop.f32.mrb[8].mxu1 }
 0x30d   : > { %v4939_v58 = vpop.f32.mrb[8].mxu0  ;;  %v4964_v38 = vpop.f32.mrb[9].mxu1 }
 0x30e   : > { %v4940_v51 = vpop.f32.mrb[9].mxu0  ;;  %v10044_v0 = vadd.f32 %v4964_v38, %v4963_v43  ;;  %v4966_v3 = vpop.f32.mrb[10].mxu1 }
 0x30f   : > { %v4941_v27 = vadd.f32 %v4940_v51, %v4939_v58  ;;  %v4942_v35 = vpop.f32.mrb[10].mxu0  ;;  %v4967_v40 = vpop.f32.mrb[11].mxu1 }
 0x310   : > { %v4943_v7 = vpop.f32.mrb[11].mxu0  ;;  %v10046_v33 = vadd.f32 %v4967_v40, %v4966_v3  ;;  %v4848_v3 = vsel %vm2045_vm1, 1.0, %v12368_v16 }
 0x311   : > { %v4944_v32 = vadd.f32 %v4943_v7, %v4942_v35  ;;  %v10076_v7 = vpop.xlane.xlu1 %2006 }
 0x323   : > { %v4969_v41 = vpop.f32.mrb[12].mxu1 }
 0x324   : > { %v4970_v30 = vpop.f32.mrb[13].mxu1 }
 0x325   : > { %v10048_v57 = vadd.f32 %v4970_v30, %v4969_v41  ;;  %v4972_v20 = vpop.f32.mrb[14].mxu1  ;;  %v12566_v41 = vld [vmem:[#allocation177_spill] sm:$0xff] }
 0x326   : > { %v4973_v13 = vpop.f32.mrb[15].mxu1 }
 0x327   : > { %v10050_v34 = vadd.f32 %v4973_v13, %v4972_v20 }
 0x32b   : > { %v4991_v31 = vpop.f32.mrb[16].mxu1 }
 0x32c   : > { %v4992_v50 = vpop.f32.mrb[17].mxu1 }
 0x32d   : > { %v4993_v56 = vadd.f32 %v4992_v50, %v4991_v31  ;;  %v4994_v49 = vpop.f32.mrb[18].mxu1  ;;  %v2093_v31 = vsub.f32 1.0, %v4848_v3 }
 0x32e   : > { %v4995_v14 = vpop.f32.mrb[19].mxu1 }
 0x32f   : > { %v1721_v61 = vadd.f32 %v4993_v56, %v4929_v45  ;;  %v4996_v42 = vadd.f32 %v4995_v14, %v4994_v49  ;;  %v10060_v45 = vpop.xlane.xlu0 %1997 }
 0x330   : > { %vm2044_vm8 = vcmp.gt.f32.partialorder %v12564_v5, %v10060_v45  ;;  %vm2108_vm12 = vcmp.ge.f32.partialorder %v12564_v5, %v10060_v45 }
 0x331   : > { %v1724_v60 = vadd.f32 %v4996_v42, %v4932_v59  ;;  %v4847_v43 = vsel %vm2044_vm8, 1.0, %v12368_v16 }
 0x332   : > { %v2092_v40 = vsub.f32 1.0, %v4847_v43 }
 0x333   : > { %v4997_v44 = vpop.f32.mrb[20].mxu1  ;;  %v10071_v51 = vpop.xlane.xlu0 %2003 }
 0x334   : > { %v4998_v52 = vpop.f32.mrb[21].mxu1  ;;  %vm2046_vm13 = vcmp.gt.f32.partialorder %v12566_v41, %v10071_v51  ;;  %vm2110_vm14 = vcmp.ge.f32.partialorder %v12566_v41, %v10071_v51 }
 0x335   : > { %v4999_v15 = vadd.f32 %v4998_v52, %v4997_v44  ;;  %v5000_v62 = vpop.f32.mrb[22].mxu1  ;;  %v4863_v52 = vsel %vm2108_vm12, 1.0, %v12368_v16  ;;  %vm12576_vm12 = vmmov %vm12574_vm2 }
 0x336   : > { %v5001_v12 = vpop.f32.mrb[23].mxu1 }
 0x337   : > { %v10052_v2 = vadd.f32 %v4999_v15, %v4935_v17  ;;  %v5002_v54 = vadd.f32 %v5001_v12, %v5000_v62  ;;  %v5245_v15 = vld [vmem:[#allocation2] sm:$0xff]  ;;  %v4849_v12 = vsel %vm2046_vm13, 1.0, %v12368_v16 }
 0x338   : > { %v2172_v62 = vmul.f32 %v5245_v15, %v2092_v40 }
 0x339   : > { %v10054_v39 = vadd.f32 %v5002_v54, %v4938_v63  ;;  %v12567_v54 = vld [vmem:[#allocation69_spill] sm:$0xff] }
 0x33a   : > { %vm2047_vm0 = vcmp.gt.f32.partialorder %v12567_v54, %v10076_v7  ;;  %vm2111_vm4 = vcmp.ge.f32.partialorder %v12567_v54, %v10076_v7 }
 0x33b   : > { %v5003_v55 = vpop.f32.mrb[24].mxu1 }
 0x33c   : > { %v5004_v36 = vpop.f32.mrb[25].mxu1 }
 0x33d   : > { %v5005_v46 = vadd.f32 %v5004_v36, %v5003_v55  ;;  %v5006_v53 = vpop.f32.mrb[26].mxu1 }
 0x33e   : > { %v5007_v1 = vpop.f32.mrb[27].mxu1 }
 0x33f   : > { %v10056_v24 = vadd.f32 %v5005_v46, %v4941_v27  ;;  %v5008_v8 = vadd.f32 %v5007_v1, %v5006_v53 }
 0x341   : > { %v10058_v29 = vadd.f32 %v5008_v8, %v4944_v32  ;;  %v4864_v8 = vsel %vm2109_vm11, 1.0, %v12368_v16 }
 0x34c   : > { %v4945_v48 = vpop.f32.mrb[12].mxu0  ;;  %v5009_v10 = vpop.f32.mrb[28].mxu1 }
 0x34d   : > { %v4946_v6 = vpop.f32.mrb[13].mxu0  ;;  %v5010_v28 = vpop.f32.mrb[29].mxu1 }
 0x34e   : > { %v4947_v59 = vadd.f32 %v4946_v6, %v4945_v48  ;;  %v4948_v25 = vpop.f32.mrb[14].mxu0  ;;  %v5011_v9 = vadd.f32 %v5010_v28, %v5009_v10  ;;  %v5012_v37 = vpop.f32.mrb[30].mxu1  ;;  %v5246_v48 = vld [vmem:[#allocation2 + $0x8] sm:$0xff] }
 0x34f   : > { %v4949_v19 = vpop.f32.mrb[15].mxu0  ;;  %v5013_v63 = vpop.f32.mrb[31].mxu1  ;;  %v2173_v6 = vmul.f32 %v5246_v48, %v2093_v31  ;;  %v4865_v31 = vsel %vm2110_vm14, 1.0, %v12368_v16 }
 0x350   : > { %v4950_v17 = vadd.f32 %v4949_v19, %v4948_v25  ;;  %v10069_v58 = vadd.f32 %v5011_v9, %v4947_v59  ;;  %v5014_v38 = vadd.f32 %v5013_v63, %v5012_v37  ;;  %v10097_v59 = vpop.xlane.xlu0 %2009  ;;  %v4850_v25 = vsel %vm2047_vm0, 1.0, %v12368_v16  ;;  %v10107_v28 = vpop.xlane.xlu1 %2012  ;;  %v12568_v9 = vld [vmem:[#allocation106_spill] sm:$0xff]  ;;  %v12569_v37 = vld [vmem:[#allocation13_spill] sm:$0xff]  ;;  %vm12578_vm0 = vmmov %vm12574_vm2 }
 0x351   : > { %vm2048_vm5 = vcmp.gt.f32.partialorder %v12568_v9, %v10097_v59  ;;  %vm12570_vm7 = vcmp.eq.s32.totalorder %v12569_v37, 4  ;;  %vm2112_vm3 = vcmp.ge.f32.partialorder %v12568_v9, %v10097_v59 }
 0x352   : > { %v10074_v35 = vadd.f32 %v5014_v38, %v4950_v17  ;;  %vm12572_vm6 = vmmov %vm12570_vm7 }
 0x353   : > { %vm12575_vm8 = vmmov %vm12572_vm6 }
 0x354   : > { %v5055_v27 = vpop.f32.mrb[16].mxu0  ;;  %v5015_v13 = vpop.f32.mrb[32].mxu1  ;;  %vm12577_vm13 = vmmov %vm12572_vm6 }
 0x355   : > { %v5056_v32 = vpop.f32.mrb[17].mxu0  ;;  %v5016_v56 = vpop.f32.mrb[33].mxu1 }
 0x356   : > { %v5057_v30 = vadd.f32 %v5056_v32, %v5055_v27  ;;  %v5058_v20 = vpop.f32.mrb[18].mxu0  ;;  %v5017_v42 = vadd.f32 %v5016_v56, %v5015_v13  ;;  %v5018_v44 = vpop.f32.mrb[34].mxu1  ;;  %v2095_v27 = vsub.f32 1.0, %v4850_v25 }
 0x357   : > { %v5059_v50 = vpop.f32.mrb[19].mxu0  ;;  %v5019_v55 = vpop.f32.mrb[35].mxu1 }
 0x358   : > { %v1947_v49 = vadd.f32 %v5057_v30, %v1721_v61  ;;  %v5060_v14 = vadd.f32 %v5059_v50, %v5058_v20  ;;  %v10089_v53 = vadd.f32 %v5017_v42, %v10036_v47  ;;  %v5020_v1 = vadd.f32 %v5019_v55, %v5018_v44  ;;  %v5247_v50 = vld [vmem:[#allocation2 + $0x10] sm:$0xff]  ;;  %v5248_v55 = vld [vmem:[#allocation2 + $0x18] sm:$0xff]  ;;  %v10150_v48 = vpop.xlane.xlu1 %2018 }
 0x359   : > { %v2156_v61 = vmax.f32 %v10060_v45, %v12564_v5  ;;  %v2157_v45 = vmax.f32 %v10062_v26, %v12565_v22  ;;  %v2094_v5 = vsub.f32 1.0, %v4849_v12  ;;  %v4866_v12 = vsel %vm2111_vm4, 1.0, %v12368_v16 }
 0x35a   : > { %v2188_v36 = vmul.f32 %v4863_v52, %v1947_v49  ;;  %v1948_v46 = vadd.f32 %v5060_v14, %v1724_v60  ;;  %v10101_v47 = vadd.f32 %v5020_v1, %v10038_v18  ;;  %v4851_v49 = vsel %vm2048_vm5, 1.0, %v12368_v16  ;;  %v12573_v14 = vld [vmem:[#allocation104_spill] sm:$0xff]  ;;  %vm12579_vm5 = vmmov %vm12572_vm6 }
 0x35b   : > { %v2174_v56 = vmul.f32 %v5247_v50, %v2094_v5  ;;  %vm2049_vm9 = vcmp.gt.f32.partialorder %v12573_v14, %v10107_v28  ;;  %vm2113_vm1 = vcmp.ge.f32.partialorder %v12573_v14, %v10107_v28  ;;  %vm2051_vm11 = vcmp.gt.f32.partialorder %v9945_v21, %v10150_v48 }
 0x35c   : > { %v2204_v10 = vadd.f32 %v2188_v36, %v2172_v62  ;;  %v2189_v60 = vmul.f32 %v4864_v8, %v1948_v46  ;;  %v5061_v19 = vpop.f32.mrb[20].mxu0  ;;  %v5021_v3 = vpop.f32.mrb[36].mxu1  ;;  %v2158_v62 = vmax.f32 %v10071_v51, %v12566_v41  ;;  %v2175_v36 = vmul.f32 %v5248_v55, %v2095_v27 }
 0x35d   : > { %v5062_v17 = vpop.f32.mrb[21].mxu0  ;;  %v5022_v22 = vpop.f32.mrb[37].mxu1  ;;  %v4852_v1 = vsel %vm2049_vm9, 1.0, %v12368_v16  ;;  %v2159_v51 = vmax.f32 %v10076_v7, %v12567_v54  ;;  %v2096_v41 = vsub.f32 1.0, %v4851_v49 }
 0x35e   : > { %v2221_v63 = vsel %vm12570_vm7, %v2156_v61, %v2204_v10  ;;  %v2205_v43 = vadd.f32 %v2189_v60, %v2173_v6  ;;  %v5063_v38 = vadd.f32 %v5062_v17, %v5061_v19  ;;  %v5064_v18 = vpop.f32.mrb[22].mxu0  ;;  %v5023_v20 = vadd.f32 %v5022_v22, %v5021_v3  ;;  %v5024_v13 = vpop.f32.mrb[38].mxu1  ;;  %v5249_v3 = vld [vmem:[#allocation2 + $0x20] sm:$0xff] }
 0x35f   : > { %2237 = vst.msk [vmem:[#allocation2] sm:$0xff] %vm12571_vm10, %v2221_v63  ;;  %v5065_v26 = vpop.f32.mrb[23].mxu0  ;;  %v10140_v46 = vpop.xlane.xlu0 %2015  ;;  %v2176_v27 = vmul.f32 %v5249_v3, %v2096_v41  ;;  %vm2115_vm7 = vcmp.ge.f32.partialorder %v9945_v21, %v10150_v48  ;;  %vm12581_vm10 = vmmov %vm12578_vm0 }
 0x360   : > { %v2222_v40 = vsel %vm12572_vm6, %v2157_v45, %v2205_v43  ;;  %v1949_v32 = vadd.f32 %v5063_v38, %v10052_v2  ;;  %v5066_v30 = vadd.f32 %v5065_v26, %v5064_v18  ;;  %v5025_v2 = vpop.f32.mrb[39].mxu1  ;;  %v10132_v52 = vadd.f32 %v5023_v20, %v10040_v4  ;;  %vm12582_vm6 = vmmov %vm12579_vm5 }
 0x361   : > { %2238 = vst.msk [vmem:[#allocation2 + $0x8] sm:$0xff] %vm12574_vm2, %v2222_v40  ;;  %v5026_v15 = vadd.f32 %v5025_v2, %v5024_v13  ;;  %vm2050_vm15 = vcmp.gt.f32.partialorder %v9934_v11, %v10140_v46  ;;  %v2097_v45 = vsub.f32 1.0, %v4852_v1  ;;  %v4867_v18 = vsel %vm2112_vm3, 1.0, %v12368_v16  ;;  %vm12584_vm2 = vmmov %vm12578_vm0 }
 0x362   : > { %v2190_v42 = vmul.f32 %v4865_v31, %v1949_v32  ;;  %v1950_v44 = vadd.f32 %v5066_v30, %v10054_v39  ;;  %v4853_v26 = vsel %vm2050_vm15, 1.0, %v12368_v16  ;;  %v2160_v20 = vmax.f32 %v10097_v59, %v12568_v9  ;;  %v5250_v31 = vld [vmem:[#allocation2 + $0x28] sm:$0xff]  ;;  %vm12585_vm15 = vmmov %vm12579_vm5 }
 0x363   : > { %v10144_v4 = vadd.f32 %v5026_v15, %v10042_v23  ;;  %v4868_v13 = vsel %vm2113_vm1, 1.0, %v12368_v16  ;;  %v2177_v50 = vmul.f32 %v5250_v31, %v2097_v45  ;;  %v10184_v49 = vpop.xlane.xlu0 %2021  ;;  %v2161_v59 = vmax.f32 %v10107_v28, %v12573_v14  ;;  %vm12586_vm1 = vmmov %vm12578_vm0 }
 0x364   : > { %v2206_v61 = vadd.f32 %v2190_v42, %v2174_v56  ;;  %v2191_v39 = vmul.f32 %v4866_v12, %v1950_v44  ;;  %v5067_v8 = vpop.f32.mrb[24].mxu0  ;;  %v5027_v19 = vpop.f32.mrb[40].mxu1  ;;  %v4854_v56 = vsel %vm2051_vm11, 1.0, %v12368_v16  ;;  %v2098_v9 = vsub.f32 1.0, %v4853_v26 }
 0x365   : > { %v5068_v6 = vpop.f32.mrb[25].mxu0  ;;  %v5028_v54 = vpop.f32.mrb[41].mxu1  ;;  %vm2114_vm14 = vcmp.ge.f32.partialorder %v9934_v11, %v10140_v46 }
 0x366   : > { %v2223_v25 = vsel %vm12575_vm8, %v2158_v62, %v2206_v61  ;;  %v2207_v10 = vadd.f32 %v2191_v39, %v2175_v36  ;;  %v5069_v60 = vadd.f32 %v5068_v6, %v5067_v8  ;;  %v5070_v23 = vpop.f32.mrb[26].mxu0  ;;  %v5029_v43 = vadd.f32 %v5028_v54, %v5027_v19  ;;  %v5030_v38 = vpop.f32.mrb[42].mxu1 }
 0x367   : > { %2239 = vst.msk [vmem:[#allocation2 + $0x10] sm:$0xff] %vm12576_vm12, %v2223_v25  ;;  %v5071_v7 = vpop.f32.mrb[27].mxu0  ;;  %v10191_v44 = vpop.xlane.xlu1 %2024  ;;  %v2099_v61 = vsub.f32 1.0, %v4854_v56  ;;  %v4869_v25 = vsel %vm2114_vm14, 1.0, %v12368_v16 }
 0x368   : > { %v2224_v5 = vsel %vm12577_vm13, %v2159_v51, %v2207_v10  ;;  %v1951_v17 = vadd.f32 %v5069_v60, %v10056_v24  ;;  %v5072_v63 = vadd.f32 %v5071_v7, %v5070_v23  ;;  %v5031_v24 = vpop.f32.mrb[43].mxu1  ;;  %v10175_v32 = vadd.f32 %v5029_v43, %v10044_v0  ;;  %v5251_v10 = vld [vmem:[#allocation2 + $0x30] sm:$0xff]  ;;  %v12583_v23 = vld [vmem:[#allocation67_spill] sm:$0xff]  ;;  %vm12588_vm13 = vmmov %vm12579_vm5 }
 0x369   : > { %2240 = vst.msk [vmem:[#allocation2 + $0x18] sm:$0xff] %vm12578_vm0, %v2224_v5  ;;  %v5032_v30 = vadd.f32 %v5031_v24, %v5030_v38  ;;  %v2178_v60 = vmul.f32 %v5251_v10, %v2098_v9  ;;  %vm2053_vm9 = vcmp.gt.f32.partialorder %v12583_v23, %v10191_v44  ;;  %v2162_v5 = vmax.f32 %v10140_v46, %v9934_v11  ;;  %v10234_v46 = vpop.xlane.xlu0 %2027 }
 0x36a   : > { %v2192_v22 = vmul.f32 %v4867_v18, %v1951_v17  ;;  %v1952_v40 = vadd.f32 %v5072_v63, %v10058_v29  ;;  %v4870_v17 = vsel %vm2115_vm7, 1.0, %v12368_v16  ;;  %v5252_v63 = vld [vmem:[#allocation2 + $0x38] sm:$0xff]  ;;  %v2163_v11 = vmax.f32 %v10150_v48, %v9945_v21  ;;  %v12587_v48 = vld [vmem:[#allocation61_spill] sm:$0xff] }
 0x36b   : > { %v10187_v0 = vadd.f32 %v5032_v30, %v10046_v33  ;;  %v12580_v33 = vld [vmem:[#allocation50_spill] sm:$0xff]  ;;  %v2179_v43 = vmul.f32 %v5252_v63, %v2099_v61  ;;  %vm2117_vm8 = vcmp.ge.f32.partialorder %v12583_v23, %v10191_v44  ;;  %vm2054_vm12 = vcmp.gt.f32.partialorder %v12587_v48, %v10234_v46 }
 0x36c   : > { %v2208_v2 = vadd.f32 %v2192_v22, %v2176_v27  ;;  %v2193_v29 = vmul.f32 %v4868_v13, %v1952_v40  ;;  %v5073_v42 = vpop.f32.mrb[28].mxu0  ;;  %v5033_v1 = vpop.f32.mrb[44].mxu1  ;;  %vm2052_vm4 = vcmp.gt.f32.partialorder %v12580_v33, %v10184_v49  ;;  %vm2116_vm3 = vcmp.ge.f32.partialorder %v12580_v33, %v10184_v49 }
 0x36d   : > { %v5074_v15 = vpop.f32.mrb[29].mxu0  ;;  %v5034_v14 = vpop.f32.mrb[45].mxu1  ;;  %v4855_v38 = vsel %vm2052_vm4, 1.0, %v12368_v16  ;;  %vm2118_vm14 = vcmp.ge.f32.partialorder %v12587_v48, %v10234_v46  ;;  %vm12590_vm4 = vmmov %vm12578_vm0 }
 0x36e   : > { %v2225_v62 = vsel %vm12579_vm5, %v2160_v20, %v2208_v2  ;;  %v2209_v12 = vadd.f32 %v2193_v29, %v2177_v50  ;;  %v5075_v55 = vadd.f32 %v5074_v15, %v5073_v42  ;;  %v5076_v36 = vpop.f32.mrb[30].mxu0  ;;  %v5035_v41 = vadd.f32 %v5034_v14, %v5033_v1  ;;  %v5036_v6 = vpop.f32.mrb[46].mxu1  ;;  %v12589_v29 = vld [vmem:[#allocation63_spill] sm:$0xff] }
 0x36f   : > { %2241 = vst.msk [vmem:[#allocation2 + $0x20] sm:$0xff] %vm12581_vm10, %v2225_v62  ;;  %v5077_v28 = vpop.f32.mrb[31].mxu0  ;;  %v5037_v19 = vpop.f32.mrb[47].mxu1  ;;  %v2100_v24 = vsub.f32 1.0, %v4855_v38  ;;  %v4871_v2 = vsel %vm2116_vm3, 1.0, %v12368_v16  ;;  %v5253_v42 = vld [vmem:[#allocation2 + $0x40] sm:$0xff]  ;;  %v2164_v62 = vmax.f32 %v10184_v49, %v12580_v33  ;;  %v2166_v38 = vmax.f32 %v10234_v46, %v12587_v48 }
 0x370   : > { %v2226_v39 = vsel %vm12582_vm6, %v2161_v59, %v2209_v12  ;;  %v1953_v8 = vadd.f32 %v5075_v55, %v10069_v58  ;;  %v5078_v51 = vadd.f32 %v5077_v28, %v5076_v36  ;;  %v10214_v58 = vadd.f32 %v5035_v41, %v10048_v57  ;;  %v10236_v22 = vpop.xlane.xlu1 %2030  ;;  %v5254_v55 = vld [vmem:[#allocation2 + $0x48] sm:$0xff]  ;;  %vm12592_vm6 = vmmov %vm12579_vm5 }
 0x371   : > { %2242 = vst.msk [vmem:[#allocation2 + $0x28] sm:$0xff] %vm12584_vm2, %v2226_v39  ;;  %v5038_v54 = vadd.f32 %v5037_v19, %v5036_v6  ;;  %vm2055_vm11 = vcmp.gt.f32.partialorder %v12589_v29, %v10236_v22  ;;  %v2180_v59 = vmul.f32 %v5253_v42, %v2100_v24  ;;  %v4857_v12 = vsel %vm2054_vm12, 1.0, %v12368_v16  ;;  %vm12594_vm2 = vmmov %vm12578_vm0 }
 0x372   : > { %v2194_v45 = vmul.f32 %v4869_v25, %v1953_v8  ;;  %v1954_v7 = vadd.f32 %v5078_v51, %v10074_v35  ;;  %v4856_v35 = vsel %vm2053_vm9, 1.0, %v12368_v16  ;;  %v4858_v1 = vsel %vm2055_vm11, 1.0, %v12368_v16  ;;  %vm12599_vm11 = vmmov %vm12578_vm0 }
 0x373   : > { %v10228_v27 = vadd.f32 %v5038_v54, %v10050_v34  ;;  %v2101_v34 = vsub.f32 1.0, %v4856_v35  ;;  %v2165_v39 = vmax.f32 %v10191_v44, %v12583_v23  ;;  %v2102_v33 = vsub.f32 1.0, %v4857_v12  ;;  %v12593_v54 = vld [vmem:[#allocation98_spill] sm:$0xff] }
 0x374   : > { %v2210_v57 = vadd.f32 %v2194_v45, %v2178_v60  ;;  %v2195_v18 = vmul.f32 %v4870_v17, %v1954_v7  ;;  %v5079_v3 = vpop.f32.mrb[32].mxu0  ;;  %v10267_v8 = vpop.xlane.xlu1 %2036  ;;  %v2103_v10 = vsub.f32 1.0, %v4858_v1  ;;  %vm2119_vm7 = vcmp.ge.f32.partialorder %v12589_v29, %v10236_v22  ;;  %v12591_v60 = vld [vmem:[#allocation79_spill] sm:$0xff] }
 0x375   : > { %v5080_v26 = vpop.f32.mrb[33].mxu0  ;;  %v2181_v36 = vmul.f32 %v5254_v55, %v2101_v34  ;;  %v4873_v7 = vsel %vm2118_vm14, 1.0, %v12368_v16  ;;  %vm2057_vm9 = vcmp.gt.f32.partialorder %v12593_v54, %v10267_v8 }
 0x376   : > { %v2227_v40 = vsel %vm12585_vm15, %v2162_v5, %v2210_v57  ;;  %v2211_v30 = vadd.f32 %v2195_v18, %v2179_v43  ;;  %v5081_v20 = vadd.f32 %v5080_v26, %v5079_v3  ;;  %v5082_v13 = vpop.f32.mrb[34].mxu0  ;;  %v5255_v5 = vld [vmem:[#allocation2 + $0x50] sm:$0xff]  ;;  %v5256_v57 = vld [vmem:[#allocation2 + $0x58] sm:$0xff]  ;;  %v4860_v3 = vsel %vm2057_vm9, 1.0, %v12368_v16  ;;  %vm12595_vm15 = vmmov %vm12579_vm5 }
 0x377   : > { %2243 = vst.msk [vmem:[#allocation2 + $0x30] sm:$0xff] %vm12586_vm1, %v2227_v40  ;;  %v5083_v21 = vpop.f32.mrb[35].mxu0  ;;  %v2182_v17 = vmul.f32 %v5255_v5, %v2102_v33  ;;  %v2183_v18 = vmul.f32 %v5256_v57, %v2103_v10  ;;  %v2167_v40 = vmax.f32 %v10236_v22, %v12589_v29  ;;  %v2105_v48 = vsub.f32 1.0, %v4860_v3  ;;  %vm12596_vm1 = vmmov %vm12578_vm0 }
 0x378   : > { %v2228_v31 = vsel %vm12588_vm13, %v2163_v11, %v2211_v30  ;;  %v1955_v50 = vadd.f32 %v5081_v20, %v10089_v53  ;;  %v5084_v56 = vadd.f32 %v5083_v21, %v5082_v13  ;;  %v4872_v53 = vsel %vm2117_vm8, 1.0, %v12368_v16  ;;  %vm12598_vm13 = vmmov %vm12579_vm5 }
 0x379   : > { %2244 = vst.msk [vmem:[#allocation2 + $0x38] sm:$0xff] %vm12578_vm0, %v2228_v31  ;;  %vm2121_vm8 = vcmp.ge.f32.partialorder %v12593_v54, %v10267_v8  ;;  %v2043_v31 = vpop.xlane.xlu1 %2042  ;;  %vm12604_vm9 = vmmov %vm12579_vm5 }
 0x37a   : > { %v2196_v9 = vmul.f32 %v4871_v2, %v1955_v50  ;;  %v1956_v15 = vadd.f32 %v5084_v56, %v10101_v47  ;;  %v10265_v47 = vpop.xlane.xlu0 %2033  ;;  %v12597_v50 = vld [vmem:[#allocation108_spill] sm:$0xff]  ;;  %v4876_v12 = vsel %vm2121_vm8, 1.0, %v12368_v16 }
 0x37b   : > { %vm2056_vm10 = vcmp.gt.f32.partialorder %v12591_v60, %v10265_v47  ;;  %vm2120_vm3 = vcmp.ge.f32.partialorder %v12591_v60, %v10265_v47 }
 0x37c   : > { %v2212_v61 = vadd.f32 %v2196_v9, %v2180_v59  ;;  %v2197_v28 = vmul.f32 %v4872_v53, %v1956_v15  ;;  %v5085_v14 = vpop.f32.mrb[36].mxu0  ;;  %v4859_v35 = vsel %vm2056_vm10, 1.0, %v12368_v16  ;;  %v4875_v42 = vsel %vm2120_vm3, 1.0, %v12368_v16  ;;  %v5257_v59 = vld [vmem:[#allocation2 + $0x60] sm:$0xff]  ;;  %v12600_v15 = vld [vmem:[#allocation90_spill] sm:$0xff]  ;;  %vm12602_vm10 = vmmov %vm12579_vm5 }
 0x37d   : > { %v5086_v49 = vpop.f32.mrb[37].mxu0  ;;  %v2104_v46 = vsub.f32 1.0, %v4859_v35  ;;  %vm2059_vm0 = vcmp.gt.f32.partialorder %v12600_v15, %v2043_v31  ;;  %vm12606_vm3 = vmmov %vm12579_vm5 }
 0x37e   : > { %v2229_v51 = vsel %vm12579_vm5, %v2164_v62, %v2212_v61  ;;  %v2213_v41 = vadd.f32 %v2197_v28, %v2181_v36  ;;  %v5087_v6 = vadd.f32 %v5086_v49, %v5085_v14  ;;  %v5088_v25 = vpop.f32.mrb[38].mxu0  ;;  %v5258_v36 = vld [vmem:[#allocation2 + $0x68] sm:$0xff]  ;;  %v4862_v49 = vsel %vm2059_vm0, 1.0, %v12368_v16 }
 0x37f   : > { %2245 = vst.msk [vmem:[#allocation2 + $0x40] sm:$0xff] %vm12590_vm4, %v2229_v51  ;;  %v5089_v44 = vpop.f32.mrb[39].mxu0  ;;  %v2184_v9 = vmul.f32 %v5257_v59, %v2104_v46  ;;  %v2185_v1 = vmul.f32 %v5258_v36, %v2105_v48  ;;  %vm12601_vm4 = vmmov %vm12596_vm1  ;;  %v2107_v10 = vsub.f32 1.0, %v4862_v49 }
 0x380   : > { %v2230_v23 = vsel %vm12592_vm6, %v2165_v39, %v2213_v41  ;;  %v1957_v19 = vadd.f32 %v5087_v6, %v10132_v52  ;;  %v5090_v45 = vadd.f32 %v5089_v44, %v5088_v25  ;;  %v4874_v52 = vsel %vm2119_vm7, 1.0, %v12368_v16  ;;  %vm12603_vm6 = vmmov %vm12596_vm1 }
 0x381   : > { %2246 = vst.msk [vmem:[#allocation2 + $0x48] sm:$0xff] %vm12594_vm2, %v2230_v23  ;;  %v2169_v39 = vmax.f32 %v10267_v8, %v12593_v54  ;;  %vm2123_vm7 = vcmp.ge.f32.partialorder %v12600_v15, %v2043_v31  ;;  %vm12605_vm2 = vmmov %vm12596_vm1 }
 0x382   : > { %v2198_v63 = vmul.f32 %v4873_v7, %v1957_v19  ;;  %v1958_v43 = vadd.f32 %v5090_v45, %v10144_v4  ;;  %v2040_v4 = vpop.xlane.xlu0 %2039  ;;  %v5259_v19 = vld [vmem:[#allocation2 + $0x70] sm:$0xff]  ;;  %v4878_v5 = vsel %vm2123_vm7, 1.0, %v12368_v16 }
 0x383   : > { %vm2058_vm12 = vcmp.gt.f32.partialorder %v12597_v50, %v2040_v4  ;;  %vm2122_vm14 = vcmp.ge.f32.partialorder %v12597_v50, %v2040_v4 }
 0x384   : > { %v2214_v11 = vadd.f32 %v2198_v63, %v2182_v17  ;;  %v2199_v26 = vmul.f32 %v4874_v52, %v1958_v43  ;;  %v5091_v24 = vpop.f32.mrb[40].mxu0  ;;  %v4861_v55 = vsel %vm2058_vm12, 1.0, %v12368_v16  ;;  %v4877_v23 = vsel %vm2122_vm14, 1.0, %v12368_v16  ;;  %v5260_v63 = vld [vmem:[#allocation2 + $0x78] sm:$0xff] }
 0x385   : > { %v5092_v30 = vpop.f32.mrb[41].mxu0  ;;  %v2106_v33 = vsub.f32 1.0, %v4861_v55  ;;  %v2170_v17 = vmax.f32 %v2040_v4, %v12597_v50  ;;  %v2187_v43 = vmul.f32 %v5260_v63, %v2107_v10 }
 0x386   : > { %v2231_v20 = vsel %vm12595_vm15, %v2166_v38, %v2214_v11  ;;  %v2215_v13 = vadd.f32 %v2199_v26, %v2183_v18  ;;  %v5093_v34 = vadd.f32 %v5092_v30, %v5091_v24  ;;  %v5094_v21 = vpop.f32.mrb[42].mxu0  ;;  %vm12607_vm15 = vmmov %vm12596_vm1 }
 0x387   : > { %2247 = vst.msk [vmem:[#allocation2 + $0x50] sm:$0xff] %vm12596_vm1, %v2231_v20  ;;  %v5095_v22 = vpop.f32.mrb[43].mxu0  ;;  %v2186_v45 = vmul.f32 %v5259_v19, %v2106_v33 }
 0x388   : > { %v2232_v56 = vsel %vm12598_vm13, %v2167_v40, %v2215_v13  ;;  %v1959_v2 = vadd.f32 %v5093_v34, %v10175_v32  ;;  %v5096_v29 = vadd.f32 %v5095_v22, %v5094_v21  ;;  %v2168_v32 = vmax.f32 %v10265_v47, %v12591_v60 }
 0x389   : > { %2248 = vst.msk [vmem:[#allocation2 + $0x58] sm:$0xff] %vm12599_vm11, %v2232_v56 }
 0x38a   : > { %v2200_v62 = vmul.f32 %v4875_v42, %v1959_v2  ;;  %v1960_v53 = vadd.f32 %v5096_v29, %v10187_v0 }
 0x38c   : > { %v2216_v61 = vadd.f32 %v2200_v62, %v2184_v9  ;;  %v2201_v28 = vmul.f32 %v4876_v12, %v1960_v53  ;;  %v5097_v14 = vpop.f32.mrb[44].mxu0 }
 0x38d   : > { %v5098_v0 = vpop.f32.mrb[45].mxu0 }
 0x38e   : > { %v2233_v51 = vsel %vm12579_vm5, %v2168_v32, %v2216_v61  ;;  %v2217_v41 = vadd.f32 %v2201_v28, %v2185_v1  ;;  %v5099_v6 = vadd.f32 %v5098_v0, %v5097_v14  ;;  %v5100_v47 = vpop.f32.mrb[46].mxu0 }
 0x38f   : > { %2249 = vst.msk [vmem:[#allocation2 + $0x60] sm:$0xff] %vm12601_vm4, %v2233_v51  ;;  %v5101_v25 = vpop.f32.mrb[47].mxu0 }
 0x390   : > { %v2234_v8 = vsel %vm12602_vm10, %v2169_v39, %v2217_v41  ;;  %v1961_v44 = vadd.f32 %v5099_v6, %v10214_v58  ;;  %v5102_v60 = vadd.f32 %v5101_v25, %v5100_v47  ;;  %v2171_v58 = vmax.f32 %v2043_v31, %v12600_v15 }
 0x391   : > { %2250 = vst.msk [vmem:[#allocation2 + $0x68] sm:$0xff] %vm12603_vm6, %v2234_v8 }
 0x392   : > { %v2202_v7 = vmul.f32 %v4877_v23, %v1961_v44  ;;  %v1962_v54 = vadd.f32 %v5102_v60, %v10228_v27 }
 0x394   : > { %v2218_v38 = vadd.f32 %v2202_v7, %v2186_v45  ;;  %v2203_v52 = vmul.f32 %v4878_v5, %v1962_v54 }
 0x396   : > { %v2235_v35 = vsel %vm12604_vm9, %v2170_v17, %v2218_v38  ;;  %v2219_v57 = vadd.f32 %v2203_v52, %v2187_v43 }
 0x397   : > { %2251 = vst.msk [vmem:[#allocation2 + $0x70] sm:$0xff] %vm12605_vm2, %v2235_v35 }
 0x398   : > { %v2236_v18 = vsel %vm12606_vm3, %v2171_v58, %v2219_v57 }
 0x399   : > { %2252 = vst.msk [vmem:[#allocation2 + $0x78] sm:$0xff] %vm12607_vm15, %v2236_v18 }
 0x39a PF: > { %v10339_v16 = vld [vmem:[#allocation2 + $0x10] sm:$0xff]  ;;  %v10342_v3 = vld [vmem:[#allocation2] sm:$0xff]  ;;  %v10344_v11 = vld [vmem:[#allocation2 + $0x18] sm:$0xff]  ;;  %v12609_v26 = vmov 0.0   ;;  %vm12610_vm1 = vcmask 64512   ;;  %s4906_s14 = sshll.u32 %s5485_s23, 1 }
 0x39b   : > { %v12608_v27 = vld [vmem:[#allocation13_spill] sm:$0xff]  ;;  %v10347_v40 = vld [vmem:[#allocation2 + $0x8] sm:$0xff]  ;;  %v10355_v13 = vld [vmem:[#allocation2 + $0x20] sm:$0xff]  ;;  %s4585_s16 = sadd.s32 %s5481_s22, %s4906_s14  ;;  %s4589_s5 = sshll.u32 %s5669_s1, 4  ;;  %s10809_s5 = int_to_ptr.vmem [resolvable:$true] %s4589_s5 }
 0x39c   : > { %vm3478_vm8 = vcmp.eq.s32.totalorder %v12608_v27, 3  ;;  %v10353_v20 = vld [vmem:[#allocation2 + $0x28] sm:$0xff]  ;;  %vm12611_vm12 = vmmov %vm12610_vm1  ;;  %v10363_v56 = vld [vmem:[#allocation2 + $0x38] sm:$0xff]  ;;  %vm3594_vm2 = vcmp.eq.s32.totalorder %v12608_v27, 0  ;;  %s4907_s28 = sshll.u32 %s4585_s16, 7  ;;  %s4555_s18 = scalar_lea.sflag [#allocation9], %s5610_s12 }
 0x39d   : > { %v4879_v24 = vsel %vm3478_vm8, 1.0, %v12609_v26  ;;  %vm12612_vm13 = vmmov %vm12610_vm1  ;;  %v10365_v2 = vld [vmem:[#allocation2 + $0x30] sm:$0xff]  ;;  %v10371_v15 = vld [vmem:[#allocation2 + $0x48] sm:$0xff]  ;;  %v10405_v23 = vsel %vm3594_vm2, 1.0, %v12609_v26  ;;  %s10807_s17 = scalar_lea.hbm %s10990_s4, %s4907_s28  ;;  %s5369_s19 = scalar_lea.vmem %s10809_s5, 128 }
 0x39e   : > { %v3483_v4 = vmul.f32 %v4879_v24, %v10339_v16  ;;  %v3481_v37 = vmul.f32 %v4879_v24, %v10342_v3  ;;  %v3484_v30 = vmul.f32 %v4879_v24, %v10344_v11  ;;  %v3482_v46 = vmul.f32 %v4879_v24, %v10347_v40  ;;  %vm12613_vm11 = vmmov %vm12610_vm1  ;;  %v10373_v62 = vld [vmem:[#allocation2 + $0x40] sm:$0xff]  ;;  %v10379_v36 = vld [vmem:[#allocation2 + $0x58] sm:$0xff]  ;;  %p5370_p1 = scmp.ne.s32.totalorder %s10809_s5, %s5369_s19  ;;  %s5505_s27 = smov [#allocation8]  }
 0x39f   : > { %v3486_v22 = vmul.f32 %v4879_v24, %v10353_v20  ;;  %v3485_v50 = vmul.f32 %v4879_v24, %v10355_v13  ;;  %vm12614_vm0 = vmmov %vm12610_vm1  ;;  %v3488_v59 = vmul.f32 %v4879_v24, %v10363_v56  ;;  %v3487_v9 = vmul.f32 %v4879_v24, %v10365_v2  ;;  %v10381_v1 = vld [vmem:[#allocation2 + $0x50] sm:$0xff]  ;;  %v10387_v49 = vld [vmem:[#allocation2 + $0x68] sm:$0xff]  ;;  %s5373_s8 = sshll.u32 %s5505_s27, 4  ;;  %s5374_s8 = int_to_ptr.vmem [resolvable:$false] %s5373_s8 }
 0x3a0   : > { %v3504_v34 = vsel %vm12610_vm1, %v3483_v4, 0.0  ;;  %v3498_v21 = vsel %vm12611_vm12, %v3481_v37, 0.0  ;;  %v3507_v48 = vsel %vm12612_vm13, %v3484_v30, 0.0  ;;  %v3501_v31 = vsel %vm12613_vm11, %v3482_v46, 0.0  ;;  %vm12615_vm14 = vmmov %vm12614_vm0  ;;  %v10389_v0 = vld [vmem:[#allocation2 + $0x60] sm:$0xff]  ;;  %v10395_v47 = vld [vmem:[#allocation2 + $0x78] sm:$0xff]  ;;  %p5371_p2 = pnand %p5370_p1, %p5589_p8  ;;  %p5376_p4 = scmp.lt.s32.totalorder %s10809_s5, %s5374_s8 }
 0x3a1   : > { %3505 = vadd.xlane.f32.xlu1 %v3504_v34  ;;  %3499 = vadd.xlane.f32.xlu0 %v3498_v21  ;;  %v3513_v29 = vsel %vm12614_vm0, %v3486_v22, 0.0  ;;  %v3510_v42 = vsel %vm12615_vm14, %v3485_v50, 0.0  ;;  %vm12616_vm5 = vmmov %vm12614_vm0  ;;  %v3490_v55 = vmul.f32 %v4879_v24, %v10371_v15  ;;  %v3489_v32 = vmul.f32 %v4879_v24, %v10373_v62  ;;  %v10397_v25 = vld [vmem:[#allocation2 + $0x70] sm:$0xff]  ;;  %v4292_v38 = vld [vmem:[#allocation3] sm:$0xff]  ;;  %s5375_s13 = scalar_lea.vmem %s5374_s8, 256 }
 0x3a2   : > { %v3519_v53 = vsel %vm12616_vm5, %v3488_v59, 0.0  ;;  %vm12617_vm7 = vmmov %vm12614_vm0  ;;  %v3492_v14 = vmul.f32 %v4879_v24, %v10379_v36  ;;  %v3491_v39 = vmul.f32 %v4879_v24, %v10381_v1  ;;  %v3494_v41 = vmul.f32 %v4879_v24, %v10387_v49  ;;  %v4293_v4 = vld [vmem:[#allocation3 + $0x8] sm:$0xff]  ;;  %v4296_v22 = vld [vmem:[#allocation3 + $0x20] sm:$0xff]  ;;  %p5372_p3 = pneg %p5371_p2  ;;  %p5377_p5 = scmp.lt.s32.totalorder %s5375_s13, %s5369_s19 }
 0x3a3   : > { %v3516_v12 = vsel %vm12617_vm7, %v3487_v9, 0.0  ;;  %vm12618_vm4 = vmmov %vm12614_vm0  ;;  %v3493_v6 = vmul.f32 %v4879_v24, %v10389_v0  ;;  %v3496_v44 = vmul.f32 %v4879_v24, %v10395_v47  ;;  %v3495_v60 = vmul.f32 %v4879_v24, %v10397_v25  ;;  %v4294_v24 = vld [vmem:[#allocation3 + $0x10] sm:$0xff]  ;;  %v4295_v50 = vld [vmem:[#allocation3 + $0x18] sm:$0xff] }
 0x3a4   : > { %v3525_v61 = vsel %vm12618_vm4, %v3490_v55, 0.0  ;;  %vm12619_vm10 = vmmov %vm12614_vm0  ;;  %v3598_v7 = vmul.f32 %v10405_v23, %v10347_v40  ;;  %v3597_v54 = vmul.f32 %v10405_v23, %v10342_v3  ;;  %v3600_v63 = vmul.f32 %v10405_v23, %v10344_v11  ;;  %p5378_p6 = por %p5377_p5, %p5376_p4 }
 0x3a5   : > { %3508 = vadd.xlane.f32.xlu1 %v3507_v48  ;;  %3502 = vadd.xlane.f32.xlu0 %v3501_v31  ;;  %v3522_v28 = vsel %vm12619_vm10, %v3489_v32, 0.0  ;;  %vm12620_vm6 = vmmov %vm12614_vm0  ;;  %v3599_v43 = vmul.f32 %v10405_v23, %v10339_v16  ;;  %v3602_v35 = vmul.f32 %v10405_v23, %v10353_v20  ;;  %v3601_v57 = vmul.f32 %v10405_v23, %v10355_v13 }
 0x3a6   : > { %v3531_v33 = vsel %vm12620_vm6, %v3492_v14, 0.0  ;;  %vm12621_vm9 = vmmov %vm12614_vm0  ;;  %v4308_v18 = vmax.f32 %v4292_v38, 1e-20  ;;  %v3604_v46 = vmul.f32 %v10405_v23, %v10363_v56  ;;  %v3603_v34 = vmul.f32 %v10405_v23, %v10365_v2  ;;  %v4297_v14 = vld [vmem:[#allocation3 + $0x28] sm:$0xff]  ;;  %p5379_p7 = pnand %p5378_p6, %p5372_p3 }
 0x3a7   : > { %v3528_v51 = vsel %vm12621_vm9, %v3491_v39, 0.0  ;;  %vm12622_vm3 = vmmov %vm12614_vm0  ;;  %v3619_v58 = vsel %vm12614_vm0, %v3599_v43, 0.0  ;;  %v4310_v21 = vmax.f32 %v4294_v24, 1e-20  ;;  %v4309_v31 = vmax.f32 %v4293_v4, 1e-20 }
 0x3a8   : > { %v3537_v10 = vsel %vm12622_vm3, %v3494_v41, 0.0  ;;  %vm12623_vm15 = vmmov %vm12614_vm0  ;;  %v4324_v48 = vmin.f32 %v4308_v18, 1.0  ;;  %v3606_v59 = vmul.f32 %v10405_v23, %v10371_v15  ;;  %v3605_v9 = vmul.f32 %v10405_v23, %v10373_v62 }
 0x3a9   : > { %3514 = vadd.xlane.f32.xlu1 %v3513_v29  ;;  %3511 = vadd.xlane.f32.xlu0 %v3510_v42  ;;  %v3534_v8 = vsel %vm12623_vm15, %v3493_v6, 0.0  ;;  %vm12624_vm8 = vmmov %vm12614_vm0  ;;  %v4325_v55 = vmin.f32 %v4309_v31, 1.0  ;;  %v4311_v32 = vmax.f32 %v4295_v50, 1e-20  ;;  %v3607_v41 = vmul.f32 %v10405_v23, %v10381_v1  ;;  %v4303_v31 = vld [vmem:[#allocation3 + $0x58] sm:$0xff] }
 0x3aa   : > { %v3543_v19 = vsel %vm12624_vm8, %v3496_v44, 0.0  ;;  %vm12625_vm1 = vmmov %vm12614_vm0  ;;  %5261 = vlog2.f32 %v4324_v48  ;;  %v4313_v44 = vmax.f32 %v4297_v14, 1e-20  ;;  %v3611_v24 = vmul.f32 %v10405_v23, %v10397_v25 }
 0x3ab   : > { %v3540_v45 = vsel %vm12625_vm1, %v3495_v60, 0.0  ;;  %vm12626_vm12 = vmmov %vm12614_vm0  ;;  %v4300_v60 = vld [vmem:[#allocation3 + $0x40] sm:$0xff]  ;;  %vm3784_vm1 = vcmp.eq.s32.totalorder %v12608_v27, 1 }
 0x3ac   : > { %v3616_v5 = vsel %vm12626_vm12, %v3598_v7, 0.0  ;;  %vm12627_vm13 = vmmov %vm12614_vm0  ;;  %v4329_v43 = vmin.f32 %v4313_v44, 1.0  ;;  %vm3965_vm12 = vcmp.eq.s32.totalorder %v12608_v27, 2 }
 0x3ad   : > { %3520 = vadd.xlane.f32.xlu1 %v3519_v53  ;;  %3517 = vadd.xlane.f32.xlu0 %v3516_v12  ;;  %v3613_v17 = vsel %vm12627_vm13, %v3597_v54, 0.0  ;;  %vm12628_vm11 = vmmov %vm12614_vm0  ;;  %v4326_v53 = vmin.f32 %v4310_v21, 1.0  ;;  %v4312_v12 = vmax.f32 %v4296_v22, 1e-20  ;;  %v3610_v54 = vmul.f32 %v10405_v23, %v10387_v49 }
 0x3ae   : > { %v3622_v52 = vsel %vm12628_vm11, %v3600_v63, 0.0  ;;  %vm12629_vm14 = vmmov %vm12614_vm0  ;;  %v4316_v63 = vmax.f32 %v4300_v60, 1e-20 }
 0x3af   : > { %v3628_v37 = vsel %vm12629_vm14, %v3602_v35, 0.0  ;;  %vm12630_vm5 = vmmov %vm12614_vm0  ;;  %5263 = vlog2.f32 %v4326_v53  ;;  %v4328_v6 = vmin.f32 %v4312_v12, 1.0 }
 0x3b0   : > { %v3625_v30 = vsel %vm12630_vm5, %v3601_v57, 0.0  ;;  %vm12631_vm7 = vmmov %vm12614_vm0  ;;  %5265 = vlog2.f32 %v4325_v55  ;;  %v4332_v4 = vmin.f32 %v4316_v63, 1.0 }
 0x3b1   : > { %3526 = vadd.xlane.f32.xlu1 %v3525_v61  ;;  %3523 = vadd.xlane.f32.xlu0 %v3522_v28  ;;  %v3634_v29 = vsel %vm12631_vm7, %v3604_v46, 0.0  ;;  %vm12632_vm4 = vmmov %vm12614_vm0  ;;  %v4298_v61 = vld [vmem:[#allocation3 + $0x30] sm:$0xff]  ;;  %v10439_v28 = vmul.f32 %v10405_v23, %v10395_v47  ;;  %5267 = vlog2.f32 %v4328_v6 }
 0x3b2   : > { %v3631_v42 = vsel %vm12632_vm4, %v3603_v34, 0.0  ;;  %vm12633_vm10 = vmmov %vm12614_vm0  ;;  %v4304_v34 = vld [vmem:[#allocation3 + $0x60] sm:$0xff] }
 0x3b3   : > { %v3640_v39 = vsel %vm12633_vm10, %v3606_v59, 0.0  ;;  %vm12634_vm6 = vmmov %vm12614_vm0  ;;  %v4319_v59 = vmax.f32 %v4303_v31, 1e-20 }
 0x3b4   : > { %vm12635_vm9 = vmmov %vm12614_vm0  ;;  %v5262_v35 = vpop.eup %5261 }
 0x3b5   : > { %3532 = vadd.xlane.f32.xlu1 %v3531_v33  ;;  %3529 = vadd.xlane.f32.xlu0 %v3528_v51  ;;  %v3637_v33 = vsel %vm12634_vm6, %v3605_v9, 0.0  ;;  %v3608_v51 = vmul.f32 %v10405_v23, %v10379_v36  ;;  %vm12636_vm2 = vmmov %vm12614_vm0  ;;  %v4341_v48 = vmul.f32 0.6931472, %v5262_v35  ;;  %v4306_v9 = vld [vmem:[#allocation3 + $0x70] sm:$0xff] }
 0x3b6   : > { %v3643_v7 = vsel %vm12636_vm2, %v3607_v41, 0.0  ;;  %vm12637_vm3 = vmmov %vm12614_vm0 }
 0x3b7   : > { %v3652_v57 = vsel %vm12637_vm3, %v3610_v54, 0.0  ;;  %vm12638_vm15 = vmmov %vm12614_vm0 }
 0x3b8   : > { %vm12639_vm8 = vmmov %vm12614_vm0 }
 0x3b9   : > { %3538 = vadd.xlane.f32.xlu1 %v3537_v10  ;;  %3535 = vadd.xlane.f32.xlu0 %v3534_v8  ;;  %v4314_v10 = vmax.f32 %v4298_v61, 1e-20  ;;  %v4327_v8 = vmin.f32 %v4311_v32, 1.0  ;;  %v5264_v21 = vpop.eup %5263  ;;  %v3655_v50 = vsel %vm12639_vm8, %v3611_v24, 0.0  ;;  %v4305_v32 = vld [vmem:[#allocation3 + $0x68] sm:$0xff]  ;;  %vm12640_vm13 = vmmov %vm12614_vm0 }
 0x3ba   : > { %v5266_v22 = vpop.eup %5265  ;;  %v4345_v12 = vmul.f32 0.6931472, %v5264_v21  ;;  %vm12641_vm11 = vmmov %vm12614_vm0 }
 0x3bb   : > { %5269 = vlog2.f32 %v4327_v8  ;;  %v5268_v53 = vpop.eup %5267  ;;  %v4343_v55 = vmul.f32 0.6931472, %v5266_v22  ;;  %v4307_v8 = vld [vmem:[#allocation3 + $0x78] sm:$0xff]  ;;  %vm12642_vm14 = vmmov %vm12614_vm0 }
 0x3bc   : > { %v4349_v6 = vmul.f32 0.6931472, %v5268_v53  ;;  %vm12643_vm5 = vmmov %vm12614_vm0 }
 0x3bd   : > { %3544 = vadd.xlane.f32.xlu1 %v3543_v19  ;;  %3541 = vadd.xlane.f32.xlu0 %v3540_v45  ;;  %v4299_v19 = vld [vmem:[#allocation3 + $0x38] sm:$0xff]  ;;  %v3646_v45 = vsel %vm12635_vm9, %v3608_v51, 0.0  ;;  %v4321_v51 = vmax.f32 %v4305_v32, 1e-20  ;;  %vm12644_vm7 = vmmov %vm12614_vm0 }
 0x3be   : > { %v4315_v38 = vmax.f32 %v4299_v19, 1e-20  ;;  %vm12645_vm4 = vmmov %vm12614_vm0 }
 0x3bf   : > { %v4337_v19 = vmin.f32 %v4321_v51, 1.0  ;;  %vm12646_vm10 = vmmov %vm12614_vm0 }
 0x3c0   : > { %vm12647_vm6 = vmmov %vm12614_vm0 }
 0x3c1   : > { %3617 = vadd.xlane.f32.xlu1 %v3616_v5  ;;  %3614 = vadd.xlane.f32.xlu0 %v3613_v17  ;;  %v3609_v5 = vmul.f32 %v10405_v23, %v10389_v0  ;;  %v4330_v17 = vmin.f32 %v4314_v10, 1.0  ;;  %vm12648_vm9 = vmmov %vm12614_vm0 }
 0x3c2   : > { %vm12649_vm2 = vmmov %vm12614_vm0 }
 0x3c3   : > { %v3649_v18 = vsel %vm12638_vm15, %v3609_v5, 0.0  ;;  %5271 = vlog2.f32 %v4330_v17  ;;  %vm12650_vm3 = vmmov %vm12614_vm0 }
 0x3c4   : > { %5273 = vlog2.f32 %v4329_v43  ;;  %vm12651_vm15 = vmmov %vm12614_vm0 }
 0x3c5   : > { %3623 = vadd.xlane.f32.xlu1 %v3622_v52  ;;  %3620 = vadd.xlane.f32.xlu0 %v3619_v58  ;;  %v4302_v52 = vld [vmem:[#allocation3 + $0x50] sm:$0xff]  ;;  %v4301_v58 = vld [vmem:[#allocation3 + $0x48] sm:$0xff]  ;;  %5275 = vlog2.f32 %v4332_v4  ;;  %v5270_v61 = vpop.eup %5269  ;;  %vm12652_vm8 = vmmov %vm12614_vm0 }
 0x3c6   : > { %v4317_v46 = vmax.f32 %v4301_v58, 1e-20  ;;  %v4347_v10 = vmul.f32 0.6931472, %v5270_v61 }
 0x3c8   : > { %v4333_v23 = vmin.f32 %v4317_v46, 1.0 }
 0x3c9   : > { %3629 = vadd.xlane.f32.xlu1 %v3628_v37  ;;  %3626 = vadd.xlane.f32.xlu0 %v3625_v30  ;;  %v4318_v37 = vmax.f32 %v4302_v52, 1e-20  ;;  %v4331_v30 = vmin.f32 %v4315_v38, 1.0 }
 0x3cb   : > { %5277 = vlog2.f32 %v4331_v30 }
 0x3cd   : > { %3635 = vadd.xlane.f32.xlu1 %v3634_v29  ;;  %3632 = vadd.xlane.f32.xlu0 %v3631_v42  ;;  %v4334_v29 = vmin.f32 %v4318_v37, 1.0  ;;  %v4320_v42 = vmax.f32 %v4304_v34, 1e-20  ;;  %v5272_v41 = vpop.eup %5271  ;;  %v10460_v34 = vsel %vm3784_vm1, 1.0, %v12609_v26  ;;  %vm12653_vm1 = vmmov %vm12614_vm0 }
 0x3ce   : > { %v5274_v44 = vpop.eup %5273  ;;  %v4353_v54 = vmul.f32 0.6931472, %v5272_v41  ;;  %v3787_v22 = vmul.f32 %v10460_v34, %v10342_v3  ;;  %v3791_v51 = vmul.f32 %v10460_v34, %v10355_v13 }
 0x3cf   : > { %5279 = vlog2.f32 %v4334_v29  ;;  %v4336_v14 = vmin.f32 %v4320_v42, 1.0  ;;  %v4351_v5 = vmul.f32 0.6931472, %v5274_v44  ;;  %v3789_v42 = vmul.f32 %v10460_v34, %v10339_v16 }
 0x3d0   : > { %5281 = vlog2.f32 %v4333_v23  ;;  %v3803_v29 = vsel %vm12640_vm13, %v3787_v22, 0.0  ;;  %v3788_v23 = vmul.f32 %v10460_v34, %v10347_v40  ;;  %vm12655_vm13 = vmmov %vm12614_vm0 }
 0x3d1   : > { %3641 = vadd.xlane.f32.xlu1 %v3640_v39  ;;  %3638 = vadd.xlane.f32.xlu0 %v3637_v33  ;;  %v4322_v39 = vmax.f32 %v4306_v9, 1e-20  ;;  %v4335_v33 = vmin.f32 %v4319_v59, 1.0  ;;  %5283 = vlog2.f32 %v4336_v14  ;;  %v10471_v59 = vsel %vm3965_vm12, 1.0, %v12609_v26  ;;  %vm12654_vm12 = vmmov %vm12614_vm0 }
 0x3d2   : > { %v3809_v9 = vsel %vm12641_vm11, %v3789_v42, 0.0  ;;  %v3806_v53 = vsel %vm12614_vm0, %v3788_v23, 0.0  ;;  %v3970_v14 = vmul.f32 %v10471_v59, %v10339_v16  ;;  %v3971_v41 = vmul.f32 %v10471_v59, %v10344_v11  ;;  %vm12656_vm11 = vmmov %vm12614_vm0 }
 0x3d3   : > { %v4338_v60 = vmin.f32 %v4322_v39, 1.0  ;;  %5285 = vlog2.f32 %v4335_v33  ;;  %v3969_v39 = vmul.f32 %v10471_v59, %v10347_v40  ;;  %v3972_v40 = vmul.f32 %v10471_v59, %v10355_v13 }
 0x3d4   : > { %v3990_v33 = vsel %vm12644_vm7, %v3970_v14, 0.0  ;;  %v3993_v16 = vsel %vm12647_vm6, %v3971_v41, 0.0  ;;  %vm12659_vm7 = vmmov %vm12614_vm0  ;;  %v3983_v14 = vmul.f32 %v10471_v59, %v10395_v47 }
 0x3d5   : > { %3647 = vadd.xlane.f32.xlu1 %v3646_v45  ;;  %3644 = vadd.xlane.f32.xlu0 %v3643_v7  ;;  %v4323_v45 = vmax.f32 %v4307_v8, 1e-20  ;;  %v5276_v7 = vpop.eup %5275  ;;  %5287 = vlog2.f32 %v4338_v60  ;;  %v3996_v8 = vsel %vm12648_vm9, %v3972_v40, 0.0  ;;  %v3973_v60 = vmul.f32 %v10471_v59, %v10353_v20  ;;  %vm12662_vm6 = vmmov %vm12614_vm0 }
 0x3d6   : > { %v5278_v17 = vpop.eup %5277  ;;  %5289 = vlog2.f32 %v4337_v19  ;;  %v4357_v38 = vmul.f32 0.6931472, %v5276_v7  ;;  %v3794_v7 = vmul.f32 %v10460_v34, %v10363_v56  ;;  %vm12663_vm9 = vmmov %vm12614_vm0 }
 0x3d7   : > { %v4339_v63 = vmin.f32 %v4323_v45, 1.0  ;;  %v4355_v52 = vmul.f32 0.6931472, %v5278_v17  ;;  %v3999_v13 = vsel %vm12651_vm15, %v3973_v60, 0.0  ;;  %v3974_v45 = vmul.f32 %v10471_v59, %v10365_v2  ;;  %vm12666_vm15 = vmmov %vm12614_vm0 }
 0x3d8   : > { %v3975_v17 = vmul.f32 %v10471_v59, %v10363_v56  ;;  %v3797_v56 = vmul.f32 %v10460_v34, %v10381_v1 }
 0x3d9   : > { %3653 = vadd.xlane.f32.xlu1 %v3652_v57  ;;  %3650 = vadd.xlane.f32.xlu0 %v3649_v18  ;;  %v5280_v43 = vpop.eup %5279  ;;  %5291 = vlog2.f32 %v4339_v63 }
 0x3da   : > { %v5282_v58 = vpop.eup %5281  ;;  %v4361_v57 = vmul.f32 0.6931472, %v5280_v43  ;;  %v3976_v43 = vmul.f32 %v10471_v59, %v10373_v62 }
 0x3db   : > { %v5284_v35 = vpop.eup %5283  ;;  %v4359_v18 = vmul.f32 0.6931472, %v5282_v58 }
 0x3dc   : > { %v4365_v37 = vmul.f32 0.6931472, %v5284_v35  ;;  %v3977_v35 = vmul.f32 %v10471_v59, %v10371_v15 }
 0x3dd   : > { %4372 = vadd.xlane.f32.xlu1 %v4341_v48  ;;  %3656 = vadd.xlane.f32.xlu0 %v3655_v50  ;;  %v5286_v24 = vpop.eup %5285 }
 0x3de   : > { %v4363_v30 = vmul.f32 0.6931472, %v5286_v24  ;;  %v3798_v24 = vmul.f32 %v10460_v34, %v10379_v36 }
 0x3df   : > { %v5288_v4 = vpop.eup %5287 }
 0x3e0   : > { %v5290_v46 = vpop.eup %5289  ;;  %v4369_v21 = vmul.f32 0.6931472, %v5288_v4 }
 0x3e1   : > { %4376 = vadd.xlane.f32.xlu1 %v4345_v12  ;;  %4374 = vadd.xlane.f32.xlu0 %v4343_v55  ;;  %v4367_v48 = vmul.f32 0.6931472, %v5290_v46  ;;  %v3968_v12 = vmul.f32 %v10471_v59, %v10342_v3  ;;  %v3790_v55 = vmul.f32 %v10460_v34, %v10344_v11  ;;  %v3987_v3 = vsel %vm12645_vm4, %v3969_v39, 0.0  ;;  %vm12660_vm4 = vmmov %vm12614_vm0 }
 0x3e2   : > { %v3793_v11 = vmul.f32 %v10460_v34, %v10365_v2  ;;  %v4005_v2 = vsel %vm12655_vm13, %v3975_v17, 0.0  ;;  %v3982_v39 = vmul.f32 %v10471_v59, %v10397_v25 }
 0x3e3   : > { %v5292_v31 = vpop.eup %5291  ;;  %v3984_v32 = vsel %vm12642_vm14, %v3968_v12, 0.0  ;;  %v3812_v61 = vsel %vm12643_vm5, %v3790_v55, 0.0  ;;  %vm12657_vm14 = vmmov %vm12614_vm0  ;;  %v3801_v12 = vmul.f32 %v10460_v34, %v10397_v25  ;;  %v3697_v55 = vadd.s32 4294967288, %v12608_v27 }
 0x3e4   : > { %v4371_v50 = vmul.f32 0.6931472, %v5292_v31  ;;  %v3821_v19 = vsel %vm12650_vm3, %v3793_v11, 0.0  ;;  %vm12658_vm5 = vmmov %vm12614_vm0 }
 0x3e5   : > { %4380 = vadd.xlane.f32.xlu1 %v4349_v6  ;;  %4378 = vadd.xlane.f32.xlu0 %v4347_v10  ;;  %v3815_v6 = vsel %vm12646_vm10, %v3791_v51, 0.0  ;;  %v3792_v10 = vmul.f32 %v10460_v34, %v10353_v20  ;;  %v3795_v20 = vmul.f32 %v10460_v34, %v10373_v62  ;;  %v4011_v62 = vsel %vm12658_vm5, %v3977_v35, 0.0  ;;  %vm12661_vm10 = vmmov %vm12614_vm0 }
 0x3e6   : > { %vm12665_vm3 = vmmov %vm12614_vm0 }
 0x3e7   : > { %v3818_v44 = vsel %vm12649_vm2, %v3792_v10, 0.0  ;;  %v3827_v63 = vsel %vm12654_vm12, %v3795_v20, 0.0  ;;  %vm12664_vm2 = vmmov %vm12614_vm0  ;;  %v3658_v23 = vsel %vm12665_vm3, %v10439_v28, 0.0  ;;  %vm3769_vm3 = vcmask 1042434  }
 0x3e9   : > { %4384 = vadd.xlane.f32.xlu1 %v4353_v54  ;;  %4382 = vadd.xlane.f32.xlu0 %v4351_v5  ;;  %v4002_v54 = vsel %vm12652_vm8, %v3974_v45, 0.0  ;;  %v3824_v5 = vsel %vm12653_vm1, %v3794_v7, 0.0  ;;  %vm12667_vm8 = vmmov %vm12614_vm0 }
 0x3ea   : > { %vm12668_vm1 = vmmov %vm12614_vm0 }
 0x3eb   : > { %v3845_v28 = vsel %vm12668_vm1, %v3801_v12, 0.0  ;;  %vm12671_vm5 = vmmov %vm12668_vm1 }
 0x3ed   : > { %4388 = vadd.xlane.f32.xlu1 %v4357_v38  ;;  %4386 = vadd.xlane.f32.xlu0 %v4355_v52  ;;  %v3796_v38 = vmul.f32 %v10460_v34, %v10371_v15  ;;  %v4008_v52 = vsel %vm12656_vm11, %v3976_v43, 0.0  ;;  %v3799_v15 = vmul.f32 %v10460_v34, %v10389_v0 }
 0x3ef   : > { %v3830_v58 = vsel %vm12614_vm0, %v3796_v38, 0.0  ;;  %v3839_v46 = vsel %vm12661_vm10, %v3799_v15, 0.0 }
 0x3f1   : > { %4392 = vadd.xlane.f32.xlu1 %v4361_v57  ;;  %4390 = vadd.xlane.f32.xlu0 %v4359_v18  ;;  %v3833_v57 = vsel %vm12657_vm14, %v3797_v56, 0.0  ;;  %v3978_v18 = vmul.f32 %v10471_v59, %v10381_v1  ;;  %vm12670_vm14 = vmmov %vm12668_vm1  ;;  %vm3771_vm1 = vcmask 1043459  }
 0x3f2   : > { %v4029_v25 = vsel %vm12670_vm14, %v3983_v14, 0.0  ;;  %vm3777_vm14 = vcmask 1046534  }
 0x3f3   : > { %v4014_v4 = vsel %vm12659_vm7, %v3978_v18, 0.0  ;;  %vm3702_vm7 = vcmask 130112  }
 0x3f5   : > { %4396 = vadd.xlane.f32.xlu1 %v4365_v37  ;;  %4394 = vadd.xlane.f32.xlu0 %v4363_v30  ;;  %v3836_v37 = vsel %vm12660_vm4, %v3798_v24, 0.0  ;;  %v3979_v30 = vmul.f32 %v10471_v59, %v10379_v36  ;;  %vm3767_vm4 = vcmask 1041409  }
 0x3f7   : > { %v4017_v1 = vsel %vm12662_vm6, %v3979_v30, 0.0 }
 0x3f9   : > { %4400 = vadd.xlane.f32.xlu1 %v4369_v21  ;;  %4398 = vadd.xlane.f32.xlu0 %v4367_v48  ;;  %v3980_v21 = vmul.f32 %v10471_v59, %v10389_v0  ;;  %v3800_v48 = vmul.f32 %v10460_v34, %v10387_v49 }
 0x3fb   : > { %v3842_v36 = vsel %vm12664_vm2, %v3800_v48, 0.0 }
 0x3fd   : > { %3804 = vadd.xlane.f32.xlu1 %v3803_v29  ;;  %4402 = vadd.xlane.f32.xlu0 %v4371_v50  ;;  %v4020_v50 = vsel %vm12663_vm9, %v3980_v21, 0.0  ;;  %v3981_v29 = vmul.f32 %v10471_v59, %v10387_v49  ;;  %v4026_v59 = vsel %vm12671_vm5, %v3982_v39, 0.0 }
 0x401   : > { %3810 = vadd.xlane.f32.xlu1 %v3809_v9  ;;  %3807 = vadd.xlane.f32.xlu0 %v3806_v53  ;;  %v4023_v9 = vsel %vm12666_vm15, %v3981_v29, 0.0  ;;  %v3802_v53 = vmul.f32 %v10460_v34, %v10395_v47 }
 0x405   : > { %3985 = vadd.xlane.f32.xlu1 %v3984_v32  ;;  %3813 = vadd.xlane.f32.xlu0 %v3812_v61  ;;  %v3848_v61 = vsel %vm12667_vm8, %v3802_v53, 0.0 }
 0x409   : > { %3991 = vadd.xlane.f32.xlu1 %v3990_v33  ;;  %3988 = vadd.xlane.f32.xlu0 %v3987_v3  ;;  %v12669_v33 = vlaneseq }
 0x40b   : > { %v3694_v34 = vshrl.u32 %v12669_v33, 7 }
 0x40d   : > { %3816 = vadd.xlane.f32.xlu1 %v3815_v6  ;;  %3994 = vadd.xlane.f32.xlu0 %v3993_v16  ;;  %v10574_v3 = vsub.s32 %v3697_v55, %v3694_v34  ;;  %v10584_v6 = vsub.s32 %v12608_v27, %v3694_v34 }
 0x411   : > { %3997 = vadd.xlane.f32.xlu1 %v3996_v8  ;;  %3819 = vadd.xlane.f32.xlu0 %v3818_v44 }
 0x415   : > { %3822 = vadd.xlane.f32.xlu1 %v3821_v19  ;;  %4000 = vadd.xlane.f32.xlu0 %v3999_v13 }
 0x419   : > { %4003 = vadd.xlane.f32.xlu1 %v4002_v54  ;;  %3825 = vadd.xlane.f32.xlu0 %v3824_v5 }
 0x41d   : > { %3828 = vadd.xlane.f32.xlu1 %v3827_v63  ;;  %4006 = vadd.xlane.f32.xlu0 %v4005_v2 }
 0x421   : > { %4009 = vadd.xlane.f32.xlu1 %v4008_v52  ;;  %3831 = vadd.xlane.f32.xlu0 %v3830_v58 }
 0x425   : > { %3834 = vadd.xlane.f32.xlu1 %v3833_v57  ;;  %4012 = vadd.xlane.f32.xlu0 %v4011_v62 }
 0x429   : > { %4015 = vadd.xlane.f32.xlu1 %v4014_v4  ;;  %3837 = vadd.xlane.f32.xlu0 %v3836_v37 }
 0x42d   : > { %3840 = vadd.xlane.f32.xlu1 %v3839_v46  ;;  %4018 = vadd.xlane.f32.xlu0 %v4017_v1 }
 0x42e   : > { %v10545_v31 = vpop.xlane.xlu1 %3505  ;;  %v3500_v22 = vpop.xlane.xlu0 %3499 }
 0x42f   : > { %vm4148_vm11 = vcmp.gt.f32.partialorder %v10545_v31, 0.0  ;;  %vm4146_vm0 = vcmp.gt.f32.partialorder %v3500_v22, 0.0  ;;  %v3546_v10 = vmax.f32 %v3500_v22, 1.0  ;;  %v3548_v60 = vmax.f32 %v10545_v31, 1.0 }
 0x430   : > { %v4887_v40 = vsel %vm4148_vm11, 1.0, %v12609_v26  ;;  %v4885_v8 = vsel %vm4146_vm0, 1.0, %v12609_v26  ;;  %vm3775_vm11 = vcmask 1045509  }
 0x431   : > { %4021 = vadd.xlane.f32.xlu1 %v4020_v50  ;;  %3843 = vadd.xlane.f32.xlu0 %v3842_v36  ;;  %v4222_v45 = vrot.slane %v4887_v40, %v10584_v6  ;;  %v4213_v7 = vrot.slane %v4885_v8, %v10584_v6  ;;  %5293 = vrcp.f32 %v3546_v10 }
 0x432   : > { %v10551_v42 = vpop.xlane.xlu1 %3508  ;;  %v3503_v0 = vpop.xlane.xlu0 %3502 }
 0x433   : > { %vm4149_vm12 = vcmp.gt.f32.partialorder %v10551_v42, 0.0  ;;  %vm4147_vm13 = vcmp.gt.f32.partialorder %v3503_v0, 0.0  ;;  %v3547_v11 = vmax.f32 %v3503_v0, 1.0  ;;  %v3549_v54 = vmax.f32 %v10551_v42, 1.0 }
 0x434   : > { %v4888_v51 = vsel %vm4149_vm12, 1.0, %v12609_v26  ;;  %v4886_v16 = vsel %vm4147_vm13, 1.0, %v12609_v26  ;;  %vm3773_vm12 = vcmask 1044484  }
 0x435   : > { %3659 = vadd.xlane.f32.xlu1 %v3658_v23  ;;  %4024 = vadd.xlane.f32.xlu0 %v4023_v9  ;;  %v4226_v44 = vrot.slane %v4888_v51, %v10574_v3  ;;  %v4217_v19 = vrot.slane %v4886_v16, %v10574_v3  ;;  %5295 = vrcp.f32 %v3547_v11 }
 0x436   : > { %v10561_v49 = vpop.xlane.xlu1 %3514  ;;  %v10563_v32 = vpop.xlane.xlu0 %3511  ;;  %5297 = vrcp.f32 %v3548_v60 }
 0x437   : > { %vm4151_vm10 = vcmp.gt.f32.partialorder %v10561_v49, 0.0  ;;  %vm4150_vm6 = vcmp.gt.f32.partialorder %v10563_v32, 0.0  ;;  %v4227_v5 = vsel %vm3702_vm7, %v4226_v44, %v4222_v45  ;;  %v4218_v63 = vsel %vm3702_vm7, %v4217_v19, %v4213_v7 }
 0x438   : > { %v4890_v20 = vsel %vm4151_vm10, 1.0, %v12609_v26  ;;  %v4889_v17 = vsel %vm4150_vm6, 1.0, %v12609_v26  ;;  %v3551_v2 = vmax.f32 %v10561_v49, 1.0  ;;  %v3550_v4 = vmax.f32 %v10563_v32, 1.0 }
 0x439   : > { %3849 = vadd.xlane.f32.xlu1 %v3848_v61  ;;  %3846 = vadd.xlane.f32.xlu0 %v3845_v28  ;;  %v4235_v57 = vrot.slane %v4890_v20, %v10574_v3  ;;  %v4231_v62 = vrot.slane %v4889_v17, %v10584_v6  ;;  %5299 = vrcp.f32 %v3549_v54  ;;  %v4282_v48 = vsel %vm3767_vm4, %v4227_v5, %v4218_v63 }
 0x43a   : > { %v10577_v41 = vpop.xlane.xlu1 %3520  ;;  %v10579_v47 = vpop.xlane.xlu0 %3517  ;;  %5301 = vrcp.f32 %v3551_v2 }
 0x43b   : > { %vm4153_vm9 = vcmp.gt.f32.partialorder %v10577_v41, 0.0  ;;  %vm4152_vm2 = vcmp.gt.f32.partialorder %v10579_v47, 0.0  ;;  %v4236_v50 = vsel %vm3702_vm7, %v4235_v57, %v4231_v62  ;;  %5303 = vrcp.f32 %v3550_v4  ;;  %v10643_v23 = vpop.eup %5293 }
 0x43c   : > { %v4892_v43 = vsel %vm4153_vm9, 1.0, %v12609_v26  ;;  %v4891_v38 = vsel %vm4152_vm2, 1.0, %v12609_v26  ;;  %v3553_v9 = vmax.f32 %v10577_v41, 1.0  ;;  %v3552_v53 = vmax.f32 %v10579_v47, 1.0 }
 0x43d   : > { %4030 = vadd.xlane.f32.xlu1 %v4029_v25  ;;  %4027 = vadd.xlane.f32.xlu0 %v4026_v59  ;;  %v4244_v37 = vrot.slane %v4892_v43, %v10574_v3  ;;  %v4240_v15 = vrot.slane %v4891_v38, %v10584_v6  ;;  %v4283_v28 = vsel %vm3769_vm3, %v4236_v50, %v4282_v48  ;;  %vm3779_vm2 = vcmask 1047559  }
 0x43e   : > { %v10594_v27 = vpop.xlane.xlu1 %3526  ;;  %v10596_v13 = vpop.xlane.xlu0 %3523  ;;  %5305 = vrcp.f32 %v3553_v9 }
 0x43f   : > { %vm4155_vm15 = vcmp.gt.f32.partialorder %v10594_v27, 0.0  ;;  %vm4154_vm8 = vcmp.gt.f32.partialorder %v10596_v13, 0.0  ;;  %v4245_v29 = vsel %vm3702_vm7, %v4244_v37, %v4240_v15  ;;  %v10653_v61 = vpop.eup %5295  ;;  %v3555_v59 = vmax.f32 %v10594_v27, 1.0 }
 0x440   : > { %v4894_v56 = vsel %vm4155_vm15, 1.0, %v12609_v26  ;;  %v4893_v35 = vsel %vm4154_vm8, 1.0, %v12609_v26  ;;  %v4284_v39 = vsel %vm3771_vm1, %v4245_v29, %v4283_v28  ;;  %vm3782_vm15 = vcmask 130048   ;;  %v10668_v8 = vpop.eup %5297 }
 0x441   : > { %v4253_v30 = vrot.slane %v4894_v56, %v10574_v3  ;;  %v4249_v46 = vrot.slane %v4893_v35, %v10584_v6  ;;  %5307 = vrcp.f32 %v3552_v53  ;;  %v3554_v27 = vmax.f32 %v10596_v13, 1.0 }
 0x442   : > { %v10612_v52 = vpop.xlane.xlu1 %3532  ;;  %v10614_v58 = vpop.xlane.xlu0 %3529  ;;  %5309 = vrcp.f32 %v3555_v59 }
 0x443   : > { %vm4157_vm13 = vcmp.gt.f32.partialorder %v10612_v52, 0.0  ;;  %vm4156_vm0 = vcmp.gt.f32.partialorder %v10614_v58, 0.0  ;;  %v4254_v12 = vsel %vm3702_vm7, %v4253_v30, %v4249_v46  ;;  %v10674_v19 = vpop.eup %5299  ;;  %v3557_v20 = vmax.f32 %v10612_v52, 1.0 }
 0x444   : > { %v4896_v18 = vsel %vm4157_vm13, 1.0, %v12609_v26  ;;  %v4895_v24 = vsel %vm4156_vm0, 1.0, %v12609_v26  ;;  %v4285_v41 = vsel %vm3773_vm12, %v4254_v12, %v4284_v39  ;;  %v10682_v5 = vpop.eup %5301  ;;  %5311 = vrcp.f32 %v3554_v27 }
 0x445   : > { %v4262_v31 = vrot.slane %v4896_v18, %v10574_v3  ;;  %v4258_v22 = vrot.slane %v4895_v24, %v10584_v6  ;;  %v10685_v2 = vpop.eup %5303  ;;  %v3556_v56 = vmax.f32 %v10614_v58, 1.0  ;;  %5313 = vrcp.f32 %v3557_v20 }
 0x446   : > { %v10629_v1 = vpop.xlane.xlu1 %3538  ;;  %v10631_v21 = vpop.xlane.xlu0 %3535 }
 0x447   : > { %vm4159_vm5 = vcmp.gt.f32.partialorder %v10629_v1, 0.0  ;;  %vm4158_vm10 = vcmp.gt.f32.partialorder %v10631_v21, 0.0  ;;  %v4263_v14 = vsel %vm3702_vm7, %v4262_v31, %v4258_v22  ;;  %v3559_v18 = vmax.f32 %v10629_v1, 1.0 }
 0x448   : > { %v4898_v36 = vsel %vm4159_vm5, 1.0, %v12609_v26  ;;  %v4897_v0 = vsel %vm4158_vm10, 1.0, %v12609_v26  ;;  %v4286_v16 = vsel %vm3775_vm11, %v4263_v14, %v4285_v41  ;;  %v10697_v15 = vpop.eup %5305  ;;  %5315 = vrcp.f32 %v3556_v56 }
 0x449   : > { %v4271_v42 = vrot.slane %v4898_v36, %v10574_v3  ;;  %v4267_v55 = vrot.slane %v4897_v0, %v10584_v6  ;;  %v3558_v58 = vmax.f32 %v10631_v21, 1.0  ;;  %5317 = vrcp.f32 %v3559_v18 }
 0x44a   : > { %v10649_v49 = vpop.xlane.xlu1 %3544  ;;  %v10651_v32 = vpop.xlane.xlu0 %3541 }
 0x44b   : > { %vm4161_vm6 = vcmp.gt.f32.partialorder %v10649_v49, 0.0  ;;  %vm4160_vm9 = vcmp.gt.f32.partialorder %v10651_v32, 0.0  ;;  %v4272_v33 = vsel %vm3702_vm7, %v4271_v42, %v4267_v55  ;;  %v10703_v31 = vpop.eup %5307  ;;  %5319 = vrcp.f32 %v3558_v58 }
 0x44c   : > { %v4900_v34 = vsel %vm4161_vm6, 1.0, %v12609_v26  ;;  %v4899_v51 = vsel %vm4160_vm9, 1.0, %v12609_v26  ;;  %v4287_v26 = vsel %vm3777_vm14, %v4272_v33, %v4286_v16  ;;  %v3560_v21 = vmax.f32 %v10651_v32, 1.0  ;;  %v10710_v0 = vpop.eup %5309 }
 0x44d   : > { %v4280_v47 = vrot.slane %v4900_v34, %v10574_v3  ;;  %v4276_v25 = vrot.slane %v4899_v51, %v10584_v6 }
 0x44e   : > { %v3618_v40 = vpop.xlane.xlu1 %3617  ;;  %v3615_v10 = vpop.xlane.xlu0 %3614  ;;  %5321 = vrcp.f32 %v3560_v21 }
 0x44f   : > { %v4281_v44 = vsel %vm3702_vm7, %v4280_v47, %v4276_v25  ;;  %v3662_v11 = vmul.f32 %v10653_v61, %v3618_v40  ;;  %v3661_v60 = vmul.f32 %v10643_v23, %v3615_v10  ;;  %v10714_v12 = vpop.eup %5311 }
 0x450   : > { %v4288_v45 = vsel %vm3779_vm2, %v4281_v44, %v4287_v26  ;;  %v10719_v34 = vpop.eup %5313 }
 0x451   : > { %4901 = vst.msk [vmem:[%s5665_s9 + $0x18] sm:$0xff] %vm3782_vm15, %v4288_v45  ;;  %v3701_v7 = vrot.slane %v3662_v11, %v10574_v3  ;;  %v3696_v54 = vrot.slane %v3661_v60, %v10584_v6 }
 0x452   : > { %v3624_v17 = vpop.xlane.xlu1 %3623  ;;  %v3621_v63 = vpop.xlane.xlu0 %3620 }
 0x453   : > { %v3703_v43 = vsel %vm3702_vm7, %v3701_v7, %v3696_v54  ;;  %v3664_v13 = vmul.f32 %v10674_v19, %v3624_v17  ;;  %v3663_v38 = vmul.f32 %v10668_v8, %v3621_v63  ;;  %v10724_v47 = vpop.eup %5315 }
 0x454   : > { %v10730_v44 = vpop.eup %5317 }
 0x455   : > { %v3711_v35 = vrot.slane %v3664_v13, %v10574_v3  ;;  %v3707_v57 = vrot.slane %v3663_v38, %v10584_v6  ;;  %v10734_v27 = vpop.eup %5319 }
 0x456   : > { %v3630_v52 = vpop.xlane.xlu1 %3629  ;;  %v3627_v62 = vpop.xlane.xlu0 %3626 }
 0x457   : > { %v3712_v24 = vsel %vm3702_vm7, %v3711_v35, %v3707_v57  ;;  %v3666_v4 = vmul.f32 %v10682_v5, %v3630_v52  ;;  %v3665_v37 = vmul.f32 %v10685_v2, %v3627_v62 }
 0x458   : > { %v3768_v30 = vsel %vm3767_vm4, %v3712_v24, %v3703_v43  ;;  %v10742_v38 = vpop.eup %5321 }
 0x459   : > { %v3720_v46 = vrot.slane %v3666_v4, %v10574_v3  ;;  %v3716_v48 = vrot.slane %v3665_v37, %v10584_v6 }
 0x45a   : > { %v3636_v1 = vpop.xlane.xlu1 %3635  ;;  %v3633_v22 = vpop.xlane.xlu0 %3632 }
 0x45b   : > { %v3721_v50 = vsel %vm3702_vm7, %v3720_v46, %v3716_v48  ;;  %v3668_v36 = vmul.f32 %v10697_v15, %v3636_v1  ;;  %v3667_v29 = vmul.f32 %v10703_v31, %v3633_v22 }
 0x45c   : > { %v3770_v42 = vsel %vm3769_vm3, %v3721_v50, %v3768_v30 }
 0x45d   : > { %v3729_v9 = vrot.slane %v3668_v36, %v10574_v3  ;;  %v3725_v53 = vrot.slane %v3667_v29, %v10584_v6 }
 0x45e   : > { %v3642_v55 = vpop.xlane.xlu1 %3641  ;;  %v3639_v28 = vpop.xlane.xlu0 %3638 }
 0x45f   : > { %v3730_v14 = vsel %vm3702_vm7, %v3729_v9, %v3725_v53  ;;  %v3670_v39 = vmul.f32 %v10710_v0, %v3642_v55  ;;  %v3669_v33 = vmul.f32 %v10714_v12, %v3639_v28 }
 0x460   : > { %v3772_v32 = vsel %vm3771_vm1, %v3730_v14, %v3770_v42 }
 0x461   : > { %v3738_v51 = vrot.slane %v3670_v39, %v10574_v3  ;;  %v3734_v41 = vrot.slane %v3669_v33, %v10584_v6 }
 0x462   : > { %v3648_v25 = vpop.xlane.xlu1 %3647  ;;  %v3645_v59 = vpop.xlane.xlu0 %3644 }
 0x463   : > { %v3739_v16 = vsel %vm3702_vm7, %v3738_v51, %v3734_v41  ;;  %v3672_v40 = vmul.f32 %v10719_v34, %v3648_v25  ;;  %v3671_v10 = vmul.f32 %v10724_v47, %v3645_v59 }
 0x464   : > { %v3774_v26 = vsel %vm3773_vm12, %v3739_v16, %v3772_v32 }
 0x465   : > { %v3747_v11 = vrot.slane %v3672_v40, %v10574_v3  ;;  %v3743_v60 = vrot.slane %v3671_v10, %v10584_v6 }
 0x466   : > { %v3654_v45 = vpop.xlane.xlu1 %3653  ;;  %v3651_v7 = vpop.xlane.xlu0 %3650 }
 0x467   : > { %v3748_v54 = vsel %vm3702_vm7, %v3747_v11, %v3743_v60  ;;  %v3674_v20 = vmul.f32 %v10730_v44, %v3654_v45  ;;  %v3673_v17 = vmul.f32 %v10734_v27, %v3651_v7 }
 0x468   : > { %v3776_v63 = vsel %vm3775_vm11, %v3748_v54, %v3774_v26 }
 0x469   : > { %v3756_v43 = vrot.slane %v3674_v20, %v10574_v3  ;;  %v3752_v13 = vrot.slane %v3673_v17, %v10584_v6 }
 0x46a   : > { %v4373_v56 = vpop.xlane.xlu1 %4372  ;;  %v3657_v35 = vpop.xlane.xlu0 %3656 }
 0x46b   : > { %v3757_v57 = vsel %vm3702_vm7, %v3756_v43, %v3752_v13  ;;  %v10746_v52 = vmul.f32 %v10742_v38, %v3657_v35  ;;  %v4404_v58 = vmul.f32 1.442695, %v4373_v56 }
 0x46c   : > { %v10749_v62 = vsel %vm3777_vm14, %v3757_v57, %v3776_v63 }
 0x46d   : > { %5323 = vpow2.f32 %v4404_v58 }
 0x46e   : > { %v4377_v18 = vpop.xlane.xlu1 %4376  ;;  %v4375_v24 = vpop.xlane.xlu0 %4374 }
 0x46f   : > { %v4408_v30 = vmul.f32 1.442695, %v4377_v18  ;;  %v4406_v22 = vmul.f32 1.442695, %v4375_v24 }
 0x471   : > { %5325 = vpow2.f32 %v4408_v30 }
 0x472   : > { %v4381_v4 = vpop.xlane.xlu1 %4380  ;;  %v4379_v37 = vpop.xlane.xlu0 %4378 }
 0x473   : > { %v4410_v1 = vmul.f32 1.442695, %v4379_v37  ;;  %v4412_v50 = vmul.f32 1.442695, %v4381_v4 }
 0x475   : > { %5327 = vpow2.f32 %v4410_v1 }
 0x476   : > { %v4385_v46 = vpop.xlane.xlu1 %4384  ;;  %v4383_v48 = vpop.xlane.xlu0 %4382  ;;  %5329 = vpow2.f32 %v4406_v22 }
 0x477   : > { %v4414_v36 = vmul.f32 1.442695, %v4383_v48  ;;  %5331 = vpow2.f32 %v4412_v50  ;;  %v4416_v9 = vmul.f32 1.442695, %v4385_v46  ;;  %v5324_v51 = vpop.eup %5323 }
 0x478   : > { %v4436_v35 = vsub.f32 1.0, %v5324_v51 }
 0x479   : > { %5333 = vpow2.f32 %v4414_v36 }
 0x47a   : > { %v4389_v29 = vpop.xlane.xlu1 %4388  ;;  %v4387_v21 = vpop.xlane.xlu0 %4386 }
 0x47b   : > { %v4418_v42 = vmul.f32 1.442695, %v4387_v21  ;;  %v4420_v28 = vmul.f32 1.442695, %v4389_v29  ;;  %v5326_v59 = vpop.eup %5325 }
 0x47c   : > { %v4438_v17 = vsub.f32 1.0, %v5326_v59 }
 0x47d   : > { %5335 = vpow2.f32 %v4418_v42 }
 0x47e   : > { %v4393_v53 = vpop.xlane.xlu1 %4392  ;;  %v4391_v55 = vpop.xlane.xlu0 %4390  ;;  %5337 = vpow2.f32 %v4416_v9  ;;  %v4480_v1 = vrot.slane %v4438_v17, %v10584_v6  ;;  %v4471_v9 = vrot.slane %v4436_v35, %v10584_v6 }
 0x47f   : > { %v4422_v14 = vmul.f32 1.442695, %v4391_v55  ;;  %v4424_v39 = vmul.f32 1.442695, %v4393_v53  ;;  %v5328_v16 = vpop.eup %5327 }
 0x480   : > { %v5330_v40 = vpop.eup %5329  ;;  %v4439_v54 = vsub.f32 1.0, %v5328_v16 }
 0x481   : > { %5339 = vpow2.f32 %v4422_v14  ;;  %v5332_v11 = vpop.eup %5331  ;;  %v4437_v63 = vsub.f32 1.0, %v5330_v40 }
 0x482   : > { %v4397_v33 = vpop.xlane.xlu1 %4396  ;;  %v4395_v32 = vpop.xlane.xlu0 %4394  ;;  %5341 = vpow2.f32 %v4420_v28  ;;  %v4440_v4 = vsub.f32 1.0, %v5332_v11  ;;  %v4484_v37 = vrot.slane %v4439_v54, %v10574_v3 }
 0x483   : > { %v4428_v41 = vmul.f32 1.442695, %v4397_v33  ;;  %v4426_v25 = vmul.f32 1.442695, %v4395_v32  ;;  %5343 = vpow2.f32 %v4424_v39  ;;  %v5334_v7 = vpop.eup %5333  ;;  %v4475_v22 = vrot.slane %v4437_v63, %v10574_v3 }
 0x484   : > { %v4441_v57 = vsub.f32 1.0, %v5334_v7  ;;  %v4489_v14 = vrot.slane %v4440_v4, %v10584_v6  ;;  %v4485_v39 = vsel %vm3702_vm7, %v4484_v37, %v4480_v1 }
 0x485   : > { %5345 = vpow2.f32 %v4428_v41  ;;  %v4476_v16 = vsel %vm3702_vm7, %v4475_v22, %v4471_v9 }
 0x486   : > { %5347 = vpow2.f32 %v4426_v25  ;;  %v4401_v10 = vpop.xlane.xlu1 %4400  ;;  %v4399_v26 = vpop.xlane.xlu0 %4398  ;;  %v4493_v53 = vrot.slane %v4441_v57, %v10574_v3 }
 0x487   : > { %v4432_v60 = vmul.f32 1.442695, %v4401_v10  ;;  %v4430_v45 = vmul.f32 1.442695, %v4399_v26  ;;  %v5336_v20 = vpop.eup %5335 }
 0x488   : > { %v5338_v56 = vpop.eup %5337  ;;  %v4443_v58 = vsub.f32 1.0, %v5336_v20  ;;  %v4494_v7 = vsel %vm3702_vm7, %v4493_v53, %v4489_v14 }
 0x489   : > { %5349 = vpow2.f32 %v4432_v60  ;;  %v4442_v50 = vsub.f32 1.0, %v5338_v56 }
 0x48a   : > { %5351 = vpow2.f32 %v4430_v45  ;;  %v3805_v43 = vpop.xlane.xlu1 %3804  ;;  %v4403_v13 = vpop.xlane.xlu0 %4402  ;;  %v4502_v32 = vrot.slane %v4443_v58, %v10574_v3 }
 0x48b   : > { %v4434_v18 = vmul.f32 1.442695, %v4403_v13  ;;  %v5340_v24 = vpop.eup %5339  ;;  %v3851_v46 = vmul.f32 %v10643_v23, %v3805_v43  ;;  %v4498_v40 = vrot.slane %v4442_v50, %v10584_v6  ;;  %v4540_v43 = vsel %vm3767_vm4, %v4485_v39, %v4476_v16 }
 0x48c   : > { %v5342_v30 = vpop.eup %5341  ;;  %v4445_v36 = vsub.f32 1.0, %v5340_v24  ;;  %v4541_v37 = vsel %vm3769_vm3, %v4494_v7, %v4540_v43 }
 0x48d   : > { %5353 = vpow2.f32 %v4434_v18  ;;  %v5344_v48 = vpop.eup %5343  ;;  %v4444_v33 = vsub.f32 1.0, %v5342_v30  ;;  %v3886_v41 = vrot.slane %v3851_v46, %v10584_v6  ;;  %v4503_v56 = vsel %vm3702_vm7, %v4502_v32, %v4498_v40 }
 0x48e   : > { %v3811_v29 = vpop.xlane.xlu1 %3810  ;;  %v3808_v21 = vpop.xlane.xlu0 %3807  ;;  %v4446_v10 = vsub.f32 1.0, %v5344_v48  ;;  %v4511_v26 = vrot.slane %v4445_v36, %v10574_v3 }
 0x48f   : > { %v5346_v42 = vpop.eup %5345  ;;  %v3852_v55 = vmul.f32 %v10653_v61, %v3808_v21  ;;  %v3853_v25 = vmul.f32 %v10668_v8, %v3811_v29  ;;  %v4507_v13 = vrot.slane %v4444_v33, %v10584_v6  ;;  %v4542_v21 = vsel %vm3771_vm1, %v4503_v56, %v4541_v37 }
 0x490   : > { %v5348_v28 = vpop.eup %5347  ;;  %v4448_v54 = vsub.f32 1.0, %v5346_v42  ;;  %v4516_v58 = vrot.slane %v4446_v10, %v10584_v6 }
 0x491   : > { %v4447_v51 = vsub.f32 1.0, %v5348_v28  ;;  %v3890_v59 = vrot.slane %v3852_v55, %v10574_v3  ;;  %v3895_v18 = vrot.slane %v3853_v25, %v10584_v6  ;;  %v4512_v30 = vsel %vm3702_vm7, %v4511_v26, %v4507_v13 }
 0x492   : > { %v3986_v11 = vpop.xlane.xlu1 %3985  ;;  %v3814_v60 = vpop.xlane.xlu0 %3813  ;;  %v4525_v50 = vrot.slane %v4448_v54, %v10584_v6 }
 0x493   : > { %v5350_v45 = vpop.eup %5349  ;;  %v3891_v20 = vsel %vm3702_vm7, %v3890_v59, %v3886_v41  ;;  %v3854_v17 = vmul.f32 %v10674_v19, %v3814_v60  ;;  %v4520_v35 = vrot.slane %v4447_v51, %v10574_v3  ;;  %v4032_v24 = vmul.f32 %v10643_v23, %v3986_v11 }
 0x494   : > { %v5352_v63 = vpop.eup %5351  ;;  %v4450_v46 = vsub.f32 1.0, %v5350_v45  ;;  %v4543_v41 = vsel %vm3773_vm12, %v4512_v30, %v4542_v21 }
 0x495   : > { %v4449_v57 = vsub.f32 1.0, %v5352_v63  ;;  %v3899_v4 = vrot.slane %v3854_v17, %v10574_v3  ;;  %v4521_v42 = vsel %vm3702_vm7, %v4520_v35, %v4516_v58  ;;  %v4067_v55 = vrot.slane %v4032_v24, %v10584_v6 }
 0x496   : > { %v3992_v48 = vpop.xlane.xlu1 %3991  ;;  %v3989_v1 = vpop.xlane.xlu0 %3988  ;;  %v4544_v59 = vsel %vm3775_vm11, %v4521_v42, %v4543_v41 }
 0x497   : > { %v5354_v22 = vpop.eup %5353  ;;  %v4529_v36 = vrot.slane %v4449_v57, %v10574_v3  ;;  %v3900_v23 = vsel %vm3702_vm7, %v3899_v4, %v3895_v18  ;;  %v4033_v29 = vmul.f32 %v10653_v61, %v3989_v1  ;;  %v4034_v28 = vmul.f32 %v10668_v8, %v3992_v48 }
 0x498   : > { %v4451_v9 = vsub.f32 1.0, %v5354_v22  ;;  %v10789_v53 = vsel %vm3767_vm4, %v3900_v23, %v3891_v20  ;;  %v4534_v61 = vrot.slane %v4450_v46, %v10584_v6 }
 0x499   : > { %v4071_v14 = vrot.slane %v4033_v29, %v10574_v3  ;;  %v4530_v39 = vsel %vm3702_vm7, %v4529_v36, %v4525_v50  ;;  %v4076_v10 = vrot.slane %v4034_v28, %v10584_v6 }
 0x49a   : > { %v4538_v33 = vrot.slane %v4451_v9, %v10574_v3  ;;  %v3817_v32 = vpop.xlane.xlu1 %3816  ;;  %v3995_v51 = vpop.xlane.xlu0 %3994  ;;  %v4545_v40 = vsel %vm3777_vm14, %v4530_v39, %v4544_v59 }
 0x49b   : > { %v4072_v25 = vsel %vm3702_vm7, %v4071_v14, %v4067_v55  ;;  %v4035_v8 = vmul.f32 %v10674_v19, %v3995_v51  ;;  %v3855_v19 = vmul.f32 %v10685_v2, %v3817_v32 }
 0x49c   : > { %v4539_v16 = vsel %vm3702_vm7, %v4538_v33, %v4534_v61 }
 0x49d   : > { %v4080_v26 = vrot.slane %v4035_v8, %v10574_v3  ;;  %v4546_v11 = vsel %vm3779_vm2, %v4539_v16, %v4545_v40 }
 0x49e   : > { %v3998_v60 = vpop.xlane.xlu1 %3997  ;;  %v3820_v45 = vpop.xlane.xlu0 %3819  ;;  %4548 = vst.msk [vmem:[%s5669_s1] sm:$0xff] %vm3782_vm15, %v4546_v11 }
 0x49f   : > { %v4081_v7 = vsel %vm3702_vm7, %v4080_v26, %v4076_v10  ;;  %v3856_v54 = vmul.f32 %v10682_v5, %v3820_v45 }
 0x4a0   : > { %5382 = shalt.err (!%p5379_p7)
}
 0x4a1   : > { %s5383_s1 = scalar_lea.hbm %s10807_s17, 128  ;;  %s5387_s28 = scalar_lea.hbm %s10990_s4, 512 }
 0x4a2   : > { %p5384_p9 = scmp.ne.s32.totalorder %s10807_s17, %s5383_s1  ;;  %p5388_p12 = scmp.lt.u32.totalorder %s10807_s17, %s10990_s4 }
 0x4a3   : > { %p5389_p0 = scmp.lt.u32.totalorder %s5387_s28, %s5383_s1  ;;  %p5391_p2 = scmp.lt.u32.totalorder %s5383_s1, %s10807_s17 }
 0x4a4   : > { %p5385_p10 = pnand %p5384_p9, %p5589_p8 }
 0x4a5   : > { %p5390_p1 = por %p5389_p0, %p5388_p12 }
 0x4a6   : > { %p5386_p11 = pneg %p5385_p10 }
 0x4a7   : > { %p5392_p3 = por %p5391_p2, %p5390_p1 }
 0x4a9   : > { %p5393_p4 = pnand %p5392_p3, %p5386_p11 }
 0x4ab   : > { %5396 = shalt.err (!%p5393_p4)
}
 0x4ac   : > { %5121 = dma.vmem_to_hbm [thread:$0]  (%p5589_p8), %s10809_s5, 128, %s10807_s17, %s4555_s18   ;;  %v4136_v20 = vsel %vm3767_vm4, %v4081_v7, %v4072_v25  ;;  %v3904_v17 = vrot.slane %v3855_v19, %v10584_v6  ;;  %v4036_v63 = vmul.f32 %v10685_v2, %v3998_v60  ;;  %v3908_v43 = vrot.slane %v3856_v54, %v10574_v3  ;;  %v3823_v13 = vpop.xlane.xlu1 %3822  ;;  %v4001_v56 = vpop.xlane.xlu0 %4000 }
 0x4ad   : > { %v4037_v57 = vmul.f32 %v10682_v5, %v4001_v56  ;;  %v3857_v4 = vmul.f32 %v10703_v31, %v3823_v13  ;;  %v3561_v8 = vmax.f32 %v10649_v49, 1.0  ;;  %s4904_s5 = sshll.u32 %s5485_s23, 3  ;;  %s4550_s8 = scalar_lea.sflag [#allocation7], %s5610_s12 }
 0x4ae   : > { %v3909_v35 = vsel %vm3702_vm7, %v3908_v43, %v3904_v17  ;;  %v4085_v24 = vrot.slane %v4036_v63, %v10584_v6  ;;  %s4567_s23 = sadd.s32 %s5481_s22, %s4904_s5  ;;  %s4570_s22 = sshll.u32 %s5665_s9, 4  ;;  %s10928_s22 = int_to_ptr.vmem [resolvable:$true] %s4570_s22 }
 0x4af   : > { %v3956_v18 = vsel %vm3769_vm3, %v3909_v35, %v10789_v53  ;;  %v4089_v37 = vrot.slane %v4037_v57, %v10574_v3  ;;  %v3913_v1 = vrot.slane %v3857_v4, %v10584_v6  ;;  %5355 = vrcp.f32 %v3561_v8  ;;  %s4905_s17 = sshll.u32 %s4567_s23, 7  ;;  %s5397_s13 = scalar_lea.vmem %s10928_s22, 512 }
 0x4b0   : > { %v4004_v58 = vpop.xlane.xlu1 %4003  ;;  %v3826_v30 = vpop.xlane.xlu0 %3825  ;;  %s10926_s27 = scalar_lea.hbm %s10989_s3, %s4905_s17  ;;  %p5398_p5 = scmp.ne.s32.totalorder %s10928_s22, %s5397_s13 }
 0x4b1   : > { %v4090_v2 = vsel %vm3702_vm7, %v4089_v37, %v4085_v24  ;;  %v3858_v46 = vmul.f32 %v10697_v15, %v3826_v30  ;;  %v4038_v5 = vmul.f32 %v10703_v31, %v4004_v58  ;;  %s5506_s1 = smov [#allocation6]  }
 0x4b2   : > { %v4137_v48 = vsel %vm3769_vm3, %v4090_v2, %v4136_v20  ;;  %p5399_p6 = pnand %p5398_p5, %p5589_p8  ;;  %s5401_s14 = sshll.u32 %s5506_s1, 4  ;;  %s5402_s14 = int_to_ptr.vmem [resolvable:$false] %s5401_s14 }
 0x4b3   : > { %v3917_v22 = vrot.slane %v3858_v46, %v10574_v3  ;;  %v4094_v42 = vrot.slane %v4038_v5, %v10584_v6  ;;  %s5403_s16 = scalar_lea.vmem %s5402_s14, 1024  ;;  %p5404_p9 = scmp.lt.s32.totalorder %s10928_s22, %s5402_s14 }
 0x4b4   : > { %v3829_v50 = vpop.xlane.xlu1 %3828  ;;  %v4007_v36 = vpop.xlane.xlu0 %4006  ;;  %p5400_p7 = pneg %p5399_p6  ;;  %p5405_p10 = scmp.lt.s32.totalorder %s5403_s16, %s5397_s13 }
 0x4b5   : > { %v3918_v23 = vsel %vm3702_vm7, %v3917_v22, %v3913_v1  ;;  %v4039_v29 = vmul.f32 %v10697_v15, %v4007_v36  ;;  %v3859_v9 = vmul.f32 %v10714_v12, %v3829_v50  ;;  %v3761_v22 = vrot.slane %v10746_v52, %v10584_v6 }
 0x4b6   : > { %v3957_v21 = vsel %vm3771_vm1, %v3918_v23, %v3956_v18  ;;  %p5406_p11 = por %p5405_p10, %p5404_p9 }
 0x4b7   : > { %v4098_v53 = vrot.slane %v4039_v29, %v10574_v3  ;;  %v3922_v61 = vrot.slane %v3859_v9, %v10584_v6 }
 0x4b8   : > { %v4010_v55 = vpop.xlane.xlu1 %4009  ;;  %v3832_v28 = vpop.xlane.xlu0 %3831  ;;  %p5407_p12 = pnand %p5406_p11, %p5400_p7 }
 0x4b9   : > { %v4099_v31 = vsel %vm3702_vm7, %v4098_v53, %v4094_v42  ;;  %v3860_v14 = vmul.f32 %v10710_v0, %v3832_v28  ;;  %v4040_v15 = vmul.f32 %v10714_v12, %v4010_v55  ;;  %v5356_v58 = vpop.eup %5355 }
 0x4ba   : > { %v4138_v39 = vsel %vm3771_vm1, %v4099_v31, %v4137_v48 }
 0x4bb   : > { %v3926_v33 = vrot.slane %v3860_v14, %v10574_v3  ;;  %v4103_v16 = vrot.slane %v4040_v15, %v10584_v6 }
 0x4bc   : > { %v3835_v32 = vpop.xlane.xlu1 %3834  ;;  %v4013_v51 = vpop.xlane.xlu0 %4012 }
 0x4bd   : > { %v3927_v41 = vsel %vm3702_vm7, %v3926_v33, %v3922_v61  ;;  %v4041_v25 = vmul.f32 %v10710_v0, %v4013_v51  ;;  %v3861_v40 = vmul.f32 %v10724_v47, %v3835_v32 }
 0x4be   : > { %v3958_v59 = vsel %vm3773_vm12, %v3927_v41, %v3957_v21 }
 0x4bf   : > { %v4107_v10 = vrot.slane %v4041_v25, %v10574_v3  ;;  %v3931_v0 = vrot.slane %v3861_v40, %v10584_v6 }
 0x4c0   : > { %v4016_v19 = vpop.xlane.xlu1 %4015  ;;  %v3838_v12 = vpop.xlane.xlu0 %3837 }
 0x4c1   : > { %v4108_v26 = vsel %vm3702_vm7, %v4107_v10, %v4103_v16  ;;  %v3862_v11 = vmul.f32 %v10719_v34, %v3838_v12  ;;  %v4042_v49 = vmul.f32 %v10724_v47, %v4016_v19 }
 0x4c2   : > { %v4139_v60 = vsel %vm3773_vm12, %v4108_v26, %v4138_v39 }
 0x4c3   : > { %v3935_v45 = vrot.slane %v3862_v11, %v10574_v3  ;;  %v4112_v43 = vrot.slane %v4042_v49, %v10584_v6 }
 0x4c4   : > { %v3841_v7 = vpop.xlane.xlu1 %3840  ;;  %v4019_v54 = vpop.xlane.xlu0 %4018 }
 0x4c5   : > { %v3936_v20 = vsel %vm3702_vm7, %v3935_v45, %v3931_v0  ;;  %v4043_v17 = vmul.f32 %v10719_v34, %v4019_v54  ;;  %v3863_v13 = vmul.f32 %v10734_v27, %v3841_v7 }
 0x4c6   : > { %v3959_v63 = vsel %vm3775_vm11, %v3936_v20, %v3958_v59 }
 0x4c7   : > { %v4116_v56 = vrot.slane %v4043_v17, %v10574_v3  ;;  %v3940_v4 = vrot.slane %v3863_v13, %v10584_v6 }
 0x4c8   : > { %v4022_v35 = vpop.xlane.xlu1 %4021  ;;  %v3844_v57 = vpop.xlane.xlu0 %3843 }
 0x4c9   : > { %v4117_v47 = vsel %vm3702_vm7, %v4116_v56, %v4112_v43  ;;  %v3864_v18 = vmul.f32 %v10730_v44, %v3844_v57  ;;  %v4044_v34 = vmul.f32 %v10734_v27, %v4022_v35 }
 0x4ca   : > { %v4140_v24 = vsel %vm3775_vm11, %v4117_v47, %v4139_v60 }
 0x4cb   : > { %v3944_v37 = vrot.slane %v3864_v18, %v10574_v3  ;;  %v4121_v27 = vrot.slane %v4044_v34, %v10584_v6 }
 0x4cc   : > { %v3660_v30 = vpop.xlane.xlu1 %3659  ;;  %v4025_v2 = vpop.xlane.xlu0 %4024 }
 0x4cd   : > { %v3945_v46 = vsel %vm3702_vm7, %v3944_v37, %v3940_v4  ;;  %v3676_v48 = vmul.f32 %v5356_v58, %v3660_v30  ;;  %v4045_v1 = vmul.f32 %v10730_v44, %v4025_v2 }
 0x4ce   : > { %v3960_v5 = vsel %vm3777_vm14, %v3945_v46, %v3959_v63 }
 0x4cf   : > { %v3765_v50 = vrot.slane %v3676_v48, %v10574_v3  ;;  %v4125_v36 = vrot.slane %v4045_v1, %v10574_v3 }
 0x4d0   : > { %v3850_v23 = vpop.xlane.xlu1 %3849  ;;  %v3847_v29 = vpop.xlane.xlu0 %3846 }
 0x4d1   : > { %v3766_v21 = vsel %vm3702_vm7, %v3765_v50, %v3761_v22  ;;  %v4126_v44 = vsel %vm3702_vm7, %v4125_v36, %v4121_v27  ;;  %v3866_v42 = vmul.f32 %v5356_v58, %v3850_v23  ;;  %v3865_v9 = vmul.f32 %v10742_v38, %v3847_v29 }
 0x4d2   : > { %v3780_v52 = vsel %vm3779_vm2, %v3766_v21, %v10749_v62  ;;  %v4141_v53 = vsel %vm3777_vm14, %v4126_v44, %v4140_v24 }
 0x4d3   : > { %3783 = vst.msk [vmem:[%s5665_s9] sm:$0xff] %vm3782_vm15, %v3780_v52  ;;  %v3953_v55 = vrot.slane %v3866_v42, %v10574_v3  ;;  %v3949_v28 = vrot.slane %v3865_v9, %v10584_v6 }
 0x4d4   : > { %v4031_v31 = vpop.xlane.xlu1 %4030  ;;  %v4028_v14 = vpop.xlane.xlu0 %4027 }
 0x4d5   : > { %v3954_v39 = vsel %vm3702_vm7, %v3953_v55, %v3949_v28  ;;  %v4047_v61 = vmul.f32 %v5356_v58, %v4031_v31  ;;  %v4046_v15 = vmul.f32 %v10742_v38, %v4028_v14 }
 0x4d6   : > { %v3961_v62 = vsel %vm3779_vm2, %v3954_v39, %v3960_v5 }
 0x4d7   : > { %4882 = vst.msk [vmem:[%s5665_s9 + $0x8] sm:$0xff] %vm3782_vm15, %v3961_v62  ;;  %v4134_v33 = vrot.slane %v4047_v61, %v10574_v3  ;;  %v4130_v32 = vrot.slane %v4046_v15, %v10584_v6 }
 0x4d9   : > { %v4135_v38 = vsel %vm3702_vm7, %v4134_v33, %v4130_v32 }
 0x4da   : > { %v4142_v51 = vsel %vm3779_vm2, %v4135_v38, %v4141_v53 }
 0x4db   : > { %4884 = vst.msk [vmem:[%s5665_s9 + $0x10] sm:$0xff] %vm3782_vm15, %v4142_v51 }
 0x4dc   : > { %5410 = shalt.err (!%p5407_p12)
}
 0x4dd   : > { %s5411_s9 = scalar_lea.hbm %s10926_s27, 512  ;;  %s5415_s15 = scalar_lea.hbm %s10989_s3, 2048 }
 0x4de   : > { %p5412_p0 = scmp.ne.s32.totalorder %s10926_s27, %s5411_s9  ;;  %p5416_p3 = scmp.lt.u32.totalorder %s10926_s27, %s10989_s3 }
 0x4df   : > { %p5417_p4 = scmp.lt.u32.totalorder %s5415_s15, %s5411_s9  ;;  %p5419_p6 = scmp.lt.u32.totalorder %s5411_s9, %s10926_s27 }
 0x4e0   : > { %p5413_p1 = pnand %p5412_p0, %p5589_p8 }
 0x4e1   : > { %p5418_p5 = por %p5417_p4, %p5416_p3 }
 0x4e2   : > { %p5414_p2 = pneg %p5413_p1 }
 0x4e3   : > { %p5420_p7 = por %p5419_p6, %p5418_p5 }
 0x4e5   : > { %p5421_p9 = pnand %p5420_p7, %p5414_p2 }
 0x4e7   : > { %5424 = shalt.err (!%p5421_p9)
}
 0x4e8   : > { %s5507_s17 = smov 128   ;;  %s5508_s18 = smov 256  }
 0x4e9   : > { %s5509_s19 = smov 8  }
 0x4ea   : > { %5120 = dma.vmem_to_hbm [thread:$0]  (%p5589_p8), %s10928_s22, 512, %s10926_s27, %s4550_s8, %s5507_s17, %s5508_s18, %s5509_s19  }
 0x4eb PF: > { %p5131_p10 = scmp.ge.s32.totalorder %s5497_s26, 2  ;;  %s4601_s13 = sand.u32 1, %s5469_s20  }
 0x4ec   : > { %s4602_s1 = scalar_lea.sflag [#allocation7], %s4601_s13 }
 0x4ed   : > { %p5125_p11 = pnand %p5131_p10, %p5598_p13 }
 0x4ef   : > { %5460 = dma.done.wait (!%p5125_p11), %s4602_s1, 512  }
 0x4f0   : > { %5462 = vsyncadd (!%p5125_p11), %s4602_s1, 4294966784  ;;  %s4611_s14 = scalar_lea.sflag [#allocation9], %s4601_s13 }
 0x4f1   : > { %5464 = dma.done.wait (!%p5125_p11), %s4611_s14, 128  }
 0x4f2   : > { %5466 = vsyncadd (!%p5125_p11), %s4611_s14, 4294967168  ;;  %s27_s26 = sadd.s32 1, %s5497_s26   ;;  %s12672_s20 = smov %s5473_s0 }
 0x4f3   : > { %p24_p12 = scmp.ge.s32.totalorder %s27_s26, 6   ;;  %s12673_s0 = smov %s5477_s21 }
 0x4f4   : > { %s12674_s21 = smov %s5607_s11  ;;  %s12675_s22 = smov %s5489_s24 }
 0x4f5   : > { %s12676_s23 = smov %s5493_s25  ;;  %s12677_s24 = smov %s12680_s29 }
 0x4f6   : > { %s12678_s25 = smov %s12684_s30  ;;  %26 = sbr.rel (!%p24_p12) target bundleno = 22 (0x16), region = 111 }
 0x4fd   :  { %4616 = vsyncpa [#allocation7], 1 }
 0x4fe   :  { %4618 = vsyncpa [#allocation7 + $0x1], 1 }
 0x4ff   :  { %4619 = vsyncpa [#allocation9], 1 }
 0x500   :  { %4621 = vsyncpa [#allocation9 + $0x1], 1 }

</bundles_post_ra>
